<compile_context>
chip_gen: v5e
topology: v5e:2x2
jax: 0.10.0
libtpu: 0.0.40
codegen_flags: <defaults>
</compile_context>

<pallas_src>
import functools

import jax
import jax.numpy as jnp
from jax.experimental import pallas as pl
from jax.experimental.pallas import tpu as pltpu

# ConcatSquashLinear stack: 3 -> 128 -> 256 -> 512 -> 256 -> 128 -> 3
LAYER_DIMS = [(3, 128), (128, 256), (256, 512), (512, 256), (256, 128), (128, 3)]
NUM_LAYERS = len(LAYER_DIMS)
NEG_SLOPE = 0.01  # torch.nn.functional.leaky_relu default negative_slope


def _default_act_dtype():
    """bf16 elementwise only on parts with a bf16 VPU (v6e / v7x); else f32."""
    try:
        kind = jax.devices()[0].device_kind.lower()
    except Exception:
        return jnp.float32
    if ("v6" in kind) or ("v7" in kind) or ("7x" in kind):
        return jnp.bfloat16
    return jnp.float32  # v5e and older: no bf16 VPU -> keep elementwise f32


def _pointwise_net_kernel(residual, act_dtype, *refs):
    """refs = (x_ref, [w, offset] * NUM_LAYERS, out_ref)  (transposed dataflow).

    x_ref  : (1, D, TN)        f32 tile of points, lane-dense along TN
    w      : (1, d_out, d_in)  per-batch gate-folded transposed weight
                               (f32 for layer 1, bf16 for layers 2..6)
    offset : (1, d_out, 1)     f32 per-batch  b*gate + ctx@Wb  (column vector)
    out    : (1, D, TN)        f32
    """
    x_ref = refs[0]
    o_ref = refs[-1]
    p_refs = refs[1:-1]

    x = x_ref[0]                                   # (D, TN) f32
    h = x
    for i in range(NUM_LAYERS):
        w_ref = p_refs[2 * i]
        off_ref = p_refs[2 * i + 1]
        # Layer 1 stays f32 (K=3, ~0.1% of FLOPs; keeps raw coords exact).
        lhs = h if i == 0 else h.astype(jnp.bfloat16)
        acc = jnp.dot(w_ref[0], lhs, preferred_element_type=jnp.float32)  # (d_out, TN)
        off = off_ref[0]                            # (d_out, 1) f32, lane-broadcast
        if i < NUM_LAYERS - 1:
            h = acc.astype(act_dtype) + off.astype(act_dtype)
            h = jnp.maximum(h, NEG_SLOPE * h)       # leaky_relu: mul + max
        else:
            h = acc + off                           # final layer add in f32
    if residual:
        h = h + x                                   # lane-dense residual, f32
    o_ref[0] = h.astype(o_ref.dtype)


def pointwise_net_forward(x, ctx_emb, params, *, residual=True, tile_n=2048,
                          act_dtype=None):
    """x: (B, N, D) f32, ctx_emb: (B, F) f32, params: list of (w, b, wg, bg, wb)."""
    B, N, D = x.shape
    if act_dtype is None:
        act_dtype = _default_act_dtype()
    tile_n = min(tile_n, N)
    assert N % tile_n == 0, "N must be divisible by tile_n"
    assert tile_n % 128 == 0, "tile_n must be a multiple of 128 (lane-dense)"
    # NOTE: on v5e (16 MiB default scoped VMEM) keep tile_n <= 1024 or raise
    # vmem_limit_bytes; on v7x keep tile_n <= 2048 (64 MiB physical VMEM).

    # Lane-dense transposed point layout: last dim = N (multiple of 128).
    x_t = jnp.transpose(x, (0, 2, 1))               # (B, D, N)

    flat_inputs = [x_t]
    in_specs = [pl.BlockSpec((1, D, tile_n), lambda b, n: (b, 0, n))]

    # Hoisted per-batch ConcatSquash hyper-network (once per call, in XLA):
    #   gate_i   = sigmoid(ctx @ Wg_i + bg_i)           (B, d_out)
    #   offset_i = b_i * gate_i + ctx @ Wb_i            (B, d_out)
    #   Wt_i[b]  = (W_i * gate_i[b])^T                  (B, d_out, d_in)
    # so in-kernel each layer is exactly  h <- Wt_i[b] @ h + offset_i[b],
    # algebraically identical to ((h @ W + b) * gate + hyper_bias).
    for li, (w, bias, wg, bg, wb) in enumerate(params):
        d_in, d_out = w.shape
        gate = jax.nn.sigmoid(ctx_emb @ wg + bg)                   # (B, d_out)
        offset = bias * gate + ctx_emb @ wb                        # (B, d_out)
        w_fold_t = jnp.einsum('io,bo->boi', w, gate)               # (B, d_out, d_in)
        w_dtype = jnp.float32 if li == 0 else jnp.bfloat16
        flat_inputs += [w_fold_t.astype(w_dtype),
                        offset[:, :, None].astype(jnp.float32)]    # (B, d_out, 1)
        in_specs += [
            pl.BlockSpec((1, d_out, d_in), lambda b, n: (b, 0, 0)),  # per-batch weight
            pl.BlockSpec((1, d_out, 1), lambda b, n: (b, 0, 0)),     # per-batch offset
        ]

    out_spec = pl.BlockSpec((1, D, tile_n), lambda b, n: (b, 0, n))
    kernel = functools.partial(_pointwise_net_kernel, residual, act_dtype)

    out_t = pl.pallas_call(
        kernel,
        out_shape=jax.ShapeDtypeStruct((B, D, N), x.dtype),
        grid_spec=pltpu.PrefetchScalarGridSpec(
            num_scalar_prefetch=0,
            grid=(B, N // tile_n),
            in_specs=in_specs,
            out_specs=out_spec,
        ),
        compiler_params=pltpu.CompilerParams(
            dimension_semantics=("parallel", "parallel")),
    )(*flat_inputs)
    return jnp.transpose(out_t, (0, 2, 1))          # back to (B, N, D)


def init_params(key, ctx_dim):
    """Deterministic synthetic parameters (PyTorch-like fan-in scaling)."""
    params = []
    keys = jax.random.split(key, NUM_LAYERS)
    for k, (din, dout) in zip(keys, LAYER_DIMS):
        k1, k2, k3, k4, k5 = jax.random.split(k, 5)
        w = jax.random.normal(k1, (din, dout), jnp.float32) / jnp.sqrt(din)
        b = jax.random.normal(k2, (1, dout), jnp.float32) * 0.01
        wg = jax.random.normal(k3, (ctx_dim, dout), jnp.float32) / jnp.sqrt(ctx_dim)
        bg = jax.random.normal(k4, (1, dout), jnp.float32) * 0.01
        wb = jax.random.normal(k5, (ctx_dim, dout), jnp.float32) / jnp.sqrt(ctx_dim)
        params.append((w, b, wg, bg, wb))
    return params


def build_ctx_emb(beta, context, class_index, angles,
                  cls_table, ang_table_x, ang_table_y, ang_table_z):
    """Glue: time/class/angle embeddings + concat (matches the torch ordering)."""
    time_emb = jnp.stack([beta, jnp.sin(beta), jnp.cos(beta)], axis=-1)   # (B, 3)
    cls_emb = cls_table[class_index]                                      # (B, cls_dim)
    ang_emb = jnp.concatenate(
        [ang_table_x[angles[:, 0]],
         ang_table_y[angles[:, 1]],
         ang_table_z[angles[:, 2]]], axis=-1)                             # (B, 3*ang_dim)
    return jnp.concatenate([time_emb, context, cls_emb, ang_emb], axis=-1)


def ref_forward(x, ctx_emb, params, residual=True):
    """Pure-JAX float32 reference of the torch forward for validation."""
    ctx = ctx_emb[:, None, :]
    h = x
    for i, (w, b, wg, bg, wb) in enumerate(params):
        gate = jax.nn.sigmoid(ctx @ wg + bg)
        hbias = ctx @ wb
        h = (h @ w + b) * gate + hbias
        if i < len(params) - 1:
            h = jnp.where(h > 0, h, NEG_SLOPE * h)
    return h + x if residual else h


if __name__ == "__main__":
    # Small, module-consistent shapes.
    B, N, D = 2, 512, 3          # point clouds: (B, N, point_dim=3)
    context_dim = 16             # latent_dim
    num_classes = 4
    cls_emb_dim = 8
    num_disc_angles = 12
    ang_emb_dim = 4
    residual = True
    F = D + context_dim + cls_emb_dim + 3 * ang_emb_dim   # combined_embedding_dim = 39

    key = jax.random.PRNGKey(0)
    (k_x, k_beta, k_ctx, k_cls, k_ang,
     k_cls_t, k_ax, k_ay, k_az, k_params) = jax.random.split(key, 10)

    x = jax.random.normal(k_x, (B, N, D), jnp.float32)
    beta = jax.random.uniform(k_beta, (B,), jnp.float32)
    context = jax.random.normal(k_ctx, (B, context_dim), jnp.float32)
    class_index = jax.random.randint(k_cls, (B,), 0, num_classes)
    angles = jax.random.randint(k_ang, (B, 3), 0, num_disc_angles)

    # Embedding tables (Embedding(num_classes, cls_emb_dim), Embedding(num_disc_angles, ang_emb_dim) x3)
    cls_table = jax.random.normal(k_cls_t, (num_classes, cls_emb_dim), jnp.float32)
    ang_table_x = jax.random.normal(k_ax, (num_disc_angles, ang_emb_dim), jnp.float32)
    ang_table_y = jax.random.normal(k_ay, (num_disc_angles, ang_emb_dim), jnp.float32)
    ang_table_z = jax.random.normal(k_az, (num_disc_angles, ang_emb_dim), jnp.float32)

    params = init_params(k_params, F)

    ctx_emb = build_ctx_emb(beta, context, class_index, angles,
                            cls_table, ang_table_x, ang_table_y, ang_table_z)

    # Default tile_n=2048 is clipped to N=512 here -> grid (2, 1): two parallel
    # grid steps, enough to feed both v7x TensorCores even at demo size.
    out = pointwise_net_forward(x, ctx_emb, params, residual=residual)
    out = jax.block_until_ready(out)

    ref = ref_forward(x, ctx_emb, params, residual=residual)
    assert out.shape == (B, N, D)
    # bf16 weights/activations in hidden layers (layer 1 + final add are f32);
    # accumulation is always f32.
    assert jnp.allclose(out, ref, atol=3e-2, rtol=3e-2), "kernel/reference mismatch"

    print("KERNEL_OK")
</pallas_src>

<mosaic_0001>
module attributes {stable_mosaic.version = 11 : i64} {
  func.func @_pointwise_net_kernel(%arg0: i32, %arg1: i32, %arg2: memref<1x3x512xf32, #tpu.memory_space<vmem>>, %arg3: memref<1x128x3xf32, #tpu.memory_space<vmem>>, %arg4: memref<1x128x1xf32, #tpu.memory_space<vmem>>, %arg5: memref<1x256x128xbf16, #tpu.memory_space<vmem>>, %arg6: memref<1x256x1xf32, #tpu.memory_space<vmem>>, %arg7: memref<1x512x256xbf16, #tpu.memory_space<vmem>>, %arg8: memref<1x512x1xf32, #tpu.memory_space<vmem>>, %arg9: memref<1x256x512xbf16, #tpu.memory_space<vmem>>, %arg10: memref<1x256x1xf32, #tpu.memory_space<vmem>>, %arg11: memref<1x128x256xbf16, #tpu.memory_space<vmem>>, %arg12: memref<1x128x1xf32, #tpu.memory_space<vmem>>, %arg13: memref<1x3x128xbf16, #tpu.memory_space<vmem>>, %arg14: memref<1x3x1xf32, #tpu.memory_space<vmem>>, %arg15: memref<1x3x512xf32, #tpu.memory_space<vmem>>) attributes {dimension_semantics = [#tpu.dimension_semantics<parallel>, #tpu.dimension_semantics<parallel>], iteration_bounds = array<i64: 2, 1>, scalar_prefetch = 0 : i64, scratch_operands = 0 : i64, tpu.core_type = #tpu.core_type<tc>, window_params = [{transform_indices = @transform_0, window_bounds = array<i64: 1, 3, 512>}, {transform_indices = @transform_1, window_bounds = array<i64: 1, 128, 3>}, {transform_indices = @transform_2, window_bounds = array<i64: 1, 128, 1>}, {transform_indices = @transform_3, window_bounds = array<i64: 1, 256, 128>}, {transform_indices = @transform_4, window_bounds = array<i64: 1, 256, 1>}, {transform_indices = @transform_5, window_bounds = array<i64: 1, 512, 256>}, {transform_indices = @transform_6, window_bounds = array<i64: 1, 512, 1>}, {transform_indices = @transform_7, window_bounds = array<i64: 1, 256, 512>}, {transform_indices = @transform_8, window_bounds = array<i64: 1, 256, 1>}, {transform_indices = @transform_9, window_bounds = array<i64: 1, 128, 256>}, {transform_indices = @transform_10, window_bounds = array<i64: 1, 128, 1>}, {transform_indices = @transform_11, window_bounds = array<i64: 1, 3, 128>}, {transform_indices = @transform_12, window_bounds = array<i64: 1, 3, 1>}, {transform_indices = @transform_13, window_bounds = array<i64: 1, 3, 512>}]} {
    %c0 = arith.constant 0 : index
    %c0_0 = arith.constant 0 : index
    %c0_1 = arith.constant 0 : index
    %0 = vector.load %arg2[%c0, %c0_0, %c0_1] : memref<1x3x512xf32, #tpu.memory_space<vmem>>, vector<1x3x512xf32>
    %1 = vector.shape_cast %0 : vector<1x3x512xf32> to vector<3x512xf32>
    %c0_2 = arith.constant 0 : index
    %c0_3 = arith.constant 0 : index
    %c0_4 = arith.constant 0 : index
    %2 = vector.load %arg3[%c0_2, %c0_3, %c0_4] : memref<1x128x3xf32, #tpu.memory_space<vmem>>, vector<1x128x3xf32>
    %3 = vector.shape_cast %2 : vector<1x128x3xf32> to vector<128x3xf32>
    %cst = arith.constant dense<0.000000e+00> : vector<128x512xf32>
    %4 = tpu.matmul %3, %1, %cst {dimension_numbers = #tpu.dot_dimension_numbers<[1], [0], [0], [1], [0, 0, 1, 1], [], []>} : vector<128x3xf32>, vector<3x512xf32>, vector<128x512xf32> -> vector<128x512xf32>
    %c0_5 = arith.constant 0 : index
    %c0_6 = arith.constant 0 : index
    %c0_7 = arith.constant 0 : index
    %5 = vector.load %arg4[%c0_5, %c0_6, %c0_7] : memref<1x128x1xf32, #tpu.memory_space<vmem>>, vector<1x128x1xf32>
    %6 = vector.shape_cast %5 : vector<1x128x1xf32> to vector<128x1xf32>
    %7 = vector.broadcast %6 : vector<128x1xf32> to vector<128x512xf32>
    %8 = arith.addf %4, %7 : vector<128x512xf32>
    %cst_8 = arith.constant 0.00999999977 : f32
    %9 = vector.broadcast %cst_8 : f32 to vector<128x512xf32>
    %10 = arith.mulf %9, %8 : vector<128x512xf32>
    %11 = arith.maximumf %8, %10 : vector<128x512xf32>
    %12 = arith.truncf %11 : vector<128x512xf32> to vector<128x512xbf16>
    %c0_9 = arith.constant 0 : index
    %c0_10 = arith.constant 0 : index
    %c0_11 = arith.constant 0 : index
    %13 = vector.load %arg5[%c0_9, %c0_10, %c0_11] : memref<1x256x128xbf16, #tpu.memory_space<vmem>>, vector<1x256x128xbf16>
    %14 = vector.shape_cast %13 : vector<1x256x128xbf16> to vector<256x128xbf16>
    %cst_12 = arith.constant dense<0.000000e+00> : vector<256x512xf32>
    %15 = tpu.matmul %14, %12, %cst_12 {dimension_numbers = #tpu.dot_dimension_numbers<[1], [0], [0], [1], [0, 0, 1, 1], [], []>} : vector<256x128xbf16>, vector<128x512xbf16>, vector<256x512xf32> -> vector<256x512xf32>
    %c0_13 = arith.constant 0 : index
    %c0_14 = arith.constant 0 : index
    %c0_15 = arith.constant 0 : index
    %16 = vector.load %arg6[%c0_13, %c0_14, %c0_15] : memref<1x256x1xf32, #tpu.memory_space<vmem>>, vector<1x256x1xf32>
    %17 = vector.shape_cast %16 : vector<1x256x1xf32> to vector<256x1xf32>
    %18 = vector.broadcast %17 : vector<256x1xf32> to vector<256x512xf32>
    %19 = arith.addf %15, %18 : vector<256x512xf32>
    %cst_16 = arith.constant 0.00999999977 : f32
    %20 = vector.broadcast %cst_16 : f32 to vector<256x512xf32>
    %21 = arith.mulf %20, %19 : vector<256x512xf32>
    %22 = arith.maximumf %19, %21 : vector<256x512xf32>
    %23 = arith.truncf %22 : vector<256x512xf32> to vector<256x512xbf16>
    %c0_17 = arith.constant 0 : index
    %c0_18 = arith.constant 0 : index
    %c0_19 = arith.constant 0 : index
    %24 = vector.load %arg7[%c0_17, %c0_18, %c0_19] : memref<1x512x256xbf16, #tpu.memory_space<vmem>>, vector<1x512x256xbf16>
    %25 = vector.shape_cast %24 : vector<1x512x256xbf16> to vector<512x256xbf16>
    %cst_20 = arith.constant dense<0.000000e+00> : vector<512x512xf32>
    %26 = tpu.matmul %25, %23, %cst_20 {dimension_numbers = #tpu.dot_dimension_numbers<[1], [0], [0], [1], [0, 0, 1, 1], [], []>} : vector<512x256xbf16>, vector<256x512xbf16>, vector<512x512xf32> -> vector<512x512xf32>
    %c0_21 = arith.constant 0 : index
    %c0_22 = arith.constant 0 : index
    %c0_23 = arith.constant 0 : index
    %27 = vector.load %arg8[%c0_21, %c0_22, %c0_23] : memref<1x512x1xf32, #tpu.memory_space<vmem>>, vector<1x512x1xf32>
    %28 = vector.shape_cast %27 : vector<1x512x1xf32> to vector<512x1xf32>
    %29 = vector.broadcast %28 : vector<512x1xf32> to vector<512x512xf32>
    %30 = arith.addf %26, %29 : vector<512x512xf32>
    %cst_24 = arith.constant 0.00999999977 : f32
    %31 = vector.broadcast %cst_24 : f32 to vector<512x512xf32>
    %32 = arith.mulf %31, %30 : vector<512x512xf32>
    %33 = arith.maximumf %30, %32 : vector<512x512xf32>
    %34 = arith.truncf %33 : vector<512x512xf32> to vector<512x512xbf16>
    %c0_25 = arith.constant 0 : index
    %c0_26 = arith.constant 0 : index
    %c0_27 = arith.constant 0 : index
    %35 = vector.load %arg9[%c0_25, %c0_26, %c0_27] : memref<1x256x512xbf16, #tpu.memory_space<vmem>>, vector<1x256x512xbf16>
    %36 = vector.shape_cast %35 : vector<1x256x512xbf16> to vector<256x512xbf16>
    %cst_28 = arith.constant dense<0.000000e+00> : vector<256x512xf32>
    %37 = tpu.matmul %36, %34, %cst_28 {dimension_numbers = #tpu.dot_dimension_numbers<[1], [0], [0], [1], [0, 0, 1, 1], [], []>} : vector<256x512xbf16>, vector<512x512xbf16>, vector<256x512xf32> -> vector<256x512xf32>
    %c0_29 = arith.constant 0 : index
    %c0_30 = arith.constant 0 : index
    %c0_31 = arith.constant 0 : index
    %38 = vector.load %arg10[%c0_29, %c0_30, %c0_31] : memref<1x256x1xf32, #tpu.memory_space<vmem>>, vector<1x256x1xf32>
    %39 = vector.shape_cast %38 : vector<1x256x1xf32> to vector<256x1xf32>
    %40 = vector.broadcast %39 : vector<256x1xf32> to vector<256x512xf32>
    %41 = arith.addf %37, %40 : vector<256x512xf32>
    %cst_32 = arith.constant 0.00999999977 : f32
    %42 = vector.broadcast %cst_32 : f32 to vector<256x512xf32>
    %43 = arith.mulf %42, %41 : vector<256x512xf32>
    %44 = arith.maximumf %41, %43 : vector<256x512xf32>
    %45 = arith.truncf %44 : vector<256x512xf32> to vector<256x512xbf16>
    %c0_33 = arith.constant 0 : index
    %c0_34 = arith.constant 0 : index
    %c0_35 = arith.constant 0 : index
    %46 = vector.load %arg11[%c0_33, %c0_34, %c0_35] : memref<1x128x256xbf16, #tpu.memory_space<vmem>>, vector<1x128x256xbf16>
    %47 = vector.shape_cast %46 : vector<1x128x256xbf16> to vector<128x256xbf16>
    %cst_36 = arith.constant dense<0.000000e+00> : vector<128x512xf32>
    %48 = tpu.matmul %47, %45, %cst_36 {dimension_numbers = #tpu.dot_dimension_numbers<[1], [0], [0], [1], [0, 0, 1, 1], [], []>} : vector<128x256xbf16>, vector<256x512xbf16>, vector<128x512xf32> -> vector<128x512xf32>
    %c0_37 = arith.constant 0 : index
    %c0_38 = arith.constant 0 : index
    %c0_39 = arith.constant 0 : index
    %49 = vector.load %arg12[%c0_37, %c0_38, %c0_39] : memref<1x128x1xf32, #tpu.memory_space<vmem>>, vector<1x128x1xf32>
    %50 = vector.shape_cast %49 : vector<1x128x1xf32> to vector<128x1xf32>
    %51 = vector.broadcast %50 : vector<128x1xf32> to vector<128x512xf32>
    %52 = arith.addf %48, %51 : vector<128x512xf32>
    %cst_40 = arith.constant 0.00999999977 : f32
    %53 = vector.broadcast %cst_40 : f32 to vector<128x512xf32>
    %54 = arith.mulf %53, %52 : vector<128x512xf32>
    %55 = arith.maximumf %52, %54 : vector<128x512xf32>
    %56 = arith.truncf %55 : vector<128x512xf32> to vector<128x512xbf16>
    %c0_41 = arith.constant 0 : index
    %c0_42 = arith.constant 0 : index
    %c0_43 = arith.constant 0 : index
    %57 = vector.load %arg13[%c0_41, %c0_42, %c0_43] : memref<1x3x128xbf16, #tpu.memory_space<vmem>>, vector<1x3x128xbf16>
    %58 = vector.shape_cast %57 : vector<1x3x128xbf16> to vector<3x128xbf16>
    %cst_44 = arith.constant dense<0.000000e+00> : vector<3x512xf32>
    %59 = tpu.matmul %58, %56, %cst_44 {dimension_numbers = #tpu.dot_dimension_numbers<[1], [0], [0], [1], [0, 0, 1, 1], [], []>} : vector<3x128xbf16>, vector<128x512xbf16>, vector<3x512xf32> -> vector<3x512xf32>
    %c0_45 = arith.constant 0 : index
    %c0_46 = arith.constant 0 : index
    %c0_47 = arith.constant 0 : index
    %60 = vector.load %arg14[%c0_45, %c0_46, %c0_47] : memref<1x3x1xf32, #tpu.memory_space<vmem>>, vector<1x3x1xf32>
    %61 = vector.shape_cast %60 : vector<1x3x1xf32> to vector<3x1xf32>
    %62 = vector.broadcast %61 : vector<3x1xf32> to vector<3x512xf32>
    %63 = arith.addf %59, %62 : vector<3x512xf32>
    %64 = arith.addf %63, %1 : vector<3x512xf32>
    %c0_48 = arith.constant 0 : index
    %c0_49 = arith.constant 0 : index
    %c0_50 = arith.constant 0 : index
    %65 = vector.load %arg15[%c0_48, %c0_49, %c0_50] : memref<1x3x512xf32, #tpu.memory_space<vmem>>, vector<1x3x512xf32>
    %66 = vector.shape_cast %65 : vector<1x3x512xf32> to vector<3x512xf32>
    %67 = vector.shape_cast %64 : vector<3x512xf32> to vector<1x3x512xf32>
    tpu.vector_store %arg15[%c0_48, %c0_49, %c0_50], %67 {strides = array<i32>} : memref<1x3x512xf32, #tpu.memory_space<vmem>>, vector<1x3x512xf32>,
    return
  }
  func.func @transform_0(%arg0: i32, %arg1: i32) -> (i32, i32, i32) {
    %c0_i32 = arith.constant 0 : i32
    %c0_i32_0 = arith.constant 0 : i32
    return %arg0, %c0_i32, %arg1 : i32, i32, i32
  }
  func.func @transform_1(%arg0: i32, %arg1: i32) -> (i32, i32, i32) {
    %c0_i32 = arith.constant 0 : i32
    %c0_i32_0 = arith.constant 0 : i32
    %c0_i32_1 = arith.constant 0 : i32
    return %arg0, %c0_i32, %c0_i32_0 : i32, i32, i32
  }
  func.func @transform_2(%arg0: i32, %arg1: i32) -> (i32, i32, i32) {
    %c0_i32 = arith.constant 0 : i32
    %c0_i32_0 = arith.constant 0 : i32
    %c0_i32_1 = arith.constant 0 : i32
    return %arg0, %c0_i32, %c0_i32_0 : i32, i32, i32
  }
  func.func @transform_3(%arg0: i32, %arg1: i32) -> (i32, i32, i32) {
    %c0_i32 = arith.constant 0 : i32
    %c0_i32_0 = arith.constant 0 : i32
    %c0_i32_1 = arith.constant 0 : i32
    return %arg0, %c0_i32, %c0_i32_0 : i32, i32, i32
  }
  func.func @transform_4(%arg0: i32, %arg1: i32) -> (i32, i32, i32) {
    %c0_i32 = arith.constant 0 : i32
    %c0_i32_0 = arith.constant 0 : i32
    %c0_i32_1 = arith.constant 0 : i32
    return %arg0, %c0_i32, %c0_i32_0 : i32, i32, i32
  }
  func.func @transform_5(%arg0: i32, %arg1: i32) -> (i32, i32, i32) {
    %c0_i32 = arith.constant 0 : i32
    %c0_i32_0 = arith.constant 0 : i32
    %c0_i32_1 = arith.constant 0 : i32
    return %arg0, %c0_i32, %c0_i32_0 : i32, i32, i32
  }
  func.func @transform_6(%arg0: i32, %arg1: i32) -> (i32, i32, i32) {
    %c0_i32 = arith.constant 0 : i32
    %c0_i32_0 = arith.constant 0 : i32
    %c0_i32_1 = arith.constant 0 : i32
    return %arg0, %c0_i32, %c0_i32_0 : i32, i32, i32
  }
  func.func @transform_7(%arg0: i32, %arg1: i32) -> (i32, i32, i32) {
    %c0_i32 = arith.constant 0 : i32
    %c0_i32_0 = arith.constant 0 : i32
    %c0_i32_1 = arith.constant 0 : i32
    return %arg0, %c0_i32, %c0_i32_0 : i32, i32, i32
  }
  func.func @transform_8(%arg0: i32, %arg1: i32) -> (i32, i32, i32) {
    %c0_i32 = arith.constant 0 : i32
    %c0_i32_0 = arith.constant 0 : i32
    %c0_i32_1 = arith.constant 0 : i32
    return %arg0, %c0_i32, %c0_i32_0 : i32, i32, i32
  }
  func.func @transform_9(%arg0: i32, %arg1: i32) -> (i32, i32, i32) {
    %c0_i32 = arith.constant 0 : i32
    %c0_i32_0 = arith.constant 0 : i32
    %c0_i32_1 = arith.constant 0 : i32
    return %arg0, %c0_i32, %c0_i32_0 : i32, i32, i32
  }
  func.func @transform_10(%arg0: i32, %arg1: i32) -> (i32, i32, i32) {
    %c0_i32 = arith.constant 0 : i32
    %c0_i32_0 = arith.constant 0 : i32
    %c0_i32_1 = arith.constant 0 : i32
    return %arg0, %c0_i32, %c0_i32_0 : i32, i32, i32
  }
  func.func @transform_11(%arg0: i32, %arg1: i32) -> (i32, i32, i32) {
    %c0_i32 = arith.constant 0 : i32
    %c0_i32_0 = arith.constant 0 : i32
    %c0_i32_1 = arith.constant 0 : i32
    return %arg0, %c0_i32, %c0_i32_0 : i32, i32, i32
  }
  func.func @transform_12(%arg0: i32, %arg1: i32) -> (i32, i32, i32) {
    %c0_i32 = arith.constant 0 : i32
    %c0_i32_0 = arith.constant 0 : i32
    %c0_i32_1 = arith.constant 0 : i32
    return %arg0, %c0_i32, %c0_i32_0 : i32, i32, i32
  }
  func.func @transform_13(%arg0: i32, %arg1: i32) -> (i32, i32, i32) {
    %c0_i32 = arith.constant 0 : i32
    %c0_i32_0 = arith.constant 0 : i32
    return %arg0, %c0_i32, %arg1 : i32, i32, i32
  }
}

</mosaic_0001>

<bundles_post_ra>
// kernel: tpu_custom_call.1
= control target key start
LH: loop header
LB: loop body
LE: loop exit
PB: predicated region body
PF: predicated region fallthrough
CT: control target
= control target key end

     0   :  { %s15170_s0 = inlined_call_operand.vmem [shape: f32[2,3,512], index: 0, kind: input, shape index: {}]   ;;  %s15171_s1 = inlined_call_operand.vmem [shape: f32[2,128,3], index: 1, kind: input, shape index: {}]   ;;  %s15172_s2 = inlined_call_operand.vmem [shape: f32[2,128,1], index: 2, kind: input, shape index: {}]   ;;  %s15173_s3 = inlined_call_operand.vmem [shape: bf16[2,256,128], index: 3, kind: input, shape index: {}]   ;;  %s15174_s4 = inlined_call_operand.vmem [shape: f32[2,256,1], index: 4, kind: input, shape index: {}]   ;;  %s15175_s5 = inlined_call_operand.vmem [shape: bf16[2,512,256], index: 5, kind: input, shape index: {}]   ;;  %s15176_s6 = inlined_call_operand.vmem [shape: f32[2,512,1], index: 6, kind: input, shape index: {}]   ;;  %s15177_s7 = inlined_call_operand.hbm [shape: bf16[2,256,512], index: 7, kind: input, shape index: {}]   ;;  %s15178_s8 = inlined_call_operand.vmem [shape: f32[2,256,1], index: 8, kind: input, shape index: {}]   ;;  %s15179_s9 = inlined_call_operand.vmem [shape: bf16[2,128,256], index: 9, kind: input, shape index: {}]   ;;  %s15180_s10 = inlined_call_operand.vmem [shape: f32[2,128,1], index: 10, kind: input, shape index: {}]   ;;  %s15181_s11 = inlined_call_operand.vmem [shape: bf16[2,3,128], index: 11, kind: input, shape index: {}]   ;;  %s15182_s12 = inlined_call_operand.vmem [shape: f32[2,3,1], index: 12, kind: input, shape index: {}]   ;;  %s15183_s13 = inlined_call_operand.vmem [shape: f32[2,3,512], index: 13, kind: output, shape index: {}]  }
   0x1   :  { %15686 = sst [smem:[#allocation140_spill]] %s15179_s9 }
   0x2   :  { %15687 = sst [smem:[#allocation141_spill]] %s15181_s11 }
   0x3   :  { %15688 = sst [smem:[#allocation142_spill]] %s15183_s13 }
   0x4   :  { %18 = vsyncpa [#allocation3], 0 }
   0x5   :  { %20 = vsyncpa [#allocation3 + $0x1], 0  ;;  %s9617_s25 = smov 0   ;;  %s9619_s26 = smov 0  }
   0x6   :  { %s9621_s27 = smov 0   ;;  %s9623_s28 = smov 0  }
   0x7   :  { %s9625_s29 = smov 0   ;;  %s9627_s30 = smov 0  }
   0x8 LB: > { %15689 = sst [smem:[#allocation5_spill]] %s9538_s29  ;;  %s8486_s14 = sadd.s32 4294967295, %s9542_s30   ;;  %s9542_s30 = sphi %s9627_s30, %s26_s30   ;;  %s9538_s29 = sphi %s9625_s29, %s16776_s29   ;;  %s9534_s28 = sphi %s9623_s28, %s16775_s28   ;;  %s9530_s27 = sphi %s9621_s27, %s16779_s27   ;;  %s9526_s26 = sphi %s9619_s26, %s16778_s26   ;;  %s9522_s25 = sphi %s9617_s25, %s16777_s25  }
   0x9   : > { %s38_s15 = sadd.s32 1, %s9538_s29  ;;  %s229_s16 = sadd.s32 1, %s9530_s27 }
   0xa   : > { %p40_p0 = scmp.ge.s32.totalorder %s38_s15, 2  ;;  %p236_p1 = scmp.ne.s32.totalorder %s9530_s27, %s9526_s26 }
   0xb   : > { %p237_p2 = scmp.eq.s32.totalorder %s9542_s30, 0  ;;  %p242_p4 = scmp.ne.s32.totalorder %s9526_s26, %s9522_s25 }
   0xc   : > { %s16781_s15 = smov (%p40_p0, %s38_s15), 0  ;;  %p243_p5 = scmp.eq.s32.totalorder %s8486_s14, 0 }
   0xd   : > { %15690 = sst [smem:[#allocation6_spill]] %s16781_s15  ;;  %p9653_p3 = por %p237_p2, %p236_p1 }
   0xe   : > { %s226_s18 = ssub.s32 %s9538_s29, %s16781_s15  ;;  %p9660_p7 = por %p243_p5, %p242_p4 }
   0xf   : > { %p227_p6 = scmp.eq.s32.totalorder %s226_s18, 0  ;;  %p9407_p8 = scmp.lt.s32.totalorder %s9542_s30, 2 }
  0x10   : > { %s485_s21 = sand.u32 1, %s9530_s27   ;;  %s9229_s22 = sshll.u32 %s9538_s29, 9 }
  0x11   : > { %s9666_s20 = scalar_select %p227_p6, %s9530_s27, %s229_s16  }
  0x12   : > { %s8490_s23 = sshll.u32 %s485_s21, 9  ;;  %s494_s25 = scalar_lea.hbm %s15177_s7, %s9229_s22 }
  0x13   : > { %s495_s11 = sshll.u32 %s494_s25, 4  ;;  %s489_s15 = scalar_lea.vmem [#allocation2], %s8490_s23  ;;  %s496_s11 = int_to_ptr.hbm [resolvable:$true] %s495_s11 }
  0x14   : > { %s497_s9 = sshll.u32 %s489_s15, 4  ;;  %p9404_p9 = pnand %p9407_p8, %p9653_p3  ;;  %s498_s9 = int_to_ptr.vmem [resolvable:$true] %s497_s9 }
  0x15   : > { %p8493_p10 = scmp.ge.s32.totalorder %s9542_s30, 1  ;;  %p543_p11 = scmp.lt.s32.totalorder %s9542_s30, 3 }
  0x16   : > { %s486_s14 = scalar_lea.sflag [#allocation3], %s485_s21  ;;  %s9544_s18 = smov 256  }
  0x17   : > { %s9545_s16 = smov 16   ;;  %p544_p12 = pnand %p8493_p10, %p543_p11 }
  0x18   : > { %9406 = dma.hbm_to_vmem [thread:$0]  (!%p9404_p9), %s496_s11, 8192, %s498_s9, %s486_s14, %s9544_s18, %s9544_s18, %s9545_s16  }
  0x19   : > { %547 = sbr.rel (%p544_p12) target bundleno = 3407 (0xd4f), region = 72 }
  0x1e   : > { %s549_s29 = sand.u32 1, %s9526_s26  }
  0x1f   : > { %s8494_s13 = sshll.u32 %s549_s29, 9  ;;  %s550_s22 = scalar_lea.sflag [#allocation3], %s549_s29 }
  0x20   : > { %s9678_s24 = scalar_lea.vmem [#allocation2], %s8494_s13 }
  0x21   : > { %9517 = dma.done.wait (%p9660_p7), %s550_s22, 8192  }
  0x22   : > { %9519 = vsyncadd (%p9660_p7), %s550_s22, 4294959104  ;;  %p664_p13 = scmp.lt.s32.totalorder %s9534_s28, 1  ;;  %v9546_v0 = vmov 0   ;;  %vm908_vm0 = vcmask 1042432   ;;  %vm859_vm1 = vcmask 23552   ;;  %vm8237_vm2 = vcmask 1043456  }
  0x23   : > { %9461 = vset.pattern.permute.xlu2 %v9546_v0  ;;  %9460 = vset.pattern.permute.xlu1 %v9546_v0 }
  0x24   : > { %9459 = vset.pattern.permute.xlu0 %v9546_v0  ;;  %s16783_s28 = smov (!%p664_p13, %s9534_s28), 1 }
  0x25   : > { %s9689_s9 = sshll.u32 %s16783_s28, 7  ;;  %s9230_s17 = sshll.u32 %s16783_s28, 4 }
  0x26   : > { %s9695_s15 = scalar_lea.vmem %s15172_s2, %s9689_s9  ;;  %s671_s23 = scalar_lea.vmem %s15170_s0, %s9230_s17 }
  0x27   : > { %v768_v1 = vld [vmem:[%s9695_s15 + $0x70] sm:$0xff]  ;;  %v766_v2 = vld [vmem:[%s9695_s15 + $0x60] sm:$0xff]  ;;  %v737_v5 = vld [vmem:[%s671_s23 + $0x8] sm:$0x77]  ;;  %s9713_s18 = scalar_lea.vmem %s15171_s1, %s9689_s9  ;;  %s9234_s16 = sshll.u32 %s16783_s28, 8 }
  0x28   : > { %v764_v3 = vld [vmem:[%s9695_s15 + $0x50] sm:$0xff]  ;;  %842 = vperm.xlu0 %9459, %v768_v1   ;;  %832 = vperm.xlu1 %9460, %v766_v2   ;;  %v736_v4 = vld [vmem:[%s671_s23] sm:$0x77]  ;;  %v769_v6 = vld [vmem:[%s9695_s15 + $0x78] sm:$0xff]  ;;  %854 = vst [vmem:[#allocation1 + $0x10] ss:$2 sm:$0xff] %v737_v5  ;;  %s9745_s11 = scalar_lea.vmem %s15174_s4, %s9234_s16  ;;  %s10444_s14 = scalar_lea.vmem %s15178_s8, %s9234_s16 }
  0x29   : > { %822 = vperm.xlu2 %9461, %v764_v3   ;;  %852 = vst [vmem:[#allocation1] ss:$2 sm:$0xff] %v736_v4  ;;  %v767_v7 = vld [vmem:[%s9695_s15 + $0x68] sm:$0xff]  ;;  %v765_v8 = vld [vmem:[%s9695_s15 + $0x58] sm:$0xff]  ;;  %v738_v9 = vld [vmem:[%s9713_s18] sm:$0xff]  ;;  %s9235_s29 = sshll.u32 %s16783_s28, 9  ;;  %s10459_s13 = scalar_lea.vmem %s15173_s3, %s9689_s9 }
  0x2a   : > { %v763_v14 = vld [vmem:[%s9695_s15 + $0x48] sm:$0xff]  ;;  %v762_v15 = vld [vmem:[%s9695_s15 + $0x40] sm:$0xff]  ;;  %v760_v16 = vld [vmem:[%s9695_s15 + $0x30] sm:$0xff]  ;;  %s9841_s21 = scalar_lea.vmem %s15176_s6, %s9235_s29  ;;  %s8516_s19 = sshll.u32 %s16783_s28, 2 }
  0x2b   : > { %v739_v17 = vld [vmem:[%s9713_s18 + $0x8] sm:$0xff]  ;;  %v761_v18 = vld [vmem:[%s9695_s15 + $0x38] sm:$0xff]  ;;  %v758_v19 = vld [vmem:[%s9695_s15 + $0x20] sm:$0xff]  ;;  %s725_s25 = scalar_lea.vmem %s15182_s12, %s8516_s19  ;;  %s10733_s16 = scalar_lea.vmem %s15175_s5, %s9235_s29 }
  0x2c   : > { %v759_v20 = vld [vmem:[%s9695_s15 + $0x28] sm:$0xff]  ;;  %v740_v21 = vld [vmem:[%s9713_s18 + $0x10] sm:$0xff]  ;;  %v757_v22 = vld [vmem:[%s9695_s15 + $0x18] sm:$0xff]  ;;  %s16766_s19 = sld [smem:[#allocation141_spill]] }
  0x2d   : > { %v756_v23 = vld [vmem:[%s9695_s15 + $0x10] sm:$0xff]  ;;  %v754_v24 = vld [vmem:[%s9695_s15] sm:$0xff]  ;;  %v741_v25 = vld [vmem:[%s9713_s18 + $0x18] sm:$0xff] }
  0x2e   : > { %v1383_v26 = vld [vmem:[%s9745_s11 + $0x70] sm:$0xff]  ;;  %v755_v27 = vld [vmem:[%s9695_s15 + $0x8] sm:$0xff]  ;;  %v1384_v28 = vld [vmem:[%s9745_s11 + $0x78] sm:$0xff]  ;;  %s10529_s15 = scalar_lea.vmem %s15180_s10, %s9689_s9 }
  0x2f   : > { %v857_v12 = vld.sshfl [vmem:[#allocation1 + $0x10] sm:$0xff pattern:$0x75316420]  ;;  %v858_v13 = vld.sshfl [vmem:[#allocation1 + $0x18] sm:$0xff pattern:$0x75316420] }
  0x30   : > { %847 = vperm.xlu0 %9459, %v769_v6   ;;  %837 = vperm.xlu1 %9460, %v767_v7   ;;  %v855_v10 = vld.sshfl [vmem:[#allocation1] sm:$0xff pattern:$0x75316420]  ;;  %v856_v11 = vld.sshfl [vmem:[#allocation1 + $0x8] sm:$0xff pattern:$0x75316420] }
  0x31   : > { %827 = vperm.xlu2 %9461, %v765_v8   ;;  %8519 = vmatpush.msk.msra.mxu0 %vm908_vm0, %v855_v10  ;;  %8216 = vst [vmem:[#allocation1] ss:$2 sm:$0xff] %v736_v4  ;;  %v742_v29 = vld [vmem:[%s9713_s18 + $0x20] sm:$0xff]  ;;  %v1400_v30 = vld [vmem:[%s9745_s11 + $0xf8] sm:$0xff]  ;;  %v1399_v31 = vld [vmem:[%s9745_s11 + $0xf0] sm:$0xff] }
  0x32   : > { %8536 = vmatpush.msk.msra.mxu1 %vm908_vm0, %v856_v11  ;;  %8553 = vmatpush.msk.msra.mxu2 %vm908_vm0, %v857_v12  ;;  %8218 = vst [vmem:[#allocation1 + $0x10] ss:$2 sm:$0xff] %v737_v5  ;;  %v1381_v32 = vld [vmem:[%s9745_s11 + $0x60] sm:$0xff]  ;;  %v743_v33 = vld [vmem:[%s9713_s18 + $0x28] sm:$0xff]  ;;  %v744_v37 = vld [vmem:[%s9713_s18 + $0x30] sm:$0xff] }
  0x33   : > { %8520 = vmatmul.msk.f32.vlgmr.msra.gmra.mxu0 %vm859_vm1, %v738_v9  ;;  %8570 = vmatpush.msk.msra.mxu3 %vm908_vm0, %v858_v13  ;;  %v1397_v34 = vld [vmem:[%s9745_s11 + $0xe0] sm:$0xff]  ;;  %v1382_v35 = vld [vmem:[%s9745_s11 + $0x68] sm:$0xff]  ;;  %v1380_v38 = vld [vmem:[%s9745_s11 + $0x58] sm:$0xff] }
  0x34   : > { %8537 = vmatmul.msk.f32.vlgmr.msra.gmra.mxu1 %vm859_vm1, %v738_v9  ;;  %8554 = vmatmul.msk.f32.vlgmr.msra.gmra.mxu2 %vm859_vm1, %v738_v9  ;;  %v1398_v36 = vld [vmem:[%s9745_s11 + $0xe8] sm:$0xff]  ;;  %v1379_v39 = vld [vmem:[%s9745_s11 + $0x50] sm:$0xff]  ;;  %v745_v41 = vld [vmem:[%s9713_s18 + $0x38] sm:$0xff] }
  0x35   : > { %8571 = vmatmul.msk.f32.vlgmr.msra.gmra.mxu3 %vm859_vm1, %v738_v9  ;;  %v1395_v40 = vld [vmem:[%s9745_s11 + $0xd0] sm:$0xff]  ;;  %v1377_v42 = vld [vmem:[%s9745_s11 + $0x40] sm:$0xff]  ;;  %v1396_v43 = vld [vmem:[%s9745_s11 + $0xd8] sm:$0xff] }
  0x36   : > { %v1378_v44 = vld [vmem:[%s9745_s11 + $0x48] sm:$0xff]  ;;  %v746_v45 = vld [vmem:[%s9713_s18 + $0x40] sm:$0xff]  ;;  %v1375_v48 = vld [vmem:[%s9745_s11 + $0x30] sm:$0xff] }
  0x37   : > { %v1394_v46 = vld [vmem:[%s9745_s11 + $0xc8] sm:$0xff]  ;;  %v1393_v47 = vld [vmem:[%s9745_s11 + $0xc0] sm:$0xff]  ;;  %v1391_v50 = vld [vmem:[%s9745_s11 + $0xb0] sm:$0xff] }
  0x38   : > { %817 = vperm.xlu1 %9460, %v763_v14   ;;  %812 = vperm.xlu0 %9459, %v762_v15   ;;  %v747_v49 = vld [vmem:[%s9713_s18 + $0x48] sm:$0xff]  ;;  %v1376_v51 = vld [vmem:[%s9745_s11 + $0x38] sm:$0xff]  ;;  %v748_v53 = vld [vmem:[%s9713_s18 + $0x50] sm:$0xff] }
  0x39   : > { %802 = vperm.xlu2 %9461, %v760_v16   ;;  %v1392_v52 = vld [vmem:[%s9745_s11 + $0xb8] sm:$0xff]  ;;  %v1374_v54 = vld [vmem:[%s9745_s11 + $0x28] sm:$0xff]  ;;  %v1373_v55 = vld [vmem:[%s9745_s11 + $0x20] sm:$0xff] }
  0x3a   : > { %v1389_v56 = vld [vmem:[%s9745_s11 + $0xa0] sm:$0xff]  ;;  %v749_v57 = vld [vmem:[%s9713_s18 + $0x58] sm:$0xff]  ;;  %v1371_v58 = vld [vmem:[%s9745_s11 + $0x10] sm:$0xff] }
  0x3b   : > { %8521 = vmatmul.msk.f32.gmra.mxu0 %vm859_vm1, %v739_v17  ;;  %v1390_v59 = vld [vmem:[%s9745_s11 + $0xa8] sm:$0xff]  ;;  %v1372_v60 = vld [vmem:[%s9745_s11 + $0x18] sm:$0xff]  ;;  %v750_v61 = vld [vmem:[%s9713_s18 + $0x60] sm:$0xff] }
  0x3c   : > { %8538 = vmatmul.msk.f32.gmra.mxu1 %vm859_vm1, %v739_v17  ;;  %8555 = vmatmul.msk.f32.gmra.mxu2 %vm859_vm1, %v739_v17  ;;  %v1388_v62 = vld [vmem:[%s9745_s11 + $0x98] sm:$0xff]  ;;  %v1387_v63 = vld [vmem:[%s9745_s11 + $0x90] sm:$0xff]  ;;  %v1369_v0 = vld [vmem:[%s9745_s11] sm:$0xff] }
  0x3d   : > { %8572 = vmatmul.msk.f32.gmra.mxu3 %vm859_vm1, %v739_v17  ;;  %v751_v1 = vld [vmem:[%s9713_s18 + $0x68] sm:$0xff]  ;;  %v1385_v2 = vld [vmem:[%s9745_s11 + $0x80] sm:$0xff]  ;;  %v752_v5 = vld [vmem:[%s9713_s18 + $0x70] sm:$0xff] }
  0x3e   : > { %v1370_v3 = vld [vmem:[%s9745_s11 + $0x8] sm:$0xff]  ;;  %v2444_v6 = vld [vmem:[%s9841_s21 + $0x178] sm:$0xff]  ;;  %v2443_v7 = vld [vmem:[%s9841_s21 + $0x170] sm:$0xff] }
  0x3f   : > { %v1386_v4 = vld [vmem:[%s9745_s11 + $0x88] sm:$0xff]  ;;  %v2411_v8 = vld [vmem:[%s9841_s21 + $0x70] sm:$0xff]  ;;  %v753_v9 = vld [vmem:[%s9713_s18 + $0x78] sm:$0xff] }
  0x40   : > { %807 = vperm.xlu0 %9459, %v761_v18   ;;  %792 = vperm.xlu1 %9460, %v758_v19   ;;  %v2459_v10 = vld [vmem:[%s9841_s21 + $0x1f0] sm:$0xff]  ;;  %v2412_v11 = vld [vmem:[%s9841_s21 + $0x78] sm:$0xff]  ;;  %v2441_v17 = vld [vmem:[%s9841_s21 + $0x160] sm:$0xff] }
  0x41   : > { %797 = vperm.xlu2 %9461, %v759_v20   ;;  %v2460_v12 = vld [vmem:[%s9841_s21 + $0x1f8] sm:$0xff]  ;;  %v2427_v16 = vld [vmem:[%s9841_s21 + $0xf0] sm:$0xff] }
  0x42   : > { %v2428_v15 = vld [vmem:[%s9841_s21 + $0xf8] sm:$0xff] }
  0x43   : > { %8522 = vmatmul.msk.f32.gmra.mxu0 %vm859_vm1, %v740_v21 }
  0x44   : > { %8539 = vmatmul.msk.f32.gmra.mxu1 %vm859_vm1, %v740_v21  ;;  %8556 = vmatmul.msk.f32.gmra.mxu2 %vm859_vm1, %v740_v21 }
  0x45   : > { %8573 = vmatmul.msk.f32.gmra.mxu3 %vm859_vm1, %v740_v21 }
  0x48   : > { %787 = vperm.xlu1 %9460, %v757_v22   ;;  %782 = vperm.xlu0 %9459, %v756_v23   ;;  %v2409_v22 = vld [vmem:[%s9841_s21 + $0x60] sm:$0xff]  ;;  %v2442_v23 = vld [vmem:[%s9841_s21 + $0x168] sm:$0xff] }
  0x49   : > { %772 = vperm.xlu2 %9461, %v754_v24   ;;  %v2410_v24 = vld [vmem:[%s9841_s21 + $0x68] sm:$0xff] }
  0x4b   : > { %8523 = vmatmul.msk.f32.gmra.mxu0 %vm859_vm1, %v741_v25 }
  0x4c   : > { %8540 = vmatmul.msk.f32.gmra.mxu1 %vm859_vm1, %v741_v25  ;;  %8557 = vmatmul.msk.f32.gmra.mxu2 %vm859_vm1, %v741_v25 }
  0x4d   : > { %8574 = vmatmul.msk.f32.gmra.mxu3 %vm859_vm1, %v741_v25 }
  0x50   : > { %1473 = vperm.xlu1 %9460, %v1383_v26   ;;  %777 = vperm.xlu0 %9459, %v755_v27  }
  0x51   : > { %1478 = vperm.xlu2 %9461, %v1384_v28  }
  0x53   : > { %8524 = vmatmul.msk.f32.gmra.mxu0 %vm859_vm1, %v742_v29 }
  0x54   : > { %8541 = vmatmul.msk.f32.gmra.mxu1 %vm859_vm1, %v742_v29  ;;  %8558 = vmatmul.msk.f32.gmra.mxu2 %vm859_vm1, %v742_v29 }
  0x55   : > { %8575 = vmatmul.msk.f32.gmra.mxu3 %vm859_vm1, %v742_v29  ;;  %v2458_v29 = vld [vmem:[%s9841_s21 + $0x1e8] sm:$0xff] }
  0x58   : > { %1558 = vperm.xlu1 %9460, %v1400_v30   ;;  %1553 = vperm.xlu0 %9459, %v1399_v31   ;;  %v2457_v30 = vld [vmem:[%s9841_s21 + $0x1e0] sm:$0xff] }
  0x59   : > { %1463 = vperm.xlu2 %9461, %v1381_v32   ;;  %v2425_v31 = vld [vmem:[%s9841_s21 + $0xe0] sm:$0xff] }
  0x5b   : > { %8525 = vmatmul.msk.f32.gmra.mxu0 %vm859_vm1, %v743_v33 }
  0x5c   : > { %8542 = vmatmul.msk.f32.gmra.mxu1 %vm859_vm1, %v743_v33  ;;  %8559 = vmatmul.msk.f32.gmra.mxu2 %vm859_vm1, %v743_v33 }
  0x5d   : > { %8576 = vmatmul.msk.f32.gmra.mxu3 %vm859_vm1, %v743_v33 }
  0x60   : > { %1543 = vperm.xlu1 %9460, %v1397_v34   ;;  %1468 = vperm.xlu0 %9459, %v1382_v35  }
  0x61   : > { %1548 = vperm.xlu2 %9461, %v1398_v36   ;;  %v2439_v36 = vld [vmem:[%s9841_s21 + $0x150] sm:$0xff] }
  0x63   : > { %8526 = vmatmul.msk.f32.gmra.mxu0 %vm859_vm1, %v744_v37 }
  0x64   : > { %8543 = vmatmul.msk.f32.gmra.mxu1 %vm859_vm1, %v744_v37  ;;  %8560 = vmatmul.msk.f32.gmra.mxu2 %vm859_vm1, %v744_v37 }
  0x65   : > { %8577 = vmatmul.msk.f32.gmra.mxu3 %vm859_vm1, %v744_v37  ;;  %v2426_v37 = vld [vmem:[%s9841_s21 + $0xe8] sm:$0xff] }
  0x68   : > { %1458 = vperm.xlu1 %9460, %v1380_v38   ;;  %1453 = vperm.xlu0 %9459, %v1379_v39   ;;  %v2440_v38 = vld [vmem:[%s9841_s21 + $0x158] sm:$0xff] }
  0x69   : > { %1533 = vperm.xlu2 %9461, %v1395_v40  }
  0x6b   : > { %8527 = vmatmul.msk.f32.gmra.mxu0 %vm859_vm1, %v745_v41 }
  0x6c   : > { %8544 = vmatmul.msk.f32.gmra.mxu1 %vm859_vm1, %v745_v41  ;;  %8561 = vmatmul.msk.f32.gmra.mxu2 %vm859_vm1, %v745_v41 }
  0x6d   : > { %8578 = vmatmul.msk.f32.gmra.mxu3 %vm859_vm1, %v745_v41 }
  0x70   : > { %1443 = vperm.xlu1 %9460, %v1377_v42   ;;  %1538 = vperm.xlu0 %9459, %v1396_v43   ;;  %v2408_v43 = vld [vmem:[%s9841_s21 + $0x58] sm:$0xff] }
  0x71   : > { %1448 = vperm.xlu2 %9461, %v1378_v44   ;;  %v2407_v44 = vld [vmem:[%s9841_s21 + $0x50] sm:$0xff] }
  0x73   : > { %8528 = vmatmul.msk.f32.gmra.mxu0 %vm859_vm1, %v746_v45 }
  0x74   : > { %8545 = vmatmul.msk.f32.gmra.mxu1 %vm859_vm1, %v746_v45  ;;  %8562 = vmatmul.msk.f32.gmra.mxu2 %vm859_vm1, %v746_v45 }
  0x75   : > { %8579 = vmatmul.msk.f32.gmra.mxu3 %vm859_vm1, %v746_v45  ;;  %v2455_v45 = vld [vmem:[%s9841_s21 + $0x1d0] sm:$0xff] }
  0x78   : > { %1528 = vperm.xlu1 %9460, %v1394_v46   ;;  %1523 = vperm.xlu0 %9459, %v1393_v47  }
  0x79   : > { %1433 = vperm.xlu2 %9461, %v1375_v48  }
  0x7b   : > { %8529 = vmatmul.msk.f32.gmra.mxu0 %vm859_vm1, %v747_v49 }
  0x7c   : > { %8546 = vmatmul.msk.f32.gmra.mxu1 %vm859_vm1, %v747_v49  ;;  %8563 = vmatmul.msk.f32.gmra.mxu2 %vm859_vm1, %v747_v49 }
  0x7d   : > { %8580 = vmatmul.msk.f32.gmra.mxu3 %vm859_vm1, %v747_v49 }
  0x80   : > { %1513 = vperm.xlu1 %9460, %v1391_v50   ;;  %1438 = vperm.xlu0 %9459, %v1376_v51   ;;  %v2423_v50 = vld [vmem:[%s9841_s21 + $0xd0] sm:$0xff]  ;;  %v2456_v51 = vld [vmem:[%s9841_s21 + $0x1d8] sm:$0xff] }
  0x81   : > { %1518 = vperm.xlu2 %9461, %v1392_v52   ;;  %v2424_v52 = vld [vmem:[%s9841_s21 + $0xd8] sm:$0xff] }
  0x83   : > { %8530 = vmatmul.msk.f32.gmra.mxu0 %vm859_vm1, %v748_v53 }
  0x84   : > { %8547 = vmatmul.msk.f32.gmra.mxu1 %vm859_vm1, %v748_v53  ;;  %8564 = vmatmul.msk.f32.gmra.mxu2 %vm859_vm1, %v748_v53 }
  0x85   : > { %8581 = vmatmul.msk.f32.gmra.mxu3 %vm859_vm1, %v748_v53 }
  0x88   : > { %1428 = vperm.xlu1 %9460, %v1374_v54   ;;  %1423 = vperm.xlu0 %9459, %v1373_v55  }
  0x89   : > { %1503 = vperm.xlu2 %9461, %v1389_v56  }
  0x8b   : > { %8531 = vmatmul.msk.f32.gmra.mxu0 %vm859_vm1, %v749_v57 }
  0x8c   : > { %8548 = vmatmul.msk.f32.gmra.mxu1 %vm859_vm1, %v749_v57  ;;  %8565 = vmatmul.msk.f32.gmra.mxu2 %vm859_vm1, %v749_v57 }
  0x8d   : > { %8582 = vmatmul.msk.f32.gmra.mxu3 %vm859_vm1, %v749_v57 }
  0x90   : > { %1413 = vperm.xlu1 %9460, %v1371_v58   ;;  %1508 = vperm.xlu0 %9459, %v1390_v59   ;;  %v2438_v58 = vld [vmem:[%s9841_s21 + $0x148] sm:$0xff]  ;;  %v2437_v59 = vld [vmem:[%s9841_s21 + $0x140] sm:$0xff] }
  0x91   : > { %1418 = vperm.xlu2 %9461, %v1372_v60   ;;  %v2405_v60 = vld [vmem:[%s9841_s21 + $0x40] sm:$0xff] }
  0x93   : > { %8532 = vmatmul.msk.f32.gmra.mxu0 %vm859_vm1, %v750_v61 }
  0x94   : > { %8549 = vmatmul.msk.f32.gmra.mxu1 %vm859_vm1, %v750_v61  ;;  %8566 = vmatmul.msk.f32.gmra.mxu2 %vm859_vm1, %v750_v61 }
  0x95   : > { %8583 = vmatmul.msk.f32.gmra.mxu3 %vm859_vm1, %v750_v61 }
  0x98   : > { %1498 = vperm.xlu1 %9460, %v1388_v62   ;;  %1493 = vperm.xlu0 %9459, %v1387_v63  }
  0x99   : > { %1403 = vperm.xlu2 %9461, %v1369_v0  }
  0x9a   : > { %v9921_v53 = vpop.permute.xlu0 %842 }
  0x9b   : > { %8533 = vmatmul.msk.f32.gmra.mxu0 %vm859_vm1, %v751_v1 }
  0x9c   : > { %8550 = vmatmul.msk.f32.gmra.mxu1 %vm859_vm1, %v751_v1  ;;  %8567 = vmatmul.msk.f32.gmra.mxu2 %vm859_vm1, %v751_v1 }
  0x9d   : > { %8584 = vmatmul.msk.f32.gmra.mxu3 %vm859_vm1, %v751_v1 }
  0xa0   : > { %1483 = vperm.xlu1 %9460, %v1385_v2   ;;  %1408 = vperm.xlu0 %9459, %v1370_v3   ;;  %v9944_v2 = vpop.permute.xlu2 %822  ;;  %v2453_v3 = vld [vmem:[%s9841_s21 + $0x1c0] sm:$0xff] }
  0xa1   : > { %1488 = vperm.xlu2 %9461, %v1386_v4   ;;  %v2406_v4 = vld [vmem:[%s9841_s21 + $0x48] sm:$0xff] }
  0xa2   : > { %v9934_v61 = vpop.permute.xlu0 %847 }
  0xa3   : > { %8534 = vmatmul.msk.f32.gmra.mxu0 %vm859_vm1, %v752_v5  ;;  %15695 = vst [vmem:[#allocation9_spill] sm:$0xff] %v9934_v61 }
  0xa4   : > { %8551 = vmatmul.msk.f32.gmra.mxu1 %vm859_vm1, %v752_v5  ;;  %8568 = vmatmul.msk.f32.gmra.mxu2 %vm859_vm1, %v752_v5 }
  0xa5   : > { %8585 = vmatmul.msk.f32.gmra.mxu3 %vm859_vm1, %v752_v5  ;;  %v2454_v5 = vld [vmem:[%s9841_s21 + $0x1c8] sm:$0xff] }
  0xa8   : > { %2698 = vperm.xlu1 %9460, %v2444_v6   ;;  %2693 = vperm.xlu0 %9459, %v2443_v7   ;;  %v9949_v6 = vpop.permute.xlu1 %832 }
  0xa9   : > { %2533 = vperm.xlu2 %9461, %v2411_v8  }
  0xab   : > { %8535 = vmatmul.msk.f32.gmra.mxu0 %vm859_vm1, %v753_v9 }
  0xac   : > { %8552 = vmatmul.msk.f32.gmra.mxu1 %vm859_vm1, %v753_v9  ;;  %8569 = vmatmul.msk.f32.gmra.mxu2 %vm859_vm1, %v753_v9 }
  0xad   : > { %8586 = vmatmul.msk.f32.gmra.mxu3 %vm859_vm1, %v753_v9 }
  0xb0   : > { %2773 = vperm.xlu1 %9460, %v2459_v10   ;;  %2538 = vperm.xlu0 %9459, %v2412_v11   ;;  %v9859_v13 = vpop.f32.mrf.mxu0  ;;  %v9959_v11 = vpop.permute.xlu0 %812 }
  0xb1   : > { %2778 = vperm.xlu2 %9461, %v2460_v12   ;;  %v9861_v14 = vpop.f32.mrf.mxu1  ;;  %v2422_v12 = vld [vmem:[%s9841_s21 + $0xc8] sm:$0xff] }
  0xb7   : > { %v9866_v18 = vpop.f32.mrf.mxu2 }
  0xb8   : > { %2618 = vperm.xlu1 %9460, %v2428_v15   ;;  %2613 = vperm.xlu0 %9459, %v2427_v16   ;;  %v9868_v19 = vpop.f32.mrf.mxu3  ;;  %v9870_v20 = vpop.f32.mrf.mxu0  ;;  %v2421_v15 = vld [vmem:[%s9841_s21 + $0xc0] sm:$0xff]  ;;  %v2435_v16 = vld [vmem:[%s9841_s21 + $0x130] sm:$0xff] }
  0xb9   : > { %2683 = vperm.xlu2 %9461, %v2441_v17   ;;  %v9872_v21 = vpop.f32.mrf.mxu1  ;;  %v9964_v17 = vpop.permute.xlu2 %827 }
  0xbf   : > { %v9877_v25 = vpop.f32.mrf.mxu2 }
  0xc0   : > { %2523 = vperm.xlu1 %9460, %v2409_v22   ;;  %2688 = vperm.xlu0 %9459, %v2442_v23   ;;  %15693 = vst [vmem:[#allocation7_spill] sm:$0xff] %v9877_v25  ;;  %v9879_v26 = vpop.f32.mrf.mxu3  ;;  %v9881_v27 = vpop.f32.mrf.mxu0 }
  0xc1   : > { %2528 = vperm.xlu2 %9461, %v2410_v24   ;;  %15694 = vst [vmem:[#allocation8_spill] sm:$0xff] %v9879_v26  ;;  %v9883_v28 = vpop.f32.mrf.mxu1  ;;  %v9966_v22 = vpop.permute.xlu1 %837 }
  0xc2   : > { %15696 = vst [vmem:[#allocation10_spill] sm:$0xff] %v9966_v22  ;;  %v2402_v22 = vld [vmem:[%s9841_s21 + $0x28] sm:$0xff] }
  0xc7   : > { %v9888_v32 = vpop.f32.mrf.mxu2 }
  0xc8   : > { %2768 = vperm.xlu1 %9460, %v2458_v29   ;;  %2763 = vperm.xlu0 %9459, %v2457_v30   ;;  %v9890_v33 = vpop.f32.mrf.mxu3  ;;  %v9892_v34 = vpop.f32.mrf.mxu0 }
  0xc9   : > { %2603 = vperm.xlu2 %9461, %v2425_v31   ;;  %v9894_v35 = vpop.f32.mrf.mxu1  ;;  %v2403_v31 = vld [vmem:[%s9841_s21 + $0x30] sm:$0xff] }
  0xcf   : > { %v9899_v39 = vpop.f32.mrf.mxu2 }
  0xd0   : > { %2673 = vperm.xlu1 %9460, %v2439_v36   ;;  %2608 = vperm.xlu0 %9459, %v2426_v37   ;;  %v9901_v40 = vpop.f32.mrf.mxu3  ;;  %v9903_v41 = vpop.f32.mrf.mxu0  ;;  %v2436_v36 = vld [vmem:[%s9841_s21 + $0x138] sm:$0xff] }
  0xd1   : > { %2678 = vperm.xlu2 %9461, %v2440_v38   ;;  %v9905_v42 = vpop.f32.mrf.mxu1  ;;  %v2404_v37 = vld [vmem:[%s9841_s21 + $0x38] sm:$0xff]  ;;  %v9979_v38 = vpop.permute.xlu0 %807 }
  0xd7   : > { %v9910_v46 = vpop.f32.mrf.mxu2 }
  0xd8   : > { %2518 = vperm.xlu1 %9460, %v2408_v43   ;;  %2513 = vperm.xlu0 %9459, %v2407_v44   ;;  %v9912_v47 = vpop.f32.mrf.mxu3  ;;  %v9914_v48 = vpop.f32.mrf.mxu0 }
  0xd9   : > { %2753 = vperm.xlu2 %9461, %v2455_v45   ;;  %v9916_v49 = vpop.f32.mrf.mxu1  ;;  %v9981_v43 = vpop.permute.xlu2 %802 }
  0xdf   : > { %v9923_v54 = vpop.f32.mrf.mxu2 }
  0xe0   : > { %2593 = vperm.xlu1 %9460, %v2423_v50   ;;  %2758 = vperm.xlu0 %9459, %v2456_v51   ;;  %v9925_v55 = vpop.f32.mrf.mxu3  ;;  %v9927_v56 = vpop.f32.mrf.mxu0 }
  0xe1   : > { %2598 = vperm.xlu2 %9461, %v2424_v52   ;;  %v9929_v57 = vpop.f32.mrf.mxu1  ;;  %v9991_v52 = vpop.permute.xlu1 %817 }
  0xe7   : > { %v9936_v62 = vpop.f32.mrf.mxu2 }
  0xe8   : > { %2668 = vperm.xlu1 %9460, %v2438_v58   ;;  %2663 = vperm.xlu0 %9459, %v2437_v59   ;;  %v9938_v63 = vpop.f32.mrf.mxu3  ;;  %v9940_v0 = vpop.f32.mrf.mxu0  ;;  %v2452_v58 = vld [vmem:[%s9841_s21 + $0x1b8] sm:$0xff]  ;;  %v2451_v59 = vld [vmem:[%s9841_s21 + $0x1b0] sm:$0xff] }
  0xe9   : > { %2503 = vperm.xlu2 %9461, %v2405_v60   ;;  %v9942_v1 = vpop.f32.mrf.mxu1  ;;  %v2419_v60 = vld [vmem:[%s9841_s21 + $0xb0] sm:$0xff] }
  0xef   : > { %v9951_v7 = vpop.f32.mrf.mxu2 }
  0xf0   : > { %2743 = vperm.xlu1 %9460, %v2453_v3   ;;  %2508 = vperm.xlu0 %9459, %v2406_v4   ;;  %v9953_v8 = vpop.f32.mrf.mxu3  ;;  %v9955_v9 = vpop.f32.mrf.mxu0 }
  0xf1   : > { %2748 = vperm.xlu2 %9461, %v2454_v5   ;;  %v9957_v10 = vpop.f32.mrf.mxu1  ;;  %v783_v3 = vpop.permute.xlu0 %782 }
  0xf2   : > { %v10021_v61 = vadd.f32 %v9883_v28, %v783_v3 }
  0xf4   : > { %15704 = vst [vmem:[#allocation18_spill] sm:$0xff] %v10021_v61 }
  0xf7   : > { %v9968_v23 = vpop.f32.mrf.mxu2 }
  0xf8   : > { %2588 = vperm.xlu1 %9460, %v2422_v12   ;;  %2583 = vperm.xlu0 %9459, %v2421_v15   ;;  %v9970_v24 = vpop.f32.mrf.mxu3  ;;  %v9972_v29 = vpop.f32.mrf.mxu0 }
  0xf9   : > { %2653 = vperm.xlu2 %9461, %v2435_v16   ;;  %v9974_v30 = vpop.f32.mrf.mxu1  ;;  %v10004_v16 = vpop.permute.xlu2 %797 }
  0xff   : > { %v9983_v44 = vpop.f32.mrf.mxu2 }
 0x100   : > { %2493 = vperm.xlu1 %9460, %v2403_v31   ;;  %2658 = vperm.xlu0 %9459, %v2436_v36   ;;  %v9985_v45 = vpop.f32.mrf.mxu3  ;;  %v9987_v50 = vpop.f32.mrf.mxu0  ;;  %v2433_v31 = vld [vmem:[%s9841_s21 + $0x120] sm:$0xff]  ;;  %v2420_v36 = vld [vmem:[%s9841_s21 + $0xb8] sm:$0xff] }
 0x101   : > { %2498 = vperm.xlu2 %9461, %v2404_v37   ;;  %15697 = vst [vmem:[#allocation11_spill] sm:$0xff] %v9985_v45  ;;  %v9989_v51 = vpop.f32.mrf.mxu1  ;;  %v2434_v37 = vld [vmem:[%s9841_s21 + $0x128] sm:$0xff]  ;;  %v10023_v45 = vpop.permute.xlu0 %777 }
 0x102   : > { %15705 = vst [vmem:[#allocation19_spill] sm:$0xff] %v10023_v45  ;;  %v10040_v28 = vadd.f32 %v9872_v21, %v10023_v45 }
 0x104   : > { %15709 = vst [vmem:[#allocation23_spill] sm:$0xff] %v10040_v28 }
 0x107   : > { %v9996_v4 = vpop.f32.mrf.mxu2 }
 0x108   : > { %2738 = vperm.xlu1 %9460, %v2452_v58   ;;  %2733 = vperm.xlu0 %9459, %v2451_v59   ;;  %v9998_v5 = vpop.f32.mrf.mxu3  ;;  %v10000_v12 = vpop.f32.mrf.mxu0 }
 0x109   : > { %2573 = vperm.xlu2 %9461, %v2419_v60   ;;  %v10002_v15 = vpop.f32.mrf.mxu1  ;;  %v793_v58 = vpop.permute.xlu1 %792 }
 0x10a   : > { %15698 = vst [vmem:[#allocation12_spill] sm:$0xff] %v10002_v15  ;;  %v10018_v15 = vadd.f32 %v9881_v27, %v783_v3  ;;  %v10036_v27 = vadd.f32 %v9870_v20, %v10023_v45 }
 0x10c   : > { %15703 = vst [vmem:[#allocation17_spill] sm:$0xff] %v10018_v15 }
 0x10d   : > { %15708 = vst [vmem:[#allocation22_spill] sm:$0xff] %v10036_v27 }
 0x10f   : > { %v10009_v59 = vpop.f32.mrf.mxu2 }
 0x110   : > { %2643 = vperm.xlu1 %9460, %v2433_v31   ;;  %2578 = vperm.xlu0 %9459, %v2420_v36   ;;  %15699 = vst [vmem:[#allocation13_spill] sm:$0xff] %v10009_v59  ;;  %v10011_v60 = vpop.f32.mrf.mxu3  ;;  %v10013_v26 = vpop.f32.mrf.mxu0  ;;  %v2401_v31 = vld [vmem:[%s9841_s21 + $0x20] sm:$0xff] }
 0x111   : > { %2648 = vperm.xlu2 %9461, %v2434_v37   ;;  %15700 = vst [vmem:[#allocation14_spill] sm:$0xff] %v10011_v60  ;;  %v10015_v25 = vpop.f32.mrf.mxu1  ;;  %v773_v36 = vpop.permute.xlu2 %772  ;;  %v2449_v37 = vld [vmem:[%s9841_s21 + $0x1a0] sm:$0xff] }
 0x112   : > { %15701 = vst [vmem:[#allocation15_spill] sm:$0xff] %v10013_v26  ;;  %v10029_v59 = vadd.f32 %v9859_v13, %v773_v36  ;;  %v10032_v60 = vadd.f32 %v9861_v14, %v773_v36  ;;  %v10043_v26 = vmul.f32 0.01, %v10018_v15  ;;  %v10046_v13 = vmul.f32 0.01, %v10021_v61 }
 0x113   : > { %15702 = vst [vmem:[#allocation16_spill] sm:$0xff] %v10015_v25  ;;  %v788_v25 = vpop.permute.xlu1 %787  ;;  %v10207_v61 = vadd.f32 %v9951_v7, %v9979_v38  ;;  %v10230_v7 = vadd.f32 %v9996_v4, %v9944_v2  ;;  %v10251_v4 = vadd.f32 %v9970_v24, %v9959_v11 }
 0x114   : > { %15706 = vst [vmem:[#allocation20_spill] sm:$0xff] %v10029_v59  ;;  %v10049_v14 = vadd.f32 %v9892_v34, %v788_v25  ;;  %v10059_v21 = vmul.f32 0.01, %v10029_v59  ;;  %v10062_v45 = vmul.f32 0.01, %v10032_v60  ;;  %v10068_v34 = vadd.f32 %v9868_v19, %v773_v36 }
 0x115   : > { %15707 = vst [vmem:[#allocation21_spill] sm:$0xff] %v10032_v60  ;;  %v10078_v59 = vadd.f32 %v9905_v42, %v793_v58  ;;  %v10081_v60 = vmul.f32 0.01, %v10036_v27  ;;  %v2417_v42 = vld [vmem:[%s9841_s21 + $0xa0] sm:$0xff] }
 0x116   : > { %15710 = vst [vmem:[#allocation24_spill] sm:$0xff] %v10043_v26  ;;  %v2431_v26 = vld [vmem:[%s9841_s21 + $0x110] sm:$0xff] }
 0x117   : > { %15711 = vst [vmem:[#allocation25_spill] sm:$0xff] %v10046_v13  ;;  %v10054_v20 = vpop.f32.mrf.mxu2  ;;  %v10200_v13 = vadd.f32 %v9972_v29, %v9991_v52  ;;  %v10220_v29 = vadd.f32 %v9953_v8, %v9979_v38  ;;  %v10242_v8 = vadd.f32 %v10000_v12, %v9964_v17  ;;  %v10262_v12 = vadd.f32 %v9983_v44, %v9991_v52 }
 0x118   : > { %2488 = vperm.xlu1 %9460, %v2402_v22   ;;  %2483 = vperm.xlu0 %9459, %v2401_v31   ;;  %15712 = vst [vmem:[#allocation26_spill] sm:$0xff] %v10049_v14  ;;  %v10052_v22 = vadd.f32 %v9894_v35, %v788_v25  ;;  %v10056_v31 = vpop.f32.mrf.mxu3  ;;  %v10070_v35 = vpop.f32.mrf.mxu0  ;;  %v10279_v44 = vmul.f32 0.01, %v10230_v7 }
 0x119   : > { %2723 = vperm.xlu2 %9461, %v2449_v37   ;;  %15714 = vst [vmem:[#allocation28_spill] sm:$0xff] %v10054_v20  ;;  %v10065_v37 = vadd.f32 %v9866_v18, %v773_v36  ;;  %v10072_v20 = vpop.f32.mrf.mxu1  ;;  %v10084_v18 = vmul.f32 0.01, %v10040_v28  ;;  %v10110_v36 = vadd.f32 %v9916_v49, %v10004_v16  ;;  %v10114_v28 = vadd.f32 %v9899_v39, %v788_v25 }
 0x11a   : > { %15713 = vst [vmem:[#allocation27_spill] sm:$0xff] %v10052_v22  ;;  %v10106_v19 = vmul.f32 0.01, %v10052_v22  ;;  %v10131_v49 = vmul.f32 0.01, %v10078_v59  ;;  %v10134_v39 = vadd.f32 %v9910_v46, %v793_v58  ;;  %v10152_v46 = vadd.f32 %v9955_v9, %v9959_v11 }
 0x11b   : > { %15715 = vst [vmem:[#allocation29_spill] sm:$0xff] %v10056_v31  ;;  %v10075_v31 = vadd.f32 %v9903_v41, %v793_v58  ;;  %v10095_v41 = vadd.f32 %v9914_v48, %v10004_v16  ;;  %v10117_v48 = vadd.f32 %v9901_v40, %v788_v25  ;;  %v10138_v25 = vadd.f32 %v9940_v0, %v9979_v38 }
 0x11c   : > { %15716 = vst [vmem:[#allocation30_spill] sm:$0xff] %v10059_v21  ;;  %v10103_v21 = vmul.f32 0.01, %v10049_v14  ;;  %v10141_v40 = vadd.f32 %v9912_v47, %v793_v58  ;;  %v10155_v0 = vmul.f32 0.01, %v10110_v36  ;;  %v10163_v47 = vadd.f32 %v9957_v10, %v9959_v11 }
 0x11d   : > { %15717 = vst [vmem:[#allocation31_spill] sm:$0xff] %v10062_v45  ;;  %v10100_v45 = vadd.f32 %v9890_v33, %v783_v3  ;;  %v10121_v33 = vadd.f32 %v9927_v56, %v9981_v43  ;;  %v10144_v56 = vmul.f32 0.01, %v10095_v41  ;;  %v10254_v22 = vmul.f32 0.01, %v10200_v13 }
 0x11e   : > { %15718 = vst [vmem:[#allocation32_spill] sm:$0xff] %v10065_v37  ;;  %v2450_v37 = vld [vmem:[%s9841_s21 + $0x1a8] sm:$0xff]  ;;  %v10223_v15 = vmul.f32 0.01, %v10163_v47 }
 0x11f   : > { %15719 = vst [vmem:[#allocation33_spill] sm:$0xff] %v10068_v34  ;;  %v10091_v34 = vadd.f32 %v9888_v32, %v783_v3  ;;  %v2418_v32 = vld [vmem:[%s9841_s21 + $0xa8] sm:$0xff]  ;;  %v10125_v3 = vadd.f32 %v9929_v57, %v9981_v43  ;;  %v10148_v57 = vadd.f32 %v9942_v1, %v9979_v38  ;;  %v10167_v1 = vadd.f32 %v9987_v50, %v9944_v2  ;;  %v10169_v58 = vpop.f32.mrf.mxu2 }
 0x120   : > { %15720 = vst [vmem:[#allocation34_spill] sm:$0xff] %v10075_v31  ;;  %2563 = vperm.xlu1 %9460, %v2417_v42   ;;  %2728 = vperm.xlu0 %9459, %v2450_v37   ;;  %v10159_v37 = vadd.f32 %v9923_v54, %v10004_v16  ;;  %v10171_v9 = vpop.f32.mrf.mxu3  ;;  %v10175_v42 = vadd.f32 %v9925_v55, %v10004_v16  ;;  %v10178_v54 = vmul.f32 0.01, %v10121_v33  ;;  %v10196_v16 = vmul.f32 0.01, %v10138_v25 }
 0x121   : > { %15721 = vst [vmem:[#allocation35_spill] sm:$0xff] %v10078_v59  ;;  %2568 = vperm.xlu2 %9461, %v2418_v32   ;;  %v10181_v10 = vmul.f32 0.01, %v10125_v3  ;;  %v10185_v50 = vadd.f32 %v9989_v51, %v9944_v2  ;;  %v976_v32 = vpop.f32.mrf.mxu0  ;;  %v1041_v27 = vpop.f32.mrf.mxu1  ;;  %v10193_v55 = vadd.f32 %v9938_v63, %v9981_v43  ;;  %v10203_v51 = vmul.f32 0.01, %v10148_v57 }
 0x122   : > { %15722 = vst [vmem:[#allocation36_spill] sm:$0xff] %v10081_v60  ;;  %v10189_v60 = vadd.f32 %v9936_v62, %v9981_v43  ;;  %v10210_v62 = vmul.f32 0.01, %v10152_v46  ;;  %v10214_v63 = vadd.f32 %v9974_v30, %v9991_v52  ;;  %v2432_v43 = vld [vmem:[%s9841_s21 + $0x118] sm:$0xff]  ;;  %v977_v38 = vadd.f32 %v976_v32, %v9921_v53 }
 0x123   : > { %15723 = vst [vmem:[#allocation37_spill] sm:$0xff] %v10084_v18  ;;  %v10128_v18 = vmul.f32 0.01, %v10075_v31  ;;  %v10234_v30 = vmul.f32 0.01, %v10185_v50 }
 0x124   : > { %15724 = vst [vmem:[#allocation38_spill] sm:$0xff] %v10091_v34  ;;  %v10247_v34 = vadd.f32 %v9968_v23, %v9959_v11  ;;  %v15750_v23 = vld [vmem:[#allocation15_spill] sm:$0xff]  ;;  %v15751_v11 = vld [vmem:[#allocation10_spill] sm:$0xff] }
 0x125   : > { %15725 = vst [vmem:[#allocation39_spill] sm:$0xff] %v10095_v41  ;;  %v10266_v32 = vadd.f32 %v15750_v23, %v9949_v6  ;;  %v10270_v24 = vadd.f32 %v10070_v35, %v15751_v11  ;;  %v1039_v23 = vadd.f32 %v10072_v20, %v15751_v11  ;;  %v10289_v35 = vmul.f32 0.01, %v10242_v8 }
 0x126   : > { %15726 = vst [vmem:[#allocation40_spill] sm:$0xff] %v10100_v45  ;;  %v10238_v45 = vadd.f32 %v9998_v5, %v9944_v2  ;;  %v1042_v2 = vadd.f32 %v1041_v27, %v9921_v53  ;;  %v10258_v5 = vmul.f32 0.01, %v10214_v63  ;;  %v15752_v27 = vld [vmem:[#allocation11_spill] sm:$0xff] }
 0x127   : > { %15727 = vst [vmem:[#allocation41_spill] sm:$0xff] %v10103_v21  ;;  %v1229_v41 = vmul.f32 0.01, %v10270_v24 }
 0x128   : > { %15728 = vst [vmem:[#allocation42_spill] sm:$0xff] %v10106_v19  ;;  %2638 = vperm.xlu1 %9460, %v2432_v43   ;;  %2633 = vperm.xlu0 %9459, %v2431_v26   ;;  %v10274_v43 = vadd.f32 %v15752_v27, %v9991_v52  ;;  %v1106_v19 = vpop.f32.mrf.mxu2  ;;  %v1171_v14 = vpop.f32.mrf.mxu3  ;;  %v10286_v52 = vmul.f32 0.01, %v10238_v45  ;;  %v1233_v27 = vmul.f32 0.01, %v977_v38 }
 0x129   : > { %15729 = vst [vmem:[#allocation43_spill] sm:$0xff] %v10110_v36  ;;  %v979_v26 = vpop.f32.mrf.mxu0  ;;  %v1044_v21 = vpop.f32.mrf.mxu1  ;;  %v1234_v20 = vmul.f32 0.01, %v1042_v2  ;;  %v15756_v36 = vld [vmem:[#allocation28_spill] sm:$0xff] }
 0x12a   : > { %15730 = vst [vmem:[#allocation44_spill] sm:$0xff] %v10114_v28  ;;  %v2399_v28 = vld [vmem:[%s9841_s21 + $0x10] sm:$0xff] }
 0x12b   : > { %15731 = vst [vmem:[#allocation45_spill] sm:$0xff] %v10117_v48  ;;  %v10226_v48 = vmul.f32 0.01, %v10167_v1  ;;  %2473 = vperm.xlu2 %9461, %v2399_v28   ;;  %v15755_v28 = vld [vmem:[#allocation12_spill] sm:$0xff] }
 0x12c   : > { %15732 = vst [vmem:[#allocation46_spill] sm:$0xff] %v10121_v33  ;;  %v10298_v31 = vadd.f32 %v15755_v28, %v9964_v17  ;;  %v10314_v28 = vadd.f32 %v10169_v58, %v15751_v11  ;;  %v1298_v33 = vmax.f32 %v1042_v2, %v1234_v20 }
 0x12d   : > { %15733 = vst [vmem:[#allocation47_spill] sm:$0xff] %v10125_v3  ;;  %v1107_v3 = vadd.f32 %v1106_v19, %v9921_v53 }
 0x12e   : > { %15734 = vst [vmem:[#allocation48_spill] sm:$0xff] %v10128_v18  ;;  %v1225_v18 = vmul.f32 0.01, %v10266_v32 }
 0x12f   : > { %15735 = vst [vmem:[#allocation49_spill] sm:$0xff] %v10131_v49  ;;  %v2447_v49 = vld [vmem:[%s9841_s21 + $0x190] sm:$0xff] }
 0x130   : > { %15736 = vst [vmem:[#allocation50_spill] sm:$0xff] %v10134_v39  ;;  %2713 = vperm.xlu1 %9460, %v2447_v49   ;;  %v1289_v58 = vmax.f32 %v10266_v32, %v1225_v18 }
 0x131   : > { %15737 = vst [vmem:[#allocation51_spill] sm:$0xff] %v10141_v40  ;;  %v15754_v40 = vld [vmem:[#allocation9_spill] sm:$0xff] }
 0x132   : > { %15738 = vst [vmem:[#allocation52_spill] sm:$0xff] %v10144_v56  ;;  %v980_v39 = vadd.f32 %v979_v26, %v15754_v40  ;;  %v1045_v59 = vadd.f32 %v1044_v21, %v15754_v40  ;;  %v2400_v56 = vld [vmem:[%s9841_s21 + $0x18] sm:$0xff]  ;;  %v1230_v21 = vmul.f32 0.01, %v1039_v23 }
 0x133   : > { %15739 = vst [vmem:[#allocation53_spill] sm:$0xff] %v10148_v57  ;;  %2478 = vperm.xlu0 %9459, %v2400_v56  }
 0x134   : > { %15740 = vst [vmem:[#allocation54_spill] sm:$0xff] %v10155_v0  ;;  %v10303_v0 = vadd.f32 %v15756_v36, %v9949_v6  ;;  %v1172_v36 = vadd.f32 %v1171_v14, %v9921_v53  ;;  %v1109_v53 = vpop.f32.mrf.mxu2  ;;  %v1174_v14 = vpop.f32.mrf.mxu3  ;;  %v1294_v49 = vmax.f32 %v1039_v23, %v1230_v21  ;;  %v2416_v23 = vld [vmem:[%s9841_s21 + $0x98] sm:$0xff] }
 0x135   : > { %15741 = vst [vmem:[#allocation55_spill] sm:$0xff] %v10159_v37  ;;  %v1175_v2 = vadd.f32 %v1174_v14, %v15754_v40 }
 0x136   : > { %15742 = vst [vmem:[#allocation56_spill] sm:$0xff] %v10175_v42  ;;  %v15753_v42 = vld [vmem:[#allocation16_spill] sm:$0xff]  ;;  %v1236_v56 = vmul.f32 0.01, %v1172_v36 }
 0x137   : > { %15743 = vst [vmem:[#allocation57_spill] sm:$0xff] %v10178_v54  ;;  %v1036_v37 = vadd.f32 %v15753_v42, %v9949_v6  ;;  %v2448_v42 = vld [vmem:[%s9841_s21 + $0x198] sm:$0xff] }
 0x138   : > { %15744 = vst [vmem:[#allocation58_spill] sm:$0xff] %v10181_v10  ;;  %2718 = vperm.xlu2 %9461, %v2448_v42   ;;  %v1300_v42 = vmax.f32 %v1172_v36, %v1236_v56  ;;  %2558 = vperm.xlu1 %9460, %v2416_v23   ;;  %v15760_v36 = vmax.f32 %v10167_v1, %v10226_v48  ;;  %v1211_v48 = vmul.f32 0.01, %v10247_v34  ;;  %v1212_v1 = vmul.f32 0.01, %v10251_v4 }
 0x139   : > { %15745 = vst [vmem:[#allocation59_spill] sm:$0xff] %v10189_v60  ;;  %v1297_v60 = vmax.f32 %v977_v38, %v1233_v27  ;;  %v1226_v10 = vmul.f32 0.01, %v1036_v37  ;;  %v10326_v38 = vadd.f32 %v10171_v9, %v15751_v11  ;;  %v1227_v9 = vmul.f32 0.01, %v10303_v0  ;;  %v2415_v27 = vld [vmem:[%s9841_s21 + $0x90] sm:$0xff] }
 0x13a   : > { %15746 = vst [vmem:[#allocation60_spill] sm:$0xff] %v10193_v55  ;;  %v1238_v55 = vmul.f32 0.01, %v1045_v59  ;;  %v1231_v11 = vmul.f32 0.01, %v10314_v28  ;;  %v15763_v56 = vld [vmem:[#allocation53_spill] sm:$0xff] }
 0x13b   : > { %15747 = vst [vmem:[#allocation61_spill] sm:$0xff] %v10203_v51  ;;  %v1290_v18 = vmax.f32 %v1036_v37, %v1226_v10  ;;  %v1285_v37 = vmax.f32 %v10242_v8, %v10289_v35  ;;  %v1291_v14 = vmax.f32 %v10303_v0, %v1227_v9  ;;  %2553 = vperm.xlu0 %9459, %v2415_v27   ;;  %v15767_v9 = vld [vmem:[#allocation47_spill] sm:$0xff] }
 0x13c   : > { %15748 = vst [vmem:[#allocation62_spill] sm:$0xff] %v10207_v61  ;;  %v1237_v61 = vmul.f32 0.01, %v980_v39  ;;  %v1302_v57 = vmax.f32 %v1045_v59, %v1238_v55  ;;  %v1293_v59 = vmax.f32 %v10270_v24, %v1229_v41  ;;  %v1110_v55 = vadd.f32 %v1109_v53, %v15754_v40  ;;  %v2429_v53 = vld [vmem:[%s9841_s21 + $0x100] sm:$0xff] }
 0x13d   : > { %15749 = vst [vmem:[#allocation63_spill] sm:$0xff] %v10220_v29  ;;  %v15757_v29 = vld [vmem:[#allocation29_spill] sm:$0xff]  ;;  %v1330_v24 = vpack.c.bf16 %v1294_v49, %v1290_v18  ;;  %v15761_v0 = vmax.f32 %v10185_v50, %v10234_v30  ;;  %v1215_v50 = vmul.f32 0.01, %v10262_v12  ;;  %v1269_v49 = vmax.f32 %v10138_v25, %v10196_v16 }
 0x13e   : > { %v10310_v26 = vadd.f32 %v15757_v29, %v9949_v6  ;;  %v1301_v54 = vmax.f32 %v980_v39, %v1237_v61  ;;  %v1222_v6 = vmul.f32 0.01, %v10298_v31  ;;  %v15758_v29 = vld [vmem:[#allocation13_spill] sm:$0xff]  ;;  %v1334_v61 = vpack.c.bf16 %v1302_v57, %v1298_v33 }
 0x13f   : > { %v10321_v51 = vadd.f32 %v15758_v29, %v9964_v17  ;;  %v1235_v39 = vmul.f32 0.01, %v1107_v3  ;;  %v1232_v33 = vmul.f32 0.01, %v10326_v38  ;;  %v1239_v57 = vmul.f32 0.01, %v1110_v55 }
 0x140   : > { %v1333_v19 = vpack.c.bf16 %v1301_v54, %v1297_v60  ;;  %v1228_v32 = vmul.f32 0.01, %v10310_v26  ;;  %1746 = vmatpush.bf16.msrb.mxu1 %v1334_v61  ;;  %v15759_v60 = vld [vmem:[#allocation14_spill] sm:$0xff]  ;;  %v1240_v54 = vmul.f32 0.01, %v1175_v2  ;;  %v1329_v40 = vpack.c.bf16 %v1293_v59, %v1289_v58  ;;  %2623 = vperm.xlu2 %9461, %v2429_v53  }
 0x141   : > { %v10336_v41 = vadd.f32 %v15759_v60, %v9964_v17  ;;  %v1286_v10 = vmax.f32 %v10298_v31, %v1222_v6  ;;  %v1299_v20 = vmax.f32 %v1107_v3, %v1235_v39  ;;  %v1303_v21 = vmax.f32 %v1110_v55, %v1239_v57  ;;  %v2430_v55 = vld [vmem:[%s9841_s21 + $0x108] sm:$0xff]  ;;  %v15766_v18 = vld [vmem:[#allocation58_spill] sm:$0xff]  ;;  %v15769_v60 = vld [vmem:[#allocation60_spill] sm:$0xff] }
 0x142   : > { %1657 = vmatpush.bf16.msrb.mxu0 %v1333_v19  ;;  %v1304_v29 = vmax.f32 %v1175_v2, %v1240_v54  ;;  %v1223_v17 = vmul.f32 0.01, %v10321_v51  ;;  %v1292_v19 = vmax.f32 %v10310_v26, %v1228_v32  ;;  %v1295_v58 = vmax.f32 %v10314_v28, %v1231_v11  ;;  %v15762_v39 = vld [vmem:[#allocation61_spill] sm:$0xff]  ;;  %v15768_v11 = vld [vmem:[#allocation59_spill] sm:$0xff]  ;;  %v15774_v53 = vld [vmem:[#allocation54_spill] sm:$0xff] }
 0x143   : > { %v1224_v8 = vmul.f32 0.01, %v10336_v41  ;;  %v1335_v31 = vpack.c.bf16 %v1303_v21, %v1299_v20  ;;  %v1296_v3 = vmax.f32 %v10326_v38, %v1232_v33  ;;  %v1325_v6 = vpack.c.bf16 %v1285_v37, %v15760_v36  ;;  %v2398_v33 = vld [vmem:[%s9841_s21 + $0x8] sm:$0xff]  ;;  %v15770_v57 = vld [vmem:[#allocation62_spill] sm:$0xff]  ;;  %2628 = vperm.xlu0 %9459, %v2430_v55   ;;  %v15772_v21 = vld [vmem:[#allocation52_spill] sm:$0xff] }
 0x144   : > { %1747 = vmatpush.bf16.msrb.mxu1 %v1330_v24  ;;  %v1336_v35 = vpack.c.bf16 %v1304_v29, %v1300_v42  ;;  %v1326_v26 = vpack.c.bf16 %v1286_v10, %v15761_v0  ;;  %v1277_v28 = vmax.f32 %v10200_v13, %v10254_v22  ;;  %v1278_v61 = vmax.f32 %v10214_v63, %v10258_v5  ;;  %v15771_v24 = vld [vmem:[#allocation63_spill] sm:$0xff] }
 0x145   : > { %v1273_v59 = vmax.f32 %v10152_v46, %v10210_v62  ;;  %v1274_v38 = vmax.f32 %v10163_v47, %v10223_v15  ;;  %1835 = vmatpush.bf16.msrb.mxu2 %v1335_v31  ;;  %v1216_v13 = vmul.f32 0.01, %v10274_v43  ;;  %v1283_v22 = vmax.f32 %v10230_v7, %v10279_v44  ;;  %v2397_v44 = vld [vmem:[%s9841_s21] sm:$0xff]  ;;  %v15773_v29 = vld [vmem:[#allocation39_spill] sm:$0xff] }
 0x146   : > { %1658 = vmatpush.bf16.msrb.mxu0 %v1329_v40  ;;  %1924 = vmatpush.bf16.msrb.mxu3 %v1336_v35  ;;  %v1284_v46 = vmax.f32 %v10238_v45, %v10286_v52  ;;  %v1331_v15 = vpack.c.bf16 %v1295_v58, %v1291_v14  ;;  %v1332_v47 = vpack.c.bf16 %v1296_v3, %v1292_v19  ;;  %v15764_v45 = vld [vmem:[#allocation57_spill] sm:$0xff]  ;;  %v15765_v52 = vld [vmem:[#allocation46_spill] sm:$0xff]  ;;  %v1207_v25 = vmul.f32 0.01, %v15770_v57  ;;  %v15776_v14 = vld [vmem:[#allocation48_spill] sm:$0xff] }
 0x147   : > { %v1287_v62 = vmax.f32 %v10321_v51, %v1223_v17  ;;  %v1288_v63 = vmax.f32 %v10336_v41, %v1224_v8  ;;  %v1321_v30 = vpack.c.bf16 %v1277_v28, %v1273_v59  ;;  %v1322_v5 = vpack.c.bf16 %v1278_v61, %v1274_v38  ;;  %2463 = vperm.xlu1 %9460, %v2397_v44   ;;  %v15777_v19 = vld [vmem:[#allocation34_spill] sm:$0xff]  ;;  %v15778_v58 = vld [vmem:[#allocation49_spill] sm:$0xff]  ;;  %v15779_v8 = vld [vmem:[#allocation35_spill] sm:$0xff] }
 0x148   : > { %1748 = vmatpush.bf16.msrb.mxu1 %v1326_v26  ;;  %v1270_v7 = vmax.f32 %v15763_v56, %v15762_v39  ;;  %v1265_v2 = vmax.f32 %v15765_v52, %v15764_v45  ;;  %v1266_v32 = vmax.f32 %v15767_v9, %v15766_v18  ;;  %v1203_v51 = vmul.f32 0.01, %v15768_v11  ;;  %2468 = vperm.xlu2 %9461, %v2398_v33   ;;  %v15780_v35 = vld [vmem:[#allocation50_spill] sm:$0xff]  ;;  %v15781_v36 = vld [vmem:[#allocation51_spill] sm:$0xff]  ;;  %v15783_v26 = vld [vmem:[#allocation56_spill] sm:$0xff] }
 0x149   : > { %v1204_v41 = vmul.f32 0.01, %v15769_v60  ;;  %1836 = vmatpush.bf16.msrb.mxu2 %v1331_v15  ;;  %v1275_v16 = vmax.f32 %v10247_v34, %v1211_v48  ;;  %v1276_v54 = vmax.f32 %v10251_v4, %v1212_v1  ;;  %v1279_v40 = vmax.f32 %v10262_v12, %v1215_v50  ;;  %v15775_v4 = vld [vmem:[#allocation43_spill] sm:$0xff]  ;;  %v15785_v15 = vld [vmem:[#allocation26_spill] sm:$0xff]  ;;  %v15794_v33 = vld [vmem:[#allocation45_spill] sm:$0xff] }
 0x14a   : > { %1659 = vmatpush.bf16.msrb.mxu0 %v1325_v6  ;;  %1925 = vmatpush.bf16.msrb.mxu3 %v1332_v47  ;;  %v1208_v37 = vmul.f32 0.01, %v15771_v24  ;;  %v1327_v10 = vpack.c.bf16 %v1287_v62, %v1283_v22  ;;  %v1328_v23 = vpack.c.bf16 %v1288_v63, %v1284_v46  ;;  %v1280_v27 = vmax.f32 %v10274_v43, %v1216_v13  ;;  %v15782_v43 = vld [vmem:[#allocation55_spill] sm:$0xff]  ;;  %v15784_v46 = vld [vmem:[#allocation41_spill] sm:$0xff]  ;;  %v15786_v62 = vld [vmem:[#allocation42_spill] sm:$0xff] }
 0x14b   : > { %v1317_v20 = vpack.c.bf16 %v1269_v49, %v1265_v2  ;;  %v1318_v42 = vpack.c.bf16 %v1270_v7, %v1266_v32  ;;  %v1261_v34 = vmax.f32 %v15773_v29, %v15772_v21  ;;  %v1262_v17 = vmax.f32 %v15775_v4, %v15774_v53  ;;  %v15787_v63 = vld [vmem:[#allocation27_spill] sm:$0xff]  ;;  %v2445_v49 = vld [vmem:[%s9841_s21 + $0x180] sm:$0xff]  ;;  %v15789_v7 = vld [vmem:[#allocation40_spill] sm:$0xff] }
 0x14c   : > { %1749 = vmatpush.bf16.msrb.mxu1 %v1322_v5  ;;  %v1257_v12 = vmax.f32 %v15777_v19, %v15776_v14  ;;  %v1258_v31 = vmax.f32 %v15779_v8, %v15778_v58  ;;  %v1195_v3 = vmul.f32 0.01, %v15780_v35  ;;  %v1196_v6 = vmul.f32 0.01, %v15781_v36  ;;  %v2446_v5 = vld [vmem:[%s9841_s21 + $0x188] sm:$0xff]  ;;  %v15788_v39 = vld [vmem:[#allocation38_spill] sm:$0xff]  ;;  %2703 = vperm.xlu0 %9459, %v2445_v49  }
 0x14d   : > { %1837 = vmatpush.bf16.msrb.mxu2 %v1327_v10  ;;  %v1199_v0 = vmul.f32 0.01, %v15782_v43  ;;  %v1200_v28 = vmul.f32 0.01, %v15783_v26  ;;  %v1267_v61 = vmax.f32 %v15768_v11, %v1203_v51  ;;  %v1271_v59 = vmax.f32 %v15770_v57, %v1207_v25  ;;  %v2413_v52 = vld [vmem:[%s9841_s21 + $0x80] sm:$0xff]  ;;  %v15790_v2 = vld [vmem:[#allocation44_spill] sm:$0xff] }
 0x14e   : > { %1660 = vmatpush.bf16.msrb.mxu0 %v1321_v30  ;;  %1926 = vmatpush.bf16.msrb.mxu3 %v1328_v23  ;;  %v1268_v38 = vmax.f32 %v15769_v60, %v1204_v41  ;;  %v1323_v48 = vpack.c.bf16 %v1279_v40, %v1275_v16  ;;  %v1324_v1 = vpack.c.bf16 %v1280_v27, %v1276_v54  ;;  %v1187_v56 = vmul.f32 0.01, %v15788_v39  ;;  %v15791_v32 = vld [vmem:[#allocation19_spill] sm:$0xff]  ;;  %v15793_v60 = vld [vmem:[#allocation8_spill] sm:$0xff]  ;;  %v15795_v40 = vld [vmem:[#allocation17_spill] sm:$0xff] }
 0x14f   : > { %v1272_v50 = vmax.f32 %v15771_v24, %v1208_v37  ;;  %v1313_v13 = vpack.c.bf16 %v1261_v34, %v1257_v12  ;;  %v1314_v22 = vpack.c.bf16 %v1262_v17, %v1258_v31  ;;  %v1253_v47 = vmax.f32 %v15785_v15, %v15784_v46  ;;  %v15792_v11 = vld [vmem:[#allocation7_spill] sm:$0xff]  ;;  %2708 = vperm.xlu1 %9460, %v2446_v5   ;;  %v15796_v24 = vld [vmem:[#allocation24_spill] sm:$0xff]  ;;  %v15798_v23 = vld [vmem:[#allocation18_spill] sm:$0xff] }
 0x150   : > { %1750 = vmatpush.bf16.msrb.mxu1 %v1318_v42  ;;  %v1254_v30 = vmax.f32 %v15787_v63, %v15786_v62  ;;  %v1188_v44 = vmul.f32 0.01, %v15789_v7  ;;  %v1259_v55 = vmax.f32 %v15780_v35, %v1195_v3  ;;  %v1260_v45 = vmax.f32 %v15781_v36, %v1196_v6  ;;  %v15799_v27 = vld [vmem:[#allocation25_spill] sm:$0xff]  ;;  %2543 = vperm.xlu2 %9461, %v2413_v52   ;;  %v15801_v21 = vld [vmem:[#allocation36_spill] sm:$0xff]  ;;  %v15802_v29 = vld [vmem:[#allocation22_spill] sm:$0xff] }
 0x151   : > { %1838 = vmatpush.bf16.msrb.mxu2 %v1323_v48  ;;  %v1191_v18 = vmul.f32 0.01, %v15790_v2  ;;  %v1319_v9 = vpack.c.bf16 %v1271_v59, %v1267_v61  ;;  %v1068_v51 = vadd.f32 %v15792_v11, %v15791_v32  ;;  %v1133_v41 = vadd.f32 %v15793_v60, %v15791_v32  ;;  %v15803_v53 = vld [vmem:[#allocation37_spill] sm:$0xff]  ;;  %v15804_v4 = vld [vmem:[#allocation23_spill] sm:$0xff]  ;;  %v15805_v14 = vld [vmem:[#allocation30_spill] sm:$0xff] }
 0x152   : > { %1661 = vmatpush.bf16.msrb.mxu0 %v1317_v20  ;;  %1927 = vmatpush.bf16.msrb.mxu3 %v1324_v1  ;;  %v1192_v57 = vmul.f32 0.01, %v15794_v33  ;;  %v1320_v25 = vpack.c.bf16 %v1272_v50, %v1268_v38  ;;  %v1263_v16 = vmax.f32 %v15782_v43, %v1199_v0  ;;  %v1264_v54 = vmax.f32 %v15783_v26, %v1200_v28  ;;  %v15806_v19 = vld [vmem:[#allocation20_spill] sm:$0xff]  ;;  %v15807_v58 = vld [vmem:[#allocation31_spill] sm:$0xff]  ;;  %v15808_v8 = vld [vmem:[#allocation21_spill] sm:$0xff] }
 0x153   : > { %v15797_v37 = vmax.f32 %v15795_v40, %v15796_v24  ;;  %v15800_v20 = vmax.f32 %v15798_v23, %v15799_v27  ;;  %v1245_v34 = vmax.f32 %v15802_v29, %v15801_v21  ;;  %v1246_v17 = vmax.f32 %v15804_v4, %v15803_v53  ;;  %v15809_v35 = vld [vmem:[#allocation32_spill] sm:$0xff]  ;;  %v15810_v36 = vld [vmem:[#allocation33_spill] sm:$0xff]  ;;  %v9241_v63 = vld [vmem:[%s10459_s13] sm:$0xff]  ;;  %v10487_v40 = vpop.permute.xlu0 %1553 }
 0x154   : > { %1751 = vmatpush.bf16.msrb.mxu1 %v1314_v22  ;;  %v1241_v12 = vmax.f32 %v15806_v19, %v15805_v14  ;;  %v1242_v31 = vmax.f32 %v15808_v8, %v15807_v58  ;;  %v1179_v3 = vmul.f32 0.01, %v15809_v35  ;;  %v1180_v6 = vmul.f32 0.01, %v15810_v36  ;;  %v2414_v22 = vld [vmem:[%s9841_s21 + $0x88] sm:$0xff]  ;;  %v5172_v46 = vld [vmem:[%s10444_s14 + $0x78] sm:$0xff] }
 0x155   : > { %v1309_v10 = vpack.c.bf16 %v1253_v47, %v15797_v37  ;;  %v1310_v42 = vpack.c.bf16 %v1254_v30, %v15800_v20  ;;  %1839 = vmatpush.bf16.msrb.mxu2 %v1319_v9  ;;  %v1251_v43 = vmax.f32 %v15788_v39, %v1187_v56  ;;  %v1252_v0 = vmax.f32 %v15789_v7, %v1188_v44  ;;  %v5188_v7 = vld [vmem:[%s10444_s14 + $0xf8] sm:$0xff]  ;;  %v5187_v44 = vld [vmem:[%s10444_s14 + $0xf0] sm:$0xff]  ;;  %v5170_v52 = vld [vmem:[%s10444_s14 + $0x68] sm:$0xff] }
 0x156   : > { %1662 = vmatpush.bf16.msrb.mxu0 %v1313_v13  ;;  %1928 = vmatpush.bf16.msrb.mxu3 %v1320_v25  ;;  %v1255_v26 = vmax.f32 %v15790_v2, %v1191_v18  ;;  %v1183_v28 = vmul.f32 0.01, %v1068_v51  ;;  %v1315_v61 = vpack.c.bf16 %v1263_v16, %v1259_v55  ;;  %v1316_v59 = vpack.c.bf16 %v1264_v54, %v1260_v45  ;;  %v5171_v13 = vld [vmem:[%s10444_s14 + $0x70] sm:$0xff]  ;;  %v5169_v55 = vld [vmem:[%s10444_s14 + $0x60] sm:$0xff]  ;;  %v9242_v2 = vld [vmem:[%s10459_s13 + $0x8] sm:$0xff]  ;;  %v10485_v54 = vpop.permute.xlu2 %1478 }
 0x157   : > { %v1256_v38 = vmax.f32 %v15794_v33, %v1192_v57  ;;  %v1184_v48 = vmul.f32 0.01, %v1133_v41  ;;  %v1305_v1 = vpack.c.bf16 %v1245_v34, %v1241_v12  ;;  %v1306_v50 = vpack.c.bf16 %v1246_v17, %v1242_v31  ;;  %5261 = vperm.xlu1 %9460, %v5171_v13   ;;  %2548 = vperm.xlu0 %9459, %v2414_v22   ;;  %v5185_v45 = vld [vmem:[%s10444_s14 + $0xe0] sm:$0xff]  ;;  %v5186_v18 = vld [vmem:[%s10444_s14 + $0xe8] sm:$0xff]  ;;  %v5168_v9 = vld [vmem:[%s10444_s14 + $0x58] sm:$0xff]  ;;  %v10508_v12 = vpop.permute.xlu1 %1473 }
 0x158   : > { %1752 = vmatpush.bf16.msrb.mxu1 %v1310_v42  ;;  %v1243_v15 = vmax.f32 %v15809_v35, %v1179_v3  ;;  %v1244_v47 = vmax.f32 %v15810_v36, %v1180_v6  ;;  %v1311_v62 = vpack.c.bf16 %v1255_v26, %v1251_v43  ;;  %v1247_v5 = vmax.f32 %v1068_v51, %v1183_v28  ;;  %v5167_v32 = vld [vmem:[%s10444_s14 + $0x50] sm:$0xff]  ;;  %v5165_v51 = vld [vmem:[%s10444_s14 + $0x40] sm:$0xff]  ;;  %v5184_v60 = vld [vmem:[%s10444_s14 + $0xd8] sm:$0xff] }
 0x159   : > { %1840 = vmatpush.bf16.msrb.mxu2 %v1315_v61  ;;  %v1312_v30 = vpack.c.bf16 %v1256_v38, %v1252_v0  ;;  %v1248_v49 = vmax.f32 %v1133_v41, %v1184_v48  ;;  %5266 = vperm.xlu2 %9461, %v5172_v46   ;;  %v5183_v11 = vld [vmem:[%s10444_s14 + $0xd0] sm:$0xff]  ;;  %v5166_v33 = vld [vmem:[%s10444_s14 + $0x48] sm:$0xff]  ;;  %v5181_v25 = vld [vmem:[%s10444_s14 + $0xc0] sm:$0xff]  ;;  %15811 = vst [vmem:[#allocation15_spill] sm:$0xff] %v10487_v40 }
 0x15a   : > { %1663 = vmatpush.bf16.msrb.mxu0 %v1309_v10  ;;  %1929 = vmatpush.bf16.msrb.mxu3 %v1316_v59  ;;  %v1307_v39 = vpack.c.bf16 %v1247_v5, %v1243_v15  ;;  %v9243_v41 = vld [vmem:[%s10459_s13 + $0x10] sm:$0xff]  ;;  %v5182_v57 = vld [vmem:[%s10444_s14 + $0xc8] sm:$0xff]  ;;  %v5164_v37 = vld [vmem:[%s10444_s14 + $0x38] sm:$0xff] }
 0x15b   : > { %v1308_v56 = vpack.c.bf16 %v1248_v49, %v1244_v47  ;;  %v5163_v16 = vld [vmem:[%s10444_s14 + $0x30] sm:$0xff]  ;;  %v9244_v10 = vld [vmem:[%s10459_s13 + $0x18] sm:$0xff]  ;;  %v5162_v20 = vld [vmem:[%s10444_s14 + $0x28] sm:$0xff]  ;;  %v10497_v21 = vpop.permute.xlu0 %1468 }
 0x15c   : > { %1753 = vmatpush.bf16.msrb.mxu1 %v1306_v50  ;;  %v5179_v24 = vld [vmem:[%s10444_s14 + $0xb0] sm:$0xff]  ;;  %v5180_v23 = vld [vmem:[%s10444_s14 + $0xb8] sm:$0xff]  ;;  %v5161_v42 = vld [vmem:[%s10444_s14 + $0x20] sm:$0xff] }
 0x15d   : > { %1841 = vmatpush.bf16.msrb.mxu2 %v1311_v62  ;;  %v5177_v29 = vld [vmem:[%s10444_s14 + $0xa0] sm:$0xff]  ;;  %v5159_v34 = vld [vmem:[%s10444_s14 + $0x10] sm:$0xff]  ;;  %v5178_v53 = vld [vmem:[%s10444_s14 + $0xa8] sm:$0xff] }
 0x15e   : > { %1664 = vmatpush.bf16.msrb.mxu0 %v1305_v1  ;;  %1930 = vmatpush.bf16.msrb.mxu3 %v1312_v30  ;;  %v10493_v27 = vpop.permute.xlu2 %1463  ;;  %v9245_v17 = vld [vmem:[%s10459_s13 + $0x20] sm:$0xff]  ;;  %v5160_v14 = vld [vmem:[%s10444_s14 + $0x18] sm:$0xff]  ;;  %v5175_v8 = vld [vmem:[%s10444_s14 + $0x90] sm:$0xff] }
 0x15f   : > { %1754 = vmatmul.bf16.vlgmr.msrb.gmra.mxu1 %v9241_v63  ;;  %5346 = vperm.xlu1 %9460, %v5188_v7   ;;  %v5176_v58 = vld [vmem:[%s10444_s14 + $0x98] sm:$0xff]  ;;  %v5157_v31 = vld [vmem:[%s10444_s14] sm:$0xff]  ;;  %v10517_v36 = vpop.permute.xlu1 %1558  ;;  %v5158_v43 = vld [vmem:[%s10444_s14 + $0x8] sm:$0xff] }
 0x160   : > { %5341 = vperm.xlu0 %9459, %v5187_v44   ;;  %15815 = vst [vmem:[#allocation9_spill] sm:$0xff] %v10517_v36  ;;  %v5173_v6 = vld [vmem:[%s10444_s14 + $0x80] sm:$0xff]  ;;  %v9246_v0 = vld [vmem:[%s10459_s13 + $0x28] sm:$0xff]  ;;  %v7444_v59 = vld [vmem:[%s10529_s15 + $0x78] sm:$0xff] }
 0x161   : > { %1665 = vmatmul.bf16.vlgmr.msrb.gmra.mxu0 %v9241_v63  ;;  %1842 = vmatpush.bf16.msrb.mxu2 %v1307_v39  ;;  %v5174_v26 = vld [vmem:[%s10444_s14 + $0x88] sm:$0xff]  ;;  %v7443_v38 = vld [vmem:[%s10529_s15 + $0x70] sm:$0xff]  ;;  %v7441_v1 = vld [vmem:[%s10529_s15 + $0x60] sm:$0xff]  ;;  %s16774_s14 = sld [smem:[#allocation142_spill]] }
 0x162   : > { %1931 = vmatpush.bf16.msrb.mxu3 %v1308_v56  ;;  %5251 = vperm.xlu2 %9461, %v5169_v55   ;;  %v7439_v13 = vld [vmem:[%s10529_s15 + $0x50] sm:$0xff]  ;;  %v7442_v22 = vld [vmem:[%s10529_s15 + $0x68] sm:$0xff]  ;;  %v7440_v47 = vld [vmem:[%s10529_s15 + $0x58] sm:$0xff] }
 0x163   : > { %v10506_v19 = vpop.permute.xlu0 %1453  ;;  %v9247_v15 = vld [vmem:[%s10459_s13 + $0x30] sm:$0xff]  ;;  %v7437_v30 = vld [vmem:[%s10529_s15 + $0x40] sm:$0xff]  ;;  %v7436_v44 = vld [vmem:[%s10529_s15 + $0x38] sm:$0xff] }
 0x164   : > { %1843 = vmatmul.bf16.vlgmr.msrb.gmra.mxu2 %v9241_v63  ;;  %v7435_v49 = vld [vmem:[%s10529_s15 + $0x30] sm:$0xff]  ;;  %v7433_v7 = vld [vmem:[%s10529_s15 + $0x20] sm:$0xff]  ;;  %v9248_v55 = vld [vmem:[%s10459_s13 + $0x38] sm:$0xff] }
 0x165   : > { %1932 = vmatmul.bf16.vlgmr.msrb.gmra.mxu3 %v9241_v63  ;;  %v7438_v63 = vld [vmem:[%s10529_s15 + $0x48] sm:$0xff] }
 0x166   : > { %v10502_v4 = vpop.permute.xlu2 %1548 }
 0x167   : > { %5331 = vperm.xlu1 %9460, %v5185_v45   ;;  %15812 = vst [vmem:[#allocation10_spill] sm:$0xff] %v10502_v4  ;;  %v10535_v48 = vpop.permute.xlu1 %1543  ;;  %v7434_v45 = vld [vmem:[%s10529_s15 + $0x28] sm:$0xff]  ;;  %s15139_s18 = scalar_lea.vmem %s16774_s14, %s9230_s17 }
 0x168   : > { %5256 = vperm.xlu0 %9459, %v5170_v52   ;;  %15817 = vst [vmem:[#allocation28_spill] sm:$0xff] %v10535_v48 }
 0x16a   : > { %5336 = vperm.xlu2 %9461, %v5186_v18  }
 0x16b   : > { %v10515_v3 = vpop.permute.xlu0 %1538 }
 0x16c   : > { %15814 = vst [vmem:[#allocation16_spill] sm:$0xff] %v10515_v3 }
 0x16e   : > { %v10513_v35 = vpop.permute.xlu2 %1533 }
 0x16f   : > { %1759 = vmatmul.bf16.gmra.mxu1 %v9242_v2  ;;  %5246 = vperm.xlu1 %9460, %v5168_v9   ;;  %15813 = vst [vmem:[#allocation11_spill] sm:$0xff] %v10513_v35  ;;  %v10546_v62 = vpop.permute.xlu1 %1458  ;;  %v7432_v9 = vld [vmem:[%s10529_s15 + $0x18] sm:$0xff] }
 0x170   : > { %5241 = vperm.xlu0 %9459, %v5167_v32   ;;  %v7431_v32 = vld [vmem:[%s10529_s15 + $0x10] sm:$0xff] }
 0x171   : > { %1670 = vmatmul.bf16.gmra.mxu0 %v9242_v2 }
 0x172   : > { %5321 = vperm.xlu2 %9461, %v5183_v11   ;;  %v7429_v11 = vld [vmem:[%s10529_s15] sm:$0xff] }
 0x173   : > { %v10531_v61 = vpop.permute.xlu0 %1523 }
 0x174   : > { %1848 = vmatmul.bf16.gmra.mxu2 %v9242_v2  ;;  %15816 = vst [vmem:[#allocation12_spill] sm:$0xff] %v10531_v61 }
 0x175   : > { %1937 = vmatmul.bf16.gmra.mxu3 %v9242_v2 }
 0x176   : > { %v10523_v28 = vpop.permute.xlu2 %1448 }
 0x177   : > { %5231 = vperm.xlu1 %9460, %v5165_v51   ;;  %v10555_v56 = vpop.permute.xlu1 %1443 }
 0x178   : > { %5326 = vperm.xlu0 %9459, %v5184_v60  }
 0x17a   : > { %5236 = vperm.xlu2 %9461, %v5166_v33   ;;  %v7430_v33 = vld [vmem:[%s10529_s15 + $0x8] sm:$0xff] }
 0x17b   : > { %v10542_v46 = vpop.permute.xlu0 %1438 }
 0x17e   : > { %v10538_v50 = vpop.permute.xlu2 %1433 }
 0x17f   : > { %1764 = vmatmul.bf16.gmra.mxu1 %v9243_v41  ;;  %5316 = vperm.xlu1 %9460, %v5182_v57   ;;  %v10565_v18 = vpop.permute.xlu1 %1528 }
 0x180   : > { %5311 = vperm.xlu0 %9459, %v5181_v25   ;;  %15821 = vst [vmem:[#allocation61_spill] sm:$0xff] %v10565_v18  ;;  %v9249_v25 = vld [vmem:[%s10459_s13 + $0x40] sm:$0xff] }
 0x181   : > { %1675 = vmatmul.bf16.gmra.mxu0 %v9243_v41 }
 0x182   : > { %5221 = vperm.xlu2 %9461, %v5163_v16  }
 0x183   : > { %v10553_v39 = vpop.permute.xlu0 %1423 }
 0x184   : > { %1853 = vmatmul.bf16.gmra.mxu2 %v9243_v41 }
 0x185   : > { %1942 = vmatmul.bf16.gmra.mxu3 %v9243_v41  ;;  %v8158_v41 = vld [vmem:[%s725_s25] sm:$0x7] }
 0x186   : > { %v10550_v5 = vpop.permute.xlu2 %1518 }
 0x187   : > { %5301 = vperm.xlu1 %9460, %v5179_v24   ;;  %15818 = vst [vmem:[#allocation29_spill] sm:$0xff] %v10550_v5  ;;  %v10579_v57 = vpop.permute.xlu1 %1513 }
 0x188   : > { %5226 = vperm.xlu0 %9459, %v5164_v37   ;;  %15823 = vst [vmem:[#allocation57_spill] sm:$0xff] %v10579_v57 }
 0x18a   : > { %5306 = vperm.xlu2 %9461, %v5180_v23  }
 0x18b   : > { %v10563_v2 = vpop.permute.xlu0 %1508 }
 0x18c   : > { %15820 = vst [vmem:[#allocation14_spill] sm:$0xff] %v10563_v2 }
 0x18e   : > { %v10561_v52 = vpop.permute.xlu2 %1503 }
 0x18f   : > { %1769 = vmatmul.bf16.gmra.mxu1 %v9244_v10  ;;  %5216 = vperm.xlu1 %9460, %v5162_v20   ;;  %15819 = vst [vmem:[#allocation13_spill] sm:$0xff] %v10561_v52 }
 0x190   : > { %5211 = vperm.xlu0 %9459, %v5161_v42  }
 0x191   : > { %1680 = vmatmul.bf16.gmra.mxu0 %v9244_v10 }
 0x192   : > { %5291 = vperm.xlu2 %9461, %v5177_v29  }
 0x193   : > { %v10576_v60 = vpop.permute.xlu0 %1493 }
 0x194   : > { %1858 = vmatmul.bf16.gmra.mxu2 %v9244_v10  ;;  %15822 = vst [vmem:[#allocation53_spill] sm:$0xff] %v10576_v60 }
 0x195   : > { %1947 = vmatmul.bf16.gmra.mxu3 %v9244_v10 }
 0x196   : > { %v10571_v51 = vpop.permute.xlu2 %1418 }
 0x197   : > { %5201 = vperm.xlu1 %9460, %v5159_v34   ;;  %v10582_v34 = vpop.permute.xlu1 %1428 }
 0x198   : > { %5296 = vperm.xlu0 %9459, %v5178_v53  }
 0x19a   : > { %5206 = vperm.xlu2 %9461, %v5160_v14  }
 0x19b   : > { %v1409_v20 = vpop.permute.xlu0 %1408 }
 0x19e   : > { %v1404_v37 = vpop.permute.xlu2 %1403 }
 0x19f   : > { %1774 = vmatmul.bf16.gmra.mxu1 %v9245_v17  ;;  %5286 = vperm.xlu1 %9460, %v5176_v58  }
 0x1a0   : > { %5281 = vperm.xlu0 %9459, %v5175_v8  }
 0x1a1   : > { %1685 = vmatmul.bf16.gmra.mxu0 %v9245_v17 }
 0x1a2   : > { %5191 = vperm.xlu2 %9461, %v5157_v31  }
 0x1a4   : > { %1863 = vmatmul.bf16.gmra.mxu2 %v9245_v17 }
 0x1a5   : > { %1952 = vmatmul.bf16.gmra.mxu3 %v9245_v17 }
 0x1a7   : > { %5271 = vperm.xlu1 %9460, %v5173_v6  }
 0x1a8   : > { %5196 = vperm.xlu0 %9459, %v5158_v43  }
 0x1aa   : > { %5276 = vperm.xlu2 %9461, %v5174_v26  }
 0x1af   : > { %1779 = vmatmul.bf16.gmra.mxu1 %v9246_v0  ;;  %7522 = vperm.xlu1 %9460, %v7444_v59  }
 0x1b0   : > { %7517 = vperm.xlu0 %9459, %v7443_v38  }
 0x1b1   : > { %1690 = vmatmul.bf16.gmra.mxu0 %v9246_v0 }
 0x1b2   : > { %7507 = vperm.xlu2 %9461, %v7441_v1   ;;  %v9250_v1 = vld [vmem:[%s10459_s13 + $0x48] sm:$0xff] }
 0x1b4   : > { %1868 = vmatmul.bf16.gmra.mxu2 %v9246_v0 }
 0x1b5   : > { %1957 = vmatmul.bf16.gmra.mxu3 %v9246_v0 }
 0x1b7   : > { %7497 = vperm.xlu1 %9460, %v7439_v13  }
 0x1b8   : > { %7512 = vperm.xlu0 %9459, %v7442_v22  }
 0x1ba   : > { %7502 = vperm.xlu2 %9461, %v7440_v47  }
 0x1bf   : > { %1784 = vmatmul.bf16.gmra.mxu1 %v9247_v15  ;;  %7492 = vperm.xlu1 %9460, %v7438_v63  }
 0x1c0   : > { %7487 = vperm.xlu0 %9459, %v7437_v30  }
 0x1c1   : > { %1695 = vmatmul.bf16.gmra.mxu0 %v9247_v15 }
 0x1c2   : > { %7477 = vperm.xlu2 %9461, %v7435_v49   ;;  %v1414_v49 = vpop.permute.xlu1 %1413 }
 0x1c4   : > { %1873 = vmatmul.bf16.gmra.mxu2 %v9247_v15 }
 0x1c5   : > { %1962 = vmatmul.bf16.gmra.mxu3 %v9247_v15 }
 0x1c7   : > { %7467 = vperm.xlu1 %9460, %v7433_v7  }
 0x1c8   : > { %7482 = vperm.xlu0 %9459, %v7436_v44  }
 0x1ca   : > { %7472 = vperm.xlu2 %9461, %v7434_v45  }
 0x1cf   : > { %1789 = vmatmul.bf16.gmra.mxu1 %v9248_v55  ;;  %7462 = vperm.xlu1 %9460, %v7432_v9  }
 0x1d0   : > { %7457 = vperm.xlu0 %9459, %v7431_v32  }
 0x1d1   : > { %1700 = vmatmul.bf16.gmra.mxu0 %v9248_v55 }
 0x1d2   : > { %7447 = vperm.xlu2 %9461, %v7429_v11  }
 0x1d4   : > { %1878 = vmatmul.bf16.gmra.mxu2 %v9248_v55 }
 0x1d5   : > { %1967 = vmatmul.bf16.gmra.mxu3 %v9248_v55 }
 0x1d7   : > { %8161 = vperm.xlu1 %9460, %v8158_v41  }
 0x1d8   : > { %7452 = vperm.xlu0 %9459, %v7430_v33  }
 0x1dc   : > { %v1755_v24 = vpop.f32.mrf.mxu1 }
 0x1dd   : > { %v1756_v23 = vadd.f32 %v1755_v24, %v1404_v37 }
 0x1de   : > { %v1666_v16 = vpop.f32.mrf.mxu0 }
 0x1df   : > { %1794 = vmatmul.bf16.gmra.mxu1 %v9249_v25  ;;  %v1667_v10 = vadd.f32 %v1666_v16, %v1404_v37  ;;  %v2014_v17 = vmul.f32 0.01, %v1756_v23 }
 0x1e1   : > { %1705 = vmatmul.bf16.gmra.mxu0 %v9249_v25  ;;  %v2013_v53 = vmul.f32 0.01, %v1667_v10  ;;  %v2142_v26 = vmax.f32 %v1756_v23, %v2014_v17 }
 0x1e3   : > { %v2141_v0 = vmax.f32 %v1667_v10, %v2013_v53 }
 0x1e4   : > { %v1757_v29 = vpop.f32.mrf.mxu1  ;;  %1883 = vmatmul.bf16.gmra.mxu2 %v9249_v25 }
 0x1e5   : > { %v1758_v58 = vadd.f32 %v1757_v29, %v1409_v20  ;;  %1972 = vmatmul.bf16.gmra.mxu3 %v9249_v25 }
 0x1e6   : > { %v1668_v42 = vpop.f32.mrf.mxu0 }
 0x1e7   : > { %v1669_v14 = vadd.f32 %v1668_v42, %v1409_v20  ;;  %v2018_v31 = vmul.f32 0.01, %v1758_v58  ;;  %v1844_v6 = vpop.f32.mrf.mxu2 }
 0x1e8   : > { %v1933_v43 = vpop.f32.mrf.mxu3  ;;  %v1845_v15 = vadd.f32 %v1844_v6, %v1404_v37 }
 0x1e9   : > { %v2017_v8 = vmul.f32 0.01, %v1669_v14  ;;  %v2146_v38 = vmax.f32 %v1758_v58, %v2018_v31  ;;  %v1934_v47 = vadd.f32 %v1933_v43, %v1404_v37 }
 0x1ea   : > { %v2015_v7 = vmul.f32 0.01, %v1845_v15 }
 0x1eb   : > { %v2145_v59 = vmax.f32 %v1669_v14, %v2017_v8  ;;  %v10587_v22 = vpack.c.bf16 %v2146_v38, %v2142_v26  ;;  %v2016_v44 = vmul.f32 0.01, %v1934_v47 }
 0x1ec   : > { %v1760_v30 = vpop.f32.mrf.mxu1  ;;  %v2143_v16 = vmax.f32 %v1845_v15, %v2015_v7  ;;  %v9251_v15 = vld [vmem:[%s10459_s13 + $0x50] sm:$0xff] }
 0x1ed   : > { %v10585_v13 = vpack.c.bf16 %v2145_v59, %v2141_v0  ;;  %v1761_v45 = vadd.f32 %v1760_v30, %v1414_v49  ;;  %v2144_v24 = vmax.f32 %v1934_v47, %v2016_v44 }
 0x1ee   : > { %v1671_v63 = vpop.f32.mrf.mxu0 }
 0x1ef   : > { %1799 = vmatmul.bf16.gmra.mxu1 %v9250_v1  ;;  %v1672_v55 = vadd.f32 %v1671_v63, %v1414_v49  ;;  %v1846_v9 = vpop.f32.mrf.mxu2  ;;  %v2022_v23 = vmul.f32 0.01, %v1761_v45 }
 0x1f0   : > { %v1935_v32 = vpop.f32.mrf.mxu3  ;;  %v1847_v11 = vadd.f32 %v1846_v9, %v1409_v20 }
 0x1f1   : > { %1710 = vmatmul.bf16.gmra.mxu0 %v9250_v1  ;;  %v1936_v41 = vadd.f32 %v1935_v32, %v1409_v20  ;;  %v2021_v10 = vmul.f32 0.01, %v1672_v55  ;;  %v2150_v26 = vmax.f32 %v1761_v45, %v2022_v23 }
 0x1f2   : > { %v2019_v33 = vmul.f32 0.01, %v1847_v11 }
 0x1f3   : > { %v2020_v25 = vmul.f32 0.01, %v1936_v41  ;;  %v2149_v0 = vmax.f32 %v1672_v55, %v2021_v10 }
 0x1f4   : > { %v1762_v42 = vpop.f32.mrf.mxu1  ;;  %v2147_v29 = vmax.f32 %v1847_v11, %v2019_v33  ;;  %1888 = vmatmul.bf16.gmra.mxu2 %v9250_v1 }
 0x1f5   : > { %v2148_v53 = vmax.f32 %v1936_v41, %v2020_v25  ;;  %v1763_v14 = vadd.f32 %v1762_v42, %v10571_v51  ;;  %1977 = vmatmul.bf16.gmra.mxu3 %v9250_v1 }
 0x1f6   : > { %v1673_v37 = vpop.f32.mrf.mxu0  ;;  %v10591_v20 = vpack.c.bf16 %v2147_v29, %v2143_v16 }
 0x1f7   : > { %v1674_v17 = vadd.f32 %v1673_v37, %v10571_v51  ;;  %v2026_v8 = vmul.f32 0.01, %v1763_v14  ;;  %v10593_v31 = vpack.c.bf16 %v2148_v53, %v2144_v24  ;;  %v1849_v6 = vpop.f32.mrf.mxu2 }
 0x1f8   : > { %15824 = vst [vmem:[#allocation46_spill] sm:$0xff] %v10591_v20  ;;  %v1938_v43 = vpop.f32.mrf.mxu3  ;;  %v1850_v30 = vadd.f32 %v1849_v6, %v1414_v49 }
 0x1f9   : > { %v2025_v58 = vmul.f32 0.01, %v1674_v17  ;;  %15825 = vst [vmem:[#allocation58_spill] sm:$0xff] %v10593_v31  ;;  %v2154_v38 = vmax.f32 %v1763_v14, %v2026_v8  ;;  %v1939_v7 = vadd.f32 %v1938_v43, %v1414_v49 }
 0x1fa   : > { %v2023_v9 = vmul.f32 0.01, %v1850_v30 }
 0x1fb   : > { %v2153_v59 = vmax.f32 %v1674_v17, %v2025_v58  ;;  %v10598_v63 = vpack.c.bf16 %v2154_v38, %v2150_v26  ;;  %v2024_v32 = vmul.f32 0.01, %v1939_v7 }
 0x1fc   : > { %v1765_v44 = vpop.f32.mrf.mxu1  ;;  %v2151_v10 = vmax.f32 %v1850_v30, %v2023_v9 }
 0x1fd   : > { %v10596_v47 = vpack.c.bf16 %v2153_v59, %v2149_v0  ;;  %v1766_v55 = vadd.f32 %v1765_v44, %v10553_v39  ;;  %v2152_v49 = vmax.f32 %v1939_v7, %v2024_v32 }
 0x1fe   : > { %v1676_v1 = vpop.f32.mrf.mxu0 }
 0x1ff   : > { %1804 = vmatmul.bf16.gmra.mxu1 %v9251_v15  ;;  %v1677_v11 = vadd.f32 %v1676_v1, %v10553_v39  ;;  %v1851_v45 = vpop.f32.mrf.mxu2  ;;  %v2030_v37 = vmul.f32 0.01, %v1766_v55  ;;  %v9252_v1 = vld [vmem:[%s10459_s13 + $0x58] sm:$0xff] }
 0x200   : > { %v1940_v41 = vpop.f32.mrf.mxu3  ;;  %v1852_v33 = vadd.f32 %v1851_v45, %v10571_v51 }
 0x201   : > { %1715 = vmatmul.bf16.gmra.mxu0 %v9251_v15  ;;  %v1941_v25 = vadd.f32 %v1940_v41, %v10571_v51  ;;  %v2029_v23 = vmul.f32 0.01, %v1677_v11  ;;  %v2158_v38 = vmax.f32 %v1766_v55, %v2030_v37 }
 0x202   : > { %v2027_v16 = vmul.f32 0.01, %v1852_v33 }
 0x203   : > { %v2028_v24 = vmul.f32 0.01, %v1941_v25  ;;  %v2157_v59 = vmax.f32 %v1677_v11, %v2029_v23 }
 0x204   : > { %v1767_v29 = vpop.f32.mrf.mxu1  ;;  %v2155_v53 = vmax.f32 %v1852_v33, %v2027_v16  ;;  %1893 = vmatmul.bf16.gmra.mxu2 %v9251_v15 }
 0x205   : > { %v2156_v17 = vmax.f32 %v1941_v25, %v2028_v24  ;;  %v1768_v58 = vadd.f32 %v1767_v29, %v10582_v34  ;;  %1982 = vmatmul.bf16.gmra.mxu3 %v9251_v15 }
 0x206   : > { %v1678_v42 = vpop.f32.mrf.mxu0  ;;  %v10606_v51 = vpack.c.bf16 %v2155_v53, %v2151_v10 }
 0x207   : > { %v1679_v14 = vadd.f32 %v1678_v42, %v10582_v34  ;;  %v2034_v6 = vmul.f32 0.01, %v1768_v58  ;;  %v10608_v43 = vpack.c.bf16 %v2156_v17, %v2152_v49  ;;  %v1854_v0 = vpop.f32.mrf.mxu2 }
 0x208   : > { %15826 = vst [vmem:[#allocation47_spill] sm:$0xff] %v10606_v51  ;;  %v1943_v26 = vpop.f32.mrf.mxu3  ;;  %v1855_v32 = vadd.f32 %v1854_v0, %v10553_v39 }
 0x209   : > { %v2033_v8 = vmul.f32 0.01, %v1679_v14  ;;  %15827 = vst [vmem:[#allocation59_spill] sm:$0xff] %v10608_v43  ;;  %v2162_v7 = vmax.f32 %v1768_v58, %v2034_v6  ;;  %v1944_v15 = vadd.f32 %v1943_v26, %v10553_v39 }
 0x20a   : > { %v2031_v33 = vmul.f32 0.01, %v1855_v32 }
 0x20b   : > { %v2161_v30 = vmax.f32 %v1679_v14, %v2033_v8  ;;  %v10613_v9 = vpack.c.bf16 %v2162_v7, %v2158_v38  ;;  %v2032_v25 = vmul.f32 0.01, %v1944_v15 }
 0x20c   : > { %v1770_v41 = vpop.f32.mrf.mxu1  ;;  %v2159_v42 = vmax.f32 %v1855_v32, %v2031_v33  ;;  %v9253_v33 = vld [vmem:[%s10459_s13 + $0x60] sm:$0xff] }
 0x20d   : > { %v10611_v44 = vpack.c.bf16 %v2161_v30, %v2157_v59  ;;  %v1771_v55 = vadd.f32 %v1770_v41, %v10538_v50  ;;  %v2160_v39 = vmax.f32 %v1944_v15, %v2032_v25 }
 0x20e   : > { %v1681_v45 = vpop.f32.mrf.mxu0 }
 0x20f   : > { %1809 = vmatmul.bf16.gmra.mxu1 %v9252_v1  ;;  %v1682_v11 = vadd.f32 %v1681_v45, %v10538_v50  ;;  %v1856_v16 = vpop.f32.mrf.mxu2  ;;  %v2038_v53 = vmul.f32 0.01, %v1771_v55 }
 0x210   : > { %v1945_v24 = vpop.f32.mrf.mxu3  ;;  %v1857_v10 = vadd.f32 %v1856_v16, %v10582_v34 }
 0x211   : > { %1720 = vmatmul.bf16.gmra.mxu0 %v9252_v1  ;;  %v1946_v49 = vadd.f32 %v1945_v24, %v10582_v34  ;;  %v2037_v29 = vmul.f32 0.01, %v1682_v11  ;;  %v2166_v15 = vmax.f32 %v1771_v55, %v2038_v53 }
 0x212   : > { %v2035_v23 = vmul.f32 0.01, %v1857_v10 }
 0x213   : > { %v2036_v37 = vmul.f32 0.01, %v1946_v49  ;;  %v2165_v32 = vmax.f32 %v1682_v11, %v2037_v29 }
 0x214   : > { %v1772_v14 = vpop.f32.mrf.mxu1  ;;  %v2163_v58 = vmax.f32 %v1857_v10, %v2035_v23  ;;  %1898 = vmatmul.bf16.gmra.mxu2 %v9252_v1 }
 0x215   : > { %v2164_v8 = vmax.f32 %v1946_v49, %v2036_v37  ;;  %v1773_v0 = vadd.f32 %v1772_v14, %v10542_v46  ;;  %1987 = vmatmul.bf16.gmra.mxu3 %v9252_v1 }
 0x216   : > { %v1683_v17 = vpop.f32.mrf.mxu0  ;;  %v10623_v34 = vpack.c.bf16 %v2163_v58, %v2159_v42 }
 0x217   : > { %v1684_v6 = vadd.f32 %v1683_v17, %v10542_v46  ;;  %v2042_v59 = vmul.f32 0.01, %v1773_v0  ;;  %v10625_v38 = vpack.c.bf16 %v2164_v8, %v2160_v39  ;;  %v1859_v30 = vpop.f32.mrf.mxu2 }
 0x218   : > { %15828 = vst [vmem:[#allocation60_spill] sm:$0xff] %v10623_v34  ;;  %v1948_v7 = vpop.f32.mrf.mxu3  ;;  %v1860_v10 = vadd.f32 %v1859_v30, %v10538_v50  ;;  %v9254_v30 = vld [vmem:[%s10459_s13 + $0x68] sm:$0xff] }
 0x219   : > { %v2041_v26 = vmul.f32 0.01, %v1684_v6  ;;  %15829 = vst [vmem:[#allocation62_spill] sm:$0xff] %v10625_v38  ;;  %v2170_v41 = vmax.f32 %v1773_v0, %v2042_v59  ;;  %v1949_v49 = vadd.f32 %v1948_v7, %v10538_v50 }
 0x21a   : > { %v2039_v55 = vmul.f32 0.01, %v1860_v10 }
 0x21b   : > { %v2169_v45 = vmax.f32 %v1684_v6, %v2041_v26  ;;  %v10630_v16 = vpack.c.bf16 %v2170_v41, %v2166_v15  ;;  %v2040_v37 = vmul.f32 0.01, %v1949_v49 }
 0x21c   : > { %v10634_v1 = vpop.f32.mrf.mxu1  ;;  %v2167_v58 = vmax.f32 %v1860_v10, %v2039_v55 }
 0x21d   : > { %v10628_v25 = vpack.c.bf16 %v2169_v45, %v2165_v32  ;;  %v2168_v8 = vmax.f32 %v1949_v49, %v2040_v37 }
 0x21e   : > { %v10632_v24 = vpop.f32.mrf.mxu0 }
 0x21f   : > { %1814 = vmatmul.bf16.gmra.mxu1 %v9253_v33  ;;  %v1861_v23 = vpop.f32.mrf.mxu2 }
 0x220   : > { %v1950_v11 = vpop.f32.mrf.mxu3  ;;  %v1862_v42 = vadd.f32 %v1861_v23, %v10542_v46  ;;  %v9255_v23 = vld [vmem:[%s10459_s13 + $0x70] sm:$0xff] }
 0x221   : > { %1725 = vmatmul.bf16.gmra.mxu0 %v9253_v33  ;;  %v1951_v39 = vadd.f32 %v1950_v11, %v10542_v46 }
 0x222   : > { %v2043_v29 = vmul.f32 0.01, %v1862_v42 }
 0x223   : > { %v2044_v53 = vmul.f32 0.01, %v1951_v39 }
 0x224   : > { %v10642_v14 = vpop.f32.mrf.mxu1  ;;  %v2171_v50 = vmax.f32 %v1862_v42, %v2043_v29  ;;  %1903 = vmatmul.bf16.gmra.mxu2 %v9253_v33 }
 0x225   : > { %v2172_v6 = vmax.f32 %v1951_v39, %v2044_v53  ;;  %1992 = vmatmul.bf16.gmra.mxu3 %v9253_v33 }
 0x226   : > { %v10640_v17 = vpop.f32.mrf.mxu0  ;;  %v10644_v0 = vpack.c.bf16 %v2171_v50, %v2167_v58 }
 0x227   : > { %v10646_v26 = vpack.c.bf16 %v2172_v6, %v2168_v8  ;;  %v10648_v59 = vpop.f32.mrf.mxu2  ;;  %v9256_v8 = vld [vmem:[%s10459_s13 + $0x78] sm:$0xff]  ;;  %s16699_s13 = sld [smem:[#allocation140_spill]] }
 0x228   : > { %v10650_v46 = vpop.f32.mrf.mxu3 }
 0x229   : > { %15830 = vst [vmem:[#allocation63_spill] sm:$0xff] %v10646_v26 }
 0x22c   : > { %v10655_v32 = vpop.f32.mrf.mxu1 }
 0x22d   : > { %s14483_s22 = scalar_lea.vmem %s16699_s13, %s9689_s9  ;;  %s8515_s9 = sshll.u32 %s16783_s28, 1 }
 0x22e   : > { %v10653_v7 = vpop.f32.mrf.mxu0  ;;  %s721_s21 = scalar_lea.vmem %s16766_s19, %s8515_s9 }
 0x22f   : > { %1819 = vmatmul.bf16.gmra.mxu1 %v9254_v30  ;;  %v10657_v15 = vpop.f32.mrf.mxu2 }
 0x230   : > { %v10659_v45 = vpop.f32.mrf.mxu3 }
 0x231   : > { %1730 = vmatmul.bf16.gmra.mxu0 %v9254_v30 }
 0x234   : > { %v1782_v33 = vpop.f32.mrf.mxu1  ;;  %1908 = vmatmul.bf16.gmra.mxu2 %v9254_v30 }
 0x235   : > { %1997 = vmatmul.bf16.gmra.mxu3 %v9254_v30 }
 0x236   : > { %v1693_v41 = vpop.f32.mrf.mxu0 }
 0x237   : > { %v10661_v10 = vpop.f32.mrf.mxu2 }
 0x238   : > { %v10663_v49 = vpop.f32.mrf.mxu3 }
 0x23c   : > { %v1785_v55 = vpop.f32.mrf.mxu1 }
 0x23e   : > { %v1696_v11 = vpop.f32.mrf.mxu0 }
 0x23f   : > { %1824 = vmatmul.bf16.gmra.mxu1 %v9255_v23  ;;  %v10666_v37 = vpop.f32.mrf.mxu2 }
 0x240   : > { %v10668_v42 = vpop.f32.mrf.mxu3 }
 0x241   : > { %1735 = vmatmul.bf16.gmra.mxu0 %v9255_v23 }
 0x244   : > { %v1787_v29 = vpop.f32.mrf.mxu1  ;;  %1913 = vmatmul.bf16.gmra.mxu2 %v9255_v23 }
 0x245   : > { %2002 = vmatmul.bf16.gmra.mxu3 %v9255_v23  ;;  %v1788_v35 = vadd.f32 %v1787_v29, %v10497_v21 }
 0x246   : > { %v1698_v39 = vpop.f32.mrf.mxu0 }
 0x247   : > { %v1874_v53 = vpop.f32.mrf.mxu2 }
 0x248   : > { %v1963_v58 = vpop.f32.mrf.mxu3  ;;  %v1875_v50 = vadd.f32 %v1874_v53, %v10493_v27  ;;  %v1699_v53 = vadd.f32 %v1698_v39, %v10497_v21  ;;  %v1694_v39 = vadd.f32 %v1693_v41, %v10546_v62 }
 0x249   : > { %v1964_v6 = vadd.f32 %v1963_v58, %v10493_v27  ;;  %v1697_v58 = vadd.f32 %v1696_v11, %v10493_v27  ;;  %v1786_v11 = vadd.f32 %v1785_v55, %v10493_v27 }
 0x24a   : > { %v2063_v52 = vmul.f32 0.01, %v1875_v50 }
 0x24b   : > { %v2064_v2 = vmul.f32 0.01, %v1964_v6 }
 0x24c   : > { %v1790_v60 = vpop.f32.mrf.mxu1  ;;  %v2191_v4 = vmax.f32 %v1875_v50, %v2063_v52 }
 0x24d   : > { %v1791_v5 = vadd.f32 %v1790_v60, %v10508_v12  ;;  %v2192_v40 = vmax.f32 %v1964_v6, %v2064_v2 }
 0x24e   : > { %v1701_v30 = vpop.f32.mrf.mxu0 }
 0x24f   : > { %1829 = vmatmul.bf16.gmra.mxu1 %v9256_v8  ;;  %v1702_v57 = vadd.f32 %v1701_v30, %v10508_v12  ;;  %v1876_v61 = vpop.f32.mrf.mxu2  ;;  %v2070_v30 = vmul.f32 0.01, %v1791_v5 }
 0x250   : > { %v1965_v18 = vpop.f32.mrf.mxu3  ;;  %v1877_v23 = vadd.f32 %v1876_v61, %v10497_v21 }
 0x251   : > { %1740 = vmatmul.bf16.gmra.mxu0 %v9256_v8  ;;  %v1966_v3 = vadd.f32 %v1965_v18, %v10497_v21  ;;  %v2069_v31 = vmul.f32 0.01, %v1702_v57  ;;  %v2065_v21 = vmul.f32 0.01, %v1699_v53 }
 0x252   : > { %v2067_v36 = vmul.f32 0.01, %v1877_v23 }
 0x253   : > { %v2068_v48 = vmul.f32 0.01, %v1966_v3  ;;  %v2197_v41 = vmax.f32 %v1702_v57, %v2069_v31  ;;  %v1687_v31 = vadd.f32 %v10632_v24, %v10555_v56 }
 0x254   : > { %v1792_v60 = vpop.f32.mrf.mxu1  ;;  %v2195_v43 = vmax.f32 %v1877_v23, %v2067_v36  ;;  %1918 = vmatmul.bf16.gmra.mxu2 %v9256_v8  ;;  %v1783_v36 = vadd.f32 %v1782_v33, %v10546_v62  ;;  %v1778_v33 = vadd.f32 %v10642_v14, %v10523_v28 }
 0x255   : > { %v2196_v51 = vmax.f32 %v1966_v3, %v2068_v48  ;;  %v1793_v18 = vadd.f32 %v1792_v60, %v10485_v54  ;;  %2007 = vmatmul.bf16.gmra.mxu3 %v9256_v8  ;;  %v1692_v3 = vadd.f32 %v10653_v7, %v10506_v19  ;;  %v2061_v48 = vmul.f32 0.01, %v1697_v58 }
 0x256   : > { %v1703_v20 = vpop.f32.mrf.mxu0  ;;  %v10684_v2 = vpack.c.bf16 %v2195_v43, %v2191_v4  ;;  %v2198_v60 = vmax.f32 %v1791_v5, %v2070_v30  ;;  %v1689_v8 = vadd.f32 %v10640_v17, %v10523_v28  ;;  %v2062_v4 = vmul.f32 0.01, %v1786_v11 }
 0x257   : > { %v1704_v61 = vadd.f32 %v1703_v20, %v10485_v54  ;;  %v2074_v52 = vmul.f32 0.01, %v1793_v18  ;;  %v10686_v50 = vpack.c.bf16 %v2196_v51, %v2192_v40  ;;  %v2066_v20 = vmul.f32 0.01, %v1788_v35  ;;  %v1879_v6 = vpop.f32.mrf.mxu2 }
 0x258   : > { %v1968_v23 = vpop.f32.mrf.mxu3  ;;  %v1781_v40 = vadd.f32 %v10655_v32, %v10506_v19  ;;  %v2057_v51 = vmul.f32 0.01, %v1694_v39  ;;  %v2193_v43 = vmax.f32 %v1699_v53, %v2065_v21  ;;  %v2058_v34 = vmul.f32 0.01, %v1783_v36 }
 0x259   : > { %v2073_v29 = vmul.f32 0.01, %v1704_v61  ;;  %v2202_v55 = vmax.f32 %v1793_v18, %v2074_v52  ;;  %v2194_v26 = vmax.f32 %v1788_v35, %v2066_v20  ;;  %v2053_v17 = vmul.f32 0.01, %v1692_v3 }
 0x25a   : > { %v2189_v30 = vmax.f32 %v1697_v58, %v2061_v48  ;;  %v1776_v32 = vadd.f32 %v10634_v1, %v10555_v56  ;;  %v2054_v53 = vmul.f32 0.01, %v1781_v40  ;;  %v2049_v18 = vmul.f32 0.01, %v1689_v8 }
 0x25b   : > { %v2201_v27 = vmax.f32 %v1704_v61, %v2073_v29  ;;  %v2298_v38 = vpack.c.bf16 %v2202_v55, %v2198_v60  ;;  %v2190_v61 = vmax.f32 %v1786_v11, %v2062_v4  ;;  %v2185_v14 = vmax.f32 %v1694_v39, %v2057_v51 }
 0x25c   : > { %v10699_v5 = vpop.f32.mrf.mxu1  ;;  %v2293_v21 = vpack.c.bf16 %v2193_v43, %v2189_v30  ;;  %v2050_v35 = vmul.f32 0.01, %v1778_v33  ;;  %v2186_v29 = vmax.f32 %v1783_v36, %v2058_v34  ;;  %v2045_v60 = vmul.f32 0.01, %v1687_v31 }
 0x25d   : > { %v2297_v7 = vpack.c.bf16 %v2201_v27, %v2197_v41  ;;  %3439 = vmatpush.bf16.msra.mxu2 %v2298_v38  ;;  %v2294_v41 = vpack.c.bf16 %v2194_v26, %v2190_v61  ;;  %v2181_v27 = vmax.f32 %v1692_v3, %v2053_v17  ;;  %v2046_v24 = vmul.f32 0.01, %v1776_v32 }
 0x25e   : > { %v10697_v57 = vpop.f32.mrf.mxu0  ;;  %v2182_v58 = vmax.f32 %v1781_v40, %v2054_v53  ;;  %v2177_v48 = vmax.f32 %v1689_v8, %v2049_v18  ;;  %v2178_v1 = vmax.f32 %v1778_v33, %v2050_v35  ;;  %v2173_v11 = vmax.f32 %v1687_v31, %v2045_v60  ;;  %v8653_v18 = vld [vmem:[%s10733_s16] sm:$0xf] }
 0x25f   : > { %3101 = vmatpush.bf16.msra.mxu0 %v2297_v7  ;;  %v1881_v52 = vpop.f32.mrf.mxu2  ;;  %v2289_v55 = vpack.c.bf16 %v2185_v14, %v2181_v27  ;;  %v2174_v34 = vmax.f32 %v1776_v32, %v2046_v24  ;;  %v1880_v33 = vadd.f32 %v1879_v6, %v10508_v12  ;;  %v1969_v31 = vadd.f32 %v1968_v23, %v10508_v12  ;;  %v9258_v14 = vld [vmem:[%s10733_s16 + $0x4] sm:$0xf0] }
 0x260   : > { %v1970_v20 = vpop.f32.mrf.mxu3  ;;  %v2290_v39 = vpack.c.bf16 %v2186_v29, %v2182_v58  ;;  %v2285_v36 = vpack.c.bf16 %v2177_v48, %v2173_v11  ;;  %v1882_v8 = vadd.f32 %v1881_v52, %v10485_v54  ;;  %v1867_v29 = vadd.f32 %v10657_v15, %v10523_v28 }
 0x261   : > { %3440 = vmatpush.bf16.msra.mxu2 %v2294_v41  ;;  %v2286_v4 = vpack.c.bf16 %v2178_v1, %v2174_v34  ;;  %v1971_v43 = vadd.f32 %v1970_v20, %v10485_v54  ;;  %v2071_v54 = vmul.f32 0.01, %v1880_v33  ;;  %v2072_v12 = vmul.f32 0.01, %v1969_v31 }
 0x262   : > { %v2075_v17 = vmul.f32 0.01, %v1882_v8  ;;  %v1956_v20 = vadd.f32 %v10659_v45, %v10523_v28  ;;  %v1954_v15 = vadd.f32 %v10650_v46, %v10555_v56  ;;  %v2051_v27 = vmul.f32 0.01, %v1867_v29 }
 0x263   : > { %3102 = vmatpush.bf16.msra.mxu0 %v2293_v21  ;;  %v2076_v53 = vmul.f32 0.01, %v1971_v43  ;;  %v2199_v21 = vmax.f32 %v1880_v33, %v2071_v54  ;;  %v2200_v35 = vmax.f32 %v1969_v31, %v2072_v12  ;;  %v9260_v31 = vld [vmem:[%s10733_s16 + $0x14] sm:$0xf0]  ;;  %v15843_v12 = vld [vmem:[#allocation63_spill] sm:$0xff] }
 0x264   : > { %v10707_v38 = vpop.f32.mrf.mxu1  ;;  %v2048_v48 = vmul.f32 0.01, %v1954_v15  ;;  %v2179_v46 = vmax.f32 %v1867_v29, %v2051_v27  ;;  %v9262_v29 = vld [vmem:[%s10733_s16 + $0x24] sm:$0xf0] }
 0x265   : > { %3441 = vmatpush.bf16.msra.mxu2 %v2290_v39  ;;  %v2204_v61 = vmax.f32 %v1971_v43, %v2076_v53 }
 0x266   : > { %v10705_v7 = vpop.f32.mrf.mxu0 }
 0x267   : > { %3103 = vmatpush.bf16.msra.mxu0 %v2289_v55  ;;  %v10709_v26 = vpop.f32.mrf.mxu2  ;;  %v2300_v41 = vpack.c.bf16 %v2204_v61, %v2200_v35  ;;  %v15845_v61 = vld [vmem:[#allocation62_spill] sm:$0xff] }
 0x268   : > { %15831 = vst [vmem:[#allocation52_spill] sm:$0xff] %v10709_v26  ;;  %v10711_v3 = vpop.f32.mrf.mxu3  ;;  %v8669_v35 = vld [vmem:[%s10733_s16 + $0x20] sm:$0xf] }
 0x269   : > { %15832 = vst [vmem:[#allocation39_spill] sm:$0xff] %v10711_v3  ;;  %3442 = vmatpush.bf16.msra.mxu2 %v2286_v4  ;;  %v2176_v4 = vmax.f32 %v1954_v15, %v2048_v48 }
 0x26b   : > { %3104 = vmatpush.bf16.msra.mxu0 %v2285_v36 }
 0x26c   : > { %v10716_v51 = vpop.f32.mrf.mxu1 }
 0x26d   : > { %3443 = vmatpush.bf16.msra.mxu2 %v10630_v16  ;;  %v2203_v16 = vmax.f32 %v1882_v8, %v2075_v17 }
 0x26e   : > { %v10714_v40 = vpop.f32.mrf.mxu0 }
 0x26f   : > { %3105 = vmatpush.bf16.msra.mxu0 %v10628_v25  ;;  %v10723_v30 = vpop.f32.mrf.mxu2  ;;  %v1872_v25 = vadd.f32 %v10666_v37, %v10546_v62  ;;  %v1959_v37 = vadd.f32 %v10663_v49, %v10506_v19 }
 0x270   : > { %15833 = vst [vmem:[#allocation54_spill] sm:$0xff] %v10723_v30  ;;  %v10725_v32 = vpop.f32.mrf.mxu3 }
 0x271   : > { %15834 = vst [vmem:[#allocation43_spill] sm:$0xff] %v10725_v32  ;;  %3444 = vmatpush.bf16.msra.mxu2 %v10613_v9  ;;  %v1870_v9 = vadd.f32 %v10661_v10, %v10506_v19  ;;  %v2059_v52 = vmul.f32 0.01, %v1872_v25  ;;  %v1865_v19 = vadd.f32 %v10648_v59, %v10555_v56  ;;  %v2056_v49 = vmul.f32 0.01, %v1959_v37 }
 0x273   : > { %3106 = vmatpush.bf16.msra.mxu0 %v10611_v44  ;;  %v1961_v44 = vadd.f32 %v10668_v42, %v10546_v62  ;;  %v2299_v62 = vpack.c.bf16 %v2203_v16, %v2199_v21  ;;  %v2187_v28 = vmax.f32 %v1872_v25, %v2059_v52  ;;  %v2047_v59 = vmul.f32 0.01, %v1865_v19  ;;  %v15850_v52 = vld [vmem:[#allocation46_spill] sm:$0xff] }
 0x274   : > { %v10740_v23 = vpop.f32.mrf.mxu1  ;;  %v2184_v56 = vmax.f32 %v1959_v37, %v2056_v49 }
 0x275   : > { %3445 = vmatpush.bf16.msra.mxu2 %v10598_v63  ;;  %v2060_v10 = vmul.f32 0.01, %v1961_v44  ;;  %v2055_v63 = vmul.f32 0.01, %v1870_v9  ;;  %v2175_v36 = vmax.f32 %v1865_v19, %v2047_v59  ;;  %v9264_v59 = vld [vmem:[%s10733_s16 + $0x34] sm:$0xf0] }
 0x276   : > { %v10738_v6 = vpop.f32.mrf.mxu0 }
 0x277   : > { %3107 = vmatpush.bf16.msra.mxu0 %v10596_v47  ;;  %v10754_v42 = vpop.f32.mrf.mxu2  ;;  %v10756_v47 = vor.u32 %v9258_v14, %v8653_v18  ;;  %v2188_v58 = vmax.f32 %v1961_v44, %v2060_v10  ;;  %v2287_v43 = vpack.c.bf16 %v2179_v46, %v2175_v36  ;;  %v15844_v44 = vld [vmem:[#allocation60_spill] sm:$0xff]  ;;  %v10818_v10 = vor.u32 %v9262_v29, %v8669_v35 }
 0x278   : > { %15835 = vst [vmem:[#allocation48_spill] sm:$0xff] %v10754_v42  ;;  %v10760_v60 = vpop.f32.mrf.mxu3 }
 0x279   : > { %15836 = vst [vmem:[#allocation34_spill] sm:$0xff] %v10756_v47  ;;  %3446 = vmatpush.bf16.msra.mxu2 %v10587_v22  ;;  %v2183_v22 = vmax.f32 %v1870_v9, %v2055_v63  ;;  %v2292_v34 = vpack.c.bf16 %v2188_v58, %v2184_v56  ;;  %v15848_v9 = vld [vmem:[#allocation47_spill] sm:$0xff]  ;;  %v8677_v58 = vld [vmem:[%s10733_s16 + $0x30] sm:$0xf] }
 0x27a   : > { %15837 = vst [vmem:[#allocation49_spill] sm:$0xff] %v10760_v60  ;;  %v10842_v48 = vor.u32 %v9264_v59, %v8677_v58 }
 0x27b   : > { %3108 = vmatpush.bf16.msra.mxu0 %v10585_v13  ;;  %v2052_v13 = vmul.f32 0.01, %v1956_v20  ;;  %v2291_v1 = vpack.c.bf16 %v2187_v28, %v2183_v22  ;;  %15853 = vst [vmem:[#allocation27_spill] sm:$0xff] %v10818_v10 }
 0x27c   : > { %v10770_v24 = vpop.f32.mrf.mxu1  ;;  %3447 = vmatmul.bf16.vlgmr.msra.gmra.mxu2 %v10756_v47  ;;  %15858 = vst [vmem:[#allocation7_spill] sm:$0xff] %v10842_v48 }
 0x27d   : > { %4115 = vmatpush.bf16.msrb.mxu2 %v2300_v41  ;;  %v2180_v39 = vmax.f32 %v1956_v20, %v2052_v13  ;;  %v10836_v13 = vpop.permute.xlu1 %1498 }
 0x27e   : > { %v10768_v45 = vpop.f32.mrf.mxu0  ;;  %3109 = vmatmul.bf16.vlgmr.msra.gmra.mxu0 %v10756_v47 }
 0x27f   : > { %3777 = vmatpush.bf16.msrb.mxu0 %v2299_v62  ;;  %v10776_v55 = vpop.f32.mrf.mxu2  ;;  %v2288_v33 = vpack.c.bf16 %v2180_v39, %v2176_v4  ;;  %v15851_v62 = vld [vmem:[#allocation58_spill] sm:$0xff] }
 0x280   : > { %15838 = vst [vmem:[#allocation35_spill] sm:$0xff] %v10776_v55  ;;  %v10778_v11 = vpop.f32.mrf.mxu3 }
 0x281   : > { %4116 = vmatpush.bf16.msrb.mxu2 %v10686_v50  ;;  %15839 = vst [vmem:[#allocation50_spill] sm:$0xff] %v10778_v11  ;;  %v8661_v50 = vld [vmem:[%s10733_s16 + $0x10] sm:$0xf] }
 0x282   : > { %v10788_v53 = vor.u32 %v9260_v31, %v8661_v50  ;;  %v9266_v50 = vld [vmem:[%s10733_s16 + $0x44] sm:$0xf0]  ;;  %v10858_v31 = vpop.permute.xlu2 %1488 }
 0x283   : > { %3778 = vmatpush.bf16.msrb.mxu0 %v10684_v2 }
 0x284   : > { %v10782_v2 = vpop.f32.mrf.mxu1  ;;  %15841 = vst [vmem:[#allocation55_spill] sm:$0xff] %v10788_v53 }
 0x285   : > { %4117 = vmatpush.bf16.msrb.mxu2 %v2292_v34  ;;  %v10850_v39 = vpop.permute.xlu1 %1483 }
 0x286   : > { %v10780_v8 = vpop.f32.mrf.mxu0 }
 0x287   : > { %3779 = vmatpush.bf16.msrb.mxu0 %v2291_v1  ;;  %v10786_v17 = vpop.f32.mrf.mxu2 }
 0x288   : > { %15840 = vst [vmem:[#allocation51_spill] sm:$0xff] %v10786_v17  ;;  %v10790_v54 = vpop.f32.mrf.mxu3 }
 0x289   : > { %4118 = vmatpush.bf16.msrb.mxu2 %v2288_v33  ;;  %15842 = vst [vmem:[#allocation56_spill] sm:$0xff] %v10790_v54  ;;  %v8685_v33 = vld [vmem:[%s10733_s16 + $0x40] sm:$0xf] }
 0x28a   : > { %v10870_v29 = vpop.permute.xlu2 %2533  ;;  %v8701_v54 = vld [vmem:[%s10733_s16 + $0x60] sm:$0xf] }
 0x28b   : > { %3780 = vmatpush.bf16.msrb.mxu0 %v2287_v43  ;;  %15866 = vst [vmem:[#allocation22_spill] sm:$0xff] %v10870_v29 }
 0x28c   : > { %v10796_v16 = vpop.f32.mrf.mxu1  ;;  %3452 = vmatmul.bf16.gmra.mxu2 %v10788_v53 }
 0x28d   : > { %4119 = vmatpush.bf16.msrb.mxu2 %v15843_v12 }
 0x28e   : > { %v10794_v25 = vpop.f32.mrf.mxu0  ;;  %3114 = vmatmul.bf16.gmra.mxu0 %v10788_v53 }
 0x28f   : > { %3781 = vmatpush.bf16.msrb.mxu0 %v10644_v0  ;;  %v10802_v18 = vpop.f32.mrf.mxu2  ;;  %v15849_v0 = vld [vmem:[#allocation59_spill] sm:$0xff] }
 0x290   : > { %15846 = vst [vmem:[#allocation41_spill] sm:$0xff] %v10802_v18  ;;  %v10804_v14 = vpop.f32.mrf.mxu3  ;;  %v15880_v18 = vld [vmem:[#allocation11_spill] sm:$0xff] }
 0x291   : > { %4120 = vmatpush.bf16.msrb.mxu2 %v15845_v61  ;;  %15847 = vst [vmem:[#allocation26_spill] sm:$0xff] %v10804_v14  ;;  %v10864_v61 = vpop.permute.xlu1 %2698 }
 0x292   : > { %15864 = vst [vmem:[#allocation25_spill] sm:$0xff] %v10864_v61  ;;  %v9268_v61 = vld [vmem:[%s10733_s16 + $0x54] sm:$0xf0] }
 0x293   : > { %3782 = vmatpush.bf16.msrb.mxu0 %v15844_v44  ;;  %v10862_v44 = vor.u32 %v9266_v50, %v8685_v33  ;;  %v8693_v50 = vld [vmem:[%s10733_s16 + $0x50] sm:$0xf] }
 0x294   : > { %v10810_v37 = vpop.f32.mrf.mxu1 }
 0x295   : > { %4121 = vmatpush.bf16.msrb.mxu2 %v15849_v0  ;;  %15863 = vst [vmem:[#allocation18_spill] sm:$0xff] %v10862_v44 }
 0x296   : > { %v10808_v21 = vpop.f32.mrf.mxu0 }
 0x297   : > { %3783 = vmatpush.bf16.msrb.mxu0 %v15848_v9  ;;  %v10816_v20 = vpop.f32.mrf.mxu2 }
 0x298   : > { %15852 = vst [vmem:[#allocation42_spill] sm:$0xff] %v10816_v20  ;;  %v10820_v41 = vpop.f32.mrf.mxu3 }
 0x299   : > { %4122 = vmatpush.bf16.msrb.mxu2 %v15851_v62  ;;  %15854 = vst [vmem:[#allocation38_spill] sm:$0xff] %v10820_v41  ;;  %v10876_v58 = vpop.permute.xlu1 %2773 }
 0x29a   : > { %15869 = vst [vmem:[#allocation30_spill] sm:$0xff] %v10876_v58  ;;  %v15875_v58 = vld [vmem:[#allocation15_spill] sm:$0xff] }
 0x29b   : > { %3784 = vmatpush.bf16.msrb.mxu0 %v15850_v52 }
 0x29c   : > { %v10824_v63 = vpop.f32.mrf.mxu1  ;;  %3457 = vmatmul.bf16.gmra.mxu2 %v10818_v10 }
 0x29e   : > { %v10822_v19 = vpop.f32.mrf.mxu0  ;;  %3119 = vmatmul.bf16.gmra.mxu0 %v10818_v10  ;;  %v10882_v10 = vpop.permute.xlu2 %2778 }
 0x29f   : > { %v10828_v15 = vpop.f32.mrf.mxu2  ;;  %15871 = vst [vmem:[#allocation31_spill] sm:$0xff] %v10882_v10  ;;  %v15877_v10 = vld [vmem:[#allocation28_spill] sm:$0xff] }
 0x2a0   : > { %15855 = vst [vmem:[#allocation40_spill] sm:$0xff] %v10828_v15  ;;  %v10830_v49 = vpop.f32.mrf.mxu3 }
 0x2a1   : > { %15856 = vst [vmem:[#allocation44_spill] sm:$0xff] %v10830_v49  ;;  %v10889_v3 = vpop.permute.xlu1 %2618  ;;  %v15882_v49 = vld [vmem:[#allocation16_spill] sm:$0xff] }
 0x2a2   : > { %15874 = vst [vmem:[#allocation33_spill] sm:$0xff] %v10889_v3 }
 0x2a4   : > { %v10834_v28 = vpop.f32.mrf.mxu1 }
 0x2a6   : > { %v10832_v27 = vpop.f32.mrf.mxu0  ;;  %v10898_v55 = vpop.permute.xlu2 %2683 }
 0x2a7   : > { %v10840_v22 = vpop.f32.mrf.mxu2  ;;  %15878 = vst [vmem:[#allocation63_spill] sm:$0xff] %v10898_v55 }
 0x2a8   : > { %15857 = vst [vmem:[#allocation19_spill] sm:$0xff] %v10840_v22  ;;  %v10844_v56 = vpop.f32.mrf.mxu3 }
 0x2a9   : > { %15859 = vst [vmem:[#allocation8_spill] sm:$0xff] %v10844_v56  ;;  %v10911_v20 = vpop.permute.xlu1 %2523 }
 0x2aa   : > { %15881 = vst [vmem:[#allocation60_spill] sm:$0xff] %v10911_v20 }
 0x2ac   : > { %v10846_v1 = vpop.f32.mrf.mxu1  ;;  %3462 = vmatmul.bf16.gmra.mxu2 %v10842_v48 }
 0x2ae   : > { %v1731_v46 = vpop.f32.mrf.mxu0  ;;  %3124 = vmatmul.bf16.gmra.mxu0 %v10842_v48  ;;  %v10880_v48 = vor.u32 %v9268_v61, %v8693_v50  ;;  %v15876_v50 = vld [vmem:[#allocation10_spill] sm:$0xff] }
 0x2af   : > { %v10852_v34 = vpop.f32.mrf.mxu2 }
 0x2b0   : > { %15860 = vst [vmem:[#allocation45_spill] sm:$0xff] %v10852_v34  ;;  %v10854_v36 = vpop.f32.mrf.mxu3 }
 0x2b1   : > { %15861 = vst [vmem:[#allocation17_spill] sm:$0xff] %v10854_v36 }
 0x2b2   : > { %15870 = vst [vmem:[#allocation20_spill] sm:$0xff] %v10880_v48 }
 0x2b4   : > { %v1822_v43 = vpop.f32.mrf.mxu1 }
 0x2b5   : > { %v1823_v36 = vadd.f32 %v1822_v43, %v15882_v49 }
 0x2b6   : > { %v1733_v4 = vpop.f32.mrf.mxu0 }
 0x2b7   : > { %v10860_v12 = vpop.f32.mrf.mxu2  ;;  %v1734_v55 = vadd.f32 %v1733_v4, %v15882_v49  ;;  %v1821_v4 = vadd.f32 %v10846_v1, %v15880_v18  ;;  %v15887_v1 = vld [vmem:[#allocation29_spill] sm:$0xff] }
 0x2b8   : > { %15862 = vst [vmem:[#allocation24_spill] sm:$0xff] %v10860_v12  ;;  %v10866_v9 = vpop.f32.mrf.mxu3 }
 0x2b9   : > { %15865 = vst [vmem:[#allocation36_spill] sm:$0xff] %v10866_v9 }
 0x2bc   : > { %v1825_v35 = vpop.f32.mrf.mxu1  ;;  %3467 = vmatmul.bf16.gmra.mxu2 %v10862_v44 }
 0x2be   : > { %v1736_v0 = vpop.f32.mrf.mxu0  ;;  %3129 = vmatmul.bf16.gmra.mxu0 %v10862_v44 }
 0x2bf   : > { %v10872_v52 = vpop.f32.mrf.mxu2  ;;  %v1737_v60 = vadd.f32 %v1736_v0, %v15877_v10  ;;  %v1826_v0 = vadd.f32 %v1825_v35, %v15877_v10  ;;  %v15884_v35 = vld [vmem:[#allocation61_spill] sm:$0xff] }
 0x2c0   : > { %15867 = vst [vmem:[#allocation37_spill] sm:$0xff] %v10872_v52  ;;  %v10874_v62 = vpop.f32.mrf.mxu3  ;;  %v2121_v52 = vmul.f32 0.01, %v1734_v55 }
 0x2c1   : > { %15868 = vst [vmem:[#allocation23_spill] sm:$0xff] %v10874_v62  ;;  %v2126_v20 = vmul.f32 0.01, %v1826_v0 }
 0x2c4   : > { %v1827_v33 = vpop.f32.mrf.mxu1 }
 0x2c5   : > { %v1828_v42 = vadd.f32 %v1827_v33, %v15876_v50 }
 0x2c6   : > { %v1738_v59 = vpop.f32.mrf.mxu0 }
 0x2c7   : > { %v10884_v53 = vpop.f32.mrf.mxu2  ;;  %v1739_v32 = vadd.f32 %v1738_v59, %v15876_v50  ;;  %v10906_v59 = vadd.f32 %v1731_v46, %v15880_v18  ;;  %v2130_v9 = vmul.f32 0.01, %v1828_v42 }
 0x2c8   : > { %15872 = vst [vmem:[#allocation21_spill] sm:$0xff] %v10884_v53  ;;  %v10886_v44 = vpop.f32.mrf.mxu3 }
 0x2c9   : > { %15873 = vst [vmem:[#allocation32_spill] sm:$0xff] %v10886_v44  ;;  %v2129_v15 = vmul.f32 0.01, %v1739_v32  ;;  %v10919_v44 = vadd.f32 %v10832_v27, %v15884_v35  ;;  %v2117_v27 = vmul.f32 0.01, %v10906_v59 }
 0x2cb   : > { %v2257_v53 = vmax.f32 %v1739_v32, %v2129_v15  ;;  %v10934_v32 = vadd.f32 %v10697_v57, %v10850_v39  ;;  %v10949_v57 = vadd.f32 %v10810_v37, %v15887_v1 }
 0x2cc   : > { %v1830_v29 = vpop.f32.mrf.mxu1  ;;  %3472 = vmatmul.bf16.gmra.mxu2 %v10880_v48 }
 0x2cd   : > { %v1831_v61 = vadd.f32 %v1830_v29, %v15875_v58  ;;  %v9270_v29 = vld [vmem:[%s10733_s16 + $0x64] sm:$0xf0]  ;;  %v10964_v37 = vmul.f32 0.01, %v10934_v32 }
 0x2ce   : > { %v1741_v47 = vpop.f32.mrf.mxu0  ;;  %3134 = vmatmul.bf16.gmra.mxu0 %v10880_v48  ;;  %v15879_v48 = vld [vmem:[#allocation9_spill] sm:$0xff] }
 0x2cf   : > { %v1742_v26 = vadd.f32 %v1741_v47, %v15875_v58  ;;  %v2134_v3 = vmul.f32 0.01, %v1831_v61  ;;  %v10900_v14 = vpop.f32.mrf.mxu2 }
 0x2d0   : > { %v10909_v33 = vpop.f32.mrf.mxu3 }
 0x2d1   : > { %v2133_v17 = vmul.f32 0.01, %v1742_v26  ;;  %v2262_v46 = vmax.f32 %v1831_v61, %v2134_v3  ;;  %v2258_v3 = vmax.f32 %v1828_v42, %v2130_v9  ;;  %v2254_v42 = vmax.f32 %v1826_v0, %v2126_v20  ;;  %v10954_v61 = vpop.permute.xlu1 %2768 }
 0x2d2   : > { %15888 = vst [vmem:[#allocation59_spill] sm:$0xff] %v10954_v61  ;;  %v9284_v61 = vld [vmem:[%s10733_s16 + $0xd4] sm:$0xf0] }
 0x2d3   : > { %v2261_v12 = vmax.f32 %v1742_v26, %v2133_v17  ;;  %v2122_v26 = vmul.f32 0.01, %v1823_v36  ;;  %v15885_v17 = vld [vmem:[#allocation12_spill] sm:$0xff] }
 0x2d4   : > { %v1832_v11 = vpop.f32.mrf.mxu1  ;;  %v1816_v15 = vadd.f32 %v10824_v63, %v15885_v17 }
 0x2d5   : > { %v1833_v47 = vadd.f32 %v1832_v11, %v15879_v48  ;;  %v10915_v11 = vor.u32 %v9270_v29, %v8701_v54  ;;  %v10925_v54 = vadd.f32 %v10834_v28, %v15884_v35  ;;  %v2118_v28 = vmul.f32 0.01, %v1821_v4 }
 0x2d6   : > { %v1743_v30 = vpop.f32.mrf.mxu0  ;;  %v2250_v20 = vmax.f32 %v1823_v36, %v2122_v26  ;;  %v2110_v29 = vmul.f32 0.01, %v1816_v15 }
 0x2d7   : > { %v1744_v41 = vadd.f32 %v1743_v30, %v15879_v48  ;;  %v2138_v22 = vmul.f32 0.01, %v1833_v47  ;;  %v2125_v30 = vmul.f32 0.01, %v1737_v60  ;;  %15883 = vst [vmem:[#allocation62_spill] sm:$0xff] %v10915_v11  ;;  %v2246_v0 = vmax.f32 %v1821_v4, %v2118_v28 }
 0x2d8   : > { %v2114_v63 = vmul.f32 0.01, %v10925_v54  ;;  %v10952_v9 = vpop.f32.mrf.mxu3 }
 0x2d9   : > { %v2137_v56 = vmul.f32 0.01, %v1744_v41  ;;  %v2266_v62 = vmax.f32 %v1833_v47, %v2138_v22  ;;  %v2253_v22 = vmax.f32 %v1737_v60, %v2125_v30  ;;  %v2113_v60 = vmul.f32 0.01, %v10919_v44  ;;  %v15890_v30 = vld [vmem:[#allocation14_spill] sm:$0xff] }
 0x2da   : > { %v2245_v47 = vmax.f32 %v10906_v59, %v2117_v27  ;;  %v2242_v4 = vmax.f32 %v10925_v54, %v2114_v63  ;;  %v2322_v26 = vpack.c.bf16 %v2250_v20, %v2246_v0  ;;  %v15892_v27 = vld [vmem:[#allocation13_spill] sm:$0xff] }
 0x2db   : > { %v2265_v34 = vmax.f32 %v1744_v41, %v2137_v56  ;;  %v2330_v43 = vpack.c.bf16 %v2266_v62, %v2262_v46  ;;  %v1727_v41 = vadd.f32 %v10822_v19, %v15885_v17  ;;  %v10938_v56 = vpop.permute.xlu2 %2528  ;;  %v10942_v19 = vadd.f32 %v10808_v21, %v15887_v1 }
 0x2dc   : > { %3477 = vmatmul.bf16.gmra.mxu2 %v10915_v11  ;;  %15886 = vst [vmem:[#allocation47_spill] sm:$0xff] %v10938_v56  ;;  %v2326_v62 = vpack.c.bf16 %v2258_v3, %v2254_v42  ;;  %v10958_v21 = vadd.f32 %v10699_v5, %v10850_v39  ;;  %v10970_v5 = vadd.f32 %v10780_v8, %v15890_v30  ;;  %v10980_v3 = vpop.permute.xlu0 %2693  ;;  %v8709_v42 = vld [vmem:[%s10733_s16 + $0x70] sm:$0xf] }
 0x2dd   : > { %v2329_v10 = vpack.c.bf16 %v2265_v34, %v2261_v12  ;;  %3608 = vmatpush.bf16.msra.mxu3 %v2330_v43  ;;  %v2249_v34 = vmax.f32 %v1734_v55, %v2121_v52  ;;  %v2325_v12 = vpack.c.bf16 %v2257_v53, %v2253_v22  ;;  %v15889_v55 = vld [vmem:[#allocation57_spill] sm:$0xff]  ;;  %v2109_v53 = vmul.f32 0.01, %v1727_v41  ;;  %15891 = vst [vmem:[#allocation46_spill] sm:$0xff] %v10980_v3 }
 0x2de   : > { %3139 = vmatmul.bf16.gmra.mxu0 %v10915_v11  ;;  %v1722_v52 = vadd.f32 %v10794_v25, %v15889_v55  ;;  %v1811_v36 = vadd.f32 %v10796_v16, %v15889_v55  ;;  %v2105_v25 = vmul.f32 0.01, %v10942_v19  ;;  %v2241_v59 = vmax.f32 %v10919_v44, %v2113_v60  ;;  %v9288_v3 = vld [vmem:[%s10733_s16 + $0xf4] sm:$0xf0]  ;;  %v8711_v11 = vld [vmem:[%s10733_s16 + $0x78] sm:$0xf0] }
 0x2df   : > { %3270 = vmatpush.bf16.msra.mxu1 %v2329_v10  ;;  %v10945_v10 = vpop.f32.mrf.mxu2  ;;  %v2321_v46 = vpack.c.bf16 %v2249_v34, %v2245_v47  ;;  %v10976_v43 = vadd.f32 %v10782_v2, %v15890_v30  ;;  %v2106_v16 = vmul.f32 0.01, %v10949_v57  ;;  %v10984_v8 = vadd.f32 %v10705_v7, %v10858_v31  ;;  %v9272_v2 = vld [vmem:[%s10733_s16 + $0x74] sm:$0xf0] }
 0x2e0   : > { %v1717_v22 = vadd.f32 %v10768_v45, %v15892_v27  ;;  %v2101_v44 = vmul.f32 0.01, %v1722_v52  ;;  %v2237_v28 = vmax.f32 %v1727_v41, %v2109_v53  ;;  %v10992_v60 = vadd.f32 %v10738_v6, %v10836_v13 }
 0x2e1   : > { %3609 = vmatpush.bf16.msra.mxu3 %v2326_v62  ;;  %v1806_v54 = vadd.f32 %v10770_v24, %v15892_v27  ;;  %v2102_v34 = vmul.f32 0.01, %v1811_v36  ;;  %v10998_v7 = vadd.f32 %v10740_v23, %v10836_v13  ;;  %v2097_v45 = vmul.f32 0.01, %v10970_v5  ;;  %v15895_v23 = vld [vmem:[#allocation53_spill] sm:$0xff] }
 0x2e2   : > { %v2233_v41 = vmax.f32 %v10942_v19, %v2105_v25  ;;  %v2317_v63 = vpack.c.bf16 %v2241_v59, %v2237_v28  ;;  %v2098_v20 = vmul.f32 0.01, %v10976_v43  ;;  %v2234_v6 = vmax.f32 %v10949_v57, %v2106_v16  ;;  %v2010_v16 = vpop.f32.mrf.mxu3 }
 0x2e3   : > { %3271 = vmatpush.bf16.msra.mxu1 %v2325_v12  ;;  %v2238_v12 = vmax.f32 %v1816_v15, %v2110_v29  ;;  %v11004_v53 = vor.u32 %v9272_v2, %v8709_v42  ;;  %v11006_v24 = vpop.permute.xlu2 %2603  ;;  %v11010_v15 = vadd.f32 %v10707_v38, %v10858_v31  ;;  %v1712_v47 = vadd.f32 %v10714_v40, %v15895_v23 }
 0x2e4   : > { %15894 = vst [vmem:[#allocation15_spill] sm:$0xff] %v11006_v24  ;;  %v2093_v29 = vmul.f32 0.01, %v1717_v22  ;;  %v2229_v0 = vmax.f32 %v1722_v52, %v2101_v44  ;;  %v2078_v25 = vmul.f32 0.01, %v10958_v21  ;;  %v1801_v57 = vadd.f32 %v10716_v51, %v15895_v23 }
 0x2e5   : > { %3610 = vmatpush.bf16.msra.mxu3 %v2322_v26  ;;  %v2318_v62 = vpack.c.bf16 %v2242_v4, %v2238_v12  ;;  %15893 = vst [vmem:[#allocation58_spill] sm:$0xff] %v11004_v53  ;;  %v2094_v59 = vmul.f32 0.01, %v1806_v54  ;;  %v11017_v4 = vpop.permute.xlu1 %2673  ;;  %v2089_v38 = vmul.f32 0.01, %v10992_v60  ;;  %v2225_v40 = vmax.f32 %v10970_v5, %v2097_v45 }
 0x2e6   : > { %15896 = vst [vmem:[#allocation10_spill] sm:$0xff] %v11017_v4  ;;  %v2090_v26 = vmul.f32 0.01, %v10998_v7  ;;  %v2313_v52 = vpack.c.bf16 %v2233_v41, %v2229_v0  ;;  %v2081_v44 = vmul.f32 0.01, %v10984_v8  ;;  %v2226_v28 = vmax.f32 %v10976_v43, %v2098_v20  ;;  %v15899_v0 = vld [vmem:[#allocation21_spill] sm:$0xff] }
 0x2e7   : > { %3272 = vmatpush.bf16.msra.mxu1 %v2321_v46  ;;  %v1921_v19 = vpop.f32.mrf.mxu2  ;;  %v2230_v46 = vmax.f32 %v1811_v36, %v2102_v34  ;;  %v2082_v36 = vmul.f32 0.01, %v11010_v15  ;;  %v2085_v2 = vmul.f32 0.01, %v1712_v47  ;;  %v2221_v34 = vmax.f32 %v1717_v22, %v2093_v29 }
 0x2e8   : > { %v11025_v42 = vadd.f32 %v1921_v19, %v15879_v48  ;;  %v11030_v12 = vadd.f32 %v2010_v16, %v15879_v48  ;;  %v2205_v5 = vmax.f32 %v10934_v32, %v10964_v37  ;;  %v2086_v43 = vmul.f32 0.01, %v1801_v57 }
 0x2e9   : > { %3611 = vmatpush.bf16.msra.mxu3 %v2318_v62  ;;  %v2314_v51 = vpack.c.bf16 %v2234_v6, %v2230_v46  ;;  %v2222_v45 = vmax.f32 %v1806_v54, %v2094_v59  ;;  %v1920_v41 = vadd.f32 %v10945_v10, %v15875_v58  ;;  %v2217_v20 = vmax.f32 %v10992_v60, %v2089_v38  ;;  %v15901_v59 = vld [vmem:[#allocation37_spill] sm:$0xff] }
 0x2ea   : > { %v2218_v22 = vmax.f32 %v10998_v7, %v2090_v26  ;;  %v2009_v48 = vadd.f32 %v10952_v9, %v15875_v58  ;;  %v2309_v6 = vpack.c.bf16 %v2225_v40, %v2221_v34  ;;  %v11045_v62 = vadd.f32 %v10900_v14, %v15876_v50  ;;  %v15898_v9 = vld [vmem:[#allocation28_spill] sm:$0xff]  ;;  %v8717_v26 = vld [vmem:[%s10733_s16 + $0x80] sm:$0xf]  ;;  %v9257_v34 = vld [vmem:[%s10733_s16 + $0x4] sm:$0xf] }
 0x2eb   : > { %3273 = vmatpush.bf16.msra.mxu1 %v2317_v63  ;;  %v11037_v63 = vpop.permute.xlu0 %2538  ;;  %v11049_v32 = vadd.f32 %v10909_v33, %v15876_v50  ;;  %v2139_v10 = vmul.f32 0.01, %v11025_v42  ;;  %v2310_v37 = vpack.c.bf16 %v2226_v28, %v2222_v45  ;;  %v2209_v54 = vmax.f32 %v10984_v8, %v2081_v44  ;;  %v11058_v33 = vpop.permute.xlu2 %2678  ;;  %v15905_v45 = vld [vmem:[#allocation45_spill] sm:$0xff] }
 0x2ec   : > { %3482 = vmatmul.bf16.gmra.mxu2 %v11004_v53  ;;  %15897 = vst [vmem:[#allocation9_spill] sm:$0xff] %v11037_v63  ;;  %v2210_v60 = vmax.f32 %v11010_v15, %v2082_v36  ;;  %v2213_v7 = vmax.f32 %v1712_v47, %v2085_v2  ;;  %v2140_v29 = vmul.f32 0.01, %v11030_v12  ;;  %v2206_v58 = vmax.f32 %v10958_v21, %v2078_v25  ;;  %v15902_v15 = vld [vmem:[#allocation32_spill] sm:$0xff]  ;;  %v9274_v2 = vld [vmem:[%s10733_s16 + $0x84] sm:$0xf0] }
 0x2ed   : > { %3612 = vmatpush.bf16.msra.mxu3 %v2314_v51  ;;  %v2214_v14 = vmax.f32 %v1801_v57, %v2086_v43  ;;  %v1915_v19 = vadd.f32 %v15899_v0, %v15898_v9  ;;  %v2135_v50 = vmul.f32 0.01, %v1920_v41  ;;  %15900 = vst [vmem:[#allocation11_spill] sm:$0xff] %v11058_v33  ;;  %v11062_v8 = vadd.f32 %v15901_v59, %v15882_v49  ;;  %v11070_v40 = vpop.permute.xlu1 %2518  ;;  %v8655_v43 = vld [vmem:[%s10733_s16 + $0x8] sm:$0xf0] }
 0x2ee   : > { %3144 = vmatmul.bf16.gmra.mxu0 %v11004_v53  ;;  %v2004_v47 = vadd.f32 %v15902_v15, %v15898_v9  ;;  %v2136_v46 = vmul.f32 0.01, %v2009_v48  ;;  %v2305_v21 = vpack.c.bf16 %v2217_v20, %v2213_v7  ;;  %v2131_v25 = vmul.f32 0.01, %v11045_v62  ;;  %15903 = vst [vmem:[#allocation16_spill] sm:$0xff] %v11070_v40  ;;  %v15911_v9 = vld [vmem:[#allocation17_spill] sm:$0xff] }
 0x2ef   : > { %3274 = vmatpush.bf16.msra.mxu1 %v2313_v52  ;;  %v2132_v57 = vmul.f32 0.01, %v11049_v32  ;;  %v2267_v16 = vmax.f32 %v11025_v42, %v2139_v10  ;;  %v2306_v38 = vpack.c.bf16 %v2218_v22, %v2214_v14  ;;  %v15904_v52 = vld [vmem:[#allocation23_spill] sm:$0xff]  ;;  %v2268_v28 = vmax.f32 %v11030_v12, %v2140_v29  ;;  %v15906_v42 = vld [vmem:[#allocation24_spill] sm:$0xff] }
 0x2f0   : > { %v11074_v44 = vadd.f32 %v15904_v52, %v15882_v49  ;;  %v2301_v51 = vpack.c.bf16 %v2209_v54, %v2205_v5  ;;  %v2302_v36 = vpack.c.bf16 %v2210_v60, %v2206_v58  ;;  %v11082_v20 = vadd.f32 %v15905_v45, %v15884_v35  ;;  %v15907_v49 = vld [vmem:[#allocation36_spill] sm:$0xff] }
 0x2f1   : > { %3613 = vmatpush.bf16.msra.mxu3 %v2310_v37  ;;  %v1910_v22 = vadd.f32 %v15906_v42, %v15880_v18  ;;  %v2263_v10 = vmax.f32 %v1920_v41, %v2135_v50  ;;  %v1999_v37 = vadd.f32 %v15907_v49, %v15880_v18  ;;  %v2123_v12 = vmul.f32 0.01, %v11062_v8 }
 0x2f2   : > { %v2128_v5 = vmul.f32 0.01, %v2004_v47  ;;  %v2264_v54 = vmax.f32 %v2009_v48, %v2136_v46  ;;  %v2259_v60 = vmax.f32 %v11045_v62, %v2131_v25  ;;  %v11090_v29 = vor.u32 %v9274_v2, %v8717_v26  ;;  %v15912_v48 = vld [vmem:[#allocation19_spill] sm:$0xff] }
 0x2f3   : > { %3275 = vmatpush.bf16.msra.mxu1 %v2309_v6  ;;  %v2127_v6 = vmul.f32 0.01, %v1915_v19  ;;  %v2331_v7 = vpack.c.bf16 %v2267_v16, %v2263_v10  ;;  %v11092_v58 = vor.u32 %v9257_v34, %v8655_v43  ;;  %v11094_v14 = vpop.permute.xlu0 %2613  ;;  %v11098_v41 = vadd.f32 %v15911_v9, %v15884_v35  ;;  %v11116_v52 = vpop.permute.xlu2 %2753 }
 0x2f4   : > { %15908 = vst [vmem:[#allocation61_spill] sm:$0xff] %v11090_v29  ;;  %v2124_v0 = vmul.f32 0.01, %v11074_v44  ;;  %v2260_v18 = vmax.f32 %v11049_v32, %v2132_v57  ;;  %v2332_v50 = vpack.c.bf16 %v2268_v28, %v2264_v54  ;;  %v1905_v62 = vadd.f32 %v15912_v48, %v15885_v17 }
 0x2f5   : > { %3614 = vmatpush.bf16.msra.mxu3 %v2306_v38  ;;  %15909 = vst [vmem:[#allocation12_spill] sm:$0xff] %v11092_v58  ;;  %v2119_v15 = vmul.f32 0.01, %v1910_v22  ;;  %v2255_v46 = vmax.f32 %v1915_v19, %v2127_v6  ;;  %v2120_v35 = vmul.f32 0.01, %v1999_v37  ;;  %v2256_v16 = vmax.f32 %v2004_v47, %v2128_v5  ;;  %v15914_v38 = vld [vmem:[#allocation40_spill] sm:$0xff]  ;;  %v11128_v45 = vpop.permute.xlu1 %2593 }
 0x2f6   : > { %15910 = vst [vmem:[#allocation29_spill] sm:$0xff] %v11094_v14  ;;  %v11110_v32 = vadd.f32 %v15914_v38, %v15887_v1  ;;  %v2115_v57 = vmul.f32 0.01, %v11082_v20  ;;  %v2251_v26 = vmax.f32 %v11062_v8, %v2123_v12  ;;  %v2116_v47 = vmul.f32 0.01, %v11098_v41  ;;  %v15920_v6 = vld [vmem:[#allocation38_spill] sm:$0xff] }
 0x2f7   : > { %3276 = vmatpush.bf16.msra.mxu1 %v2305_v21  ;;  %v15913_v21 = vld [vmem:[#allocation8_spill] sm:$0xff]  ;;  %v2327_v19 = vpack.c.bf16 %v2259_v60, %v2255_v46  ;;  %15915 = vst [vmem:[#allocation57_spill] sm:$0xff] %v11116_v52  ;;  %v2328_v8 = vpack.c.bf16 %v2260_v18, %v2256_v16  ;;  %v2111_v34 = vmul.f32 0.01, %v1905_v62  ;;  %v2247_v43 = vmax.f32 %v1910_v22, %v2119_v15  ;;  %v15921_v12 = vld [vmem:[#allocation26_spill] sm:$0xff]  ;;  %v15924_v15 = vld [vmem:[#allocation35_spill] sm:$0xff] }
 0x2f8   : > { %v1994_v25 = vadd.f32 %v15913_v21, %v15885_v17  ;;  %v15916_v17 = vld [vmem:[#allocation44_spill] sm:$0xff]  ;;  %15918 = vst [vmem:[#allocation14_spill] sm:$0xff] %v11128_v45  ;;  %v2248_v49 = vmax.f32 %v1999_v37, %v2120_v35  ;;  %v11138_v5 = vadd.f32 %v15921_v12, %v15890_v30  ;;  %v2107_v54 = vmul.f32 0.01, %v11110_v32  ;;  %v15922_v37 = vld [vmem:[#allocation51_spill] sm:$0xff]  ;;  %v15930_v12 = vld [vmem:[#allocation49_spill] sm:$0xff] }
 0x2f9   : > { %3615 = vmatpush.bf16.msra.mxu3 %v2302_v36  ;;  %v11120_v28 = vadd.f32 %v15916_v17, %v15887_v1  ;;  %v15917_v36 = vld [vmem:[#allocation42_spill] sm:$0xff]  ;;  %v15919_v1 = vld [vmem:[#allocation41_spill] sm:$0xff]  ;;  %v2243_v22 = vmax.f32 %v11082_v20, %v2115_v57  ;;  %v2239_v48 = vmax.f32 %v1905_v62, %v2111_v34  ;;  %v11154_v46 = vadd.f32 %v15924_v15, %v10836_v13  ;;  %v9259_v34 = vld [vmem:[%s10733_s16 + $0x14] sm:$0xf] }
 0x2fa   : > { %v1900_v2 = vadd.f32 %v15917_v36, %v15889_v55  ;;  %v11132_v42 = vadd.f32 %v15919_v1, %v15890_v30  ;;  %v2112_v10 = vmul.f32 0.01, %v1994_v25  ;;  %v2100_v62 = vmul.f32 0.01, %v11138_v5  ;;  %v15926_v17 = vld [vmem:[#allocation50_spill] sm:$0xff]  ;;  %v15928_v1 = vld [vmem:[#allocation48_spill] sm:$0xff] }
 0x2fb   : > { %v11102_v59 = vpop.f32.mrf.mxu0  ;;  %3277 = vmatpush.bf16.msra.mxu1 %v2301_v51  ;;  %v2252_v51 = vmax.f32 %v11074_v44, %v2124_v0  ;;  %v1989_v44 = vadd.f32 %v15920_v6, %v15889_v55  ;;  %v2108_v9 = vmul.f32 0.01, %v11120_v28  ;;  %v2244_v0 = vmax.f32 %v11098_v41, %v2116_v47  ;;  %v11150_v20 = vpop.permute.xlu0 %2688  ;;  %v15925_v41 = vld [vmem:[#allocation56_spill] sm:$0xff]  ;;  %v9276_v36 = vld [vmem:[%s10733_s16 + $0x94] sm:$0xf0] }
 0x2fc   : > { %3487 = vmatmul.bf16.gmra.mxu2 %v11090_v29  ;;  %3616 = vmatmul.bf16.vlgmr.msra.gmra.mxu3 %v11092_v58  ;;  %v2103_v30 = vmul.f32 0.01, %v1900_v2  ;;  %15923 = vst [vmem:[#allocation13_spill] sm:$0xff] %v11150_v20  ;;  %v1984_v21 = vadd.f32 %v15925_v41, %v15892_v27  ;;  %v2240_v16 = vmax.f32 %v1994_v25, %v2112_v10  ;;  %v2099_v38 = vmul.f32 0.01, %v11132_v42  ;;  %v15927_v25 = vld [vmem:[#allocation54_spill] sm:$0xff] }
 0x2fd   : > { %4284 = vmatpush.bf16.msrb.mxu3 %v2332_v50  ;;  %v2324_v55 = vpack.c.bf16 %v2252_v51, %v2248_v49  ;;  %v1895_v50 = vadd.f32 %v15922_v37, %v15892_v27  ;;  %v2104_v35 = vmul.f32 0.01, %v1989_v44  ;;  %v2235_v57 = vmax.f32 %v11110_v32, %v2107_v54  ;;  %v8663_v27 = vld [vmem:[%s10733_s16 + $0x18] sm:$0xf0]  ;;  %v11172_v32 = vpop.permute.xlu2 %2598  ;;  %v9271_v20 = vld [vmem:[%s10733_s16 + $0x74] sm:$0xf] }
 0x2fe   : > { %3149 = vmatmul.bf16.gmra.mxu0 %v11090_v29  ;;  %3278 = vmatmul.bf16.vlgmr.msra.gmra.mxu1 %v11092_v58  ;;  %v1981_v47 = vadd.f32 %v15926_v17, %v10836_v13  ;;  %v2236_v51 = vmax.f32 %v11120_v28, %v2108_v9  ;;  %v1890_v6 = vadd.f32 %v15928_v1, %v15895_v23  ;;  %v2091_v28 = vmul.f32 0.01, %v11154_v46 }
 0x2ff   : > { %3946 = vmatpush.bf16.msrb.mxu1 %v2331_v7  ;;  %v11142_v60 = vpop.f32.mrf.mxu2  ;;  %v2323_v7 = vpack.c.bf16 %v2251_v26, %v2247_v43  ;;  %v2319_v26 = vpack.c.bf16 %v2243_v22, %v2239_v48  ;;  %v1887_v43 = vadd.f32 %v15927_v25, %v10858_v31  ;;  %v2095_v10 = vmul.f32 0.01, %v1895_v50  ;;  %15929 = vst [vmem:[#allocation53_spill] sm:$0xff] %v11172_v32 }
 0x300   : > { %v2231_v49 = vmax.f32 %v1900_v2, %v2103_v30  ;;  %v1979_v13 = vadd.f32 %v15930_v12, %v15895_v23  ;;  %v2096_v54 = vmul.f32 0.01, %v1984_v21  ;;  %v2232_v22 = vmax.f32 %v1989_v44, %v2104_v35  ;;  %v11184_v2 = vpop.permute.xlu1 %2668  ;;  %v15934_v30 = vld [vmem:[#allocation43_spill] sm:$0xff] }
 0x301   : > { %4285 = vmatpush.bf16.msrb.mxu3 %v2328_v8  ;;  %v2320_v8 = vpack.c.bf16 %v2244_v0, %v2240_v16  ;;  %v11182_v37 = vor.u32 %v9259_v34, %v8663_v27  ;;  %15933 = vst [vmem:[#allocation37_spill] sm:$0xff] %v11184_v2  ;;  %v1976_v48 = vadd.f32 %v15934_v30, %v10858_v31  ;;  %v2092_v23 = vmul.f32 0.01, %v1981_v47  ;;  %v8671_v30 = vld [vmem:[%s10733_s16 + $0x28] sm:$0xf0] }
 0x302   : > { %v2315_v0 = vpack.c.bf16 %v2235_v57, %v2231_v49  ;;  %v2228_v15 = vmax.f32 %v11138_v5, %v2100_v62  ;;  %v2316_v44 = vpack.c.bf16 %v2236_v51, %v2232_v22  ;;  %v2087_v16 = vmul.f32 0.01, %v1890_v6  ;;  %v15936_v57 = vld [vmem:[#allocation39_spill] sm:$0xff]  ;;  %v8733_v22 = vld [vmem:[%s10733_s16 + $0xa0] sm:$0xf] }
 0x303   : > { %3947 = vmatpush.bf16.msrb.mxu1 %v2327_v19  ;;  %v11146_v18 = vpop.f32.mrf.mxu0  ;;  %v8725_v19 = vld [vmem:[%s10733_s16 + $0x90] sm:$0xf]  ;;  %15932 = vst [vmem:[#allocation21_spill] sm:$0xff] %v11182_v37  ;;  %v2224_v17 = vmax.f32 %v1984_v21, %v2096_v54  ;;  %v2219_v31 = vmax.f32 %v11154_v46, %v2091_v28  ;;  %v11198_v62 = vpop.permute.xlu0 %2763  ;;  %v2084_v51 = vmul.f32 0.01, %v1976_v48 }
 0x304   : > { %15937 = vst [vmem:[#allocation32_spill] sm:$0xff] %v11198_v62  ;;  %v2215_v21 = vmax.f32 %v1890_v6, %v2087_v16  ;;  %v9267_v62 = vld [vmem:[%s10733_s16 + $0x54] sm:$0xf] }
 0x305   : > { %4286 = vmatpush.bf16.msrb.mxu3 %v2324_v55  ;;  %v11180_v55 = vor.u32 %v9276_v36, %v8725_v19  ;;  %v2088_v19 = vmul.f32 0.01, %v1979_v13  ;;  %v2220_v36 = vmax.f32 %v1981_v47, %v2092_v23  ;;  %v11204_v47 = vpop.permute.xlu2 %2503 }
 0x306   : > { %v2307_v1 = vpack.c.bf16 %v2219_v31, %v2215_v21  ;;  %15938 = vst [vmem:[#allocation23_spill] sm:$0xff] %v11204_v47  ;;  %v9263_v31 = vld [vmem:[%s10733_s16 + $0x34] sm:$0xf] }
 0x307   : > { %3948 = vmatpush.bf16.msrb.mxu1 %v2323_v7  ;;  %v2227_v7 = vmax.f32 %v11132_v42, %v2099_v38  ;;  %v11178_v9 = vpop.f32.mrf.mxu2  ;;  %15931 = vst [vmem:[#allocation28_spill] sm:$0xff] %v11180_v55  ;;  %v15935_v42 = vld [vmem:[#allocation52_spill] sm:$0xff]  ;;  %v2223_v38 = vmax.f32 %v1895_v50, %v2095_v10  ;;  %v2216_v46 = vmax.f32 %v1979_v13, %v2088_v19 }
 0x308   : > { %v1885_v35 = vadd.f32 %v15935_v42, %v10850_v39  ;;  %v2212_v10 = vmax.f32 %v1976_v48, %v2084_v51  ;;  %v11208_v6 = vpop.permute.xlu1 %2743  ;;  %v8741_v19 = vld [vmem:[%s10733_s16 + $0xb0] sm:$0xf] }
 0x309   : > { %4287 = vmatpush.bf16.msrb.mxu3 %v2320_v8  ;;  %v2083_v8 = vmul.f32 0.01, %v1887_v43  ;;  %v2311_v5 = vpack.c.bf16 %v2227_v7, %v2223_v38  ;;  %v2308_v12 = vpack.c.bf16 %v2220_v36, %v2216_v46  ;;  %15939 = vst [vmem:[#allocation45_spill] sm:$0xff] %v11208_v6  ;;  %v9278_v7 = vld [vmem:[%s10733_s16 + $0xa4] sm:$0xf0] }
 0x30a   : > { %v2079_v50 = vmul.f32 0.01, %v1885_v35 }
 0x30b   : > { %3949 = vmatpush.bf16.msrb.mxu1 %v2319_v26  ;;  %v11189_v41 = vpop.f32.mrf.mxu0  ;;  %v1974_v26 = vadd.f32 %v15936_v57, %v10850_v39  ;;  %v2312_v39 = vpack.c.bf16 %v2228_v15, %v2224_v17  ;;  %v2211_v27 = vmax.f32 %v1887_v43, %v2083_v8  ;;  %v11214_v23 = vpop.permute.xlu0 %2608  ;;  %v11218_v15 = vor.u32 %v9278_v7, %v8733_v22  ;;  %v9280_v8 = vld [vmem:[%s10733_s16 + $0xb4] sm:$0xf0]  ;;  %v8687_v22 = vld [vmem:[%s10733_s16 + $0x48] sm:$0xf0] }
 0x30c   : > { %3492 = vmatmul.bf16.gmra.mxu2 %v11180_v55  ;;  %3621 = vmatmul.bf16.gmra.mxu3 %v11182_v37  ;;  %v2207_v28 = vmax.f32 %v1885_v35, %v2079_v50  ;;  %15940 = vst [vmem:[#allocation24_spill] sm:$0xff] %v11214_v23 }
 0x30d   : > { %4288 = vmatpush.bf16.msrb.mxu3 %v2316_v44  ;;  %v2080_v34 = vmul.f32 0.01, %v1974_v26  ;;  %15941 = vst [vmem:[#allocation36_spill] sm:$0xff] %v11218_v15  ;;  %v11224_v35 = vpop.permute.xlu2 %2748 }
 0x30e   : > { %3154 = vmatmul.bf16.gmra.mxu0 %v11180_v55  ;;  %3283 = vmatmul.bf16.gmra.mxu1 %v11182_v37  ;;  %v2303_v13 = vpack.c.bf16 %v2211_v27, %v2207_v28  ;;  %15943 = vst [vmem:[#allocation19_spill] sm:$0xff] %v11224_v35 }
 0x30f   : > { %3950 = vmatpush.bf16.msrb.mxu1 %v2315_v0  ;;  %v11202_v25 = vpop.f32.mrf.mxu2  ;;  %v2208_v54 = vmax.f32 %v1974_v26, %v2080_v34  ;;  %v9261_v0 = vld [vmem:[%s10733_s16 + $0x24] sm:$0xf] }
 0x310   : > { %v11220_v44 = vor.u32 %v9261_v0, %v8671_v30  ;;  %v11228_v16 = vpop.permute.xlu1 %2588 }
 0x311   : > { %4289 = vmatpush.bf16.msrb.mxu3 %v2312_v39  ;;  %v2304_v43 = vpack.c.bf16 %v2212_v10, %v2208_v54  ;;  %15944 = vst [vmem:[#allocation8_spill] sm:$0xff] %v11228_v16  ;;  %v11248_v39 = vor.u32 %v9280_v8, %v8741_v19  ;;  %v9282_v54 = vld [vmem:[%s10733_s16 + $0xc4] sm:$0xf0] }
 0x312   : > { %15942 = vst [vmem:[#allocation17_spill] sm:$0xff] %v11220_v44 }
 0x313   : > { %3951 = vmatpush.bf16.msrb.mxu1 %v2311_v5  ;;  %v11206_v49 = vpop.f32.mrf.mxu0  ;;  %v11234_v57 = vpop.permute.xlu0 %2513  ;;  %v8679_v5 = vld [vmem:[%s10733_s16 + $0x38] sm:$0xf0]  ;;  %15948 = vst [vmem:[#allocation41_spill] sm:$0xff] %v11248_v39 }
 0x314   : > { %15945 = vst [vmem:[#allocation40_spill] sm:$0xff] %v11234_v57  ;;  %v11250_v50 = vor.u32 %v9263_v31, %v8679_v5 }
 0x315   : > { %4290 = vmatpush.bf16.msrb.mxu3 %v2308_v12  ;;  %v11239_v17 = vpop.permute.xlu2 %2653  ;;  %v8749_v12 = vld [vmem:[%s10733_s16 + $0xc0] sm:$0xf] }
 0x316   : > { %15946 = vst [vmem:[#allocation44_spill] sm:$0xff] %v11239_v17  ;;  %v11276_v7 = vor.u32 %v9282_v54, %v8749_v12  ;;  %v8719_v17 = vld [vmem:[%s10733_s16 + $0x88] sm:$0xf0] }
 0x317   : > { %3952 = vmatpush.bf16.msrb.mxu1 %v2307_v1  ;;  %v11216_v48 = vpop.f32.mrf.mxu2  ;;  %15949 = vst [vmem:[#allocation38_spill] sm:$0xff] %v11250_v50 }
 0x318   : > { %v11244_v51 = vpop.permute.xlu1 %2493  ;;  %15954 = vst [vmem:[#allocation50_spill] sm:$0xff] %v11276_v7 }
 0x319   : > { %4291 = vmatpush.bf16.msrb.mxu3 %v2304_v43  ;;  %15947 = vst [vmem:[#allocation42_spill] sm:$0xff] %v11244_v51 }
 0x31b   : > { %3953 = vmatpush.bf16.msrb.mxu1 %v2303_v13  ;;  %v11222_v42 = vpop.f32.mrf.mxu0  ;;  %v11254_v34 = vpop.permute.xlu0 %2758  ;;  %v9265_v13 = vld [vmem:[%s10733_s16 + $0x44] sm:$0xf] }
 0x31c   : > { %3497 = vmatmul.bf16.gmra.mxu2 %v11218_v15  ;;  %3626 = vmatmul.bf16.gmra.mxu3 %v11220_v44  ;;  %15950 = vst [vmem:[#allocation26_spill] sm:$0xff] %v11254_v34  ;;  %v11278_v0 = vor.u32 %v9265_v13, %v8687_v22  ;;  %v8757_v13 = vld [vmem:[%s10733_s16 + $0xd0] sm:$0xf]  ;;  %v8695_v34 = vld [vmem:[%s10733_s16 + $0x58] sm:$0xf0] }
 0x31d   : > { %v11260_v46 = vpop.permute.xlu2 %2498  ;;  %v11306_v35 = vor.u32 %v9284_v61, %v8757_v13  ;;  %v8765_v13 = vld [vmem:[%s10733_s16 + $0xe0] sm:$0xf] }
 0x31e   : > { %3159 = vmatmul.bf16.gmra.mxu0 %v11218_v15  ;;  %3288 = vmatmul.bf16.gmra.mxu1 %v11220_v44  ;;  %15951 = vst [vmem:[#allocation51_spill] sm:$0xff] %v11260_v46  ;;  %v9269_v44 = vld [vmem:[%s10733_s16 + $0x64] sm:$0xf]  ;;  %v8703_v15 = vld [vmem:[%s10733_s16 + $0x68] sm:$0xf0] }
 0x31f   : > { %v11232_v38 = vpop.f32.mrf.mxu2  ;;  %15955 = vst [vmem:[#allocation54_spill] sm:$0xff] %v11278_v0 }
 0x320   : > { %v11264_v1 = vpop.permute.xlu1 %2738  ;;  %15961 = vst [vmem:[#allocation64_spill] sm:$0xff] %v11306_v35 }
 0x321   : > { %15952 = vst [vmem:[#allocation35_spill] sm:$0xff] %v11264_v1 }
 0x323   : > { %v11236_v26 = vpop.f32.mrf.mxu0  ;;  %v11269_v28 = vpop.permute.xlu0 %2663 }
 0x324   : > { %15953 = vst [vmem:[#allocation56_spill] sm:$0xff] %v11269_v28 }
 0x325   : > { %v11280_v30 = vpop.permute.xlu2 %2573 }
 0x326   : > { %15956 = vst [vmem:[#allocation48_spill] sm:$0xff] %v11280_v30  ;;  %v8727_v30 = vld [vmem:[%s10733_s16 + $0x98] sm:$0xf0] }
 0x327   : > { %v11246_v36 = vpop.f32.mrf.mxu2 }
 0x328   : > { %v11284_v8 = vpop.permute.xlu1 %2643 }
 0x329   : > { %15957 = vst [vmem:[#allocation49_spill] sm:$0xff] %v11284_v8 }
 0x32b   : > { %v11252_v21 = vpop.f32.mrf.mxu0  ;;  %v11290_v31 = vpop.permute.xlu0 %2508 }
 0x32c   : > { %3502 = vmatmul.bf16.gmra.mxu2 %v11248_v39  ;;  %3631 = vmatmul.bf16.gmra.mxu3 %v11250_v50  ;;  %15958 = vst [vmem:[#allocation43_spill] sm:$0xff] %v11290_v31 }
 0x32d   : > { %v11296_v54 = vpop.permute.xlu2 %2648 }
 0x32e   : > { %3164 = vmatmul.bf16.gmra.mxu0 %v11248_v39  ;;  %3293 = vmatmul.bf16.gmra.mxu1 %v11250_v50  ;;  %15959 = vst [vmem:[#allocation52_spill] sm:$0xff] %v11296_v54  ;;  %v9286_v39 = vld [vmem:[%s10733_s16 + $0xe4] sm:$0xf0] }
 0x32f   : > { %v11262_v27 = vpop.f32.mrf.mxu2 }
 0x330   : > { %v11299_v22 = vpop.permute.xlu1 %2488 }
 0x331   : > { %15960 = vst [vmem:[#allocation39_spill] sm:$0xff] %v11299_v22 }
 0x333   : > { %v11266_v10 = vpop.f32.mrf.mxu0 }
 0x335   : > { %v11316_v1 = vpop.permute.xlu2 %2723 }
 0x336   : > { %15964 = vst [vmem:[#allocation67_spill] sm:$0xff] %v11316_v1 }
 0x337   : > { %v11274_v43 = vpop.f32.mrf.mxu2 }
 0x338   : > { %v11320_v50 = vpop.permute.xlu1 %2563 }
 0x339   : > { %15965 = vst [vmem:[#allocation68_spill] sm:$0xff] %v11320_v50 }
 0x33b   : > { %v11282_v19 = vpop.f32.mrf.mxu0 }
 0x33c   : > { %3507 = vmatmul.bf16.gmra.mxu2 %v11276_v7  ;;  %3636 = vmatmul.bf16.gmra.mxu3 %v11278_v0 }
 0x33d   : > { %v11332_v37 = vpop.permute.xlu2 %2568 }
 0x33e   : > { %3169 = vmatmul.bf16.gmra.mxu0 %v11276_v7  ;;  %3298 = vmatmul.bf16.gmra.mxu1 %v11278_v0  ;;  %v11308_v0 = vor.u32 %v9267_v62, %v8695_v34  ;;  %v11310_v7 = vpop.permute.xlu0 %2583  ;;  %15967 = vst [vmem:[#allocation70_spill] sm:$0xff] %v11332_v37 }
 0x33f   : > { %v11292_v5 = vpop.f32.mrf.mxu2  ;;  %15963 = vst [vmem:[#allocation66_spill] sm:$0xff] %v11310_v7  ;;  %v9292_v7 = vld [vmem:[%s10733_s16 + $0x114] sm:$0xf0] }
 0x340   : > { %15962 = vst [vmem:[#allocation65_spill] sm:$0xff] %v11308_v0  ;;  %v11340_v55 = vpop.permute.xlu1 %2638 }
 0x341   : > { %15970 = vst [vmem:[#allocation73_spill] sm:$0xff] %v11340_v55 }
 0x343   : > { %v11294_v12 = vpop.f32.mrf.mxu0 }
 0x346   : > { %v11326_v34 = vpop.permute.xlu0 %2658 }
 0x347   : > { %v11304_v52 = vpop.f32.mrf.mxu2  ;;  %15966 = vst [vmem:[#allocation69_spill] sm:$0xff] %v11326_v34  ;;  %v9273_v34 = vld [vmem:[%s10733_s16 + $0x84] sm:$0xf] }
 0x348   : > { %v11400_v55 = vor.u32 %v9273_v34, %v8719_v17 }
 0x34a   : > { %15983 = vst [vmem:[#allocation86_spill] sm:$0xff] %v11400_v55 }
 0x34b   : > { %v11312_v6 = vpop.f32.mrf.mxu0 }
 0x34c   : > { %3512 = vmatmul.bf16.gmra.mxu2 %v11306_v35  ;;  %3641 = vmatmul.bf16.gmra.mxu3 %v11308_v0 }
 0x34e   : > { %3174 = vmatmul.bf16.gmra.mxu0 %v11306_v35  ;;  %3303 = vmatmul.bf16.gmra.mxu1 %v11308_v0  ;;  %v11336_v0 = vor.u32 %v9286_v39, %v8765_v13  ;;  %v11338_v35 = vor.u32 %v9269_v44, %v8703_v15  ;;  %v11346_v29 = vpop.permute.xlu0 %2733  ;;  %v11352_v39 = vpop.permute.xlu2 %2473  ;;  %v8773_v13 = vld [vmem:[%s10733_s16 + $0xf0] sm:$0xf] }
 0x34f   : > { %v11322_v61 = vpop.f32.mrf.mxu2  ;;  %15971 = vst [vmem:[#allocation74_spill] sm:$0xff] %v11346_v29  ;;  %v11356_v44 = vpop.permute.xlu1 %2713 }
 0x350   : > { %15968 = vst [vmem:[#allocation71_spill] sm:$0xff] %v11336_v0 }
 0x351   : > { %15969 = vst [vmem:[#allocation72_spill] sm:$0xff] %v11338_v35 }
 0x352   : > { %15972 = vst [vmem:[#allocation75_spill] sm:$0xff] %v11352_v39 }
 0x353   : > { %v11324_v62 = vpop.f32.mrf.mxu0  ;;  %15973 = vst [vmem:[#allocation76_spill] sm:$0xff] %v11356_v44 }
 0x356   : > { %v11362_v33 = vpop.permute.xlu0 %2578  ;;  %v11372_v2 = vpop.permute.xlu2 %2718 }
 0x357   : > { %v11334_v1 = vpop.f32.mrf.mxu2  ;;  %15974 = vst [vmem:[#allocation77_spill] sm:$0xff] %v11362_v33  ;;  %v11376_v44 = vpop.permute.xlu1 %2558  ;;  %v9275_v33 = vld [vmem:[%s10733_s16 + $0x94] sm:$0xf] }
 0x358   : > { %15977 = vst [vmem:[#allocation80_spill] sm:$0xff] %v11372_v2  ;;  %v9290_v2 = vld [vmem:[%s10733_s16 + $0x104] sm:$0xf0] }
 0x359   : > { %15978 = vst [vmem:[#allocation81_spill] sm:$0xff] %v11376_v44 }
 0x35b   : > { %v11342_v58 = vpop.f32.mrf.mxu0 }
 0x35c   : > { %3517 = vmatmul.bf16.gmra.mxu2 %v11336_v0  ;;  %3646 = vmatmul.bf16.gmra.mxu3 %v11338_v35 }
 0x35e   : > { %3179 = vmatmul.bf16.gmra.mxu0 %v11336_v0  ;;  %3308 = vmatmul.bf16.gmra.mxu1 %v11338_v35  ;;  %v11366_v35 = vor.u32 %v9288_v3, %v8773_v13  ;;  %v11368_v0 = vor.u32 %v9271_v20, %v8711_v11  ;;  %v11382_v3 = vpop.permute.xlu0 %2483  ;;  %v8781_v20 = vld [vmem:[%s10733_s16 + $0x100] sm:$0xf]  ;;  %v11387_v13 = vpop.permute.xlu2 %2623 }
 0x35f   : > { %v11350_v53 = vpop.f32.mrf.mxu2  ;;  %15979 = vst [vmem:[#allocation82_spill] sm:$0xff] %v11382_v3  ;;  %v11392_v54 = vpop.permute.xlu1 %2463 }
 0x360   : > { %15975 = vst [vmem:[#allocation78_spill] sm:$0xff] %v11366_v35  ;;  %v3111_v8 = vadd.f32 %v11102_v59, %v11392_v54 }
 0x361   : > { %15976 = vst [vmem:[#allocation79_spill] sm:$0xff] %v11368_v0 }
 0x362   : > { %15980 = vst [vmem:[#allocation83_spill] sm:$0xff] %v11387_v13 }
 0x363   : > { %v11354_v15 = vpop.f32.mrf.mxu0  ;;  %15981 = vst [vmem:[#allocation84_spill] sm:$0xff] %v11392_v54 }
 0x366   : > { %v11404_v32 = vpop.permute.xlu0 %2728  ;;  %v11410_v59 = vpop.permute.xlu2 %2468 }
 0x367   : > { %v11364_v29 = vpop.f32.mrf.mxu2  ;;  %15984 = vst [vmem:[#allocation87_spill] sm:$0xff] %v11404_v32 }
 0x368   : > { %15985 = vst [vmem:[#allocation88_spill] sm:$0xff] %v11410_v59 }
 0x36b   : > { %v11370_v4 = vpop.f32.mrf.mxu0 }
 0x36c   : > { %3522 = vmatmul.bf16.gmra.mxu2 %v11366_v35  ;;  %3651 = vmatmul.bf16.gmra.mxu3 %v11368_v0 }
 0x36e   : > { %3184 = vmatmul.bf16.gmra.mxu0 %v11366_v35  ;;  %3313 = vmatmul.bf16.gmra.mxu1 %v11368_v0  ;;  %v11398_v0 = vor.u32 %v9290_v2, %v8781_v20  ;;  %v3449_v2 = vadd.f32 %v11142_v60, %v11392_v54  ;;  %v11421_v16 = vpop.permute.xlu0 %2633 }
 0x36f   : > { %v11380_v28 = vpop.f32.mrf.mxu2  ;;  %15987 = vst [vmem:[#allocation90_spill] sm:$0xff] %v11421_v16 }
 0x370   : > { %15982 = vst [vmem:[#allocation85_spill] sm:$0xff] %v11398_v0 }
 0x373   : > { %v11384_v11 = vpop.f32.mrf.mxu0 }
 0x377   : > { %v11396_v35 = vpop.f32.mrf.mxu2 }
 0x37b   : > { %v11402_v14 = vpop.f32.mrf.mxu0  ;;  %v3279_v23 = vpop.f32.mrf.mxu1 }
 0x37c   : > { %v3280_v24 = vadd.f32 %v3279_v23, %v3111_v8  ;;  %3527 = vmatmul.bf16.gmra.mxu2 %v11398_v0  ;;  %3656 = vmatmul.bf16.gmra.mxu3 %v11400_v55  ;;  %v3113_v23 = vadd.f32 %v11146_v18, %v11410_v59  ;;  %v3451_v18 = vadd.f32 %v11178_v9, %v11410_v59 }
 0x37e   : > { %3189 = vmatmul.bf16.gmra.mxu0 %v11398_v0  ;;  %3318 = vmatmul.bf16.gmra.mxu1 %v11400_v55  ;;  %v4453_v0 = vmul.f32 0.01, %v3280_v24  ;;  %v8789_v55 = vld [vmem:[%s10733_s16 + $0x110] sm:$0xf] }
 0x37f   : > { %v11416_v17 = vpop.f32.mrf.mxu2  ;;  %v3617_v8 = vpop.f32.mrf.mxu3  ;;  %v11432_v50 = vor.u32 %v9292_v7, %v8789_v55  ;;  %v3454_v55 = vadd.f32 %v11202_v25, %v11352_v39 }
 0x380   : > { %v3618_v34 = vadd.f32 %v3617_v8, %v3449_v2  ;;  %v4709_v60 = vmax.f32 %v3280_v24, %v4453_v0  ;;  %v3116_v2 = vadd.f32 %v11189_v41, %v11352_v39 }
 0x381   : > { %15988 = vst [vmem:[#allocation91_spill] sm:$0xff] %v11432_v50 }
 0x382   : > { %v4454_v16 = vmul.f32 0.01, %v3618_v34 }
 0x383   : > { %v11418_v20 = vpop.f32.mrf.mxu0  ;;  %v3281_v32 = vpop.f32.mrf.mxu1 }
 0x384   : > { %15986 = vst [vmem:[#allocation89_spill] sm:$0xff] %v11418_v20  ;;  %v3282_v13 = vadd.f32 %v3281_v32, %v3113_v23  ;;  %v11434_v32 = vor.u32 %v9275_v33, %v8727_v30  ;;  %v4710_v9 = vmax.f32 %v3618_v34, %v4454_v16  ;;  %v11444_v33 = vpop.permute.xlu0 %2478 }
 0x385   : > { %15990 = vst [vmem:[#allocation93_spill] sm:$0xff] %v11444_v33  ;;  %v3118_v7 = vadd.f32 %v11206_v49, %v11444_v33  ;;  %v3121_v49 = vadd.f32 %v11222_v42, %v11382_v3 }
 0x386   : > { %v4457_v45 = vmul.f32 0.01, %v3282_v13  ;;  %15989 = vst [vmem:[#allocation92_spill] sm:$0xff] %v11434_v32 }
 0x387   : > { %v11430_v8 = vpop.f32.mrf.mxu2  ;;  %v3619_v37 = vpop.f32.mrf.mxu3 }
 0x388   : > { %v4713_v54 = vmax.f32 %v3282_v13, %v4457_v45  ;;  %v3620_v44 = vadd.f32 %v3619_v37, %v3451_v18 }
 0x38a   : > { %v11436_v23 = vpack.c.bf16 %v4713_v54, %v4709_v60  ;;  %v4458_v0 = vmul.f32 0.01, %v3620_v44 }
 0x38b   : > { %v11438_v20 = vpop.f32.mrf.mxu0  ;;  %v3284_v24 = vpop.f32.mrf.mxu1 }
 0x38c   : > { %v3285_v45 = vadd.f32 %v3284_v24, %v3116_v2  ;;  %v4714_v41 = vmax.f32 %v3620_v44, %v4458_v0  ;;  %3532 = vmatmul.bf16.gmra.mxu2 %v11432_v50  ;;  %3661 = vmatmul.bf16.gmra.mxu3 %v11434_v32  ;;  %v8797_v2 = vld [vmem:[%s10733_s16 + $0x120] sm:$0xf]  ;;  %v9294_v24 = vld [vmem:[%s10733_s16 + $0x124] sm:$0xf0]  ;;  %v9277_v0 = vld [vmem:[%s10733_s16 + $0xa4] sm:$0xf] }
 0x38e   : > { %3194 = vmatmul.bf16.gmra.mxu0 %v11432_v50  ;;  %3323 = vmatmul.bf16.gmra.mxu1 %v11434_v32  ;;  %v11448_v37 = vpack.c.bf16 %v4714_v41, %v4710_v9  ;;  %v4461_v34 = vmul.f32 0.01, %v3285_v45  ;;  %v8735_v32 = vld [vmem:[%s10733_s16 + $0xa8] sm:$0xf0]  ;;  %v3456_v41 = vadd.f32 %v11216_v48, %v11444_v33 }
 0x38f   : > { %v11452_v16 = vpop.f32.mrf.mxu2  ;;  %v3622_v30 = vpop.f32.mrf.mxu3  ;;  %v11468_v39 = vor.u32 %v9277_v0, %v8735_v32  ;;  %v3459_v32 = vadd.f32 %v11232_v38, %v11382_v3 }
 0x390   : > { %15991 = vst [vmem:[#allocation94_spill] sm:$0xff] %v11448_v37  ;;  %v3623_v54 = vadd.f32 %v3622_v30, %v3454_v55  ;;  %v4717_v25 = vmax.f32 %v3285_v45, %v4461_v34  ;;  %v11466_v30 = vor.u32 %v9294_v24, %v8797_v2  ;;  %v3123_v2 = vadd.f32 %v11236_v26, %v11299_v22 }
 0x391   : > { %15993 = vst [vmem:[#allocation96_spill] sm:$0xff] %v11468_v39  ;;  %v3126_v26 = vadd.f32 %v11252_v21, %v11244_v51 }
 0x392   : > { %15992 = vst [vmem:[#allocation95_spill] sm:$0xff] %v11466_v30 }
 0x393   : > { %v11454_v44 = vpop.f32.mrf.mxu0  ;;  %v3286_v13 = vpop.f32.mrf.mxu1 }
 0x394   : > { %v3287_v60 = vadd.f32 %v3286_v13, %v3118_v7  ;;  %v4462_v13 = vmul.f32 0.01, %v3623_v54 }
 0x396   : > { %v4465_v18 = vmul.f32 0.01, %v3287_v60  ;;  %v4718_v48 = vmax.f32 %v3623_v54, %v4462_v13  ;;  %v9296_v13 = vld [vmem:[%s10733_s16 + $0x134] sm:$0xf0] }
 0x397   : > { %v11464_v50 = vpop.f32.mrf.mxu2  ;;  %v3624_v55 = vpop.f32.mrf.mxu3 }
 0x398   : > { %v4721_v9 = vmax.f32 %v3287_v60, %v4465_v18  ;;  %v3625_v59 = vadd.f32 %v3624_v55, %v3456_v41  ;;  %v8805_v55 = vld [vmem:[%s10733_s16 + $0x130] sm:$0xf] }
 0x39a   : > { %v11470_v7 = vpack.c.bf16 %v4721_v9, %v4717_v25  ;;  %v4466_v60 = vmul.f32 0.01, %v3625_v59 }
 0x39b   : > { %v11472_v37 = vpop.f32.mrf.mxu0  ;;  %v3289_v45 = vpop.f32.mrf.mxu1 }
 0x39c   : > { %v3290_v34 = vadd.f32 %v3289_v45, %v3121_v49  ;;  %v4722_v42 = vmax.f32 %v3625_v59, %v4466_v60  ;;  %3537 = vmatmul.bf16.gmra.mxu2 %v11466_v30  ;;  %3666 = vmatmul.bf16.gmra.mxu3 %v11468_v39  ;;  %v9279_v45 = vld [vmem:[%s10733_s16 + $0xb4] sm:$0xf]  ;;  %v8743_v60 = vld [vmem:[%s10733_s16 + $0xb8] sm:$0xf0] }
 0x39e   : > { %3199 = vmatmul.bf16.gmra.mxu0 %v11466_v30  ;;  %3328 = vmatmul.bf16.gmra.mxu1 %v11468_v39  ;;  %v11480_v18 = vpack.c.bf16 %v4722_v42, %v4718_v48  ;;  %v4469_v9 = vmul.f32 0.01, %v3290_v34  ;;  %v3461_v42 = vadd.f32 %v11246_v36, %v11299_v22  ;;  %v11500_v30 = vor.u32 %v9279_v45, %v8743_v60 }
 0x39f   : > { %v11484_v24 = vpop.f32.mrf.mxu2  ;;  %v3627_v0 = vpop.f32.mrf.mxu3 }
 0x3a0   : > { %15994 = vst [vmem:[#allocation97_spill] sm:$0xff] %v11480_v18  ;;  %v3628_v54 = vadd.f32 %v3627_v0, %v3459_v32  ;;  %v4725_v38 = vmax.f32 %v3290_v34, %v4469_v9  ;;  %v11498_v0 = vor.u32 %v9296_v13, %v8805_v55  ;;  %v3128_v13 = vadd.f32 %v11266_v10, %v11260_v46 }
 0x3a1   : > { %15996 = vst [vmem:[#allocation99_spill] sm:$0xff] %v11500_v30  ;;  %v3131_v10 = vadd.f32 %v11282_v19, %v11204_v47 }
 0x3a2   : > { %15995 = vst [vmem:[#allocation98_spill] sm:$0xff] %v11498_v0 }
 0x3a3   : > { %v11486_v25 = vpop.f32.mrf.mxu0  ;;  %v3291_v59 = vpop.f32.mrf.mxu1 }
 0x3a4   : > { %v3292_v41 = vadd.f32 %v3291_v59, %v3123_v2  ;;  %v4470_v59 = vmul.f32 0.01, %v3628_v54 }
 0x3a6   : > { %v4473_v49 = vmul.f32 0.01, %v3292_v41  ;;  %v4726_v36 = vmax.f32 %v3628_v54, %v4470_v59  ;;  %v9298_v59 = vld [vmem:[%s10733_s16 + $0x144] sm:$0xf0] }
 0x3a7   : > { %v11496_v39 = vpop.f32.mrf.mxu2  ;;  %v3629_v32 = vpop.f32.mrf.mxu3 }
 0x3a8   : > { %v4729_v48 = vmax.f32 %v3292_v41, %v4473_v49  ;;  %v3630_v3 = vadd.f32 %v3629_v32, %v3461_v42  ;;  %v3464_v49 = vadd.f32 %v11262_v27, %v11244_v51  ;;  %v8813_v32 = vld [vmem:[%s10733_s16 + $0x140] sm:$0xf] }
 0x3aa   : > { %v11502_v2 = vpack.c.bf16 %v4729_v48, %v4725_v38  ;;  %v4474_v41 = vmul.f32 0.01, %v3630_v3 }
 0x3ab   : > { %v11504_v33 = vpop.f32.mrf.mxu0  ;;  %v3294_v34 = vpop.f32.mrf.mxu1 }
 0x3ac   : > { %v3295_v9 = vadd.f32 %v3294_v34, %v3126_v26  ;;  %v4730_v21 = vmax.f32 %v3630_v3, %v4474_v41  ;;  %3542 = vmatmul.bf16.gmra.mxu2 %v11498_v0  ;;  %3671 = vmatmul.bf16.gmra.mxu3 %v11500_v30  ;;  %v9281_v34 = vld [vmem:[%s10733_s16 + $0xc4] sm:$0xf]  ;;  %v8751_v41 = vld [vmem:[%s10733_s16 + $0xc8] sm:$0xf0] }
 0x3ae   : > { %3204 = vmatmul.bf16.gmra.mxu0 %v11498_v0  ;;  %3333 = vmatmul.bf16.gmra.mxu1 %v11500_v30  ;;  %v11512_v55 = vpack.c.bf16 %v4730_v21, %v4726_v36  ;;  %v4477_v48 = vmul.f32 0.01, %v3295_v9  ;;  %v3466_v21 = vadd.f32 %v11274_v43, %v11260_v46  ;;  %v11532_v0 = vor.u32 %v9281_v34, %v8751_v41 }
 0x3af   : > { %v11516_v45 = vpop.f32.mrf.mxu2  ;;  %v3632_v60 = vpop.f32.mrf.mxu3 }
 0x3b0   : > { %15997 = vst [vmem:[#allocation100_spill] sm:$0xff] %v11512_v55  ;;  %v3633_v54 = vadd.f32 %v3632_v60, %v3464_v49  ;;  %v4733_v27 = vmax.f32 %v3295_v9, %v4477_v48  ;;  %v11530_v60 = vor.u32 %v9298_v59, %v8813_v32  ;;  %v3133_v59 = vadd.f32 %v11294_v12, %v11290_v31 }
 0x3b1   : > { %15999 = vst [vmem:[#allocation102_spill] sm:$0xff] %v11532_v0 }
 0x3b2   : > { %15998 = vst [vmem:[#allocation101_spill] sm:$0xff] %v11530_v60 }
 0x3b3   : > { %v11518_v38 = vpop.f32.mrf.mxu0  ;;  %v3296_v3 = vpop.f32.mrf.mxu1 }
 0x3b4   : > { %v3297_v42 = vadd.f32 %v3296_v3, %v3128_v13  ;;  %v4478_v3 = vmul.f32 0.01, %v3633_v54 }
 0x3b6   : > { %v4481_v26 = vmul.f32 0.01, %v3297_v42  ;;  %v4734_v43 = vmax.f32 %v3633_v54, %v4478_v3  ;;  %v9300_v3 = vld [vmem:[%s10733_s16 + $0x154] sm:$0xf0] }
 0x3b7   : > { %v11528_v30 = vpop.f32.mrf.mxu2  ;;  %v3634_v49 = vpop.f32.mrf.mxu3 }
 0x3b8   : > { %v4737_v36 = vmax.f32 %v3297_v42, %v4481_v26  ;;  %v3635_v51 = vadd.f32 %v3634_v49, %v3466_v21  ;;  %v3469_v26 = vadd.f32 %v11292_v5, %v11204_v47  ;;  %v8821_v49 = vld [vmem:[%s10733_s16 + $0x150] sm:$0xf] }
 0x3ba   : > { %v11534_v13 = vpack.c.bf16 %v4737_v36, %v4733_v27  ;;  %v4482_v42 = vmul.f32 0.01, %v3635_v51 }
 0x3bb   : > { %v11536_v22 = vpop.f32.mrf.mxu0  ;;  %v3299_v9 = vpop.f32.mrf.mxu1 }
 0x3bc   : > { %v3300_v48 = vadd.f32 %v3299_v9, %v3131_v10  ;;  %v4738_v19 = vmax.f32 %v3635_v51, %v4482_v42  ;;  %3547 = vmatmul.bf16.gmra.mxu2 %v11530_v60  ;;  %3676 = vmatmul.bf16.gmra.mxu3 %v11532_v0  ;;  %v9283_v9 = vld [vmem:[%s10733_s16 + $0xd4] sm:$0xf]  ;;  %v8759_v42 = vld [vmem:[%s10733_s16 + $0xd8] sm:$0xf0] }
 0x3be   : > { %3209 = vmatmul.bf16.gmra.mxu0 %v11530_v60  ;;  %3338 = vmatmul.bf16.gmra.mxu1 %v11532_v0  ;;  %v11544_v32 = vpack.c.bf16 %v4738_v19, %v4734_v43  ;;  %v4485_v36 = vmul.f32 0.01, %v3300_v48  ;;  %v3471_v19 = vadd.f32 %v11304_v52, %v11290_v31  ;;  %v11560_v60 = vor.u32 %v9300_v3, %v8821_v49 }
 0x3bf   : > { %v11548_v34 = vpop.f32.mrf.mxu2  ;;  %v3637_v41 = vpop.f32.mrf.mxu3 }
 0x3c0   : > { %16000 = vst [vmem:[#allocation103_spill] sm:$0xff] %v11544_v32  ;;  %v3638_v54 = vadd.f32 %v3637_v41, %v3469_v26  ;;  %v4741_v5 = vmax.f32 %v3300_v48, %v4485_v36  ;;  %v11562_v26 = vor.u32 %v9283_v9, %v8759_v42  ;;  %v3136_v48 = vadd.f32 %v11312_v6, %v11234_v57 }
 0x3c1   : > { %16001 = vst [vmem:[#allocation104_spill] sm:$0xff] %v11560_v60  ;;  %v3138_v6 = vadd.f32 %v11324_v62, %v11070_v40 }
 0x3c2   : > { %16002 = vst [vmem:[#allocation105_spill] sm:$0xff] %v11562_v26 }
 0x3c3   : > { %v11550_v27 = vpop.f32.mrf.mxu0  ;;  %v3301_v51 = vpop.f32.mrf.mxu1 }
 0x3c4   : > { %v3302_v21 = vadd.f32 %v3301_v51, %v3133_v59  ;;  %v4486_v59 = vmul.f32 0.01, %v3638_v54 }
 0x3c6   : > { %v4489_v10 = vmul.f32 0.01, %v3302_v21  ;;  %v4742_v52 = vmax.f32 %v3638_v54, %v4486_v59  ;;  %v9285_v59 = vld [vmem:[%s10733_s16 + $0xe4] sm:$0xf] }
 0x3c7   : > { %v11558_v12 = vpop.f32.mrf.mxu2  ;;  %v3639_v0 = vpop.f32.mrf.mxu3 }
 0x3c8   : > { %v4745_v43 = vmax.f32 %v3302_v21, %v4489_v10  ;;  %v3640_v51 = vadd.f32 %v3639_v0, %v3471_v19  ;;  %v3474_v21 = vadd.f32 %v11322_v61, %v11234_v57  ;;  %v8829_v19 = vld [vmem:[%s10733_s16 + $0x160] sm:$0xf] }
 0x3ca   : > { %v11564_v41 = vpack.c.bf16 %v4745_v43, %v4741_v5  ;;  %v4490_v18 = vmul.f32 0.01, %v3640_v51 }
 0x3cb   : > { %v11566_v47 = vpop.f32.mrf.mxu0  ;;  %v3304_v46 = vpop.f32.mrf.mxu1 }
 0x3cc   : > { %v4746_v36 = vmax.f32 %v3640_v51, %v4490_v18  ;;  %3552 = vmatmul.bf16.gmra.mxu2 %v11560_v60  ;;  %3681 = vmatmul.bf16.gmra.mxu3 %v11562_v26  ;;  %v3305_v0 = vadd.f32 %v3304_v46, %v3136_v48  ;;  %v9302_v46 = vld [vmem:[%s10733_s16 + $0x164] sm:$0xf0]  ;;  %v8767_v51 = vld [vmem:[%s10733_s16 + $0xe8] sm:$0xf0] }
 0x3ce   : > { %3214 = vmatmul.bf16.gmra.mxu0 %v11560_v60  ;;  %3343 = vmatmul.bf16.gmra.mxu1 %v11562_v26  ;;  %v11576_v10 = vpack.c.bf16 %v4746_v36, %v4742_v52  ;;  %v4493_v42 = vmul.f32 0.01, %v3305_v0  ;;  %v3476_v52 = vadd.f32 %v11334_v1, %v11070_v40  ;;  %v11592_v26 = vor.u32 %v9302_v46, %v8829_v19  ;;  %v11606_v19 = vpop.permute.xlu0 %2553 }
 0x3cf   : > { %v11580_v49 = vpop.f32.mrf.mxu2  ;;  %v3642_v54 = vpop.f32.mrf.mxu3  ;;  %16007 = vst [vmem:[#allocation109_spill] sm:$0xff] %v11606_v19 }
 0x3d0   : > { %16003 = vst [vmem:[#allocation106_spill] sm:$0xff] %v11576_v10  ;;  %v3643_v18 = vadd.f32 %v3642_v54, %v3474_v21  ;;  %v4749_v61 = vmax.f32 %v3305_v0, %v4493_v42  ;;  %v11594_v21 = vor.u32 %v9285_v59, %v8767_v51  ;;  %v16006_v0 = vld [vmem:[#allocation60_spill] sm:$0xff] }
 0x3d1   : > { %16004 = vst [vmem:[#allocation107_spill] sm:$0xff] %v11592_v26  ;;  %v3141_v42 = vadd.f32 %v11342_v58, %v16006_v0  ;;  %v3479_v58 = vadd.f32 %v11350_v53, %v16006_v0 }
 0x3d2   : > { %16005 = vst [vmem:[#allocation108_spill] sm:$0xff] %v11594_v21 }
 0x3d3   : > { %v11582_v3 = vpop.f32.mrf.mxu0  ;;  %v3306_v9 = vpop.f32.mrf.mxu1 }
 0x3d4   : > { %v3307_v5 = vadd.f32 %v3306_v9, %v3138_v6  ;;  %v4494_v6 = vmul.f32 0.01, %v3643_v18 }
 0x3d6   : > { %v4497_v43 = vmul.f32 0.01, %v3307_v5  ;;  %v4750_v1 = vmax.f32 %v3643_v18, %v4494_v6  ;;  %v3143_v18 = vadd.f32 %v11354_v15, %v10938_v56  ;;  %v8837_v6 = vld [vmem:[%s10733_s16 + $0x170] sm:$0xf]  ;;  %v11632_v32 = vpop.permute.xlu0 %2628 }
 0x3d7   : > { %v11590_v62 = vpop.f32.mrf.mxu2  ;;  %v3644_v36 = vpop.f32.mrf.mxu3  ;;  %16010 = vst [vmem:[#allocation112_spill] sm:$0xff] %v11632_v32 }
 0x3d8   : > { %v4753_v48 = vmax.f32 %v3307_v5, %v4497_v43  ;;  %v3645_v9 = vadd.f32 %v3644_v36, %v3476_v52 }
 0x3da   : > { %v11596_v54 = vpack.c.bf16 %v4753_v48, %v4749_v61  ;;  %v4498_v31 = vmul.f32 0.01, %v3645_v9 }
 0x3db   : > { %v11598_v60 = vpop.f32.mrf.mxu0  ;;  %v3309_v57 = vpop.f32.mrf.mxu1 }
 0x3dc   : > { %v4754_v5 = vmax.f32 %v3645_v9, %v4498_v31  ;;  %3557 = vmatmul.bf16.gmra.mxu2 %v11592_v26  ;;  %3686 = vmatmul.bf16.gmra.mxu3 %v11594_v21  ;;  %v3310_v43 = vadd.f32 %v3309_v57, %v3141_v42  ;;  %v9304_v9 = vld [vmem:[%s10733_s16 + $0x174] sm:$0xf0]  ;;  %v9287_v42 = vld [vmem:[%s10733_s16 + $0xf4] sm:$0xf] }
 0x3dd   : > { %v11626_v0 = vor.u32 %v9304_v9, %v8837_v6 }
 0x3de   : > { %3219 = vmatmul.bf16.gmra.mxu0 %v11592_v26  ;;  %3348 = vmatmul.bf16.gmra.mxu1 %v11594_v21  ;;  %v11610_v46 = vpack.c.bf16 %v4754_v5, %v4750_v1  ;;  %v4501_v52 = vmul.f32 0.01, %v3310_v43  ;;  %v8775_v21 = vld [vmem:[%s10733_s16 + $0xf8] sm:$0xf0]  ;;  %v3481_v5 = vadd.f32 %v11364_v29, %v10938_v56 }
 0x3df   : > { %v11614_v31 = vpop.f32.mrf.mxu2  ;;  %v3647_v59 = vpop.f32.mrf.mxu3  ;;  %16008 = vst [vmem:[#allocation110_spill] sm:$0xff] %v11626_v0 }
 0x3e0   : > { %v3648_v51 = vadd.f32 %v3647_v59, %v3479_v58  ;;  %v4757_v53 = vmax.f32 %v3310_v43, %v4501_v52  ;;  %v11628_v58 = vor.u32 %v9287_v42, %v8775_v21  ;;  %v16011_v52 = vld [vmem:[#allocation22_spill] sm:$0xff] }
 0x3e2   : > { %16009 = vst [vmem:[#allocation111_spill] sm:$0xff] %v11628_v58  ;;  %v4502_v40 = vmul.f32 0.01, %v3648_v51 }
 0x3e3   : > { %v11616_v61 = vpop.f32.mrf.mxu0  ;;  %v3311_v48 = vpop.f32.mrf.mxu1 }
 0x3e4   : > { %v3312_v57 = vadd.f32 %v3311_v48, %v3143_v18  ;;  %v4758_v29 = vmax.f32 %v3648_v51, %v4502_v40 }
 0x3e6   : > { %v4505_v36 = vmul.f32 0.01, %v3312_v57 }
 0x3e7   : > { %v11624_v15 = vpop.f32.mrf.mxu2  ;;  %v3649_v26 = vpop.f32.mrf.mxu3 }
 0x3e8   : > { %v4761_v1 = vmax.f32 %v3312_v57, %v4505_v36  ;;  %v3650_v18 = vadd.f32 %v3649_v26, %v3481_v5  ;;  %v3146_v57 = vadd.f32 %v11370_v4, %v16011_v52  ;;  %v3484_v36 = vadd.f32 %v11380_v28, %v16011_v52  ;;  %v9289_v28 = vld [vmem:[%s10733_s16 + $0x104] sm:$0xf] }
 0x3e9   : > { %v3148_v4 = vadd.f32 %v11384_v11, %v11037_v63  ;;  %v3486_v11 = vadd.f32 %v11396_v35, %v11037_v63 }
 0x3ea   : > { %v4989_v59 = vpack.c.bf16 %v4761_v1, %v4757_v53  ;;  %v4506_v43 = vmul.f32 0.01, %v3650_v18 }
 0x3eb   : > { %v11630_v48 = vpop.f32.mrf.mxu0  ;;  %v3314_v55 = vpop.f32.mrf.mxu1 }
 0x3ec   : > { %v4762_v21 = vmax.f32 %v3650_v18, %v4506_v43  ;;  %3562 = vmatmul.bf16.gmra.mxu2 %v11626_v0  ;;  %3691 = vmatmul.bf16.gmra.mxu3 %v11628_v58  ;;  %v3315_v26 = vadd.f32 %v3314_v55, %v3146_v57  ;;  %v8845_v55 = vld [vmem:[%s10733_s16 + $0x180] sm:$0xf]  ;;  %v11651_v43 = vpop.permute.xlu0 %2703  ;;  %v9306_v57 = vld [vmem:[%s10733_s16 + $0x184] sm:$0xf0] }
 0x3ed   : > { %16012 = vst [vmem:[#allocation113_spill] sm:$0xff] %v11651_v43 }
 0x3ee   : > { %3224 = vmatmul.bf16.gmra.mxu0 %v11626_v0  ;;  %3353 = vmatmul.bf16.gmra.mxu1 %v11628_v58  ;;  %v11642_v6 = vpack.c.bf16 %v4762_v21, %v4758_v29  ;;  %v4509_v1 = vmul.f32 0.01, %v3315_v26  ;;  %v8783_v29 = vld [vmem:[%s10733_s16 + $0x108] sm:$0xf0]  ;;  %v11656_v0 = vpop.permute.xlu2 %2543 }
 0x3ef   : > { %v11646_v9 = vpop.f32.mrf.mxu2  ;;  %v3652_v40 = vpop.f32.mrf.mxu3  ;;  %16013 = vst [vmem:[#allocation114_spill] sm:$0xff] %v11656_v0  ;;  %v11666_v56 = vor.u32 %v9289_v28, %v8783_v29  ;;  %v16017_v28 = vld [vmem:[#allocation89_spill] sm:$0xff] }
 0x3f0   : > { %v3653_v51 = vadd.f32 %v3652_v40, %v3484_v36  ;;  %v4765_v21 = vmax.f32 %v3315_v26, %v4509_v1  ;;  %v3151_v36 = vadd.f32 %v11402_v14, %v11656_v0 }
 0x3f1   : > { %16015 = vst [vmem:[#allocation116_spill] sm:$0xff] %v11666_v56 }
 0x3f2   : > { %v4510_v43 = vmul.f32 0.01, %v3653_v51 }
 0x3f3   : > { %v11648_v42 = vpop.f32.mrf.mxu0  ;;  %v3316_v53 = vpop.f32.mrf.mxu1 }
 0x3f4   : > { %v3317_v5 = vadd.f32 %v3316_v53, %v3148_v4  ;;  %v11664_v53 = vor.u32 %v9306_v57, %v8845_v55  ;;  %v4766_v14 = vmax.f32 %v3653_v51, %v4510_v43  ;;  %v3489_v55 = vadd.f32 %v11416_v17, %v11656_v0  ;;  %v9291_v17 = vld [vmem:[%s10733_s16 + $0x114] sm:$0xf] }
 0x3f6   : > { %v4513_v18 = vmul.f32 0.01, %v3317_v5  ;;  %16014 = vst [vmem:[#allocation115_spill] sm:$0xff] %v11664_v53 }
 0x3f7   : > { %v11662_v52 = vpop.f32.mrf.mxu2  ;;  %v3654_v4 = vpop.f32.mrf.mxu3 }
 0x3f8   : > { %v4769_v58 = vmax.f32 %v3317_v5, %v4513_v18  ;;  %v3655_v10 = vadd.f32 %v3654_v4, %v3486_v11  ;;  %v8853_v4 = vld [vmem:[%s10733_s16 + $0x190] sm:$0xf] }
 0x3fa   : > { %v4993_v40 = vpack.c.bf16 %v4769_v58, %v4765_v21  ;;  %v4514_v18 = vmul.f32 0.01, %v3655_v10  ;;  %v11674_v58 = vpop.permute.xlu0 %2548 }
 0x3fb   : > { %v11668_v26 = vpop.f32.mrf.mxu0  ;;  %v3319_v1 = vpop.f32.mrf.mxu1  ;;  %16016 = vst [vmem:[#allocation117_spill] sm:$0xff] %v11674_v58  ;;  %v3153_v51 = vadd.f32 %v16017_v28, %v11674_v58  ;;  %v3491_v28 = vadd.f32 %v11430_v8, %v11674_v58 }
 0x3fc   : > { %v3320_v5 = vadd.f32 %v3319_v1, %v3151_v36  ;;  %5669 = vmatpush.bf16.msra.mxu0 %v4993_v40  ;;  %v4770_v35 = vmax.f32 %v3655_v10, %v4514_v18  ;;  %3567 = vmatmul.bf16.gmra.mxu2 %v11664_v53  ;;  %v9308_v1 = vld [vmem:[%s10733_s16 + $0x194] sm:$0xf0]  ;;  %v8791_v18 = vld [vmem:[%s10733_s16 + $0x118] sm:$0xf0] }
 0x3fd   : > { %3696 = vmatmul.bf16.gmra.mxu3 %v11666_v56 }
 0x3fe   : > { %3229 = vmatmul.bf16.gmra.mxu0 %v11664_v53  ;;  %3358 = vmatmul.bf16.gmra.mxu1 %v11666_v56  ;;  %v11678_v57 = vpack.c.bf16 %v4770_v35, %v4766_v14 }
 0x3ff   : > { %v11682_v10 = vpop.f32.mrf.mxu2  ;;  %v3657_v43 = vpop.f32.mrf.mxu3 }
 0x400   : > { %5670 = vmatpush.bf16.msra.mxu0 %v4989_v59  ;;  %v3658_v29 = vadd.f32 %v3657_v43, %v3489_v55  ;;  %v4517_v59 = vmul.f32 0.01, %v3320_v5  ;;  %v3156_v55 = vadd.f32 %v11438_v20, %v11606_v19 }
 0x402   : > { %v4773_v14 = vmax.f32 %v3320_v5, %v4517_v59  ;;  %v4518_v53 = vmul.f32 0.01, %v3658_v29 }
 0x403   : > { %v11684_v21 = vpop.f32.mrf.mxu0  ;;  %v3321_v11 = vpop.f32.mrf.mxu1 }
 0x404   : > { %v3322_v36 = vadd.f32 %v3321_v11, %v3153_v51  ;;  %5671 = vmatpush.bf16.msra.mxu0 %v11596_v54  ;;  %v11698_v11 = vor.u32 %v9308_v1, %v8853_v4  ;;  %v11700_v54 = vor.u32 %v9291_v17, %v8791_v18  ;;  %v4774_v20 = vmax.f32 %v3658_v29, %v4518_v53  ;;  %v16021_v1 = vld [vmem:[#allocation81_spill] sm:$0xff] }
 0x405   : > { %v3158_v17 = vadd.f32 %v11454_v44, %v16021_v1  ;;  %v3496_v44 = vadd.f32 %v11464_v50, %v16021_v1 }
 0x406   : > { %v4521_v40 = vmul.f32 0.01, %v3322_v36  ;;  %16018 = vst [vmem:[#allocation89_spill] sm:$0xff] %v11698_v11 }
 0x407   : > { %v11696_v43 = vpop.f32.mrf.mxu2  ;;  %v3659_v51 = vpop.f32.mrf.mxu3  ;;  %16019 = vst [vmem:[#allocation118_spill] sm:$0xff] %v11700_v54 }
 0x408   : > { %v4777_v35 = vmax.f32 %v3322_v36, %v4521_v40  ;;  %5672 = vmatpush.bf16.msra.mxu0 %v11564_v41  ;;  %v3660_v5 = vadd.f32 %v3659_v51, %v3491_v28  ;;  %v8861_v51 = vld [vmem:[%s10733_s16 + $0x1a0] sm:$0xf] }
 0x40a   : > { %v11702_v56 = vpack.c.bf16 %v4777_v35, %v4773_v14  ;;  %v4522_v8 = vmul.f32 0.01, %v3660_v5 }
 0x40b   : > { %v11704_v59 = vpop.f32.mrf.mxu0  ;;  %v3324_v41 = vpop.f32.mrf.mxu1 }
 0x40c   : > { %v3325_v36 = vadd.f32 %v3324_v41, %v3156_v55  ;;  %5673 = vmatpush.bf16.msra.mxu0 %v11534_v13  ;;  %v4778_v40 = vmax.f32 %v3660_v5, %v4522_v8  ;;  %3572 = vmatmul.bf16.gmra.mxu2 %v11698_v11  ;;  %v3494_v13 = vadd.f32 %v11452_v16, %v11606_v19  ;;  %v9310_v5 = vld [vmem:[%s10733_s16 + $0x1a4] sm:$0xf0]  ;;  %v9293_v16 = vld [vmem:[%s10733_s16 + $0x124] sm:$0xf]  ;;  %v8799_v41 = vld [vmem:[%s10733_s16 + $0x128] sm:$0xf0] }
 0x40d   : > { %3701 = vmatmul.bf16.gmra.mxu3 %v11700_v54 }
 0x40e   : > { %3234 = vmatmul.bf16.gmra.mxu0 %v11698_v11  ;;  %3363 = vmatmul.bf16.gmra.mxu1 %v11700_v54  ;;  %v11714_v4 = vpack.c.bf16 %v4778_v40, %v4774_v20  ;;  %v4525_v28 = vmul.f32 0.01, %v3325_v36  ;;  %v16022_v40 = vld [vmem:[#allocation68_spill] sm:$0xff] }
 0x40f   : > { %v11718_v53 = vpop.f32.mrf.mxu2  ;;  %v3662_v29 = vpop.f32.mrf.mxu3 }
 0x410   : > { %5674 = vmatpush.bf16.msra.mxu0 %v11502_v2  ;;  %16020 = vst [vmem:[#allocation119_spill] sm:$0xff] %v11714_v4  ;;  %v3663_v18 = vadd.f32 %v3662_v29, %v3494_v13  ;;  %v4781_v8 = vmax.f32 %v3325_v36, %v4525_v28  ;;  %v3161_v13 = vadd.f32 %v11472_v37, %v16022_v40 }
 0x412   : > { %v4526_v11 = vmul.f32 0.01, %v3663_v18 }
 0x413   : > { %v11720_v14 = vpop.f32.mrf.mxu0  ;;  %v3326_v35 = vpop.f32.mrf.mxu1 }
 0x414   : > { %v3327_v55 = vadd.f32 %v3326_v35, %v3158_v17  ;;  %5675 = vmatpush.bf16.msra.mxu0 %v11470_v7  ;;  %v11734_v35 = vor.u32 %v9310_v5, %v8861_v51  ;;  %v11736_v7 = vor.u32 %v9293_v16, %v8799_v41  ;;  %v4782_v50 = vmax.f32 %v3663_v18, %v4526_v11  ;;  %v16026_v16 = vld [vmem:[#allocation70_spill] sm:$0xff] }
 0x415   : > { %v3499_v51 = vadd.f32 %v11484_v24, %v16022_v40  ;;  %v3163_v41 = vadd.f32 %v11486_v25, %v16026_v16  ;;  %v16027_v25 = vld [vmem:[#allocation48_spill] sm:$0xff] }
 0x416   : > { %v4529_v2 = vmul.f32 0.01, %v3327_v55  ;;  %16023 = vst [vmem:[#allocation120_spill] sm:$0xff] %v11734_v35  ;;  %v3166_v40 = vadd.f32 %v11504_v33, %v16027_v25 }
 0x417   : > { %v11732_v29 = vpop.f32.mrf.mxu2  ;;  %v3664_v17 = vpop.f32.mrf.mxu3  ;;  %16024 = vst [vmem:[#allocation121_spill] sm:$0xff] %v11736_v7 }
 0x418   : > { %v4785_v20 = vmax.f32 %v3327_v55, %v4529_v2  ;;  %5676 = vmatpush.bf16.msra.mxu0 %v11436_v23  ;;  %v3665_v36 = vadd.f32 %v3664_v17, %v3496_v44 }
 0x41a   : > { %v11738_v54 = vpack.c.bf16 %v4785_v20, %v4781_v8  ;;  %v4530_v2 = vmul.f32 0.01, %v3665_v36 }
 0x41b   : > { %v11740_v28 = vpop.f32.mrf.mxu0  ;;  %v3329_v23 = vpop.f32.mrf.mxu1 }
 0x41c   : > { %v3330_v55 = vadd.f32 %v3329_v23, %v3161_v13  ;;  %v4786_v37 = vmax.f32 %v3665_v36, %v4530_v2  ;;  %3577 = vmatmul.bf16.gmra.mxu2 %v11734_v35  ;;  %v8869_v23 = vld [vmem:[%s10733_s16 + $0x1b0] sm:$0xf]  ;;  %v9312_v2 = vld [vmem:[%s10733_s16 + $0x1b4] sm:$0xf0] }
 0x41d   : > { %3706 = vmatmul.bf16.gmra.mxu3 %v11736_v7 }
 0x41e   : > { %3239 = vmatmul.bf16.gmra.mxu0 %v11734_v35  ;;  %3368 = vmatmul.bf16.gmra.mxu1 %v11736_v7  ;;  %v11748_v5 = vpack.c.bf16 %v4786_v37, %v4782_v50  ;;  %v4533_v13 = vmul.f32 0.01, %v3330_v55  ;;  %v9295_v7 = vld [vmem:[%s10733_s16 + $0x134] sm:$0xf]  ;;  %v8807_v35 = vld [vmem:[%s10733_s16 + $0x138] sm:$0xf0]  ;;  %v3501_v37 = vadd.f32 %v11496_v39, %v16026_v16 }
 0x41f   : > { %v11752_v8 = vpop.f32.mrf.mxu2  ;;  %v3667_v20 = vpop.f32.mrf.mxu3  ;;  %v11768_v19 = vor.u32 %v9295_v7, %v8807_v35  ;;  %v3504_v35 = vadd.f32 %v11516_v45, %v16027_v25 }
 0x420   : > { %16025 = vst [vmem:[#allocation122_spill] sm:$0xff] %v11748_v5  ;;  %v3668_v11 = vadd.f32 %v3667_v20, %v3499_v51  ;;  %v4789_v24 = vmax.f32 %v3330_v55, %v4533_v13  ;;  %v11766_v20 = vor.u32 %v9312_v2, %v8869_v23 }
 0x421   : > { %16029 = vst [vmem:[#allocation124_spill] sm:$0xff] %v11768_v19 }
 0x422   : > { %16028 = vst [vmem:[#allocation123_spill] sm:$0xff] %v11766_v20 }
 0x423   : > { %v11754_v18 = vpop.f32.mrf.mxu0  ;;  %v3331_v44 = vpop.f32.mrf.mxu1 }
 0x424   : > { %v3332_v17 = vadd.f32 %v3331_v44, %v3163_v41  ;;  %v4534_v44 = vmul.f32 0.01, %v3668_v11 }
 0x426   : > { %v4537_v36 = vmul.f32 0.01, %v3332_v17  ;;  %v4790_v39 = vmax.f32 %v3668_v11, %v4534_v44  ;;  %v8877_v44 = vld [vmem:[%s10733_s16 + $0x1c0] sm:$0xf] }
 0x427   : > { %v11764_v1 = vpop.f32.mrf.mxu2  ;;  %v3669_v51 = vpop.f32.mrf.mxu3 }
 0x428   : > { %v4793_v50 = vmax.f32 %v3332_v17, %v4537_v36  ;;  %v3670_v58 = vadd.f32 %v3669_v51, %v3501_v37 }
 0x42a   : > { %v11770_v41 = vpack.c.bf16 %v4793_v50, %v4789_v24  ;;  %v4538_v17 = vmul.f32 0.01, %v3670_v58 }
 0x42b   : > { %v11772_v0 = vpop.f32.mrf.mxu0  ;;  %v3334_v55 = vpop.f32.mrf.mxu1 }
 0x42c   : > { %v3335_v13 = vadd.f32 %v3334_v55, %v3166_v40  ;;  %v4794_v33 = vmax.f32 %v3670_v58, %v4538_v17  ;;  %3582 = vmatmul.bf16.gmra.mxu2 %v11766_v20  ;;  %v16031_v40 = vld [vmem:[#allocation77_spill] sm:$0xff]  ;;  %v9314_v55 = vld [vmem:[%s10733_s16 + $0x1c4] sm:$0xf0]  ;;  %v9297_v17 = vld [vmem:[%s10733_s16 + $0x144] sm:$0xf] }
 0x42d   : > { %3711 = vmatmul.bf16.gmra.mxu3 %v11768_v19  ;;  %v3168_v36 = vadd.f32 %v11518_v38, %v16031_v40  ;;  %v16032_v38 = vld [vmem:[#allocation66_spill] sm:$0xff] }
 0x42e   : > { %3244 = vmatmul.bf16.gmra.mxu0 %v11766_v20  ;;  %3373 = vmatmul.bf16.gmra.mxu1 %v11768_v19  ;;  %v11780_v7 = vpack.c.bf16 %v4794_v33, %v4790_v39  ;;  %v4541_v50 = vmul.f32 0.01, %v3335_v13  ;;  %v8815_v19 = vld [vmem:[%s10733_s16 + $0x148] sm:$0xf0]  ;;  %v3506_v33 = vadd.f32 %v11528_v30, %v16031_v40  ;;  %v3171_v20 = vadd.f32 %v11536_v22, %v16032_v38 }
 0x42f   : > { %v11784_v23 = vpop.f32.mrf.mxu2  ;;  %v3672_v2 = vpop.f32.mrf.mxu3  ;;  %v11800_v16 = vor.u32 %v9297_v17, %v8815_v19  ;;  %v3509_v19 = vadd.f32 %v11548_v34, %v16032_v38 }
 0x430   : > { %16030 = vst [vmem:[#allocation125_spill] sm:$0xff] %v11780_v7  ;;  %v3673_v11 = vadd.f32 %v3672_v2, %v3504_v35  ;;  %v4797_v45 = vmax.f32 %v3335_v13, %v4541_v50  ;;  %v11798_v2 = vor.u32 %v9314_v55, %v8877_v44 }
 0x431   : > { %16034 = vst [vmem:[#allocation127_spill] sm:$0xff] %v11800_v16 }
 0x432   : > { %16033 = vst [vmem:[#allocation126_spill] sm:$0xff] %v11798_v2 }
 0x433   : > { %v11786_v24 = vpop.f32.mrf.mxu0  ;;  %v3336_v58 = vpop.f32.mrf.mxu1 }
 0x434   : > { %v3337_v37 = vadd.f32 %v3336_v58, %v3168_v36  ;;  %v4542_v58 = vmul.f32 0.01, %v3673_v11 }
 0x436   : > { %v4545_v51 = vmul.f32 0.01, %v3337_v37  ;;  %v4798_v22 = vmax.f32 %v3673_v11, %v4542_v58  ;;  %v8885_v58 = vld [vmem:[%s10733_s16 + $0x1d0] sm:$0xf] }
 0x437   : > { %v11796_v25 = vpop.f32.mrf.mxu2  ;;  %v3674_v35 = vpop.f32.mrf.mxu3 }
 0x438   : > { %v4801_v39 = vmax.f32 %v3337_v37, %v4545_v51  ;;  %v3675_v63 = vadd.f32 %v3674_v35, %v3506_v33 }
 0x43a   : > { %v11802_v36 = vpack.c.bf16 %v4801_v39, %v4797_v45  ;;  %v4546_v37 = vmul.f32 0.01, %v3675_v63 }
 0x43b   : > { %v11804_v4 = vpop.f32.mrf.mxu0  ;;  %v3339_v13 = vpop.f32.mrf.mxu1 }
 0x43c   : > { %v3340_v50 = vadd.f32 %v3339_v13, %v3171_v20  ;;  %v4802_v30 = vmax.f32 %v3675_v63, %v4546_v37  ;;  %3587 = vmatmul.bf16.gmra.mxu2 %v11798_v2  ;;  %v16036_v20 = vld [vmem:[#allocation8_spill] sm:$0xff]  ;;  %v9316_v13 = vld [vmem:[%s10733_s16 + $0x1d4] sm:$0xf0] }
 0x43d   : > { %3716 = vmatmul.bf16.gmra.mxu3 %v11800_v16  ;;  %v3173_v44 = vadd.f32 %v11550_v27, %v16036_v20  ;;  %v9299_v37 = vld [vmem:[%s10733_s16 + $0x154] sm:$0xf]  ;;  %v11828_v38 = vor.u32 %v9316_v13, %v8885_v58 }
 0x43e   : > { %3249 = vmatmul.bf16.gmra.mxu0 %v11798_v2  ;;  %3378 = vmatmul.bf16.gmra.mxu1 %v11800_v16  ;;  %v11812_v51 = vpack.c.bf16 %v4802_v30, %v4798_v22  ;;  %v4549_v39 = vmul.f32 0.01, %v3340_v50  ;;  %v8823_v16 = vld [vmem:[%s10733_s16 + $0x158] sm:$0xf0]  ;;  %v3511_v30 = vadd.f32 %v11558_v12, %v16036_v20 }
 0x43f   : > { %v11816_v55 = vpop.f32.mrf.mxu2  ;;  %v3677_v17 = vpop.f32.mrf.mxu3  ;;  %16037 = vst [vmem:[#allocation129_spill] sm:$0xff] %v11828_v38 }
 0x440   : > { %16035 = vst [vmem:[#allocation128_spill] sm:$0xff] %v11812_v51  ;;  %v3678_v11 = vadd.f32 %v3677_v17, %v3509_v19  ;;  %v4805_v34 = vmax.f32 %v3340_v50, %v4549_v39  ;;  %v11830_v19 = vor.u32 %v9299_v37, %v8823_v16  ;;  %v16039_v50 = vld [vmem:[#allocation14_spill] sm:$0xff] }
 0x441   : > { %v3176_v39 = vadd.f32 %v11566_v47, %v16039_v50  ;;  %v16041_v47 = vld [vmem:[#allocation53_spill] sm:$0xff] }
 0x442   : > { %16038 = vst [vmem:[#allocation130_spill] sm:$0xff] %v11830_v19  ;;  %v3178_v58 = vadd.f32 %v11582_v3, %v16041_v47 }
 0x443   : > { %v11818_v45 = vpop.f32.mrf.mxu0  ;;  %v3341_v63 = vpop.f32.mrf.mxu1 }
 0x444   : > { %v3342_v33 = vadd.f32 %v3341_v63, %v3173_v44  ;;  %v4550_v44 = vmul.f32 0.01, %v3678_v11 }
 0x446   : > { %v4553_v35 = vmul.f32 0.01, %v3342_v33  ;;  %v4806_v12 = vmax.f32 %v3678_v11, %v4550_v44 }
 0x447   : > { %v11826_v27 = vpop.f32.mrf.mxu2  ;;  %v3679_v2 = vpop.f32.mrf.mxu3 }
 0x448   : > { %v4809_v22 = vmax.f32 %v3342_v33, %v4553_v35  ;;  %v3680_v63 = vadd.f32 %v3679_v2, %v3511_v30  ;;  %v3514_v2 = vadd.f32 %v11580_v49, %v16039_v50 }
 0x44a   : > { %v11832_v17 = vpack.c.bf16 %v4809_v22, %v4805_v34  ;;  %v4554_v7 = vmul.f32 0.01, %v3680_v63 }
 0x44b   : > { %v11834_v40 = vpop.f32.mrf.mxu0  ;;  %v3344_v5 = vpop.f32.mrf.mxu1 }
 0x44c   : > { %v4810_v33 = vmax.f32 %v3680_v63, %v4554_v7  ;;  %3592 = vmatmul.bf16.gmra.mxu2 %v11828_v38  ;;  %v3345_v16 = vadd.f32 %v3344_v5, %v3176_v39  ;;  %v8893_v63 = vld [vmem:[%s10733_s16 + $0x1e0] sm:$0xf]  ;;  %v9318_v5 = vld [vmem:[%s10733_s16 + $0x1e4] sm:$0xf0]  ;;  %v9301_v39 = vld [vmem:[%s10733_s16 + $0x164] sm:$0xf] }
 0x44d   : > { %3721 = vmatmul.bf16.gmra.mxu3 %v11830_v19  ;;  %v11860_v50 = vor.u32 %v9318_v5, %v8893_v63 }
 0x44e   : > { %3254 = vmatmul.bf16.gmra.mxu0 %v11828_v38  ;;  %3383 = vmatmul.bf16.gmra.mxu1 %v11830_v19  ;;  %v11844_v35 = vpack.c.bf16 %v4810_v33, %v4806_v12  ;;  %v4557_v22 = vmul.f32 0.01, %v3345_v16  ;;  %v8831_v19 = vld [vmem:[%s10733_s16 + $0x168] sm:$0xf0]  ;;  %v3516_v33 = vadd.f32 %v11590_v62, %v16041_v47 }
 0x44f   : > { %v11848_v13 = vpop.f32.mrf.mxu2  ;;  %v3682_v11 = vpop.f32.mrf.mxu3  ;;  %16042 = vst [vmem:[#allocation132_spill] sm:$0xff] %v11860_v50 }
 0x450   : > { %16040 = vst [vmem:[#allocation131_spill] sm:$0xff] %v11844_v35  ;;  %v3683_v7 = vadd.f32 %v3682_v11, %v3514_v2  ;;  %v4813_v49 = vmax.f32 %v3345_v16, %v4557_v22  ;;  %v11862_v2 = vor.u32 %v9301_v39, %v8831_v19  ;;  %v16044_v16 = vld [vmem:[#allocation15_spill] sm:$0xff] }
 0x451   : > { %v3181_v22 = vadd.f32 %v11598_v60, %v16044_v16  ;;  %v3519_v19 = vadd.f32 %v11614_v31, %v16044_v16  ;;  %v16046_v60 = vld [vmem:[#allocation24_spill] sm:$0xff] }
 0x452   : > { %16043 = vst [vmem:[#allocation133_spill] sm:$0xff] %v11862_v2  ;;  %v3183_v63 = vadd.f32 %v11616_v61, %v16046_v60 }
 0x453   : > { %v11850_v37 = vpop.f32.mrf.mxu0  ;;  %v3346_v34 = vpop.f32.mrf.mxu1 }
 0x454   : > { %v3347_v30 = vadd.f32 %v3346_v34, %v3178_v58  ;;  %v4558_v58 = vmul.f32 0.01, %v3683_v7 }
 0x456   : > { %v4561_v44 = vmul.f32 0.01, %v3347_v30  ;;  %v4814_v62 = vmax.f32 %v3683_v7, %v4558_v58 }
 0x457   : > { %v11858_v3 = vpop.f32.mrf.mxu2  ;;  %v3684_v38 = vpop.f32.mrf.mxu3 }
 0x458   : > { %v4817_v12 = vmax.f32 %v3347_v30, %v4561_v44  ;;  %v3685_v34 = vadd.f32 %v3684_v38, %v3516_v33 }
 0x45a   : > { %v11864_v11 = vpack.c.bf16 %v4817_v12, %v4813_v49  ;;  %v4562_v35 = vmul.f32 0.01, %v3685_v34 }
 0x45b   : > { %v11866_v20 = vpop.f32.mrf.mxu0  ;;  %v3349_v51 = vpop.f32.mrf.mxu1 }
 0x45c   : > { %v4818_v30 = vmax.f32 %v3685_v34, %v4562_v35  ;;  %3597 = vmatmul.bf16.gmra.mxu2 %v11860_v50  ;;  %v3350_v38 = vadd.f32 %v3349_v51, %v3181_v22  ;;  %v8901_v34 = vld [vmem:[%s10733_s16 + $0x1f0] sm:$0xf]  ;;  %v9320_v51 = vld [vmem:[%s10733_s16 + $0x1f4] sm:$0xf0]  ;;  %v9303_v22 = vld [vmem:[%s10733_s16 + $0x174] sm:$0xf] }
 0x45d   : > { %3726 = vmatmul.bf16.gmra.mxu3 %v11862_v2  ;;  %v11892_v16 = vor.u32 %v9320_v51, %v8901_v34 }
 0x45e   : > { %3259 = vmatmul.bf16.gmra.mxu0 %v11860_v50  ;;  %3388 = vmatmul.bf16.gmra.mxu1 %v11862_v2  ;;  %v11876_v44 = vpack.c.bf16 %v4818_v30, %v4814_v62  ;;  %v4565_v12 = vmul.f32 0.01, %v3350_v38  ;;  %v8839_v2 = vld [vmem:[%s10733_s16 + $0x178] sm:$0xf0]  ;;  %v3521_v30 = vadd.f32 %v11624_v15, %v16046_v60 }
 0x45f   : > { %v11880_v5 = vpop.f32.mrf.mxu2  ;;  %v3687_v7 = vpop.f32.mrf.mxu3  ;;  %16049 = vst [vmem:[#allocation137_spill] sm:$0xff] %v11892_v16 }
 0x460   : > { %16045 = vst [vmem:[#allocation134_spill] sm:$0xff] %v11876_v44  ;;  %v3688_v35 = vadd.f32 %v3687_v7, %v3519_v19  ;;  %v4821_v31 = vmax.f32 %v3350_v38, %v4565_v12  ;;  %v11894_v19 = vor.u32 %v9303_v22, %v8839_v2 }
 0x461   : > { %16047 = vst [vmem:[#allocation135_spill] sm:$0xff] %v11880_v5 }
 0x462   : > { %16050 = vst [vmem:[#allocation138_spill] sm:$0xff] %v11894_v19  ;;  %v4566_v47 = vmul.f32 0.01, %v3688_v35 }
 0x463   : > { %v11882_v39 = vpop.f32.mrf.mxu0  ;;  %v3351_v49 = vpop.f32.mrf.mxu1 }
 0x464   : > { %16048 = vst [vmem:[#allocation136_spill] sm:$0xff] %v11882_v39  ;;  %v3352_v33 = vadd.f32 %v3351_v49, %v3183_v63  ;;  %v16051_v39 = vld [vmem:[#allocation29_spill] sm:$0xff]  ;;  %v4822_v15 = vmax.f32 %v3688_v35, %v4566_v47 }
 0x465   : > { %v3186_v38 = vadd.f32 %v11630_v48, %v16051_v39  ;;  %v3524_v2 = vadd.f32 %v11646_v9, %v16051_v39 }
 0x466   : > { %v4569_v58 = vmul.f32 0.01, %v3352_v33 }
 0x467   : > { %v11890_v61 = vpop.f32.mrf.mxu2  ;;  %v3689_v50 = vpop.f32.mrf.mxu3 }
 0x468   : > { %v4825_v62 = vmax.f32 %v3352_v33, %v4569_v58  ;;  %v3690_v63 = vadd.f32 %v3689_v50, %v3521_v30  ;;  %v16052_v58 = vld [vmem:[#allocation33_spill] sm:$0xff]  ;;  %v9305_v30 = vld [vmem:[%s10733_s16 + $0x184] sm:$0xf] }
 0x469   : > { %v3188_v48 = vadd.f32 %v11648_v42, %v16052_v58  ;;  %v3526_v9 = vadd.f32 %v11662_v52, %v16052_v58  ;;  %v16055_v52 = vld [vmem:[#allocation34_spill] sm:$0xff] }
 0x46a   : > { %v5021_v7 = vpack.c.bf16 %v4825_v62, %v4821_v31  ;;  %v4570_v5 = vmul.f32 0.01, %v3690_v63 }
 0x46b   : > { %v11896_v49 = vpop.f32.mrf.mxu0  ;;  %v3354_v44 = vpop.f32.mrf.mxu1 }
 0x46c   : > { %v4826_v12 = vmax.f32 %v3690_v63, %v4570_v5  ;;  %3602 = vmatmul.bf16.gmra.mxu2 %v11892_v16  ;;  %v3355_v50 = vadd.f32 %v3354_v44, %v3186_v38  ;;  %v8847_v44 = vld [vmem:[%s10733_s16 + $0x188] sm:$0xf0] }
 0x46d   : > { %3731 = vmatmul.bf16.gmra.mxu3 %v11894_v19 }
 0x46e   : > { %3264 = vmatmul.bf16.gmra.mxu0 %v11892_v16  ;;  %3393 = vmatmul.bf16.gmra.mxu1 %v11894_v19  ;;  %v11906_v33 = vpack.c.bf16 %v4826_v12, %v4822_v15  ;;  %v4573_v22 = vmul.f32 0.01, %v3355_v50  ;;  %v16053_v15 = vld [vmem:[#allocation83_spill] sm:$0xff] }
 0x46f   : > { %v11910_v34 = vpop.f32.mrf.mxu2  ;;  %v3692_v51 = vpop.f32.mrf.mxu3  ;;  %v3191_v42 = vadd.f32 %v11668_v26, %v16053_v15 }
 0x470   : > { %v3693_v47 = vadd.f32 %v3692_v51, %v3524_v2  ;;  %v4829_v63 = vmax.f32 %v3355_v50, %v4573_v22  ;;  %v11922_v51 = vor.u32 %v9305_v30, %v8847_v44  ;;  %v3193_v30 = vadd.f32 %v11684_v21, %v11632_v32 }
 0x471   : > { %v3531_v21 = vadd.f32 %v11696_v43, %v11632_v32  ;;  %v16078_v32 = vld [vmem:[#allocation10_spill] sm:$0xff] }
 0x472   : > { %16054 = vst [vmem:[#allocation139_spill] sm:$0xff] %v11922_v51  ;;  %v4574_v16 = vmul.f32 0.01, %v3693_v47 }
 0x473   : > { %v11912_v35 = vpop.f32.mrf.mxu0  ;;  %v3356_v5 = vpop.f32.mrf.mxu1 }
 0x474   : > { %v3357_v31 = vadd.f32 %v3356_v5, %v3188_v48  ;;  %v4830_v22 = vmax.f32 %v3693_v47, %v4574_v16 }
 0x476   : > { %v4577_v62 = vmul.f32 0.01, %v3357_v31 }
 0x477   : > { %v11920_v19 = vpop.f32.mrf.mxu2  ;;  %v3694_v2 = vpop.f32.mrf.mxu3 }
 0x478   : > { %v4833_v38 = vmax.f32 %v3357_v31, %v4577_v62  ;;  %v3695_v39 = vadd.f32 %v3694_v2, %v3526_v9  ;;  %v3529_v31 = vadd.f32 %v11682_v10, %v16053_v15  ;;  %v9307_v10 = vld [vmem:[%s10733_s16 + $0x194] sm:$0xf]  ;;  %v8855_v9 = vld [vmem:[%s10733_s16 + $0x198] sm:$0xf0]  ;;  %v16056_v2 = vld [vmem:[#allocation90_spill] sm:$0xff] }
 0x479   : > { %v16084_v15 = vld [vmem:[#allocation63_spill] sm:$0xff] }
 0x47a   : > { %v5025_v12 = vpack.c.bf16 %v4833_v38, %v4829_v63  ;;  %v4578_v50 = vmul.f32 0.01, %v3695_v39 }
 0x47b   : > { %v11924_v48 = vpop.f32.mrf.mxu0  ;;  %v3359_v5 = vpop.f32.mrf.mxu1 }
 0x47c   : > { %v3360_v60 = vadd.f32 %v3359_v5, %v3191_v42  ;;  %5758 = vmatpush.bf16.msra.mxu1 %v5025_v12  ;;  %v4834_v26 = vmax.f32 %v3695_v39, %v4578_v50  ;;  %4123 = vmatmul.bf16.vlgmr.msrb.gmra.mxu2 %v16055_v52  ;;  %v3196_v5 = vadd.f32 %v11704_v59, %v16056_v2  ;;  %v16059_v59 = vld [vmem:[#allocation55_spill] sm:$0xff] }
 0x47d   : > { %3736 = vmatmul.bf16.gmra.mxu3 %v11922_v51 }
 0x47e   : > { %3398 = vmatmul.bf16.gmra.mxu1 %v11922_v51  ;;  %3785 = vmatmul.bf16.vlgmr.msrb.gmra.mxu0 %v16055_v52  ;;  %v11933_v62 = vpack.c.bf16 %v4834_v26, %v4830_v22  ;;  %v4581_v38 = vmul.f32 0.01, %v3360_v60  ;;  %v11953_v52 = vor.u32 %v9307_v10, %v8855_v9 }
 0x47f   : > { %6025 = vmatpush.bf16.msrb.mxu0 %v11678_v57  ;;  %v11937_v44 = vpop.f32.mrf.mxu2 }
 0x480   : > { %5759 = vmatpush.bf16.msra.mxu1 %v5021_v7  ;;  %v3697_v16 = vpop.f32.mrf.mxu3  ;;  %v4837_v42 = vmax.f32 %v3360_v60, %v4581_v38  ;;  %16057 = vst [vmem:[#allocation34_spill] sm:$0xff] %v11953_v52 }
 0x481   : > { %v3698_v39 = vadd.f32 %v3697_v16, %v3529_v31  ;;  %v16058_v31 = vld [vmem:[#allocation106_spill] sm:$0xff] }
 0x483   : > { %v11939_v47 = vpop.f32.mrf.mxu0  ;;  %v3361_v63 = vpop.f32.mrf.mxu1  ;;  %6026 = vmatpush.bf16.msrb.mxu0 %v11642_v6  ;;  %v4582_v22 = vmul.f32 0.01, %v3698_v39 }
 0x484   : > { %v3362_v57 = vadd.f32 %v3361_v63, %v3193_v30  ;;  %5760 = vmatpush.bf16.msra.mxu1 %v11864_v11  ;;  %v16060_v63 = vld [vmem:[#allocation103_spill] sm:$0xff] }
 0x485   : > { %v4838_v30 = vmax.f32 %v3698_v39, %v4582_v22  ;;  %v8863_v22 = vld [vmem:[%s10733_s16 + $0x1a8] sm:$0xf0] }
 0x486   : > { %v4585_v7 = vmul.f32 0.01, %v3362_v57 }
 0x487   : > { %6027 = vmatpush.bf16.msrb.mxu0 %v11610_v46  ;;  %v11951_v50 = vpop.f32.mrf.mxu2 }
 0x488   : > { %v4841_v12 = vmax.f32 %v3362_v57, %v4585_v7  ;;  %5761 = vmatpush.bf16.msra.mxu1 %v11832_v17  ;;  %v3699_v6 = vpop.f32.mrf.mxu3  ;;  %v16061_v57 = vld [vmem:[#allocation73_spill] sm:$0xff] }
 0x489   : > { %v3700_v60 = vadd.f32 %v3699_v6, %v3531_v21  ;;  %v3198_v7 = vadd.f32 %v11720_v14, %v16061_v57  ;;  %v3536_v14 = vadd.f32 %v11732_v29, %v16061_v57  ;;  %v16067_v29 = vld [vmem:[#allocation27_spill] sm:$0xff] }
 0x48a   : > { %v11955_v11 = vpack.c.bf16 %v4841_v12, %v4837_v42 }
 0x48b   : > { %v11957_v26 = vpop.f32.mrf.mxu0  ;;  %v3364_v46 = vpop.f32.mrf.mxu1  ;;  %6028 = vmatpush.bf16.msrb.mxu0 %v16058_v31  ;;  %v4586_v43 = vmul.f32 0.01, %v3700_v60  ;;  %v16063_v31 = vld [vmem:[#allocation97_spill] sm:$0xff] }
 0x48c   : > { %v3365_v17 = vadd.f32 %v3364_v46, %v3196_v5  ;;  %5762 = vmatpush.bf16.msra.mxu1 %v11802_v36  ;;  %4128 = vmatmul.bf16.gmra.mxu2 %v16059_v59  ;;  %v3534_v36 = vadd.f32 %v11718_v53, %v16056_v2  ;;  %v16062_v5 = vld [vmem:[#allocation100_spill] sm:$0xff]  ;;  %v9309_v53 = vld [vmem:[%s10733_s16 + $0x1a4] sm:$0xf] }
 0x48d   : > { %v4842_v16 = vmax.f32 %v3700_v60, %v4586_v43  ;;  %3741 = vmatmul.bf16.gmra.mxu3 %v11953_v52  ;;  %v16064_v43 = vld [vmem:[#allocation49_spill] sm:$0xff] }
 0x48e   : > { %3403 = vmatmul.bf16.gmra.mxu1 %v11953_v52  ;;  %3790 = vmatmul.bf16.gmra.mxu0 %v16059_v59  ;;  %v4589_v21 = vmul.f32 0.01, %v3365_v17  ;;  %v3201_v59 = vadd.f32 %v11740_v28, %v16064_v43 }
 0x48f   : > { %6029 = vmatpush.bf16.msrb.mxu0 %v16060_v63  ;;  %v11969_v38 = vpack.c.bf16 %v4842_v16, %v4838_v30  ;;  %v11973_v39 = vpop.f32.mrf.mxu2  ;;  %v11989_v63 = vor.u32 %v9309_v53, %v8863_v22  ;;  %v16068_v53 = vld [vmem:[#allocation52_spill] sm:$0xff] }
 0x490   : > { %5763 = vmatpush.bf16.msra.mxu1 %v11770_v41  ;;  %v3702_v10 = vpop.f32.mrf.mxu3  ;;  %v4845_v60 = vmax.f32 %v3365_v17, %v4589_v21  ;;  %v3203_v22 = vadd.f32 %v11754_v18, %v16068_v53 }
 0x491   : > { %v3703_v9 = vadd.f32 %v3702_v10, %v3534_v36  ;;  %16065 = vst [vmem:[#allocation106_spill] sm:$0xff] %v11989_v63 }
 0x493   : > { %v11975_v42 = vpop.f32.mrf.mxu0  ;;  %v3366_v12 = vpop.f32.mrf.mxu1  ;;  %6030 = vmatpush.bf16.msrb.mxu0 %v16062_v5  ;;  %v4590_v36 = vmul.f32 0.01, %v3703_v9 }
 0x494   : > { %v3367_v6 = vadd.f32 %v3366_v12, %v3198_v7  ;;  %5764 = vmatpush.bf16.msra.mxu1 %v11738_v54  ;;  %v16066_v12 = vld [vmem:[#allocation94_spill] sm:$0xff] }
 0x495   : > { %v4846_v28 = vmax.f32 %v3703_v9, %v4590_v36 }
 0x496   : > { %v4593_v41 = vmul.f32 0.01, %v3367_v6 }
 0x497   : > { %6031 = vmatpush.bf16.msrb.mxu0 %v16063_v31  ;;  %v11987_v30 = vpop.f32.mrf.mxu2 }
 0x498   : > { %v4849_v46 = vmax.f32 %v3367_v6, %v4593_v41  ;;  %5765 = vmatpush.bf16.msra.mxu1 %v11702_v56  ;;  %v3704_v16 = vpop.f32.mrf.mxu3  ;;  %v3539_v6 = vadd.f32 %v11752_v8, %v16064_v43  ;;  %v3541_v8 = vadd.f32 %v11764_v1, %v16068_v53  ;;  %v16071_v1 = vld [vmem:[#allocation7_spill] sm:$0xff] }
 0x499   : > { %v3705_v17 = vadd.f32 %v3704_v16, %v3536_v14 }
 0x49a   : > { %v11991_v54 = vpack.c.bf16 %v4849_v46, %v4845_v60 }
 0x49b   : > { %v11993_v7 = vpop.f32.mrf.mxu0  ;;  %v3369_v10 = vpop.f32.mrf.mxu1  ;;  %6032 = vmatpush.bf16.msrb.mxu0 %v16066_v12  ;;  %v4594_v21 = vmul.f32 0.01, %v3705_v17 }
 0x49c   : > { %v3370_v56 = vadd.f32 %v3369_v10, %v3201_v59  ;;  %4133 = vmatmul.bf16.gmra.mxu2 %v16067_v29  ;;  %v8871_v10 = vld [vmem:[%s10733_s16 + $0x1b8] sm:$0xf0] }
 0x49d   : > { %v4850_v5 = vmax.f32 %v3705_v17, %v4594_v21  ;;  %3746 = vmatmul.bf16.gmra.mxu3 %v11989_v63  ;;  %v9311_v17 = vld [vmem:[%s10733_s16 + $0x1b4] sm:$0xf] }
 0x49e   : > { %3408 = vmatmul.bf16.gmra.mxu1 %v11989_v63  ;;  %3795 = vmatmul.bf16.gmra.mxu0 %v16067_v29  ;;  %v4597_v59 = vmul.f32 0.01, %v3370_v56  ;;  %v16069_v29 = vld [vmem:[#allocation44_spill] sm:$0xff] }
 0x49f   : > { %v12002_v41 = vpack.c.bf16 %v4850_v5, %v4846_v28  ;;  %v12006_v60 = vpop.f32.mrf.mxu2  ;;  %v3206_v18 = vadd.f32 %v11772_v0, %v16069_v29 }
 0x4a0   : > { %v3707_v46 = vpop.f32.mrf.mxu3  ;;  %v4853_v12 = vmax.f32 %v3370_v56, %v4597_v59 }
 0x4a1   : > { %v3708_v31 = vadd.f32 %v3707_v46, %v3539_v6  ;;  %v12018_v6 = vor.u32 %v9311_v17, %v8871_v10  ;;  %v16072_v10 = vld [vmem:[#allocation69_spill] sm:$0xff] }
 0x4a3   : > { %v12008_v14 = vpop.f32.mrf.mxu0  ;;  %v3371_v9 = vpop.f32.mrf.mxu1  ;;  %16070 = vst [vmem:[#allocation55_spill] sm:$0xff] %v12018_v6  ;;  %v4598_v63 = vmul.f32 0.01, %v3708_v31 }
 0x4a4   : > { %v3372_v16 = vadd.f32 %v3371_v9, %v3203_v22 }
 0x4a5   : > { %v4854_v0 = vmax.f32 %v3708_v31, %v4598_v63 }
 0x4a6   : > { %v4601_v36 = vmul.f32 0.01, %v3372_v16 }
 0x4a7   : > { %v12016_v28 = vpop.f32.mrf.mxu2 }
 0x4a8   : > { %v4857_v21 = vmax.f32 %v3372_v16, %v4601_v36  ;;  %v3709_v5 = vpop.f32.mrf.mxu3  ;;  %v3544_v36 = vadd.f32 %v11784_v23, %v16069_v29  ;;  %v3546_v23 = vadd.f32 %v11796_v25, %v16072_v10  ;;  %v16075_v25 = vld [vmem:[#allocation18_spill] sm:$0xff] }
 0x4a9   : > { %v3710_v22 = vadd.f32 %v3709_v5, %v3541_v8 }
 0x4aa   : > { %v12020_v46 = vpack.c.bf16 %v4857_v21, %v4853_v12 }
 0x4ab   : > { %v12022_v9 = vpop.f32.mrf.mxu0  ;;  %v3374_v43 = vpop.f32.mrf.mxu1  ;;  %v4602_v59 = vmul.f32 0.01, %v3710_v22 }
 0x4ac   : > { %v3375_v56 = vadd.f32 %v3374_v43, %v3206_v18  ;;  %4138 = vmatmul.bf16.gmra.mxu2 %v16071_v1  ;;  %v3208_v43 = vadd.f32 %v11786_v24, %v16072_v10 }
 0x4ad   : > { %v4858_v16 = vmax.f32 %v3710_v22, %v4602_v59  ;;  %3751 = vmatmul.bf16.gmra.mxu3 %v12018_v6  ;;  %v9313_v59 = vld [vmem:[%s10733_s16 + $0x1c4] sm:$0xf] }
 0x4ae   : > { %3413 = vmatmul.bf16.gmra.mxu1 %v12018_v6  ;;  %3800 = vmatmul.bf16.gmra.mxu0 %v16071_v1  ;;  %v4605_v31 = vmul.f32 0.01, %v3375_v56  ;;  %v8879_v1 = vld [vmem:[%s10733_s16 + $0x1c8] sm:$0xf0] }
 0x4af   : > { %v12030_v17 = vpack.c.bf16 %v4858_v16, %v4854_v0  ;;  %v12034_v12 = vpop.f32.mrf.mxu2  ;;  %v16073_v0 = vld [vmem:[#allocation56_spill] sm:$0xff] }
 0x4b0   : > { %v3712_v21 = vpop.f32.mrf.mxu3  ;;  %v4861_v6 = vmax.f32 %v3375_v56, %v4605_v31  ;;  %v3211_v24 = vadd.f32 %v11804_v4, %v16073_v0 }
 0x4b1   : > { %v3713_v8 = vadd.f32 %v3712_v21, %v3544_v36  ;;  %v12046_v36 = vor.u32 %v9313_v59, %v8879_v1 }
 0x4b3   : > { %v12036_v18 = vpop.f32.mrf.mxu0  ;;  %v3376_v63 = vpop.f32.mrf.mxu1  ;;  %16074 = vst [vmem:[#allocation103_spill] sm:$0xff] %v12046_v36  ;;  %v4606_v57 = vmul.f32 0.01, %v3713_v8 }
 0x4b4   : > { %v3377_v5 = vadd.f32 %v3376_v63, %v3208_v43 }
 0x4b5   : > { %v4862_v4 = vmax.f32 %v3713_v8, %v4606_v57 }
 0x4b6   : > { %v4609_v22 = vmul.f32 0.01, %v3377_v5 }
 0x4b7   : > { %v12044_v16 = vpop.f32.mrf.mxu2 }
 0x4b8   : > { %v4865_v53 = vmax.f32 %v3377_v5, %v4609_v22  ;;  %v3714_v29 = vpop.f32.mrf.mxu3 }
 0x4b9   : > { %v3715_v43 = vadd.f32 %v3714_v29, %v3546_v23 }
 0x4ba   : > { %v12048_v21 = vpack.c.bf16 %v4865_v53, %v4861_v6  ;;  %v3549_v53 = vadd.f32 %v11816_v55, %v16073_v0  ;;  %v16076_v6 = vld [vmem:[#allocation37_spill] sm:$0xff] }
 0x4bb   : > { %v12050_v63 = vpop.f32.mrf.mxu0  ;;  %v3379_v52 = vpop.f32.mrf.mxu1  ;;  %v4610_v31 = vmul.f32 0.01, %v3715_v43  ;;  %v3551_v55 = vadd.f32 %v11826_v27, %v16076_v6 }
 0x4bc   : > { %v3380_v56 = vadd.f32 %v3379_v52, %v3211_v24  ;;  %4143 = vmatmul.bf16.gmra.mxu2 %v16075_v25  ;;  %v3213_v52 = vadd.f32 %v11818_v45, %v16076_v6 }
 0x4bd   : > { %v4866_v5 = vmax.f32 %v3715_v43, %v4610_v31  ;;  %3756 = vmatmul.bf16.gmra.mxu3 %v12046_v36  ;;  %v9315_v31 = vld [vmem:[%s10733_s16 + $0x1d4] sm:$0xf] }
 0x4be   : > { %3418 = vmatmul.bf16.gmra.mxu1 %v12046_v36  ;;  %3805 = vmatmul.bf16.gmra.mxu0 %v16075_v25  ;;  %v4613_v8 = vmul.f32 0.01, %v3380_v56  ;;  %v8887_v25 = vld [vmem:[%s10733_s16 + $0x1d8] sm:$0xf0] }
 0x4bf   : > { %v12058_v29 = vpack.c.bf16 %v4866_v5, %v4862_v4  ;;  %v12062_v22 = vpop.f32.mrf.mxu2  ;;  %v12072_v5 = vor.u32 %v9315_v31, %v8887_v25  ;;  %v16080_v31 = vld [vmem:[#allocation11_spill] sm:$0xff] }
 0x4c0   : > { %v3717_v59 = vpop.f32.mrf.mxu3  ;;  %v4869_v36 = vmax.f32 %v3380_v56, %v4613_v8  ;;  %v3216_v56 = vadd.f32 %v11834_v40, %v16078_v32  ;;  %v16079_v8 = vld [vmem:[#allocation20_spill] sm:$0xff]  ;;  %v3218_v40 = vadd.f32 %v11850_v37, %v16080_v31 }
 0x4c1   : > { %v3718_v1 = vadd.f32 %v3717_v59, %v3549_v53  ;;  %16077 = vst [vmem:[#allocation100_spill] sm:$0xff] %v12072_v5 }
 0x4c3   : > { %v12064_v23 = vpop.f32.mrf.mxu0  ;;  %v3381_v57 = vpop.f32.mrf.mxu1  ;;  %v4614_v53 = vmul.f32 0.01, %v3718_v1 }
 0x4c4   : > { %v3382_v24 = vadd.f32 %v3381_v57, %v3213_v52 }
 0x4c5   : > { %v4870_v27 = vmax.f32 %v3718_v1, %v4614_v53 }
 0x4c6   : > { %v4617_v43 = vmul.f32 0.01, %v3382_v24 }
 0x4c7   : > { %v12070_v4 = vpop.f32.mrf.mxu2 }
 0x4c8   : > { %v4873_v10 = vmax.f32 %v3382_v24, %v4617_v43  ;;  %v3719_v45 = vpop.f32.mrf.mxu3 }
 0x4c9   : > { %v3720_v59 = vadd.f32 %v3719_v45, %v3551_v55 }
 0x4ca   : > { %v12074_v0 = vpack.c.bf16 %v4873_v10, %v4869_v36  ;;  %v3554_v36 = vadd.f32 %v11848_v13, %v16078_v32  ;;  %v3556_v13 = vadd.f32 %v11858_v3, %v16080_v31 }
 0x4cb   : > { %v12076_v2 = vpop.f32.mrf.mxu0  ;;  %v3384_v52 = vpop.f32.mrf.mxu1  ;;  %v4618_v57 = vmul.f32 0.01, %v3720_v59 }
 0x4cc   : > { %4148 = vmatmul.bf16.gmra.mxu2 %v16079_v8  ;;  %v3385_v10 = vadd.f32 %v3384_v52, %v3216_v56  ;;  %v8895_v52 = vld [vmem:[%s10733_s16 + $0x1e8] sm:$0xf0] }
 0x4cd   : > { %v4874_v24 = vmax.f32 %v3720_v59, %v4618_v57  ;;  %3761 = vmatmul.bf16.gmra.mxu3 %v12072_v5 }
 0x4ce   : > { %3423 = vmatmul.bf16.gmra.mxu1 %v12072_v5  ;;  %3810 = vmatmul.bf16.gmra.mxu0 %v16079_v8  ;;  %v4621_v59 = vmul.f32 0.01, %v3385_v10  ;;  %v9317_v8 = vld [vmem:[%s10733_s16 + $0x1e4] sm:$0xf] }
 0x4cf   : > { %v12086_v43 = vpack.c.bf16 %v4874_v24, %v4870_v27  ;;  %v12090_v25 = vpop.f32.mrf.mxu2  ;;  %v12100_v24 = vor.u32 %v9317_v8, %v8895_v52  ;;  %v16086_v8 = vld [vmem:[#allocation13_spill] sm:$0xff]  ;;  %v16087_v52 = vld [vmem:[#allocation136_spill] sm:$0xff] }
 0x4d0   : > { %v3722_v55 = vpop.f32.mrf.mxu3  ;;  %v4877_v56 = vmax.f32 %v3385_v10, %v4621_v59  ;;  %v3221_v10 = vadd.f32 %v11866_v20, %v16084_v15 }
 0x4d1   : > { %v3723_v1 = vadd.f32 %v3722_v55, %v3554_v36  ;;  %16082 = vst [vmem:[#allocation94_spill] sm:$0xff] %v12100_v24 }
 0x4d3   : > { %v12092_v45 = vpop.f32.mrf.mxu0  ;;  %v3386_v53 = vpop.f32.mrf.mxu1  ;;  %v4622_v36 = vmul.f32 0.01, %v3723_v1 }
 0x4d4   : > { %v3387_v57 = vadd.f32 %v3386_v53, %v3218_v40 }
 0x4d5   : > { %v4878_v3 = vmax.f32 %v3723_v1, %v4622_v36 }
 0x4d6   : > { %v4625_v5 = vmul.f32 0.01, %v3387_v57 }
 0x4d7   : > { %v12098_v27 = vpop.f32.mrf.mxu2 }
 0x4d8   : > { %v4881_v6 = vmax.f32 %v3387_v57, %v4625_v5  ;;  %16081 = vst [vmem:[#allocation97_spill] sm:$0xff] %v12098_v27  ;;  %v3724_v37 = vpop.f32.mrf.mxu3  ;;  %v16085_v5 = vld [vmem:[#allocation62_spill] sm:$0xff] }
 0x4d9   : > { %v3725_v55 = vadd.f32 %v3724_v37, %v3556_v13 }
 0x4da   : > { %v12102_v32 = vpack.c.bf16 %v4881_v6, %v4877_v56  ;;  %v3223_v56 = vadd.f32 %v16087_v52, %v16086_v8 }
 0x4db   : > { %v12104_v51 = vpop.f32.mrf.mxu0  ;;  %v3389_v40 = vpop.f32.mrf.mxu1  ;;  %v4626_v53 = vmul.f32 0.01, %v3725_v55 }
 0x4dc   : > { %16083 = vst [vmem:[#allocation27_spill] sm:$0xff] %v12104_v51  ;;  %4153 = vmatmul.bf16.gmra.mxu2 %v16085_v5  ;;  %v3390_v6 = vadd.f32 %v3389_v40, %v3221_v10  ;;  %v8903_v40 = vld [vmem:[%s10733_s16 + $0x1f8] sm:$0xf0] }
 0x4dd   : > { %v4882_v59 = vmax.f32 %v3725_v55, %v4626_v53  ;;  %3766 = vmatmul.bf16.gmra.mxu3 %v12100_v24  ;;  %v16090_v55 = vld [vmem:[#allocation135_spill] sm:$0xff] }
 0x4de   : > { %3428 = vmatmul.bf16.gmra.mxu1 %v12100_v24  ;;  %3815 = vmatmul.bf16.gmra.mxu0 %v16085_v5  ;;  %v4629_v1 = vmul.f32 0.01, %v3390_v6  ;;  %v3559_v53 = vadd.f32 %v16090_v55, %v16084_v15  ;;  %v9319_v5 = vld [vmem:[%s10733_s16 + $0x1f4] sm:$0xf] }
 0x4df   : > { %v12112_v57 = vpack.c.bf16 %v4882_v59, %v4878_v3  ;;  %v12116_v13 = vpop.f32.mrf.mxu2  ;;  %v3561_v59 = vadd.f32 %v11890_v61, %v16086_v8  ;;  %v12128_v51 = vor.u32 %v9319_v5, %v8903_v40 }
 0x4e0   : > { %16088 = vst [vmem:[#allocation7_spill] sm:$0xff] %v12116_v13  ;;  %v3727_v20 = vpop.f32.mrf.mxu3  ;;  %v4885_v10 = vmax.f32 %v3390_v6, %v4629_v1 }
 0x4e1   : > { %v3728_v58 = vadd.f32 %v3727_v20, %v3559_v53  ;;  %16091 = vst [vmem:[#allocation20_spill] sm:$0xff] %v12128_v51  ;;  %v16092_v20 = vld [vmem:[#allocation46_spill] sm:$0xff] }
 0x4e2   : > { %v3226_v53 = vadd.f32 %v11896_v49, %v16092_v20 }
 0x4e3   : > { %v12118_v37 = vpop.f32.mrf.mxu0  ;;  %v3391_v31 = vpop.f32.mrf.mxu1  ;;  %v4630_v27 = vmul.f32 0.01, %v3728_v58 }
 0x4e4   : > { %16089 = vst [vmem:[#allocation18_spill] sm:$0xff] %v12118_v37  ;;  %v3392_v36 = vadd.f32 %v3391_v31, %v3223_v56 }
 0x4e5   : > { %v4886_v61 = vmax.f32 %v3728_v58, %v4630_v27  ;;  %v3564_v58 = vadd.f32 %v11910_v34, %v16092_v20 }
 0x4e6   : > { %v4633_v24 = vmul.f32 0.01, %v3392_v36 }
 0x4e7   : > { %v12126_v52 = vpop.f32.mrf.mxu2 }
 0x4e8   : > { %v4889_v3 = vmax.f32 %v3392_v36, %v4633_v24  ;;  %v3729_v13 = vpop.f32.mrf.mxu3  ;;  %v16093_v24 = vld [vmem:[#allocation58_spill] sm:$0xff] }
 0x4e9   : > { %v3730_v31 = vadd.f32 %v3729_v13, %v3561_v59  ;;  %v16094_v13 = vld [vmem:[#allocation25_spill] sm:$0xff] }
 0x4ea   : > { %v5053_v37 = vpack.c.bf16 %v4889_v3, %v4885_v10  ;;  %v3228_v5 = vadd.f32 %v11912_v35, %v16094_v13 }
 0x4eb   : > { %v12130_v56 = vpop.f32.mrf.mxu0  ;;  %v3394_v55 = vpop.f32.mrf.mxu1  ;;  %v4634_v15 = vmul.f32 0.01, %v3730_v31 }
 0x4ec   : > { %4158 = vmatmul.bf16.gmra.mxu2 %v16093_v24  ;;  %v3395_v1 = vadd.f32 %v3394_v55, %v3226_v53  ;;  %v3566_v53 = vadd.f32 %v11920_v19, %v16094_v13 }
 0x4ed   : > { %v4890_v6 = vmax.f32 %v3730_v31, %v4634_v15  ;;  %3771 = vmatmul.bf16.gmra.mxu3 %v12128_v51 }
 0x4ee   : > { %3433 = vmatmul.bf16.gmra.mxu1 %v12128_v51  ;;  %3820 = vmatmul.bf16.gmra.mxu0 %v16093_v24  ;;  %v4637_v59 = vmul.f32 0.01, %v3395_v1  ;;  %v16097_v24 = vld [vmem:[#allocation113_spill] sm:$0xff] }
 0x4ef   : > { %v12138_v36 = vpack.c.bf16 %v4890_v6, %v4886_v61  ;;  %v12142_v40 = vpop.f32.mrf.mxu2  ;;  %v3231_v35 = vadd.f32 %v11924_v48, %v16097_v24  ;;  %v3569_v48 = vadd.f32 %v11937_v44, %v16097_v24 }
 0x4f0   : > { %16095 = vst [vmem:[#allocation62_spill] sm:$0xff] %v12142_v40  ;;  %v3732_v10 = vpop.f32.mrf.mxu3  ;;  %v4893_v31 = vmax.f32 %v3395_v1, %v4637_v59  ;;  %v16098_v1 = vld [vmem:[#allocation61_spill] sm:$0xff] }
 0x4f1   : > { %v3733_v27 = vadd.f32 %v3732_v10, %v3564_v58 }
 0x4f3   : > { %v12144_v49 = vpop.f32.mrf.mxu0  ;;  %v3396_v3 = vpop.f32.mrf.mxu1  ;;  %v4638_v40 = vmul.f32 0.01, %v3733_v27 }
 0x4f4   : > { %16096 = vst [vmem:[#allocation136_spill] sm:$0xff] %v12144_v49  ;;  %v3397_v8 = vadd.f32 %v3396_v3, %v3228_v5 }
 0x4f5   : > { %v4894_v19 = vmax.f32 %v3733_v27, %v4638_v40 }
 0x4f6   : > { %v4641_v15 = vmul.f32 0.01, %v3397_v8 }
 0x4f7   : > { %v12152_v6 = vpop.f32.mrf.mxu2 }
 0x4f8   : > { %v4897_v55 = vmax.f32 %v3397_v8, %v4641_v15  ;;  %v3734_v51 = vpop.f32.mrf.mxu3  ;;  %v16099_v8 = vld [vmem:[#allocation12_spill] sm:$0xff] }
 0x4f9   : > { %v3735_v49 = vadd.f32 %v3734_v51, %v3566_v53  ;;  %v12161_v51 = vpop.permute.xlu1 %2708 }
 0x4fa   : > { %v5057_v61 = vpack.c.bf16 %v4897_v55, %v4893_v31  ;;  %16100 = vst [vmem:[#allocation135_spill] sm:$0xff] %v12161_v51  ;;  %v3233_v15 = vadd.f32 %v11939_v47, %v12161_v51  ;;  %v3571_v47 = vadd.f32 %v11951_v50, %v12161_v51  ;;  %v16104_v50 = vld [vmem:[#allocation28_spill] sm:$0xff] }
 0x4fb   : > { %v3399_v5 = vpop.f32.mrf.mxu1  ;;  %v12154_v3 = vpop.f32.mrf.mxu0  ;;  %v4642_v10 = vmul.f32 0.01, %v3735_v49 }
 0x4fc   : > { %v3400_v34 = vadd.f32 %v3399_v5, %v3231_v35  ;;  %5847 = vmatpush.bf16.msra.mxu2 %v5057_v61  ;;  %v16101_v61 = vld [vmem:[#allocation134_spill] sm:$0xff]  ;;  %v16102_v5 = vld [vmem:[#allocation76_spill] sm:$0xff] }
 0x4fd   : > { %v4898_v59 = vmax.f32 %v3735_v49, %v4642_v10  ;;  %4163 = vmatmul.bf16.gmra.mxu2 %v16098_v1  ;;  %4292 = vmatmul.bf16.vlgmr.msrb.gmra.mxu3 %v16099_v8  ;;  %v3236_v10 = vadd.f32 %v11957_v26, %v16102_v5 }
 0x4fe   : > { %3825 = vmatmul.bf16.gmra.mxu0 %v16098_v1  ;;  %3954 = vmatmul.bf16.vlgmr.msrb.gmra.mxu1 %v16099_v8  ;;  %v4645_v53 = vmul.f32 0.01, %v3400_v34 }
 0x4ff   : > { %6114 = vmatpush.bf16.msrb.mxu1 %v11933_v62  ;;  %v5058_v58 = vpack.c.bf16 %v4898_v59, %v4894_v19  ;;  %v12167_v55 = vpop.f32.mrf.mxu2 }
 0x500   : > { %5848 = vmatpush.bf16.msra.mxu2 %v5053_v37  ;;  %v3737_v31 = vpop.f32.mrf.mxu3  ;;  %v4901_v35 = vmax.f32 %v3400_v34, %v4645_v53  ;;  %v16106_v53 = vld [vmem:[#allocation128_spill] sm:$0xff] }
 0x501   : > { %v3738_v40 = vadd.f32 %v3737_v31, %v3569_v48  ;;  %v16103_v48 = vld [vmem:[#allocation131_spill] sm:$0xff]  ;;  %v16105_v31 = vld [vmem:[#allocation21_spill] sm:$0xff] }
 0x503   : > { %v3401_v49 = vpop.f32.mrf.mxu1  ;;  %v12169_v27 = vpop.f32.mrf.mxu0  ;;  %6115 = vmatpush.bf16.msrb.mxu1 %v11906_v33  ;;  %v4646_v19 = vmul.f32 0.01, %v3738_v40 }
 0x504   : > { %v3402_v62 = vadd.f32 %v3401_v49, %v3233_v15  ;;  %5849 = vmatpush.bf16.msra.mxu2 %v12102_v32 }
 0x505   : > { %v4902_v26 = vmax.f32 %v3738_v40, %v4646_v19  ;;  %v16108_v19 = vld [vmem:[#allocation125_spill] sm:$0xff] }
 0x506   : > { %v4649_v37 = vmul.f32 0.01, %v3402_v62 }
 0x507   : > { %6116 = vmatpush.bf16.msrb.mxu1 %v16101_v61  ;;  %v12179_v8 = vpop.f32.mrf.mxu2 }
 0x508   : > { %v4905_v44 = vmax.f32 %v3402_v62, %v4649_v37  ;;  %5850 = vmatpush.bf16.msra.mxu2 %v12074_v0  ;;  %v3739_v1 = vpop.f32.mrf.mxu3  ;;  %v3574_v62 = vadd.f32 %v11973_v39, %v16102_v5 }
 0x509   : > { %v3740_v32 = vadd.f32 %v3739_v1, %v3571_v47 }
 0x50a   : > { %v12181_v33 = vpack.c.bf16 %v4905_v44, %v4901_v35 }
 0x50b   : > { %v3404_v59 = vpop.f32.mrf.mxu1  ;;  %v12183_v34 = vpop.f32.mrf.mxu0  ;;  %6117 = vmatpush.bf16.msrb.mxu1 %v16103_v48  ;;  %v4650_v0 = vmul.f32 0.01, %v3740_v32  ;;  %v16109_v48 = vld [vmem:[#allocation122_spill] sm:$0xff] }
 0x50c   : > { %v3405_v15 = vadd.f32 %v3404_v59, %v3236_v10  ;;  %5851 = vmatpush.bf16.msra.mxu2 %v12048_v21  ;;  %v16107_v21 = vld [vmem:[#allocation80_spill] sm:$0xff] }
 0x50d   : > { %v4906_v49 = vmax.f32 %v3740_v32, %v4650_v0  ;;  %4168 = vmatmul.bf16.gmra.mxu2 %v16104_v50  ;;  %4297 = vmatmul.bf16.gmra.mxu3 %v16105_v31  ;;  %v3238_v35 = vadd.f32 %v11975_v42, %v16107_v21  ;;  %v3576_v42 = vadd.f32 %v11987_v30, %v16107_v21  ;;  %v16110_v0 = vld [vmem:[#allocation67_spill] sm:$0xff]  ;;  %v16112_v30 = vld [vmem:[#allocation36_spill] sm:$0xff] }
 0x50e   : > { %3830 = vmatmul.bf16.gmra.mxu0 %v16104_v50  ;;  %3959 = vmatmul.bf16.gmra.mxu1 %v16105_v31  ;;  %v4653_v1 = vmul.f32 0.01, %v3405_v15  ;;  %v3241_v50 = vadd.f32 %v11993_v7, %v16110_v0 }
 0x50f   : > { %6118 = vmatpush.bf16.msrb.mxu1 %v16106_v53  ;;  %v12195_v37 = vpack.c.bf16 %v4906_v49, %v4902_v26  ;;  %v12199_v61 = vpop.f32.mrf.mxu2 }
 0x510   : > { %5852 = vmatpush.bf16.msra.mxu2 %v12020_v46  ;;  %v3742_v44 = vpop.f32.mrf.mxu3  ;;  %v4909_v39 = vmax.f32 %v3405_v15, %v4653_v1  ;;  %v3579_v1 = vadd.f32 %v12006_v60, %v16110_v0  ;;  %v16129_v0 = vld [vmem:[#allocation27_spill] sm:$0xff] }
 0x511   : > { %v3743_v40 = vadd.f32 %v3742_v44, %v3574_v62 }
 0x513   : > { %v3406_v47 = vpop.f32.mrf.mxu1  ;;  %v12201_v10 = vpop.f32.mrf.mxu0  ;;  %6119 = vmatpush.bf16.msrb.mxu1 %v16108_v19 }
 0x514   : > { %v3407_v32 = vadd.f32 %v3406_v47, %v3238_v35  ;;  %5853 = vmatpush.bf16.msra.mxu2 %v11991_v54  ;;  %v4654_v54 = vmul.f32 0.01, %v3743_v40  ;;  %v16111_v35 = vld [vmem:[#allocation119_spill] sm:$0xff] }
 0x516   : > { %v4657_v46 = vmul.f32 0.01, %v3407_v32  ;;  %v4910_v7 = vmax.f32 %v3743_v40, %v4654_v54 }
 0x517   : > { %6120 = vmatpush.bf16.msrb.mxu1 %v16109_v48  ;;  %v12211_v26 = vpop.f32.mrf.mxu2 }
 0x518   : > { %v4913_v59 = vmax.f32 %v3407_v32, %v4657_v46  ;;  %5854 = vmatpush.bf16.msra.mxu2 %v11955_v11  ;;  %v3744_v31 = vpop.f32.mrf.mxu3  ;;  %v16114_v32 = vld [vmem:[#allocation87_spill] sm:$0xff] }
 0x519   : > { %v3745_v53 = vadd.f32 %v3744_v31, %v3576_v42 }
 0x51a   : > { %v12213_v49 = vpack.c.bf16 %v4913_v59, %v4909_v39 }
 0x51b   : > { %v3409_v15 = vpop.f32.mrf.mxu1  ;;  %v12215_v62 = vpop.f32.mrf.mxu0  ;;  %6121 = vmatpush.bf16.msrb.mxu1 %v16111_v35  ;;  %v4658_v44 = vmul.f32 0.01, %v3745_v53 }
 0x51c   : > { %6203 = vmatpush.bf16.msrb.mxu2 %v5058_v58  ;;  %v3410_v11 = vadd.f32 %v3409_v15, %v3241_v50  ;;  %v16113_v58 = vld [vmem:[#allocation17_spill] sm:$0xff] }
 0x51d   : > { %v4914_v47 = vmax.f32 %v3745_v53, %v4658_v44  ;;  %4173 = vmatmul.bf16.gmra.mxu2 %v16112_v30  ;;  %4302 = vmatmul.bf16.gmra.mxu3 %v16113_v58 }
 0x51e   : > { %3835 = vmatmul.bf16.gmra.mxu0 %v16112_v30  ;;  %3964 = vmatmul.bf16.gmra.mxu1 %v16113_v58  ;;  %v4661_v42 = vmul.f32 0.01, %v3410_v11 }
 0x51f   : > { %v12226_v19 = vpack.c.bf16 %v4914_v47, %v4910_v7  ;;  %v12230_v39 = vpop.f32.mrf.mxu2 }
 0x520   : > { %6204 = vmatpush.bf16.msrb.mxu2 %v12138_v36  ;;  %v3243_v36 = vadd.f32 %v12008_v14, %v16114_v32  ;;  %v3747_v46 = vpop.f32.mrf.mxu3  ;;  %v4917_v60 = vmax.f32 %v3410_v11, %v4661_v42  ;;  %v16115_v14 = vld [vmem:[#allocation74_spill] sm:$0xff] }
 0x521   : > { %v3748_v59 = vadd.f32 %v3747_v46, %v3579_v1  ;;  %v3246_v53 = vadd.f32 %v12022_v9, %v16115_v14 }
 0x523   : > { %v3411_v40 = vpop.f32.mrf.mxu1  ;;  %v12232_v48 = vpop.f32.mrf.mxu0  ;;  %v4662_v30 = vmul.f32 0.01, %v3748_v59 }
 0x524   : > { %6205 = vmatpush.bf16.msrb.mxu2 %v12112_v57  ;;  %v3412_v50 = vadd.f32 %v3411_v40, %v3243_v36  ;;  %v3581_v57 = vadd.f32 %v12016_v28, %v16114_v32  ;;  %v16116_v28 = vld [vmem:[#allocation41_spill] sm:$0xff]  ;;  %v3584_v36 = vadd.f32 %v12034_v12, %v16115_v14  ;;  %v16118_v40 = vld [vmem:[#allocation35_spill] sm:$0xff]  ;;  %v16128_v32 = vld [vmem:[#allocation32_spill] sm:$0xff] }
 0x525   : > { %v4918_v1 = vmax.f32 %v3748_v59, %v4662_v30  ;;  %v16119_v30 = vld [vmem:[#allocation45_spill] sm:$0xff] }
 0x526   : > { %v4665_v31 = vmul.f32 0.01, %v3412_v50 }
 0x527   : > { %v12240_v35 = vpop.f32.mrf.mxu2 }
 0x528   : > { %6206 = vmatpush.bf16.msrb.mxu2 %v12086_v43  ;;  %v4921_v54 = vmax.f32 %v3412_v50, %v4665_v31  ;;  %v3749_v15 = vpop.f32.mrf.mxu3 }
 0x529   : > { %v3750_v58 = vadd.f32 %v3749_v15, %v3581_v57 }
 0x52a   : > { %v12242_v44 = vpack.c.bf16 %v4921_v54, %v4917_v60 }
 0x52b   : > { %v3414_v7 = vpop.f32.mrf.mxu1  ;;  %v12244_v43 = vpop.f32.mrf.mxu0  ;;  %v4666_v47 = vmul.f32 0.01, %v3750_v58 }
 0x52c   : > { %6207 = vmatpush.bf16.msrb.mxu2 %v12058_v29  ;;  %v3415_v11 = vadd.f32 %v3414_v7, %v3246_v53  ;;  %v16117_v29 = vld [vmem:[#allocation38_spill] sm:$0xff] }
 0x52d   : > { %v4922_v9 = vmax.f32 %v3750_v58, %v4666_v47  ;;  %4178 = vmatmul.bf16.gmra.mxu2 %v16116_v28  ;;  %4307 = vmatmul.bf16.gmra.mxu3 %v16117_v29 }
 0x52e   : > { %3840 = vmatmul.bf16.gmra.mxu0 %v16116_v28  ;;  %3969 = vmatmul.bf16.gmra.mxu1 %v16117_v29  ;;  %v4669_v54 = vmul.f32 0.01, %v3415_v11 }
 0x52f   : > { %v12254_v46 = vpack.c.bf16 %v4922_v9, %v4918_v1  ;;  %v12258_v50 = vpop.f32.mrf.mxu2 }
 0x530   : > { %6208 = vmatpush.bf16.msrb.mxu2 %v12030_v17  ;;  %v3248_v17 = vadd.f32 %v12036_v18, %v16118_v40  ;;  %v3752_v42 = vpop.f32.mrf.mxu3  ;;  %v4925_v12 = vmax.f32 %v3415_v11, %v4669_v54  ;;  %v3251_v18 = vadd.f32 %v12050_v63, %v16119_v30  ;;  %v16120_v11 = vld [vmem:[#allocation50_spill] sm:$0xff]  ;;  %v3589_v63 = vadd.f32 %v12062_v22, %v16119_v30  ;;  %v16122_v54 = vld [vmem:[#allocation19_spill] sm:$0xff]  ;;  %v16123_v30 = vld [vmem:[#allocation57_spill] sm:$0xff] }
 0x531   : > { %v3753_v31 = vadd.f32 %v3752_v42, %v3584_v36  ;;  %v3591_v22 = vadd.f32 %v12070_v4, %v16122_v54 }
 0x533   : > { %v3416_v59 = vpop.f32.mrf.mxu1  ;;  %v12260_v60 = vpop.f32.mrf.mxu0  ;;  %v4670_v28 = vmul.f32 0.01, %v3753_v31 }
 0x534   : > { %6209 = vmatpush.bf16.msrb.mxu2 %v12002_v41  ;;  %v3417_v57 = vadd.f32 %v3416_v59, %v3248_v17  ;;  %v3586_v41 = vadd.f32 %v12044_v16, %v16118_v40  ;;  %v16121_v17 = vld [vmem:[#allocation54_spill] sm:$0xff] }
 0x535   : > { %v4926_v16 = vmax.f32 %v3753_v31, %v4670_v28 }
 0x536   : > { %v4673_v53 = vmul.f32 0.01, %v3417_v57 }
 0x537   : > { %v12267_v7 = vpop.f32.mrf.mxu2 }
 0x538   : > { %6210 = vmatpush.bf16.msrb.mxu2 %v11969_v38  ;;  %v4929_v15 = vmax.f32 %v3417_v57, %v4673_v53  ;;  %v3754_v58 = vpop.f32.mrf.mxu3  ;;  %v3253_v57 = vadd.f32 %v12064_v23, %v16122_v54 }
 0x539   : > { %v3755_v29 = vadd.f32 %v3754_v58, %v3586_v41 }
 0x53a   : > { %v12269_v47 = vpack.c.bf16 %v4929_v15, %v4925_v12 }
 0x53b   : > { %v3419_v1 = vpop.f32.mrf.mxu1  ;;  %v12271_v9 = vpop.f32.mrf.mxu0  ;;  %v4674_v36 = vmul.f32 0.01, %v3755_v29 }
 0x53c   : > { %v3420_v38 = vadd.f32 %v3419_v1, %v3251_v18 }
 0x53d   : > { %v4930_v42 = vmax.f32 %v3755_v29, %v4674_v36  ;;  %4183 = vmatmul.bf16.gmra.mxu2 %v16120_v11  ;;  %4312 = vmatmul.bf16.gmra.mxu3 %v16121_v17 }
 0x53e   : > { %3845 = vmatmul.bf16.gmra.mxu0 %v16120_v11  ;;  %3974 = vmatmul.bf16.gmra.mxu1 %v16121_v17  ;;  %v4677_v31 = vmul.f32 0.01, %v3420_v38 }
 0x53f   : > { %v12279_v59 = vpack.c.bf16 %v4930_v42, %v4926_v16  ;;  %v12283_v12 = vpop.f32.mrf.mxu2 }
 0x540   : > { %v3757_v53 = vpop.f32.mrf.mxu3  ;;  %v4933_v29 = vmax.f32 %v3420_v38, %v4677_v31  ;;  %v16125_v38 = vld [vmem:[#allocation65_spill] sm:$0xff] }
 0x541   : > { %v3758_v15 = vadd.f32 %v3757_v53, %v3589_v63 }
 0x543   : > { %v3421_v41 = vpop.f32.mrf.mxu1  ;;  %v12285_v18 = vpop.f32.mrf.mxu0  ;;  %v4678_v23 = vmul.f32 0.01, %v3758_v15 }
 0x544   : > { %v3422_v58 = vadd.f32 %v3421_v41, %v3253_v57  ;;  %v3256_v57 = vadd.f32 %v12076_v2, %v16123_v30  ;;  %v16124_v41 = vld [vmem:[#allocation64_spill] sm:$0xff] }
 0x545   : > { %v4934_v31 = vmax.f32 %v3758_v15, %v4678_v23 }
 0x546   : > { %v4681_v28 = vmul.f32 0.01, %v3422_v58 }
 0x547   : > { %v12289_v11 = vpop.f32.mrf.mxu2 }
 0x548   : > { %v4937_v1 = vmax.f32 %v3422_v58, %v4681_v28  ;;  %v3759_v36 = vpop.f32.mrf.mxu3  ;;  %v3594_v28 = vadd.f32 %v12090_v25, %v16123_v30 }
 0x549   : > { %v3760_v16 = vadd.f32 %v3759_v36, %v3591_v22 }
 0x54a   : > { %v12291_v17 = vpack.c.bf16 %v4937_v1, %v4933_v29  ;;  %v16126_v1 = vld [vmem:[#allocation26_spill] sm:$0xff] }
 0x54b   : > { %v3424_v42 = vpop.f32.mrf.mxu1  ;;  %v12293_v63 = vpop.f32.mrf.mxu0  ;;  %v4682_v53 = vmul.f32 0.01, %v3760_v16  ;;  %v3258_v22 = vadd.f32 %v12092_v45, %v16126_v1 }
 0x54c   : > { %v3425_v58 = vadd.f32 %v3424_v42, %v3256_v57  ;;  %v16127_v57 = vld [vmem:[#allocation97_spill] sm:$0xff] }
 0x54d   : > { %v4938_v4 = vmax.f32 %v3760_v16, %v4682_v53  ;;  %4188 = vmatmul.bf16.gmra.mxu2 %v16124_v41  ;;  %4317 = vmatmul.bf16.gmra.mxu3 %v16125_v38  ;;  %v3596_v25 = vadd.f32 %v16127_v57, %v16126_v1  ;;  %v16133_v57 = vld [vmem:[#allocation18_spill] sm:$0xff] }
 0x54e   : > { %3850 = vmatmul.bf16.gmra.mxu0 %v16124_v41  ;;  %3979 = vmatmul.bf16.gmra.mxu1 %v16125_v38  ;;  %v4685_v23 = vmul.f32 0.01, %v3425_v58 }
 0x54f   : > { %v12303_v29 = vpack.c.bf16 %v4938_v4, %v4934_v31  ;;  %v12307_v36 = vpop.f32.mrf.mxu2 }
 0x550   : > { %v3762_v2 = vpop.f32.mrf.mxu3  ;;  %v4941_v41 = vmax.f32 %v3425_v58, %v4685_v23  ;;  %v16131_v58 = vld [vmem:[#allocation72_spill] sm:$0xff] }
 0x551   : > { %v3763_v54 = vadd.f32 %v3762_v2, %v3594_v28 }
 0x553   : > { %v3426_v40 = vpop.f32.mrf.mxu1  ;;  %v12309_v15 = vpop.f32.mrf.mxu0  ;;  %v4686_v45 = vmul.f32 0.01, %v3763_v54 }
 0x554   : > { %v3427_v16 = vadd.f32 %v3426_v40, %v3258_v22  ;;  %v3261_v40 = vadd.f32 %v16129_v0, %v16128_v32  ;;  %v16130_v22 = vld [vmem:[#allocation71_spill] sm:$0xff] }
 0x555   : > { %v4942_v23 = vmax.f32 %v3763_v54, %v4686_v45 }
 0x556   : > { %v4689_v53 = vmul.f32 0.01, %v3427_v16 }
 0x557   : > { %v12313_v31 = vpop.f32.mrf.mxu2 }
 0x558   : > { %v4945_v42 = vmax.f32 %v3427_v16, %v4689_v53  ;;  %v3764_v38 = vpop.f32.mrf.mxu3 }
 0x559   : > { %v3765_v30 = vadd.f32 %v3764_v38, %v3596_v25 }
 0x55a   : > { %v12315_v4 = vpack.c.bf16 %v4945_v42, %v4941_v41  ;;  %v16132_v42 = vld [vmem:[#allocation59_spill] sm:$0xff] }
 0x55b   : > { %v3429_v14 = vpop.f32.mrf.mxu1  ;;  %v12317_v28 = vpop.f32.mrf.mxu0  ;;  %v4690_v2 = vmul.f32 0.01, %v3765_v30  ;;  %v3263_v25 = vadd.f32 %v16133_v57, %v16132_v42 }
 0x55c   : > { %v3430_v53 = vadd.f32 %v3429_v14, %v3261_v40  ;;  %v3601_v40 = vadd.f32 %v12126_v52, %v16132_v42 }
 0x55d   : > { %v4946_v16 = vmax.f32 %v3765_v30, %v4690_v2  ;;  %4193 = vmatmul.bf16.gmra.mxu2 %v16130_v22  ;;  %4322 = vmatmul.bf16.gmra.mxu3 %v16131_v58  ;;  %v16134_v30 = vld [vmem:[#allocation7_spill] sm:$0xff] }
 0x55e   : > { %3855 = vmatmul.bf16.gmra.mxu0 %v16130_v22  ;;  %3984 = vmatmul.bf16.gmra.mxu1 %v16131_v58  ;;  %v4693_v5 = vmul.f32 0.01, %v3430_v53  ;;  %v3599_v54 = vadd.f32 %v16134_v30, %v16128_v32  ;;  %v16138_v32 = vld [vmem:[#allocation78_spill] sm:$0xff] }
 0x55f   : > { %v12325_v41 = vpack.c.bf16 %v4946_v16, %v4942_v23  ;;  %v12329_v1 = vpop.f32.mrf.mxu2 }
 0x560   : > { %v3767_v38 = vpop.f32.mrf.mxu3  ;;  %v4949_v22 = vmax.f32 %v3430_v53, %v4693_v5  ;;  %v16139_v5 = vld [vmem:[#allocation79_spill] sm:$0xff] }
 0x561   : > { %v3768_v2 = vadd.f32 %v3767_v38, %v3599_v54  ;;  %v16140_v54 = vld [vmem:[#allocation31_spill] sm:$0xff] }
 0x563   : > { %v3431_v0 = vpop.f32.mrf.mxu1  ;;  %v12331_v21 = vpop.f32.mrf.mxu0  ;;  %v4694_v57 = vmul.f32 0.01, %v3768_v2 }
 0x564   : > { %v3432_v51 = vadd.f32 %v3431_v0, %v3263_v25  ;;  %v16137_v0 = vld [vmem:[#allocation30_spill] sm:$0xff] }
 0x565   : > { %v3266_v30 = vadd.f32 %v12130_v56, %v16137_v0 }
 0x566   : > { %v4697_v45 = vmul.f32 0.01, %v3432_v51 }
 0x567   : > { %v12337_v23 = vpop.f32.mrf.mxu2 }
 0x568   : > { %v4953_v14 = vmax.f32 %v3432_v51, %v4697_v45  ;;  %v3769_v58 = vpop.f32.mrf.mxu3  ;;  %16135 = vst [vmem:[#allocation58_spill] sm:$0xff] %v12337_v23  ;;  %v4950_v51 = vmax.f32 %v3768_v2, %v4694_v57  ;;  %v16141_v45 = vld [vmem:[#allocation136_spill] sm:$0xff] }
 0x569   : > { %v3770_v24 = vadd.f32 %v3769_v58, %v3601_v40 }
 0x56a   : > { %v5085_v16 = vpack.c.bf16 %v4953_v14, %v4949_v22  ;;  %v3268_v22 = vadd.f32 %v16141_v45, %v16140_v54 }
 0x56b   : > { %v3434_v13 = vpop.f32.mrf.mxu1  ;;  %v12339_v20 = vpop.f32.mrf.mxu0  ;;  %v4698_v25 = vmul.f32 0.01, %v3770_v24 }
 0x56c   : > { %16136 = vst [vmem:[#allocation61_spill] sm:$0xff] %v12339_v20  ;;  %v3435_v52 = vadd.f32 %v3434_v13, %v3266_v30  ;;  %v3606_v30 = vadd.f32 %v12152_v6, %v16140_v54 }
 0x56d   : > { %v4954_v53 = vmax.f32 %v3770_v24, %v4698_v25  ;;  %4198 = vmatmul.bf16.gmra.mxu2 %v16138_v32  ;;  %4327 = vmatmul.bf16.gmra.mxu3 %v16139_v5  ;;  %v16144_v24 = vld [vmem:[#allocation62_spill] sm:$0xff] }
 0x56e   : > { %3860 = vmatmul.bf16.gmra.mxu0 %v16138_v32  ;;  %3989 = vmatmul.bf16.gmra.mxu1 %v16139_v5  ;;  %v4701_v42 = vmul.f32 0.01, %v3435_v52  ;;  %v3604_v2 = vadd.f32 %v16144_v24, %v16137_v0  ;;  %v16145_v5 = vld [vmem:[#allocation84_spill] sm:$0xff] }
 0x56f   : > { %v12347_v38 = vpack.c.bf16 %v4954_v53, %v4950_v51  ;;  %v12351_v40 = vpop.f32.mrf.mxu2  ;;  %v3787_v51 = vadd.f32 %v12154_v3, %v16145_v5  ;;  %v4125_v3 = vadd.f32 %v12167_v55, %v16145_v5 }
 0x570   : > { %v3772_v14 = vpop.f32.mrf.mxu3  ;;  %16142 = vst [vmem:[#allocation12_spill] sm:$0xff] %v12351_v40  ;;  %v4957_v25 = vmax.f32 %v3435_v52, %v4701_v42  ;;  %v16146_v42 = vld [vmem:[#allocation85_spill] sm:$0xff] }
 0x571   : > { %v3773_v57 = vadd.f32 %v3772_v14, %v3604_v2 }
 0x573   : > { %v3436_v56 = vpop.f32.mrf.mxu1  ;;  %v12353_v58 = vpop.f32.mrf.mxu0 }
 0x574   : > { %16143 = vst [vmem:[#allocation134_spill] sm:$0xff] %v12353_v58  ;;  %v3437_v20 = vadd.f32 %v3436_v56, %v3268_v22  ;;  %v4702_v58 = vmul.f32 0.01, %v3773_v57 }
 0x576   : > { %v4705_v32 = vmul.f32 0.01, %v3437_v20  ;;  %v4958_v6 = vmax.f32 %v3773_v57, %v4702_v58 }
 0x577   : > { %v12361_v40 = vpop.f32.mrf.mxu2 }
 0x578   : > { %v4961_v13 = vmax.f32 %v3437_v20, %v4705_v32  ;;  %v3774_v45 = vpop.f32.mrf.mxu3  ;;  %v16147_v20 = vld [vmem:[#allocation86_spill] sm:$0xff]  ;;  %v16148_v32 = vld [vmem:[#allocation88_spill] sm:$0xff] }
 0x579   : > { %v3775_v23 = vadd.f32 %v3774_v45, %v3606_v30  ;;  %v4127_v55 = vadd.f32 %v12179_v8, %v16148_v32  ;;  %v16151_v8 = vld [vmem:[#allocation92_spill] sm:$0xff] }
 0x57a   : > { %v5089_v53 = vpack.c.bf16 %v4961_v13, %v4957_v25  ;;  %v3789_v25 = vadd.f32 %v12169_v27, %v16148_v32  ;;  %v16149_v27 = vld [vmem:[#allocation75_spill] sm:$0xff] }
 0x57b   : > { %v12363_v22 = vpop.f32.mrf.mxu0  ;;  %v3955_v56 = vpop.f32.mrf.mxu1  ;;  %v4706_v14 = vmul.f32 0.01, %v3775_v23  ;;  %v3792_v5 = vadd.f32 %v12183_v34, %v16149_v27 }
 0x57c   : > { %v3956_v24 = vadd.f32 %v3955_v56, %v3787_v51  ;;  %5936 = vmatpush.bf16.msra.mxu3 %v5089_v53 }
 0x57d   : > { %v4962_v52 = vmax.f32 %v3775_v23, %v4706_v14  ;;  %4203 = vmatmul.bf16.gmra.mxu2 %v16146_v42  ;;  %4332 = vmatmul.bf16.gmra.mxu3 %v16147_v20 }
 0x57e   : > { %3865 = vmatmul.bf16.gmra.mxu0 %v16146_v42  ;;  %3994 = vmatmul.bf16.gmra.mxu1 %v16147_v20  ;;  %v4455_v23 = vmul.f32 0.01, %v3956_v24 }
 0x57f   : > { %v5090_v2 = vpack.c.bf16 %v4962_v52, %v4958_v6 }
 0x580   : > { %5937 = vmatpush.bf16.msra.mxu3 %v5085_v16  ;;  %v12373_v13 = vpop.f32.mrf.mxu2  ;;  %v4293_v30 = vpop.f32.mrf.mxu3  ;;  %v4711_v16 = vmax.f32 %v3956_v24, %v4455_v23  ;;  %v16153_v23 = vld [vmem:[#allocation93_spill] sm:$0xff] }
 0x581   : > { %v4294_v51 = vadd.f32 %v4293_v30, %v4125_v3  ;;  %v4130_v30 = vadd.f32 %v12199_v61, %v16149_v27  ;;  %v4132_v61 = vadd.f32 %v12211_v26, %v16153_v23  ;;  %v16156_v26 = vld [vmem:[#allocation96_spill] sm:$0xff] }
 0x583   : > { %v12375_v53 = vpop.f32.mrf.mxu0  ;;  %v3957_v58 = vpop.f32.mrf.mxu1  ;;  %v4456_v6 = vmul.f32 0.01, %v4294_v51 }
 0x584   : > { %v3958_v57 = vadd.f32 %v3957_v58, %v3789_v25  ;;  %5938 = vmatpush.bf16.msra.mxu3 %v12315_v4  ;;  %v16150_v25 = vld [vmem:[#allocation91_spill] sm:$0xff] }
 0x585   : > { %v4712_v32 = vmax.f32 %v4294_v51, %v4456_v6 }
 0x586   : > { %v4459_v45 = vmul.f32 0.01, %v3958_v57 }
 0x588   : > { %v4715_v56 = vmax.f32 %v3958_v57, %v4459_v45  ;;  %5939 = vmatpush.bf16.msra.mxu3 %v12291_v17  ;;  %v12383_v14 = vpop.f32.mrf.mxu2  ;;  %v4295_v42 = vpop.f32.mrf.mxu3 }
 0x589   : > { %v4296_v52 = vadd.f32 %v4295_v42, %v4127_v55 }
 0x58a   : > { %v12385_v20 = vpack.c.bf16 %v4715_v56, %v4711_v16 }
 0x58b   : > { %v12387_v3 = vpop.f32.mrf.mxu0  ;;  %v3960_v4 = vpop.f32.mrf.mxu1  ;;  %v4460_v17 = vmul.f32 0.01, %v4296_v52 }
 0x58c   : > { %v3961_v24 = vadd.f32 %v3960_v4, %v3792_v5  ;;  %5940 = vmatpush.bf16.msra.mxu3 %v12269_v47  ;;  %v3794_v47 = vadd.f32 %v12201_v10, %v16153_v23  ;;  %v16154_v10 = vld [vmem:[#allocation82_spill] sm:$0xff] }
 0x58d   : > { %v4716_v34 = vmax.f32 %v4296_v52, %v4460_v17  ;;  %4208 = vmatmul.bf16.gmra.mxu2 %v16150_v25  ;;  %4337 = vmatmul.bf16.gmra.mxu3 %v16151_v8  ;;  %v3797_v27 = vadd.f32 %v12215_v62, %v16154_v10 }
 0x58e   : > { %3870 = vmatmul.bf16.gmra.mxu0 %v16150_v25  ;;  %3999 = vmatmul.bf16.gmra.mxu1 %v16151_v8  ;;  %v4463_v55 = vmul.f32 0.01, %v3961_v24 }
 0x58f   : > { %v12397_v58 = vpack.c.bf16 %v4716_v34, %v4712_v32 }
 0x590   : > { %5941 = vmatpush.bf16.msra.mxu3 %v12242_v44  ;;  %v12401_v57 = vpop.f32.mrf.mxu2  ;;  %v4298_v45 = vpop.f32.mrf.mxu3  ;;  %v4719_v42 = vmax.f32 %v3961_v24, %v4463_v55 }
 0x591   : > { %16152 = vst [vmem:[#allocation131_spill] sm:$0xff] %v12397_v58  ;;  %v4299_v16 = vadd.f32 %v4298_v45, %v4130_v30  ;;  %v4135_v30 = vadd.f32 %v12230_v39, %v16154_v10 }
 0x593   : > { %v12403_v51 = vpop.f32.mrf.mxu0  ;;  %v3962_v56 = vpop.f32.mrf.mxu1  ;;  %v4464_v25 = vmul.f32 0.01, %v4299_v16 }
 0x594   : > { %v3963_v5 = vadd.f32 %v3962_v56, %v3794_v47  ;;  %5942 = vmatpush.bf16.msra.mxu3 %v12213_v49  ;;  %v16158_v47 = vld [vmem:[#allocation39_spill] sm:$0xff] }
 0x596   : > { %v4467_v44 = vmul.f32 0.01, %v3963_v5 }
 0x598   : > { %v4723_v6 = vmax.f32 %v3963_v5, %v4467_v44  ;;  %5943 = vmatpush.bf16.msra.mxu3 %v12181_v33  ;;  %v12411_v52 = vpop.f32.mrf.mxu2  ;;  %v4300_v4 = vpop.f32.mrf.mxu3  ;;  %v16155_v33 = vld [vmem:[#allocation95_spill] sm:$0xff] }
 0x599   : > { %v4301_v8 = vadd.f32 %v4300_v4, %v4132_v61 }
 0x59a   : > { %v12413_v17 = vpack.c.bf16 %v4723_v6, %v4719_v42 }
 0x59b   : > { %v12415_v49 = vpop.f32.mrf.mxu0  ;;  %v3965_v24 = vpop.f32.mrf.mxu1  ;;  %v4468_v34 = vmul.f32 0.01, %v4301_v8 }
 0x59c   : > { %6292 = vmatpush.bf16.msrb.mxu3 %v5090_v2  ;;  %v3966_v32 = vadd.f32 %v3965_v24, %v3797_v27  ;;  %v4720_v2 = vmax.f32 %v4299_v16, %v4464_v25 }
 0x59d   : > { %v4724_v62 = vmax.f32 %v4301_v8, %v4468_v34  ;;  %4213 = vmatmul.bf16.gmra.mxu2 %v16155_v33  ;;  %4342 = vmatmul.bf16.gmra.mxu3 %v16156_v26 }
 0x59e   : > { %3875 = vmatmul.bf16.gmra.mxu0 %v16155_v33  ;;  %4004 = vmatmul.bf16.gmra.mxu1 %v16156_v26  ;;  %v4471_v44 = vmul.f32 0.01, %v3966_v32 }
 0x59f   : > { %v12425_v23 = vpack.c.bf16 %v4724_v62, %v4720_v2 }
 0x5a0   : > { %6293 = vmatpush.bf16.msrb.mxu3 %v12347_v38  ;;  %v3799_v38 = vadd.f32 %v12232_v48, %v16158_v47  ;;  %v12429_v45 = vpop.f32.mrf.mxu2  ;;  %v4303_v56 = vpop.f32.mrf.mxu3  ;;  %v4727_v39 = vmax.f32 %v3966_v32, %v4471_v44  ;;  %v16159_v48 = vld [vmem:[#allocation42_spill] sm:$0xff] }
 0x5a1   : > { %16157 = vst [vmem:[#allocation28_spill] sm:$0xff] %v12425_v23  ;;  %v4304_v55 = vadd.f32 %v4303_v56, %v4135_v30  ;;  %v3802_v10 = vadd.f32 %v12244_v43, %v16159_v48  ;;  %v4140_v2 = vadd.f32 %v12258_v50, %v16159_v48  ;;  %v16163_v30 = vld [vmem:[#allocation51_spill] sm:$0xff] }
 0x5a3   : > { %v12431_v16 = vpop.f32.mrf.mxu0  ;;  %v3967_v5 = vpop.f32.mrf.mxu1  ;;  %v4472_v8 = vmul.f32 0.01, %v4304_v55 }
 0x5a4   : > { %6294 = vmatpush.bf16.msrb.mxu3 %v12325_v41  ;;  %v3968_v42 = vadd.f32 %v3967_v5, %v3799_v38  ;;  %v4137_v41 = vadd.f32 %v12240_v35, %v16158_v47  ;;  %v16160_v35 = vld [vmem:[#allocation98_spill] sm:$0xff] }
 0x5a5   : > { %v4728_v26 = vmax.f32 %v4304_v55, %v4472_v8 }
 0x5a6   : > { %v4475_v6 = vmul.f32 0.01, %v3968_v42 }
 0x5a8   : > { %6295 = vmatpush.bf16.msrb.mxu3 %v12303_v29  ;;  %v4731_v61 = vmax.f32 %v3968_v42, %v4475_v6  ;;  %v12439_v27 = vpop.f32.mrf.mxu2  ;;  %v4305_v4 = vpop.f32.mrf.mxu3 }
 0x5a9   : > { %v4306_v24 = vadd.f32 %v4305_v4, %v4137_v41 }
 0x5aa   : > { %v12441_v25 = vpack.c.bf16 %v4731_v61, %v4727_v39  ;;  %v16164_v61 = vld [vmem:[#allocation23_spill] sm:$0xff] }
 0x5ab   : > { %v12443_v34 = vpop.f32.mrf.mxu0  ;;  %v3970_v29 = vpop.f32.mrf.mxu1  ;;  %v4476_v33 = vmul.f32 0.01, %v4306_v24 }
 0x5ac   : > { %6296 = vmatpush.bf16.msrb.mxu3 %v12279_v59  ;;  %v3971_v32 = vadd.f32 %v3970_v29, %v3802_v10  ;;  %v16161_v59 = vld [vmem:[#allocation99_spill] sm:$0xff] }
 0x5ad   : > { %v4732_v43 = vmax.f32 %v4306_v24, %v4476_v33  ;;  %4218 = vmatmul.bf16.gmra.mxu2 %v16160_v35  ;;  %4347 = vmatmul.bf16.gmra.mxu3 %v16161_v59 }
 0x5ae   : > { %3880 = vmatmul.bf16.gmra.mxu0 %v16160_v35  ;;  %4009 = vmatmul.bf16.gmra.mxu1 %v16161_v59  ;;  %v4479_v44 = vmul.f32 0.01, %v3971_v32  ;;  %v16166_v35 = vld [vmem:[#allocation102_spill] sm:$0xff] }
 0x5af   : > { %v12453_v62 = vpack.c.bf16 %v4732_v43, %v4728_v26  ;;  %v16168_v43 = vld [vmem:[#allocation43_spill] sm:$0xff] }
 0x5b0   : > { %6297 = vmatpush.bf16.msrb.mxu3 %v12254_v46  ;;  %v3804_v46 = vadd.f32 %v12260_v60, %v16163_v30  ;;  %v12457_v47 = vpop.f32.mrf.mxu2  ;;  %v4308_v38 = vpop.f32.mrf.mxu3  ;;  %v4735_v50 = vmax.f32 %v3971_v32, %v4479_v44  ;;  %v3807_v60 = vadd.f32 %v12271_v9, %v16164_v61  ;;  %v16165_v32 = vld [vmem:[#allocation101_spill] sm:$0xff]  ;;  %v4145_v9 = vadd.f32 %v12283_v12, %v16164_v61 }
 0x5b1   : > { %16162 = vst [vmem:[#allocation21_spill] sm:$0xff] %v12453_v62  ;;  %v4309_v56 = vadd.f32 %v4308_v38, %v4140_v2  ;;  %v3809_v2 = vadd.f32 %v12285_v18, %v16168_v43  ;;  %v4147_v12 = vadd.f32 %v12289_v11, %v16168_v43  ;;  %v16173_v43 = vld [vmem:[#allocation16_spill] sm:$0xff] }
 0x5b3   : > { %v12459_v55 = vpop.f32.mrf.mxu0  ;;  %v3972_v5 = vpop.f32.mrf.mxu1  ;;  %v4480_v4 = vmul.f32 0.01, %v4309_v56 }
 0x5b4   : > { %6298 = vmatpush.bf16.msrb.mxu3 %v12226_v19  ;;  %v3973_v42 = vadd.f32 %v3972_v5, %v3804_v46  ;;  %v4142_v19 = vadd.f32 %v12267_v7, %v16163_v30 }
 0x5b5   : > { %v4736_v7 = vmax.f32 %v4309_v56, %v4480_v4 }
 0x5b6   : > { %v4483_v6 = vmul.f32 0.01, %v3973_v42 }
 0x5b8   : > { %6299 = vmatpush.bf16.msrb.mxu3 %v12195_v37  ;;  %v4739_v39 = vmax.f32 %v3973_v42, %v4483_v6  ;;  %v12466_v41 = vpop.f32.mrf.mxu2  ;;  %v4310_v48 = vpop.f32.mrf.mxu3 }
 0x5b9   : > { %v4311_v8 = vadd.f32 %v4310_v48, %v4142_v19  ;;  %v16169_v19 = vld [vmem:[#allocation40_spill] sm:$0xff] }
 0x5ba   : > { %v12468_v10 = vpack.c.bf16 %v4739_v39, %v4735_v50  ;;  %v3812_v61 = vadd.f32 %v12293_v63, %v16169_v19  ;;  %v4150_v63 = vadd.f32 %v12307_v36, %v16169_v19  ;;  %v4152_v36 = vadd.f32 %v12313_v31, %v16173_v43  ;;  %v16174_v19 = vld [vmem:[#allocation60_spill] sm:$0xff] }
 0x5bb   : > { %v12470_v24 = vpop.f32.mrf.mxu0  ;;  %v3975_v29 = vpop.f32.mrf.mxu1  ;;  %v4484_v33 = vmul.f32 0.01, %v4311_v8 }
 0x5bc   : > { %v3976_v37 = vadd.f32 %v3975_v29, %v3807_v60 }
 0x5bd   : > { %v4740_v59 = vmax.f32 %v4311_v8, %v4484_v33  ;;  %4223 = vmatmul.bf16.gmra.mxu2 %v16165_v32  ;;  %4352 = vmatmul.bf16.gmra.mxu3 %v16166_v35 }
 0x5be   : > { %3885 = vmatmul.bf16.gmra.mxu0 %v16165_v32  ;;  %4014 = vmatmul.bf16.gmra.mxu1 %v16166_v35  ;;  %v4487_v44 = vmul.f32 0.01, %v3976_v37 }
 0x5bf   : > { %v12478_v26 = vpack.c.bf16 %v4740_v59, %v4736_v7  ;;  %v16171_v7 = vld [vmem:[#allocation105_spill] sm:$0xff] }
 0x5c0   : > { %v12482_v30 = vpop.f32.mrf.mxu2  ;;  %v4313_v46 = vpop.f32.mrf.mxu3  ;;  %v4743_v50 = vmax.f32 %v3976_v37, %v4487_v44  ;;  %v16170_v37 = vld [vmem:[#allocation104_spill] sm:$0xff] }
 0x5c1   : > { %16167 = vst [vmem:[#allocation128_spill] sm:$0xff] %v12478_v26  ;;  %v4314_v38 = vadd.f32 %v4313_v46, %v4145_v9 }
 0x5c3   : > { %v12484_v5 = vpop.f32.mrf.mxu0  ;;  %v3977_v56 = vpop.f32.mrf.mxu1  ;;  %v4488_v4 = vmul.f32 0.01, %v4314_v38 }
 0x5c4   : > { %v3978_v42 = vadd.f32 %v3977_v56, %v3809_v2  ;;  %v3814_v2 = vadd.f32 %v12309_v15, %v16173_v43 }
 0x5c5   : > { %v4744_v11 = vmax.f32 %v4314_v38, %v4488_v4 }
 0x5c6   : > { %v4491_v6 = vmul.f32 0.01, %v3978_v42 }
 0x5c8   : > { %v4747_v39 = vmax.f32 %v3978_v42, %v4491_v6  ;;  %v12490_v60 = vpop.f32.mrf.mxu2  ;;  %v4315_v18 = vpop.f32.mrf.mxu3 }
 0x5c9   : > { %v4316_v8 = vadd.f32 %v4315_v18, %v4147_v12  ;;  %v3817_v18 = vadd.f32 %v12317_v28, %v16174_v19  ;;  %v4155_v28 = vadd.f32 %v12329_v1, %v16174_v19  ;;  %v16180_v19 = vld [vmem:[#allocation22_spill] sm:$0xff] }
 0x5ca   : > { %v12492_v48 = vpack.c.bf16 %v4747_v39, %v4743_v50 }
 0x5cb   : > { %v12494_v29 = vpop.f32.mrf.mxu0  ;;  %v3980_v33 = vpop.f32.mrf.mxu1  ;;  %v4492_v35 = vmul.f32 0.01, %v4316_v8 }
 0x5cc   : > { %v3981_v32 = vadd.f32 %v3980_v33, %v3812_v61 }
 0x5cd   : > { %v4748_v59 = vmax.f32 %v4316_v8, %v4492_v35  ;;  %4228 = vmatmul.bf16.gmra.mxu2 %v16170_v37  ;;  %4357 = vmatmul.bf16.gmra.mxu3 %v16171_v7 }
 0x5ce   : > { %3890 = vmatmul.bf16.gmra.mxu0 %v16170_v37  ;;  %4019 = vmatmul.bf16.gmra.mxu1 %v16171_v7  ;;  %v4495_v6 = vmul.f32 0.01, %v3981_v32 }
 0x5cf   : > { %v12502_v9 = vpack.c.bf16 %v4748_v59, %v4744_v11 }
 0x5d0   : > { %v12506_v46 = vpop.f32.mrf.mxu2  ;;  %v4318_v56 = vpop.f32.mrf.mxu3  ;;  %v4751_v12 = vmax.f32 %v3981_v32, %v4495_v6  ;;  %v16175_v32 = vld [vmem:[#allocation107_spill] sm:$0xff] }
 0x5d1   : > { %16172 = vst [vmem:[#allocation125_spill] sm:$0xff] %v12502_v9  ;;  %v4319_v44 = vadd.f32 %v4318_v56, %v4150_v63  ;;  %v16176_v63 = vld [vmem:[#allocation108_spill] sm:$0xff]  ;;  %v16178_v56 = vld [vmem:[#allocation47_spill] sm:$0xff] }
 0x5d3   : > { %v12508_v42 = vpop.f32.mrf.mxu0  ;;  %v3982_v38 = vpop.f32.mrf.mxu1  ;;  %v4496_v33 = vmul.f32 0.01, %v4319_v44 }
 0x5d4   : > { %v3983_v50 = vadd.f32 %v3982_v38, %v3814_v2  ;;  %v3819_v38 = vadd.f32 %v12331_v21, %v16178_v56 }
 0x5d5   : > { %v4752_v31 = vmax.f32 %v4319_v44, %v4496_v33 }
 0x5d6   : > { %v4499_v39 = vmul.f32 0.01, %v3983_v50 }
 0x5d8   : > { %v4755_v61 = vmax.f32 %v3983_v50, %v4499_v39  ;;  %v12514_v4 = vpop.f32.mrf.mxu2  ;;  %v4320_v15 = vpop.f32.mrf.mxu3 }
 0x5d9   : > { %v4321_v35 = vadd.f32 %v4320_v15, %v4152_v36 }
 0x5da   : > { %v12516_v8 = vpack.c.bf16 %v4755_v61, %v4751_v12 }
 0x5db   : > { %v12518_v37 = vpop.f32.mrf.mxu0  ;;  %v3985_v7 = vpop.f32.mrf.mxu1  ;;  %v4500_v59 = vmul.f32 0.01, %v4321_v35 }
 0x5dc   : > { %v3986_v11 = vadd.f32 %v3985_v7, %v3817_v18  ;;  %v16181_v7 = vld [vmem:[#allocation61_spill] sm:$0xff] }
 0x5dd   : > { %v4756_v43 = vmax.f32 %v4321_v35, %v4500_v59  ;;  %4233 = vmatmul.bf16.gmra.mxu2 %v16175_v32  ;;  %4362 = vmatmul.bf16.gmra.mxu3 %v16176_v63  ;;  %v16179_v35 = vld [vmem:[#allocation58_spill] sm:$0xff]  ;;  %v3822_v59 = vadd.f32 %v16181_v7, %v16180_v19 }
 0x5de   : > { %3895 = vmatmul.bf16.gmra.mxu0 %v16175_v32  ;;  %4024 = vmatmul.bf16.gmra.mxu1 %v16176_v63  ;;  %v4503_v61 = vmul.f32 0.01, %v3986_v11  ;;  %v4157_v1 = vadd.f32 %v16179_v35, %v16178_v56  ;;  %v16186_v35 = vld [vmem:[#allocation9_spill] sm:$0xff] }
 0x5df   : > { %v12526_v2 = vpack.c.bf16 %v4756_v43, %v4752_v31 }
 0x5e0   : > { %v12530_v6 = vpop.f32.mrf.mxu2  ;;  %v4323_v50 = vpop.f32.mrf.mxu3  ;;  %v4759_v15 = vmax.f32 %v3986_v11, %v4503_v61  ;;  %v16182_v11 = vld [vmem:[#allocation110_spill] sm:$0xff]  ;;  %v16183_v61 = vld [vmem:[#allocation111_spill] sm:$0xff] }
 0x5e1   : > { %16177 = vst [vmem:[#allocation122_spill] sm:$0xff] %v12526_v2  ;;  %v4324_v39 = vadd.f32 %v4323_v50, %v4155_v28 }
 0x5e3   : > { %v12532_v12 = vpop.f32.mrf.mxu0  ;;  %v3987_v44 = vpop.f32.mrf.mxu1  ;;  %v4504_v31 = vmul.f32 0.01, %v4324_v39 }
 0x5e4   : > { %v3988_v36 = vadd.f32 %v3987_v44, %v3819_v38 }
 0x5e5   : > { %v4760_v56 = vmax.f32 %v4324_v39, %v4504_v31 }
 0x5e6   : > { %v4507_v18 = vmul.f32 0.01, %v3988_v36 }
 0x5e8   : > { %v4763_v33 = vmax.f32 %v3988_v36, %v4507_v18  ;;  %v12538_v32 = vpop.f32.mrf.mxu2  ;;  %v4325_v21 = vpop.f32.mrf.mxu3  ;;  %v16184_v18 = vld [vmem:[#allocation12_spill] sm:$0xff] }
 0x5e9   : > { %v4326_v43 = vadd.f32 %v4325_v21, %v4157_v1  ;;  %v16187_v1 = vld [vmem:[#allocation134_spill] sm:$0xff] }
 0x5ea   : > { %v12540_v63 = vpack.c.bf16 %v4763_v33, %v4759_v15  ;;  %v4160_v15 = vadd.f32 %v16184_v18, %v16180_v19  ;;  %v3824_v7 = vadd.f32 %v16187_v1, %v16186_v35  ;;  %v4162_v19 = vadd.f32 %v12361_v40, %v16186_v35 }
 0x5eb   : > { %v12542_v28 = vpop.f32.mrf.mxu0  ;;  %v3990_v50 = vpop.f32.mrf.mxu1  ;;  %v4508_v44 = vmul.f32 0.01, %v4326_v43 }
 0x5ec   : > { %v3991_v38 = vadd.f32 %v3990_v50, %v3822_v59 }
 0x5ed   : > { %v4764_v36 = vmax.f32 %v4326_v43, %v4508_v44  ;;  %4238 = vmatmul.bf16.gmra.mxu2 %v16182_v11  ;;  %4367 = vmatmul.bf16.gmra.mxu3 %v16183_v61 }
 0x5ee   : > { %3900 = vmatmul.bf16.gmra.mxu0 %v16182_v11  ;;  %4029 = vmatmul.bf16.gmra.mxu1 %v16183_v61  ;;  %v4511_v31 = vmul.f32 0.01, %v3991_v38 }
 0x5ef   : > { %v12550_v33 = vpack.c.bf16 %v4764_v36, %v4760_v56  ;;  %v16188_v56 = vld [vmem:[#allocation114_spill] sm:$0xff] }
 0x5f0   : > { %v12554_v59 = vpop.f32.mrf.mxu2  ;;  %v4328_v21 = vpop.f32.mrf.mxu3  ;;  %v4767_v11 = vmax.f32 %v3991_v38, %v4511_v31  ;;  %v3827_v36 = vadd.f32 %v12363_v22, %v16188_v56  ;;  %v16189_v38 = vld [vmem:[#allocation115_spill] sm:$0xff]  ;;  %v16190_v31 = vld [vmem:[#allocation116_spill] sm:$0xff]  ;;  %v4165_v22 = vadd.f32 %v12373_v13, %v16188_v56  ;;  %v16193_v56 = vld [vmem:[#allocation109_spill] sm:$0xff] }
 0x5f1   : > { %16185 = vst [vmem:[#allocation119_spill] sm:$0xff] %v12550_v33  ;;  %v4329_v50 = vadd.f32 %v4328_v21, %v4160_v15 }
 0x5f3   : > { %v12556_v58 = vpop.f32.mrf.mxu0  ;;  %v3992_v39 = vpop.f32.mrf.mxu1  ;;  %v4512_v15 = vmul.f32 0.01, %v4329_v50 }
 0x5f4   : > { %v3993_v43 = vadd.f32 %v3992_v39, %v3824_v7 }
 0x5f5   : > { %v4768_v40 = vmax.f32 %v4329_v50, %v4512_v15 }
 0x5f6   : > { %v4515_v44 = vmul.f32 0.01, %v3993_v43 }
 0x5f8   : > { %v4771_v61 = vmax.f32 %v3993_v43, %v4515_v44  ;;  %v12564_v1 = vpop.f32.mrf.mxu2  ;;  %v4330_v23 = vpop.f32.mrf.mxu3 }
 0x5f9   : > { %v4331_v21 = vadd.f32 %v4330_v23, %v4162_v19  ;;  %v16192_v23 = vld [vmem:[#allocation117_spill] sm:$0xff] }
 0x5fa   : > { %v12562_v18 = vpack.c.bf16 %v4771_v61, %v4767_v11  ;;  %v3829_v44 = vadd.f32 %v12375_v53, %v16192_v23  ;;  %v4167_v13 = vadd.f32 %v12383_v14, %v16192_v23 }
 0x5fb   : > { %v12566_v62 = vpop.f32.mrf.mxu0  ;;  %v3995_v26 = vpop.f32.mrf.mxu1  ;;  %v4516_v39 = vmul.f32 0.01, %v4331_v21 }
 0x5fc   : > { %v3996_v7 = vadd.f32 %v3995_v26, %v3827_v36 }
 0x5fd   : > { %v4772_v35 = vmax.f32 %v4331_v21, %v4516_v39  ;;  %4243 = vmatmul.bf16.gmra.mxu2 %v16189_v38  ;;  %4372 = vmatmul.bf16.gmra.mxu3 %v16190_v31 }
 0x5fe   : > { %3905 = vmatmul.bf16.gmra.mxu0 %v16189_v38  ;;  %4034 = vmatmul.bf16.gmra.mxu1 %v16190_v31  ;;  %v4519_v36 = vmul.f32 0.01, %v3996_v7  ;;  %v3832_v31 = vadd.f32 %v12387_v3, %v16193_v56  ;;  %v4170_v3 = vadd.f32 %v12401_v57, %v16193_v56  ;;  %v16199_v56 = vld [vmem:[#allocation68_spill] sm:$0xff] }
 0x5ff   : > { %v12574_v43 = vpack.c.bf16 %v4772_v35, %v4768_v40 }
 0x600   : > { %v12578_v26 = vpop.f32.mrf.mxu2  ;;  %v4333_v11 = vpop.f32.mrf.mxu3  ;;  %v4775_v39 = vmax.f32 %v3996_v7, %v4519_v36  ;;  %v16195_v7 = vld [vmem:[#allocation89_spill] sm:$0xff]  ;;  %v16196_v36 = vld [vmem:[#allocation118_spill] sm:$0xff] }
 0x601   : > { %16191 = vst [vmem:[#allocation36_spill] sm:$0xff] %v12574_v43  ;;  %v4334_v61 = vadd.f32 %v4333_v11, %v4165_v22 }
 0x603   : > { %v12580_v19 = vpop.f32.mrf.mxu0  ;;  %v3997_v50 = vpop.f32.mrf.mxu1  ;;  %v4520_v22 = vmul.f32 0.01, %v4334_v61 }
 0x604   : > { %v3998_v15 = vadd.f32 %v3997_v50, %v3829_v44 }
 0x605   : > { %v4776_v14 = vmax.f32 %v4334_v61, %v4520_v22 }
 0x606   : > { %v4523_v21 = vmul.f32 0.01, %v3998_v15 }
 0x608   : > { %v4779_v38 = vmax.f32 %v3998_v15, %v4523_v21  ;;  %v12586_v40 = vpop.f32.mrf.mxu2  ;;  %v4335_v53 = vpop.f32.mrf.mxu3  ;;  %v16198_v21 = vld [vmem:[#allocation81_spill] sm:$0xff] }
 0x609   : > { %v4336_v11 = vadd.f32 %v4335_v53, %v4167_v13  ;;  %v4172_v57 = vadd.f32 %v12411_v52, %v16198_v21 }
 0x60a   : > { %v12588_v35 = vpack.c.bf16 %v4779_v38, %v4775_v39  ;;  %v3834_v39 = vadd.f32 %v12403_v51, %v16198_v21 }
 0x60b   : > { %v12590_v9 = vpop.f32.mrf.mxu0  ;;  %v4000_v2 = vpop.f32.mrf.mxu1  ;;  %v4524_v50 = vmul.f32 0.01, %v4336_v11 }
 0x60c   : > { %16194 = vst [vmem:[#allocation17_spill] sm:$0xff] %v12588_v35  ;;  %v4001_v44 = vadd.f32 %v4000_v2, %v3832_v31 }
 0x60d   : > { %v4780_v23 = vmax.f32 %v4336_v11, %v4524_v50  ;;  %4248 = vmatmul.bf16.gmra.mxu2 %v16195_v7  ;;  %4377 = vmatmul.bf16.gmra.mxu3 %v16196_v36 }
 0x60e   : > { %3910 = vmatmul.bf16.gmra.mxu0 %v16195_v7  ;;  %4039 = vmatmul.bf16.gmra.mxu1 %v16196_v36  ;;  %v4527_v53 = vmul.f32 0.01, %v4001_v44  ;;  %v3837_v36 = vadd.f32 %v12415_v49, %v16199_v56  ;;  %v4175_v49 = vadd.f32 %v12429_v45, %v16199_v56  ;;  %v16205_v56 = vld [vmem:[#allocation48_spill] sm:$0xff] }
 0x60f   : > { %v12598_v15 = vpack.c.bf16 %v4780_v23, %v4776_v14 }
 0x610   : > { %v12602_v2 = vpop.f32.mrf.mxu2  ;;  %v4338_v38 = vpop.f32.mrf.mxu3  ;;  %v4783_v50 = vmax.f32 %v4001_v44, %v4527_v53  ;;  %v16201_v44 = vld [vmem:[#allocation120_spill] sm:$0xff]  ;;  %v16202_v53 = vld [vmem:[#allocation121_spill] sm:$0xff] }
 0x611   : > { %16197 = vst [vmem:[#allocation41_spill] sm:$0xff] %v12598_v15  ;;  %v4339_v13 = vadd.f32 %v4338_v38, %v4170_v3 }
 0x613   : > { %v12604_v31 = vpop.f32.mrf.mxu0  ;;  %v4002_v61 = vpop.f32.mrf.mxu1  ;;  %v4528_v3 = vmul.f32 0.01, %v4339_v13 }
 0x614   : > { %v4003_v22 = vadd.f32 %v4002_v61, %v3834_v39 }
 0x615   : > { %v4784_v52 = vmax.f32 %v4339_v13, %v4528_v3 }
 0x616   : > { %v4531_v11 = vmul.f32 0.01, %v4003_v22 }
 0x618   : > { %v4787_v7 = vmax.f32 %v4003_v22, %v4531_v11  ;;  %v12610_v14 = vpop.f32.mrf.mxu2  ;;  %v4340_v51 = vpop.f32.mrf.mxu3  ;;  %v16204_v11 = vld [vmem:[#allocation70_spill] sm:$0xff] }
 0x619   : > { %v4341_v38 = vadd.f32 %v4340_v51, %v4172_v57  ;;  %v4177_v45 = vadd.f32 %v12439_v27, %v16204_v11 }
 0x61a   : > { %v12612_v23 = vpack.c.bf16 %v4787_v7, %v4783_v50  ;;  %v3839_v50 = vadd.f32 %v12431_v16, %v16204_v11 }
 0x61b   : > { %v12614_v15 = vpop.f32.mrf.mxu0  ;;  %v4005_v33 = vpop.f32.mrf.mxu1  ;;  %v4532_v61 = vmul.f32 0.01, %v4341_v38 }
 0x61c   : > { %16200 = vst [vmem:[#allocation38_spill] sm:$0xff] %v12612_v23  ;;  %v4006_v39 = vadd.f32 %v4005_v33, %v3837_v36 }
 0x61d   : > { %v4788_v21 = vmax.f32 %v4341_v38, %v4532_v61  ;;  %4253 = vmatmul.bf16.gmra.mxu2 %v16201_v44  ;;  %4382 = vmatmul.bf16.gmra.mxu3 %v16202_v53 }
 0x61e   : > { %3915 = vmatmul.bf16.gmra.mxu0 %v16201_v44  ;;  %4044 = vmatmul.bf16.gmra.mxu1 %v16202_v53  ;;  %v4535_v51 = vmul.f32 0.01, %v4006_v39  ;;  %v3842_v53 = vadd.f32 %v12443_v34, %v16205_v56  ;;  %v4180_v34 = vadd.f32 %v12457_v47, %v16205_v56  ;;  %v16211_v56 = vld [vmem:[#allocation66_spill] sm:$0xff] }
 0x61f   : > { %v12622_v22 = vpack.c.bf16 %v4788_v21, %v4784_v52 }
 0x620   : > { %v12626_v33 = vpop.f32.mrf.mxu2  ;;  %v4343_v7 = vpop.f32.mrf.mxu3  ;;  %v4791_v61 = vmax.f32 %v4006_v39, %v4535_v51  ;;  %v16207_v39 = vld [vmem:[#allocation123_spill] sm:$0xff]  ;;  %v16208_v51 = vld [vmem:[#allocation124_spill] sm:$0xff] }
 0x621   : > { %16203 = vst [vmem:[#allocation50_spill] sm:$0xff] %v12622_v22  ;;  %v4344_v57 = vadd.f32 %v4343_v7, %v4175_v49 }
 0x623   : > { %v12628_v36 = vpop.f32.mrf.mxu0  ;;  %v4007_v13 = vpop.f32.mrf.mxu1  ;;  %v4536_v49 = vmul.f32 0.01, %v4344_v57 }
 0x624   : > { %v4008_v3 = vadd.f32 %v4007_v13, %v3839_v50 }
 0x625   : > { %v4792_v27 = vmax.f32 %v4344_v57, %v4536_v49 }
 0x626   : > { %v4539_v38 = vmul.f32 0.01, %v4008_v3 }
 0x628   : > { %v4795_v44 = vmax.f32 %v4008_v3, %v4539_v38  ;;  %v12634_v52 = vpop.f32.mrf.mxu2  ;;  %v4345_v16 = vpop.f32.mrf.mxu3  ;;  %v16210_v38 = vld [vmem:[#allocation77_spill] sm:$0xff] }
 0x629   : > { %v4346_v7 = vadd.f32 %v4345_v16, %v4177_v45  ;;  %v4182_v47 = vadd.f32 %v12466_v41, %v16210_v38 }
 0x62a   : > { %v12636_v21 = vpack.c.bf16 %v4795_v44, %v4791_v61  ;;  %v3844_v61 = vadd.f32 %v12459_v55, %v16210_v38 }
 0x62b   : > { %v12638_v22 = vpop.f32.mrf.mxu0  ;;  %v4010_v43 = vpop.f32.mrf.mxu1  ;;  %v4540_v13 = vmul.f32 0.01, %v4346_v7 }
 0x62c   : > { %16206 = vst [vmem:[#allocation54_spill] sm:$0xff] %v12636_v21  ;;  %v4011_v50 = vadd.f32 %v4010_v43, %v3842_v53 }
 0x62d   : > { %v4796_v11 = vmax.f32 %v4346_v7, %v4540_v13  ;;  %4258 = vmatmul.bf16.gmra.mxu2 %v16207_v39  ;;  %4387 = vmatmul.bf16.gmra.mxu3 %v16208_v51 }
 0x62e   : > { %3920 = vmatmul.bf16.gmra.mxu0 %v16207_v39  ;;  %4049 = vmatmul.bf16.gmra.mxu1 %v16208_v51  ;;  %v4543_v16 = vmul.f32 0.01, %v4011_v50  ;;  %v3847_v51 = vadd.f32 %v12470_v24, %v16211_v56  ;;  %v4185_v24 = vadd.f32 %v12482_v30, %v16211_v56  ;;  %v16217_v56 = vld [vmem:[#allocation14_spill] sm:$0xff] }
 0x62f   : > { %v12646_v3 = vpack.c.bf16 %v4796_v11, %v4792_v27 }
 0x630   : > { %v12650_v43 = vpop.f32.mrf.mxu2  ;;  %v4348_v44 = vpop.f32.mrf.mxu3  ;;  %v4799_v13 = vmax.f32 %v4011_v50, %v4543_v16  ;;  %v16213_v50 = vld [vmem:[#allocation126_spill] sm:$0xff]  ;;  %v16214_v16 = vld [vmem:[#allocation127_spill] sm:$0xff] }
 0x631   : > { %16209 = vst [vmem:[#allocation64_spill] sm:$0xff] %v12646_v3  ;;  %v4349_v45 = vadd.f32 %v4348_v44, %v4180_v34 }
 0x633   : > { %v12652_v53 = vpop.f32.mrf.mxu0  ;;  %v4012_v57 = vpop.f32.mrf.mxu1  ;;  %v4544_v34 = vmul.f32 0.01, %v4349_v45 }
 0x634   : > { %v4013_v49 = vadd.f32 %v4012_v57, %v3844_v61 }
 0x635   : > { %v4800_v41 = vmax.f32 %v4349_v45, %v4544_v34 }
 0x636   : > { %v4547_v7 = vmul.f32 0.01, %v4013_v49 }
 0x638   : > { %v4803_v39 = vmax.f32 %v4013_v49, %v4547_v7  ;;  %v12658_v27 = vpop.f32.mrf.mxu2  ;;  %v4350_v55 = vpop.f32.mrf.mxu3  ;;  %v16216_v7 = vld [vmem:[#allocation8_spill] sm:$0xff] }
 0x639   : > { %v4351_v44 = vadd.f32 %v4350_v55, %v4182_v47  ;;  %v4187_v30 = vadd.f32 %v12490_v60, %v16216_v7 }
 0x63a   : > { %v12660_v11 = vpack.c.bf16 %v4803_v39, %v4799_v13  ;;  %v3849_v13 = vadd.f32 %v12484_v5, %v16216_v7 }
 0x63b   : > { %v12662_v3 = vpop.f32.mrf.mxu0  ;;  %v4015_v54 = vpop.f32.mrf.mxu1  ;;  %v4548_v57 = vmul.f32 0.01, %v4351_v44 }
 0x63c   : > { %16212 = vst [vmem:[#allocation65_spill] sm:$0xff] %v12660_v11  ;;  %v4016_v61 = vadd.f32 %v4015_v54, %v3847_v51 }
 0x63d   : > { %v4804_v38 = vmax.f32 %v4351_v44, %v4548_v57  ;;  %4263 = vmatmul.bf16.gmra.mxu2 %v16213_v50  ;;  %4392 = vmatmul.bf16.gmra.mxu3 %v16214_v16 }
 0x63e   : > { %3925 = vmatmul.bf16.gmra.mxu0 %v16213_v50  ;;  %4054 = vmatmul.bf16.gmra.mxu1 %v16214_v16  ;;  %v4551_v55 = vmul.f32 0.01, %v4016_v61  ;;  %v3852_v16 = vadd.f32 %v12494_v29, %v16217_v56  ;;  %v4190_v29 = vadd.f32 %v12506_v46, %v16217_v56  ;;  %v16223_v56 = vld [vmem:[#allocation15_spill] sm:$0xff] }
 0x63f   : > { %v12670_v49 = vpack.c.bf16 %v4804_v38, %v4800_v41 }
 0x640   : > { %v12674_v54 = vpop.f32.mrf.mxu2  ;;  %v4353_v39 = vpop.f32.mrf.mxu3  ;;  %v4807_v57 = vmax.f32 %v4016_v61, %v4551_v55  ;;  %v16219_v61 = vld [vmem:[#allocation129_spill] sm:$0xff]  ;;  %v16220_v55 = vld [vmem:[#allocation130_spill] sm:$0xff] }
 0x641   : > { %16215 = vst [vmem:[#allocation97_spill] sm:$0xff] %v12670_v49  ;;  %v4354_v47 = vadd.f32 %v4353_v39, %v4185_v24 }
 0x643   : > { %v12676_v51 = vpop.f32.mrf.mxu0  ;;  %v4017_v45 = vpop.f32.mrf.mxu1  ;;  %v4552_v24 = vmul.f32 0.01, %v4354_v47 }
 0x644   : > { %v4018_v34 = vadd.f32 %v4017_v45, %v3849_v13 }
 0x645   : > { %v4808_v60 = vmax.f32 %v4354_v47, %v4552_v24 }
 0x646   : > { %v4555_v44 = vmul.f32 0.01, %v4018_v34 }
 0x648   : > { %v4811_v50 = vmax.f32 %v4018_v34, %v4555_v44  ;;  %v12682_v41 = vpop.f32.mrf.mxu2  ;;  %v4355_v5 = vpop.f32.mrf.mxu3  ;;  %v16222_v44 = vld [vmem:[#allocation53_spill] sm:$0xff] }
 0x649   : > { %v4356_v39 = vadd.f32 %v4355_v5, %v4187_v30  ;;  %v4192_v46 = vadd.f32 %v12514_v4, %v16222_v44 }
 0x64a   : > { %v12684_v38 = vpack.c.bf16 %v4811_v50, %v4807_v57  ;;  %v3854_v57 = vadd.f32 %v12508_v42, %v16222_v44 }
 0x64b   : > { %v12686_v49 = vpop.f32.mrf.mxu0  ;;  %v4020_v0 = vpop.f32.mrf.mxu1  ;;  %v4556_v45 = vmul.f32 0.01, %v4356_v39 }
 0x64c   : > { %16218 = vst [vmem:[#allocation27_spill] sm:$0xff] %v12684_v38  ;;  %v4021_v13 = vadd.f32 %v4020_v0, %v3852_v16 }
 0x64d   : > { %v4812_v7 = vmax.f32 %v4356_v39, %v4556_v45  ;;  %4268 = vmatmul.bf16.gmra.mxu2 %v16219_v61  ;;  %4397 = vmatmul.bf16.gmra.mxu3 %v16220_v55 }
 0x64e   : > { %3930 = vmatmul.bf16.gmra.mxu0 %v16219_v61  ;;  %4059 = vmatmul.bf16.gmra.mxu1 %v16220_v55  ;;  %v4559_v5 = vmul.f32 0.01, %v4021_v13  ;;  %v3857_v55 = vadd.f32 %v12518_v37, %v16223_v56  ;;  %v4195_v37 = vadd.f32 %v12530_v6, %v16223_v56  ;;  %v16228_v56 = vld [vmem:[#allocation29_spill] sm:$0xff] }
 0x64f   : > { %v12694_v34 = vpack.c.bf16 %v4812_v7, %v4808_v60 }
 0x650   : > { %v12698_v0 = vpop.f32.mrf.mxu2  ;;  %v4358_v50 = vpop.f32.mrf.mxu3  ;;  %v4815_v45 = vmax.f32 %v4021_v13, %v4559_v5  ;;  %v16224_v13 = vld [vmem:[#allocation132_spill] sm:$0xff]  ;;  %v16225_v5 = vld [vmem:[#allocation133_spill] sm:$0xff] }
 0x651   : > { %16221 = vst [vmem:[#allocation71_spill] sm:$0xff] %v12694_v34  ;;  %v4359_v30 = vadd.f32 %v4358_v50, %v4190_v29 }
 0x653   : > { %v12700_v16 = vpop.f32.mrf.mxu0  ;;  %v4022_v47 = vpop.f32.mrf.mxu1  ;;  %v4560_v29 = vmul.f32 0.01, %v4359_v30 }
 0x654   : > { %v4023_v24 = vadd.f32 %v4022_v47, %v3854_v57 }
 0x655   : > { %v4816_v4 = vmax.f32 %v4359_v30, %v4560_v29 }
 0x656   : > { %v4563_v39 = vmul.f32 0.01, %v4023_v24 }
 0x658   : > { %v4819_v61 = vmax.f32 %v4023_v24, %v4563_v39  ;;  %v12706_v60 = vpop.f32.mrf.mxu2  ;;  %v4360_v42 = vpop.f32.mrf.mxu3  ;;  %v16227_v39 = vld [vmem:[#allocation24_spill] sm:$0xff] }
 0x659   : > { %v4361_v50 = vadd.f32 %v4360_v42, %v4192_v46  ;;  %v4197_v6 = vadd.f32 %v12538_v32, %v16227_v39 }
 0x65a   : > { %v12708_v7 = vpack.c.bf16 %v4819_v61, %v4815_v45  ;;  %v3859_v45 = vadd.f32 %v12532_v12, %v16227_v39  ;;  %v4200_v39 = vadd.f32 %v12554_v59, %v16228_v56 }
 0x65b   : > { %v12710_v34 = vpop.f32.mrf.mxu0  ;;  %v4025_v35 = vpop.f32.mrf.mxu1  ;;  %v4564_v47 = vmul.f32 0.01, %v4361_v50 }
 0x65c   : > { %v4026_v57 = vadd.f32 %v4025_v35, %v3857_v55 }
 0x65d   : > { %v4820_v44 = vmax.f32 %v4361_v50, %v4564_v47  ;;  %4273 = vmatmul.bf16.gmra.mxu2 %v16224_v13  ;;  %4402 = vmatmul.bf16.gmra.mxu3 %v16225_v5 }
 0x65e   : > { %3935 = vmatmul.bf16.gmra.mxu0 %v16224_v13  ;;  %4064 = vmatmul.bf16.gmra.mxu1 %v16225_v5  ;;  %v4567_v42 = vmul.f32 0.01, %v4026_v57  ;;  %v3862_v5 = vadd.f32 %v12542_v28, %v16228_v56  ;;  %v8917_v56 = vld [vmem:[%s9678_s24 + $0x8] sm:$0xf] }
 0x65f   : > { %v12718_v24 = vpack.c.bf16 %v4820_v44, %v4816_v4 }
 0x660   : > { %v12722_v35 = vpop.f32.mrf.mxu2  ;;  %v4363_v61 = vpop.f32.mrf.mxu3  ;;  %v4823_v47 = vmax.f32 %v4026_v57, %v4567_v42  ;;  %v16229_v57 = vld [vmem:[#allocation137_spill] sm:$0xff]  ;;  %v16230_v42 = vld [vmem:[#allocation138_spill] sm:$0xff] }
 0x661   : > { %16226 = vst [vmem:[#allocation72_spill] sm:$0xff] %v12718_v24  ;;  %v4364_v46 = vadd.f32 %v4363_v61, %v4195_v37 }
 0x663   : > { %v12724_v55 = vpop.f32.mrf.mxu0  ;;  %v4027_v30 = vpop.f32.mrf.mxu1  ;;  %v4568_v37 = vmul.f32 0.01, %v4364_v46 }
 0x664   : > { %v4028_v29 = vadd.f32 %v4027_v30, %v3859_v45 }
 0x665   : > { %v4824_v32 = vmax.f32 %v4364_v46, %v4568_v37 }
 0x666   : > { %v4571_v50 = vmul.f32 0.01, %v4028_v29 }
 0x668   : > { %v4827_v13 = vmax.f32 %v4028_v29, %v4571_v50  ;;  %v12730_v4 = vpop.f32.mrf.mxu2  ;;  %v4365_v12 = vpop.f32.mrf.mxu3 }
 0x669   : > { %v4366_v61 = vadd.f32 %v4365_v12, %v4197_v6 }
 0x66a   : > { %v12732_v44 = vpack.c.bf16 %v4827_v13, %v4823_v47 }
 0x66b   : > { %v12734_v24 = vpop.f32.mrf.mxu0  ;;  %v4030_v23 = vpop.f32.mrf.mxu1  ;;  %v4572_v30 = vmul.f32 0.01, %v4366_v61 }
 0x66c   : > { %v4031_v45 = vadd.f32 %v4030_v23, %v3862_v5  ;;  %v16232_v23 = vld [vmem:[#allocation33_spill] sm:$0xff] }
 0x66d   : > { %v4828_v28 = vmax.f32 %v4366_v61, %v4572_v30  ;;  %4278 = vmatmul.bf16.gmra.mxu2 %v16229_v57  ;;  %4407 = vmatmul.bf16.gmra.mxu3 %v16230_v42  ;;  %v3864_v50 = vadd.f32 %v12556_v58, %v16232_v23  ;;  %v8909_v30 = vld [vmem:[%s9678_s24] sm:$0xf] }
 0x66e   : > { %3940 = vmatmul.bf16.gmra.mxu0 %v16229_v57  ;;  %4069 = vmatmul.bf16.gmra.mxu1 %v16230_v42  ;;  %v4575_v12 = vmul.f32 0.01, %v4031_v45  ;;  %v9323_v57 = vld [vmem:[%s9678_s24 + $0xc] sm:$0xf0]  ;;  %v16233_v58 = vld [vmem:[#allocation83_spill] sm:$0xff] }
 0x66f   : > { %v12742_v29 = vpack.c.bf16 %v4828_v28, %v4824_v32  ;;  %v9324_v32 = vld [vmem:[%s9678_s24 + $0x14] sm:$0xf0]  ;;  %v4202_v28 = vadd.f32 %v12564_v1, %v16232_v23  ;;  %v12762_v11 = vor.u32 %v9323_v57, %v8909_v30  ;;  %v16236_v1 = vld [vmem:[#allocation139_spill] sm:$0xff]  ;;  %v4205_v30 = vadd.f32 %v12578_v26, %v16233_v58 }
 0x670   : > { %v12746_v47 = vpop.f32.mrf.mxu2  ;;  %v4368_v13 = vpop.f32.mrf.mxu3  ;;  %v4831_v42 = vmax.f32 %v4031_v45, %v4575_v12  ;;  %v12766_v12 = vor.u32 %v9324_v32, %v8917_v56  ;;  %v8925_v26 = vld [vmem:[%s9678_s24 + $0x20] sm:$0xf] }
 0x671   : > { %16231 = vst [vmem:[#allocation18_spill] sm:$0xff] %v12742_v29  ;;  %v4369_v46 = vadd.f32 %v4368_v13, %v4200_v39  ;;  %v3867_v29 = vadd.f32 %v12566_v62, %v16233_v58  ;;  %v9327_v58 = vld [vmem:[%s9678_s24 + $0x2c] sm:$0xf0] }
 0x672   : > { %16234 = vst [vmem:[#allocation7_spill] sm:$0xff] %v12762_v11 }
 0x673   : > { %v12748_v6 = vpop.f32.mrf.mxu0  ;;  %v4032_v5 = vpop.f32.mrf.mxu1  ;;  %16235 = vst [vmem:[#allocation78_spill] sm:$0xff] %v12766_v12 }
 0x674   : > { %v4033_v37 = vadd.f32 %v4032_v5, %v3864_v50  ;;  %v4576_v50 = vmul.f32 0.01, %v4369_v46 }
 0x676   : > { %v4579_v61 = vmul.f32 0.01, %v4033_v37  ;;  %v4832_v62 = vmax.f32 %v4369_v46, %v4576_v50 }
 0x678   : > { %v4835_v59 = vmax.f32 %v4033_v37, %v4579_v61  ;;  %v12760_v39 = vpop.f32.mrf.mxu2  ;;  %v4370_v13 = vpop.f32.mrf.mxu3 }
 0x679   : > { %v4371_v5 = vadd.f32 %v4370_v13, %v4202_v28 }
 0x67a   : > { %v12758_v21 = vpack.c.bf16 %v4835_v59, %v4831_v42 }
 0x67b   : > { %v12764_v38 = vpop.f32.mrf.mxu0  ;;  %v4035_v45 = vpop.f32.mrf.mxu1  ;;  %v4580_v61 = vmul.f32 0.01, %v4371_v5 }
 0x67c   : > { %v4036_v37 = vadd.f32 %v4035_v45, %v3867_v29  ;;  %v16238_v29 = vld [vmem:[#allocation112_spill] sm:$0xff] }
 0x67d   : > { %v4836_v23 = vmax.f32 %v4371_v5, %v4580_v61  ;;  %4412 = vmatmul.bf16.gmra.mxu3 %v16236_v1  ;;  %5855 = vmatmul.bf16.vlgmr.msra.gmra.mxu2 %v12766_v12  ;;  %v3869_v42 = vadd.f32 %v12580_v19, %v16238_v29  ;;  %v8933_v19 = vld [vmem:[%s9678_s24 + $0x28] sm:$0xf]  ;;  %v9328_v61 = vld [vmem:[%s9678_s24 + $0x34] sm:$0xf0] }
 0x67e   : > { %4074 = vmatmul.bf16.gmra.mxu1 %v16236_v1  ;;  %5677 = vmatmul.bf16.vlgmr.msra.gmra.mxu0 %v12762_v11  ;;  %v4583_v13 = vmul.f32 0.01, %v4036_v37  ;;  %v4207_v1 = vadd.f32 %v12586_v40, %v16238_v29 }
 0x67f   : > { %6381 = vmatpush.bf16.msra.mxu0 %v12562_v18  ;;  %v12775_v57 = vpack.c.bf16 %v4836_v23, %v4832_v62  ;;  %v16239_v62 = vld [vmem:[#allocation90_spill] sm:$0xff] }
 0x680   : > { %v12779_v46 = vpop.f32.mrf.mxu2  ;;  %v4373_v59 = vpop.f32.mrf.mxu3  ;;  %v4839_v5 = vmax.f32 %v4036_v37, %v4583_v13  ;;  %v3872_v23 = vadd.f32 %v12590_v9, %v16239_v62 }
 0x681   : > { %16237 = vst [vmem:[#allocation79_spill] sm:$0xff] %v12775_v57  ;;  %v4374_v56 = vadd.f32 %v4373_v59, %v4205_v30 }
 0x683   : > { %v12781_v32 = vpop.f32.mrf.mxu0  ;;  %v4037_v28 = vpop.f32.mrf.mxu1  ;;  %6382 = vmatpush.bf16.msra.mxu0 %v12540_v63  ;;  %v12795_v63 = vor.u32 %v9327_v58, %v8925_v26  ;;  %v4210_v58 = vadd.f32 %v12602_v2, %v16239_v62  ;;  %v8941_v2 = vld [vmem:[%s9678_s24 + $0x40] sm:$0xf]  ;;  %v9331_v62 = vld [vmem:[%s9678_s24 + $0x4c] sm:$0xf0] }
 0x684   : > { %v4038_v18 = vadd.f32 %v4037_v28, %v3869_v42  ;;  %v4584_v28 = vmul.f32 0.01, %v4374_v56 }
 0x685   : > { %16240 = vst [vmem:[#allocation136_spill] sm:$0xff] %v12795_v63 }
 0x686   : > { %v4587_v50 = vmul.f32 0.01, %v4038_v18  ;;  %v4840_v9 = vmax.f32 %v4374_v56, %v4584_v28 }
 0x687   : > { %6383 = vmatpush.bf16.msra.mxu0 %v12516_v8 }
 0x688   : > { %v4843_v45 = vmax.f32 %v4038_v18, %v4587_v50  ;;  %v12793_v30 = vpop.f32.mrf.mxu2  ;;  %v4375_v59 = vpop.f32.mrf.mxu3  ;;  %v12801_v18 = vor.u32 %v9328_v61, %v8933_v19  ;;  %v16242_v50 = vld [vmem:[#allocation34_spill] sm:$0xff] }
 0x689   : > { %v4376_v37 = vadd.f32 %v4375_v59, %v4207_v1 }
 0x68a   : > { %v12797_v42 = vpack.c.bf16 %v4843_v45, %v4839_v5  ;;  %16241 = vst [vmem:[#allocation62_spill] sm:$0xff] %v12801_v18  ;;  %v16244_v5 = vld [vmem:[#allocation73_spill] sm:$0xff] }
 0x68b   : > { %v12799_v13 = vpop.f32.mrf.mxu0  ;;  %v4040_v8 = vpop.f32.mrf.mxu1  ;;  %6384 = vmatpush.bf16.msra.mxu0 %v12492_v48  ;;  %v4588_v29 = vmul.f32 0.01, %v4376_v37  ;;  %v3874_v45 = vadd.f32 %v12604_v31, %v16244_v5  ;;  %v8949_v31 = vld [vmem:[%s9678_s24 + $0x48] sm:$0xf] }
 0x68c   : > { %v4041_v40 = vadd.f32 %v4040_v8, %v3872_v23 }
 0x68d   : > { %v4844_v26 = vmax.f32 %v4376_v37, %v4588_v29  ;;  %4417 = vmatmul.bf16.gmra.mxu3 %v16242_v50  ;;  %5860 = vmatmul.bf16.gmra.mxu2 %v12801_v18  ;;  %v9332_v29 = vld [vmem:[%s9678_s24 + $0x54] sm:$0xf0] }
 0x68e   : > { %4079 = vmatmul.bf16.gmra.mxu1 %v16242_v50  ;;  %5682 = vmatmul.bf16.gmra.mxu0 %v12795_v63  ;;  %v4591_v59 = vmul.f32 0.01, %v4041_v40  ;;  %v4212_v50 = vadd.f32 %v12610_v14, %v16244_v5 }
 0x68f   : > { %6385 = vmatpush.bf16.msra.mxu0 %v12468_v10  ;;  %v12811_v48 = vpack.c.bf16 %v4844_v26, %v4840_v9  ;;  %v16245_v9 = vld [vmem:[#allocation49_spill] sm:$0xff] }
 0x690   : > { %v12815_v56 = vpop.f32.mrf.mxu2  ;;  %v4378_v19 = vpop.f32.mrf.mxu3  ;;  %v4847_v37 = vmax.f32 %v4041_v40, %v4591_v59  ;;  %v3877_v26 = vadd.f32 %v12614_v15, %v16245_v9 }
 0x691   : > { %16243 = vst [vmem:[#allocation84_spill] sm:$0xff] %v12811_v48  ;;  %v4379_v61 = vadd.f32 %v4378_v19, %v4210_v58 }
 0x693   : > { %v12817_v1 = vpop.f32.mrf.mxu0  ;;  %v4042_v23 = vpop.f32.mrf.mxu1  ;;  %6386 = vmatpush.bf16.msra.mxu0 %v12441_v25  ;;  %v12831_v25 = vor.u32 %v9331_v62, %v8941_v2  ;;  %v4215_v62 = vadd.f32 %v12626_v33, %v16245_v9  ;;  %v8965_v9 = vld [vmem:[%s9678_s24 + $0x68] sm:$0xf] }
 0x694   : > { %v4043_v10 = vadd.f32 %v4042_v23, %v3874_v45  ;;  %v4592_v23 = vmul.f32 0.01, %v4379_v61 }
 0x695   : > { %16246 = vst [vmem:[#allocation85_spill] sm:$0xff] %v12831_v25 }
 0x696   : > { %v4595_v28 = vmul.f32 0.01, %v4043_v10  ;;  %v4848_v15 = vmax.f32 %v4379_v61, %v4592_v23 }
 0x697   : > { %6387 = vmatpush.bf16.msra.mxu0 %v12413_v17 }
 0x698   : > { %v4851_v8 = vmax.f32 %v4043_v10, %v4595_v28  ;;  %v12829_v58 = vpop.f32.mrf.mxu2  ;;  %v4380_v19 = vpop.f32.mrf.mxu3  ;;  %v12837_v10 = vor.u32 %v9332_v29, %v8949_v31  ;;  %v16248_v28 = vld [vmem:[#allocation106_spill] sm:$0xff] }
 0x699   : > { %v4381_v40 = vadd.f32 %v4380_v19, %v4212_v50 }
 0x69a   : > { %v12833_v45 = vpack.c.bf16 %v4851_v8, %v4847_v37  ;;  %16247 = vst [vmem:[#allocation86_spill] sm:$0xff] %v12837_v10  ;;  %v16250_v37 = vld [vmem:[#allocation52_spill] sm:$0xff] }
 0x69b   : > { %v12835_v59 = vpop.f32.mrf.mxu0  ;;  %v4045_v17 = vpop.f32.mrf.mxu1  ;;  %6388 = vmatpush.bf16.msra.mxu0 %v12385_v20  ;;  %v4596_v5 = vmul.f32 0.01, %v4381_v40  ;;  %v3879_v8 = vadd.f32 %v12628_v36, %v16250_v37  ;;  %v16251_v36 = vld [vmem:[#allocation44_spill] sm:$0xff] }
 0x69c   : > { %v4046_v14 = vadd.f32 %v4045_v17, %v3877_v26  ;;  %v8957_v17 = vld [vmem:[%s9678_s24 + $0x60] sm:$0xf]  ;;  %v3882_v57 = vadd.f32 %v12638_v22, %v16251_v36 }
 0x69d   : > { %v4852_v2 = vmax.f32 %v4381_v40, %v4596_v5  ;;  %4422 = vmatmul.bf16.gmra.mxu3 %v16248_v28  ;;  %5865 = vmatmul.bf16.gmra.mxu2 %v12837_v10  ;;  %v9335_v5 = vld [vmem:[%s9678_s24 + $0x6c] sm:$0xf0] }
 0x69e   : > { %4084 = vmatmul.bf16.gmra.mxu1 %v16248_v28  ;;  %5687 = vmatmul.bf16.gmra.mxu0 %v12831_v25  ;;  %v4599_v19 = vmul.f32 0.01, %v4046_v14 }
 0x69f   : > { %v12846_v20 = vpack.c.bf16 %v4852_v2, %v4848_v15  ;;  %v9336_v15 = vld [vmem:[%s9678_s24 + $0x74] sm:$0xf0]  ;;  %v4217_v2 = vadd.f32 %v12634_v52, %v16250_v37  ;;  %v16254_v52 = vld [vmem:[#allocation55_spill] sm:$0xff] }
 0x6a0   : > { %v12850_v31 = vpop.f32.mrf.mxu2  ;;  %v4383_v29 = vpop.f32.mrf.mxu3  ;;  %v4855_v28 = vmax.f32 %v4046_v14, %v4599_v19  ;;  %v12870_v19 = vor.u32 %v9336_v15, %v8965_v9 }
 0x6a1   : > { %16249 = vst [vmem:[#allocation88_spill] sm:$0xff] %v12846_v20  ;;  %v4384_v61 = vadd.f32 %v4383_v29, %v4215_v62  ;;  %v12864_v29 = vor.u32 %v9335_v5, %v8957_v17  ;;  %v4220_v17 = vadd.f32 %v12650_v43, %v16251_v36  ;;  %v8981_v36 = vld [vmem:[%s9678_s24 + $0x88] sm:$0xf] }
 0x6a2   : > { %16253 = vst [vmem:[#allocation91_spill] sm:$0xff] %v12870_v19 }
 0x6a3   : > { %v12852_v50 = vpop.f32.mrf.mxu0  ;;  %v4047_v26 = vpop.f32.mrf.mxu1  ;;  %16252 = vst [vmem:[#allocation75_spill] sm:$0xff] %v12864_v29 }
 0x6a4   : > { %v4048_v23 = vadd.f32 %v4047_v26, %v3879_v8  ;;  %v4600_v8 = vmul.f32 0.01, %v4384_v61 }
 0x6a6   : > { %v4603_v40 = vmul.f32 0.01, %v4048_v23  ;;  %v4856_v22 = vmax.f32 %v4384_v61, %v4600_v8 }
 0x6a8   : > { %v4859_v33 = vmax.f32 %v4048_v23, %v4603_v40  ;;  %v12862_v10 = vpop.f32.mrf.mxu2  ;;  %v4385_v62 = vpop.f32.mrf.mxu3 }
 0x6a9   : > { %v4386_v26 = vadd.f32 %v4385_v62, %v4217_v2 }
 0x6aa   : > { %v12866_v25 = vpack.c.bf16 %v4859_v33, %v4855_v28 }
 0x6ab   : > { %v12868_v48 = vpop.f32.mrf.mxu0  ;;  %v4050_v14 = vpop.f32.mrf.mxu1  ;;  %v4604_v40 = vmul.f32 0.01, %v4386_v26 }
 0x6ac   : > { %v4051_v23 = vadd.f32 %v4050_v14, %v3882_v57  ;;  %v16256_v57 = vld [vmem:[#allocation69_spill] sm:$0xff]  ;;  %v8973_v14 = vld [vmem:[%s9678_s24 + $0x80] sm:$0xf] }
 0x6ad   : > { %v4860_v37 = vmax.f32 %v4386_v26, %v4604_v40  ;;  %4427 = vmatmul.bf16.gmra.mxu3 %v16254_v52  ;;  %5870 = vmatmul.bf16.gmra.mxu2 %v12870_v19  ;;  %v3884_v28 = vadd.f32 %v12652_v53, %v16256_v57  ;;  %v9339_v40 = vld [vmem:[%s9678_s24 + $0x8c] sm:$0xf0]  ;;  %v16257_v53 = vld [vmem:[#allocation56_spill] sm:$0xff] }
 0x6ae   : > { %4089 = vmatmul.bf16.gmra.mxu1 %v16254_v52  ;;  %5692 = vmatmul.bf16.gmra.mxu0 %v12864_v29  ;;  %v4607_v62 = vmul.f32 0.01, %v4051_v23  ;;  %v3887_v19 = vadd.f32 %v12662_v3, %v16257_v53 }
 0x6af   : > { %v12878_v5 = vpack.c.bf16 %v4860_v37, %v4856_v22  ;;  %v9340_v22 = vld [vmem:[%s9678_s24 + $0x94] sm:$0xf0]  ;;  %v4222_v37 = vadd.f32 %v12658_v27, %v16256_v57  ;;  %v16260_v27 = vld [vmem:[#allocation103_spill] sm:$0xff] }
 0x6b0   : > { %v12882_v33 = vpop.f32.mrf.mxu2  ;;  %v4388_v9 = vpop.f32.mrf.mxu3  ;;  %v4863_v52 = vmax.f32 %v4051_v23, %v4607_v62  ;;  %v12902_v62 = vor.u32 %v9340_v22, %v8981_v36 }
 0x6b1   : > { %16255 = vst [vmem:[#allocation92_spill] sm:$0xff] %v12878_v5  ;;  %v4389_v61 = vadd.f32 %v4388_v9, %v4220_v17  ;;  %v12896_v9 = vor.u32 %v9339_v40, %v8973_v14  ;;  %v4225_v14 = vadd.f32 %v12674_v54, %v16257_v53  ;;  %v8997_v53 = vld [vmem:[%s9678_s24 + $0xa8] sm:$0xf] }
 0x6b2   : > { %16259 = vst [vmem:[#allocation82_spill] sm:$0xff] %v12902_v62 }
 0x6b3   : > { %v12884_v15 = vpop.f32.mrf.mxu0  ;;  %v4052_v2 = vpop.f32.mrf.mxu1  ;;  %16258 = vst [vmem:[#allocation93_spill] sm:$0xff] %v12896_v9 }
 0x6b4   : > { %v4053_v8 = vadd.f32 %v4052_v2, %v3884_v28  ;;  %v4608_v28 = vmul.f32 0.01, %v4389_v61 }
 0x6b6   : > { %v4611_v26 = vmul.f32 0.01, %v4053_v8  ;;  %v4864_v3 = vmax.f32 %v4389_v61, %v4608_v28 }
 0x6b8   : > { %v4867_v43 = vmax.f32 %v4053_v8, %v4611_v26  ;;  %v12894_v29 = vpop.f32.mrf.mxu2  ;;  %v4390_v17 = vpop.f32.mrf.mxu3 }
 0x6b9   : > { %v4391_v2 = vadd.f32 %v4390_v17, %v4222_v37 }
 0x6ba   : > { %v12898_v20 = vpack.c.bf16 %v4867_v43, %v4863_v52 }
 0x6bb   : > { %v12900_v5 = vpop.f32.mrf.mxu0  ;;  %v4055_v23 = vpop.f32.mrf.mxu1  ;;  %v4612_v26 = vmul.f32 0.01, %v4391_v2 }
 0x6bc   : > { %v4056_v8 = vadd.f32 %v4055_v23, %v3887_v19  ;;  %v16262_v19 = vld [vmem:[#allocation37_spill] sm:$0xff]  ;;  %v8989_v23 = vld [vmem:[%s9678_s24 + $0xa0] sm:$0xf] }
 0x6bd   : > { %v4868_v57 = vmax.f32 %v4391_v2, %v4612_v26  ;;  %4432 = vmatmul.bf16.gmra.mxu3 %v16260_v27  ;;  %5875 = vmatmul.bf16.gmra.mxu2 %v12902_v62  ;;  %v3889_v52 = vadd.f32 %v12676_v51, %v16262_v19  ;;  %v9343_v26 = vld [vmem:[%s9678_s24 + $0xac] sm:$0xf0] }
 0x6be   : > { %4094 = vmatmul.bf16.gmra.mxu1 %v16260_v27  ;;  %5697 = vmatmul.bf16.gmra.mxu0 %v12896_v9  ;;  %v4615_v17 = vmul.f32 0.01, %v4056_v8  ;;  %v12926_v9 = vor.u32 %v9343_v26, %v8989_v23 }
 0x6bf   : > { %v12910_v40 = vpack.c.bf16 %v4868_v57, %v4864_v3  ;;  %v9344_v3 = vld [vmem:[%s9678_s24 + $0xb4] sm:$0xf0]  ;;  %v4227_v57 = vadd.f32 %v12682_v41, %v16262_v19 }
 0x6c0   : > { %v12914_v43 = vpop.f32.mrf.mxu2  ;;  %v4393_v36 = vpop.f32.mrf.mxu3  ;;  %v4871_v27 = vmax.f32 %v4056_v8, %v4615_v17  ;;  %16263 = vst [vmem:[#allocation96_spill] sm:$0xff] %v12926_v9  ;;  %v12932_v18 = vor.u32 %v9344_v3, %v8997_v53  ;;  %v16265_v17 = vld [vmem:[#allocation10_spill] sm:$0xff] }
 0x6c1   : > { %16261 = vst [vmem:[#allocation95_spill] sm:$0xff] %v12910_v40  ;;  %v4394_v61 = vadd.f32 %v4393_v36, %v4225_v14  ;;  %v4230_v23 = vadd.f32 %v12698_v0, %v16265_v17 }
 0x6c2   : > { %16264 = vst [vmem:[#allocation39_spill] sm:$0xff] %v12932_v18 }
 0x6c3   : > { %v12916_v22 = vpop.f32.mrf.mxu0  ;;  %v4057_v37 = vpop.f32.mrf.mxu1  ;;  %v4616_v36 = vmul.f32 0.01, %v4394_v61 }
 0x6c4   : > { %v4058_v28 = vadd.f32 %v4057_v37, %v3889_v52 }
 0x6c5   : > { %v4872_v41 = vmax.f32 %v4394_v61, %v4616_v36 }
 0x6c6   : > { %v4619_v2 = vmul.f32 0.01, %v4058_v28 }
 0x6c8   : > { %v4875_v54 = vmax.f32 %v4058_v28, %v4619_v2  ;;  %v12924_v51 = vpop.f32.mrf.mxu2  ;;  %v4395_v62 = vpop.f32.mrf.mxu3  ;;  %v3892_v28 = vadd.f32 %v12686_v49, %v16265_v17  ;;  %v16266_v2 = vld [vmem:[#allocation100_spill] sm:$0xff]  ;;  %v16268_v49 = vld [vmem:[#allocation11_spill] sm:$0xff] }
 0x6c9   : > { %v4396_v40 = vadd.f32 %v4395_v62, %v4227_v57  ;;  %v9013_v17 = vld [vmem:[%s9678_s24 + $0xc8] sm:$0xf] }
 0x6ca   : > { %v12928_v14 = vpack.c.bf16 %v4875_v54, %v4871_v27  ;;  %v3894_v27 = vadd.f32 %v12700_v16, %v16268_v49 }
 0x6cb   : > { %v12930_v52 = vpop.f32.mrf.mxu0  ;;  %v4060_v37 = vpop.f32.mrf.mxu1  ;;  %v4620_v8 = vmul.f32 0.01, %v4396_v40 }
 0x6cc   : > { %v4061_v62 = vadd.f32 %v4060_v37, %v3892_v28  ;;  %v9347_v28 = vld [vmem:[%s9678_s24 + $0xcc] sm:$0xf0] }
 0x6cd   : > { %v4876_v19 = vmax.f32 %v4396_v40, %v4620_v8  ;;  %4437 = vmatmul.bf16.gmra.mxu3 %v16266_v2  ;;  %5880 = vmatmul.bf16.gmra.mxu2 %v12932_v18  ;;  %v9005_v8 = vld [vmem:[%s9678_s24 + $0xc0] sm:$0xf] }
 0x6ce   : > { %4099 = vmatmul.bf16.gmra.mxu1 %v16266_v2  ;;  %5702 = vmatmul.bf16.gmra.mxu0 %v12926_v9  ;;  %v4623_v57 = vmul.f32 0.01, %v4061_v62  ;;  %v12958_v9 = vor.u32 %v9347_v28, %v9005_v8 }
 0x6cf   : > { %v12942_v26 = vpack.c.bf16 %v4876_v19, %v4872_v41  ;;  %v9348_v41 = vld [vmem:[%s9678_s24 + $0xd4] sm:$0xf0]  ;;  %v4232_v19 = vadd.f32 %v12706_v60, %v16268_v49 }
 0x6d0   : > { %v12946_v54 = vpop.f32.mrf.mxu2  ;;  %v4398_v61 = vpop.f32.mrf.mxu3  ;;  %v4879_v2 = vmax.f32 %v4061_v62, %v4623_v57  ;;  %16269 = vst [vmem:[#allocation98_spill] sm:$0xff] %v12958_v9  ;;  %v16271_v57 = vld [vmem:[#allocation63_spill] sm:$0xff] }
 0x6d1   : > { %16267 = vst [vmem:[#allocation42_spill] sm:$0xff] %v12942_v26  ;;  %v4399_v40 = vadd.f32 %v4398_v61, %v4230_v23  ;;  %v12964_v26 = vor.u32 %v9348_v41, %v9013_v17  ;;  %v4235_v8 = vadd.f32 %v12722_v35, %v16271_v57 }
 0x6d3   : > { %v12948_v53 = vpop.f32.mrf.mxu0  ;;  %v4062_v3 = vpop.f32.mrf.mxu1  ;;  %v4624_v61 = vmul.f32 0.01, %v4399_v40  ;;  %16270 = vst [vmem:[#allocation99_spill] sm:$0xff] %v12964_v26 }
 0x6d4   : > { %v4063_v36 = vadd.f32 %v4062_v3, %v3894_v27 }
 0x6d5   : > { %v4880_v60 = vmax.f32 %v4399_v40, %v4624_v61 }
 0x6d6   : > { %v4627_v37 = vmul.f32 0.01, %v4063_v36 }
 0x6d8   : > { %v4883_v0 = vmax.f32 %v4063_v36, %v4627_v37  ;;  %v12956_v16 = vpop.f32.mrf.mxu2  ;;  %v4400_v18 = vpop.f32.mrf.mxu3  ;;  %v3897_v36 = vadd.f32 %v12710_v34, %v16271_v57  ;;  %v16272_v37 = vld [vmem:[#allocation94_spill] sm:$0xff]  ;;  %v16274_v34 = vld [vmem:[#allocation13_spill] sm:$0xff]  ;;  %v9029_v57 = vld [vmem:[%s9678_s24 + $0xe8] sm:$0xf] }
 0x6d9   : > { %v4401_v63 = vadd.f32 %v4400_v18, %v4232_v19 }
 0x6da   : > { %v12960_v23 = vpack.c.bf16 %v4883_v0, %v4879_v2  ;;  %v3899_v2 = vadd.f32 %v12724_v55, %v16274_v34 }
 0x6db   : > { %v12962_v27 = vpop.f32.mrf.mxu0  ;;  %v4065_v3 = vpop.f32.mrf.mxu1  ;;  %v4628_v62 = vmul.f32 0.01, %v4401_v63 }
 0x6dc   : > { %v4066_v18 = vadd.f32 %v4065_v3, %v3897_v36  ;;  %v9351_v36 = vld [vmem:[%s9678_s24 + $0xec] sm:$0xf0] }
 0x6dd   : > { %v4884_v49 = vmax.f32 %v4401_v63, %v4628_v62  ;;  %4442 = vmatmul.bf16.gmra.mxu3 %v16272_v37  ;;  %5885 = vmatmul.bf16.gmra.mxu2 %v12964_v26  ;;  %v9021_v62 = vld [vmem:[%s9678_s24 + $0xe0] sm:$0xf] }
 0x6de   : > { %4104 = vmatmul.bf16.gmra.mxu1 %v16272_v37  ;;  %5707 = vmatmul.bf16.gmra.mxu0 %v12958_v9  ;;  %v4631_v19 = vmul.f32 0.01, %v4066_v18  ;;  %v12990_v9 = vor.u32 %v9351_v36, %v9021_v62  ;;  %v16282_v36 = vld [vmem:[#allocation25_spill] sm:$0xff] }
 0x6df   : > { %v12974_v28 = vpack.c.bf16 %v4884_v49, %v4880_v60  ;;  %v9352_v60 = vld [vmem:[%s9678_s24 + $0xf4] sm:$0xf0]  ;;  %v4237_v49 = vadd.f32 %v12730_v4, %v16274_v34 }
 0x6e0   : > { %v12978_v0 = vpop.f32.mrf.mxu2  ;;  %v4403_v40 = vpop.f32.mrf.mxu3  ;;  %v4887_v37 = vmax.f32 %v4066_v18, %v4631_v19  ;;  %16276 = vst [vmem:[#allocation101_spill] sm:$0xff] %v12990_v9  ;;  %v16279_v19 = vld [vmem:[#allocation46_spill] sm:$0xff] }
 0x6e1   : > { %16273 = vst [vmem:[#allocation51_spill] sm:$0xff] %v12974_v28  ;;  %v4404_v63 = vadd.f32 %v4403_v40, %v4235_v8  ;;  %v4240_v62 = vadd.f32 %v12746_v47, %v16279_v19  ;;  %v9355_v47 = vld [vmem:[%s9678_s24 + $0x10c] sm:$0xf0] }
 0x6e3   : > { %v12980_v17 = vpop.f32.mrf.mxu0  ;;  %v4067_v41 = vpop.f32.mrf.mxu1  ;;  %v4632_v40 = vmul.f32 0.01, %v4404_v63 }
 0x6e4   : > { %v4068_v61 = vadd.f32 %v4067_v41, %v3899_v2  ;;  %v12994_v41 = vor.u32 %v9352_v60, %v9029_v57 }
 0x6e5   : > { %v4888_v4 = vmax.f32 %v4404_v63, %v4632_v40 }
 0x6e6   : > { %v4635_v3 = vmul.f32 0.01, %v4068_v61  ;;  %16278 = vst [vmem:[#allocation43_spill] sm:$0xff] %v12994_v41 }
 0x6e8   : > { %v4891_v35 = vmax.f32 %v4068_v61, %v4635_v3  ;;  %v12988_v55 = vpop.f32.mrf.mxu2  ;;  %v4405_v26 = vpop.f32.mrf.mxu3  ;;  %v3902_v61 = vadd.f32 %v12734_v24, %v16279_v19  ;;  %v16280_v3 = vld [vmem:[#allocation20_spill] sm:$0xff]  ;;  %v9321_v19 = vld [vmem:[%s9678_s24 + $0x4] sm:$0xf] }
 0x6e9   : > { %16275 = vst [vmem:[#allocation23_spill] sm:$0xff] %v12988_v55  ;;  %v4406_v28 = vadd.f32 %v4405_v26, %v4237_v49 }
 0x6ea   : > { %v5055_v8 = vpack.c.bf16 %v4891_v35, %v4887_v37  ;;  %v3904_v37 = vadd.f32 %v12748_v6, %v16282_v36 }
 0x6eb   : > { %v12992_v12 = vpop.f32.mrf.mxu0  ;;  %v4070_v2 = vpop.f32.mrf.mxu1  ;;  %v4636_v18 = vmul.f32 0.01, %v4406_v28 }
 0x6ec   : > { %16277 = vst [vmem:[#allocation102_spill] sm:$0xff] %v12992_v12  ;;  %v4071_v26 = vadd.f32 %v4070_v2, %v3902_v61  ;;  %v8911_v61 = vld [vmem:[%s9678_s24 + $0x10] sm:$0xf0] }
 0x6ed   : > { %v4892_v34 = vmax.f32 %v4406_v28, %v4636_v18  ;;  %4447 = vmatmul.bf16.gmra.mxu3 %v16280_v3  ;;  %5890 = vmatmul.bf16.gmra.mxu2 %v12994_v41  ;;  %v9037_v18 = vld [vmem:[%s9678_s24 + $0x100] sm:$0xf]  ;;  %v9322_v41 = vld [vmem:[%s9678_s24 + $0xc] sm:$0xf] }
 0x6ee   : > { %4109 = vmatmul.bf16.gmra.mxu1 %v16280_v3  ;;  %5712 = vmatmul.bf16.gmra.mxu0 %v12990_v9  ;;  %v4639_v49 = vmul.f32 0.01, %v4071_v26  ;;  %v9045_v3 = vld [vmem:[%s9678_s24 + $0x108] sm:$0xf]  ;;  %v8919_v9 = vld [vmem:[%s9678_s24 + $0x18] sm:$0xf0] }
 0x6ef   : > { %v13004_v24 = vpack.c.bf16 %v4892_v34, %v4888_v4  ;;  %v9356_v34 = vld [vmem:[%s9678_s24 + $0x114] sm:$0xf0]  ;;  %v13034_v55 = vor.u32 %v9322_v41, %v8919_v9  ;;  %v16290_v41 = vld [vmem:[#allocation135_spill] sm:$0xff] }
 0x6f0   : > { %v13008_v63 = vpop.f32.mrf.mxu2  ;;  %v4408_v28 = vpop.f32.mrf.mxu3  ;;  %v4895_v4 = vmax.f32 %v4071_v26, %v4639_v49 }
 0x6f1   : > { %16281 = vst [vmem:[#allocation40_spill] sm:$0xff] %v13004_v24  ;;  %v4409_v35 = vadd.f32 %v4408_v28, %v4240_v62  ;;  %v4242_v24 = vadd.f32 %v12760_v39, %v16282_v36  ;;  %v16285_v62 = vld [vmem:[#allocation113_spill] sm:$0xff] }
 0x6f2   : > { %16283 = vst [vmem:[#allocation104_spill] sm:$0xff] %v13008_v63  ;;  %v3907_v28 = vadd.f32 %v12764_v38, %v16285_v62  ;;  %v13028_v63 = vor.u32 %v9321_v19, %v8911_v61 }
 0x6f3   : > { %v13010_v57 = vpop.f32.mrf.mxu0  ;;  %v4072_v60 = vpop.f32.mrf.mxu1  ;;  %v4640_v12 = vmul.f32 0.01, %v4409_v35  ;;  %16289 = vst [vmem:[#allocation108_spill] sm:$0xff] %v13034_v55 }
 0x6f4   : > { %16284 = vst [vmem:[#allocation105_spill] sm:$0xff] %v13010_v57  ;;  %v4073_v40 = vadd.f32 %v4072_v60, %v3904_v37  ;;  %v13026_v60 = vor.u32 %v9355_v47, %v9037_v18 }
 0x6f5   : > { %16287 = vst [vmem:[#allocation60_spill] sm:$0xff] %v13028_v63  ;;  %v4896_v36 = vmax.f32 %v4409_v35, %v4640_v12  ;;  %v3909_v12 = vadd.f32 %v12781_v32, %v16290_v41  ;;  %v9325_v32 = vld [vmem:[%s9678_s24 + $0x24] sm:$0xf] }
 0x6f6   : > { %v4643_v2 = vmul.f32 0.01, %v4073_v40  ;;  %16286 = vst [vmem:[#allocation16_spill] sm:$0xff] %v13026_v60 }
 0x6f8   : > { %v4899_v6 = vmax.f32 %v4073_v40, %v4643_v2  ;;  %v13024_v57 = vpop.f32.mrf.mxu2  ;;  %v4410_v37 = vpop.f32.mrf.mxu3  ;;  %v13032_v2 = vor.u32 %v9356_v34, %v9045_v3  ;;  %v9053_v3 = vld [vmem:[%s9678_s24 + $0x120] sm:$0xf]  ;;  %v9061_v34 = vld [vmem:[%s9678_s24 + $0x128] sm:$0xf] }
 0x6f9   : > { %v4411_v26 = vadd.f32 %v4410_v37, %v4242_v24  ;;  %v9360_v37 = vld [vmem:[%s9678_s24 + $0x134] sm:$0xf0] }
 0x6fa   : > { %v5059_v11 = vpack.c.bf16 %v4899_v6, %v4895_v4  ;;  %16288 = vst [vmem:[#allocation107_spill] sm:$0xff] %v13032_v2  ;;  %v9359_v4 = vld [vmem:[%s9678_s24 + $0x12c] sm:$0xf0]  ;;  %v8927_v6 = vld [vmem:[%s9678_s24 + $0x30] sm:$0xf0] }
 0x6fb   : > { %v4075_v49 = vpop.f32.mrf.mxu1  ;;  %v13030_v40 = vpop.f32.mrf.mxu0  ;;  %v4644_v38 = vmul.f32 0.01, %v4411_v26 }
 0x6fc   : > { %v4076_v39 = vadd.f32 %v4075_v49, %v3907_v28  ;;  %6559 = vmatpush.bf16.msra.mxu2 %v5059_v11  ;;  %v4245_v11 = vadd.f32 %v12779_v46, %v16285_v62  ;;  %v8935_v49 = vld [vmem:[%s9678_s24 + $0x38] sm:$0xf0] }
 0x6fd   : > { %v4900_v18 = vmax.f32 %v4411_v26, %v4644_v38  ;;  %5895 = vmatmul.bf16.gmra.mxu2 %v13032_v2  ;;  %5944 = vmatmul.bf16.vlgmr.msra.gmra.mxu3 %v13034_v55  ;;  %v9326_v26 = vld [vmem:[%s9678_s24 + $0x2c] sm:$0xf] }
 0x6fe   : > { %5717 = vmatmul.bf16.gmra.mxu0 %v13026_v60  ;;  %5766 = vmatmul.bf16.vlgmr.msra.gmra.mxu1 %v13028_v63  ;;  %v16291_v38 = vld [vmem:[#allocation76_spill] sm:$0xff] }
 0x6ff   : > { %6470 = vmatpush.bf16.msra.mxu1 %v12758_v21  ;;  %v13043_v9 = vpack.c.bf16 %v4900_v18, %v4896_v36 }
 0x700   : > { %6560 = vmatpush.bf16.msra.mxu2 %v5055_v8  ;;  %v4413_v24 = vpop.f32.mrf.mxu3  ;;  %v13047_v35 = vpop.f32.mrf.mxu2  ;;  %v4647_v8 = vmul.f32 0.01, %v4076_v39 }
 0x701   : > { %v4414_v47 = vadd.f32 %v4413_v24, %v4245_v11  ;;  %v13069_v11 = vor.u32 %v9359_v4, %v9053_v3  ;;  %v16297_v4 = vld [vmem:[#allocation65_spill] sm:$0xff] }
 0x702   : > { %v4903_v62 = vmax.f32 %v4076_v39, %v4647_v8  ;;  %v13071_v39 = vor.u32 %v9325_v32, %v8927_v6  ;;  %v13077_v8 = vor.u32 %v9360_v37, %v9061_v34  ;;  %v16299_v6 = vld [vmem:[#allocation80_spill] sm:$0xff] }
 0x703   : > { %v4077_v19 = vpop.f32.mrf.mxu1  ;;  %v13049_v21 = vpop.f32.mrf.mxu0  ;;  %6471 = vmatpush.bf16.msra.mxu1 %v12732_v44  ;;  %v4247_v44 = vadd.f32 %v12793_v30, %v16290_v41  ;;  %16292 = vst [vmem:[#allocation47_spill] sm:$0xff] %v13069_v11  ;;  %v13079_v30 = vor.u32 %v9326_v26, %v8935_v49  ;;  %v16296_v41 = vld [vmem:[#allocation27_spill] sm:$0xff]  ;;  %v16300_v49 = vld [vmem:[#allocation54_spill] sm:$0xff] }
 0x704   : > { %v4078_v46 = vadd.f32 %v4077_v19, %v3909_v12  ;;  %6561 = vmatpush.bf16.msra.mxu2 %v12960_v23  ;;  %v3912_v23 = vadd.f32 %v12799_v13, %v16291_v38  ;;  %16293 = vst [vmem:[#allocation58_spill] sm:$0xff] %v13071_v39 }
 0x705   : > { %16294 = vst [vmem:[#allocation22_spill] sm:$0xff] %v13077_v8 }
 0x706   : > { %v4651_v61 = vmul.f32 0.01, %v4078_v46  ;;  %16295 = vst [vmem:[#allocation61_spill] sm:$0xff] %v13079_v30 }
 0x707   : > { %6472 = vmatpush.bf16.msra.mxu1 %v12708_v7  ;;  %v4648_v7 = vmul.f32 0.01, %v4414_v47 }
 0x708   : > { %v4907_v28 = vmax.f32 %v4078_v46, %v4651_v61  ;;  %6562 = vmatpush.bf16.msra.mxu2 %v12928_v14  ;;  %v4415_v36 = vpop.f32.mrf.mxu3  ;;  %v13067_v18 = vpop.f32.mrf.mxu2 }
 0x709   : > { %v4416_v14 = vadd.f32 %v4415_v36, %v4247_v44  ;;  %v4904_v61 = vmax.f32 %v4414_v47, %v4648_v7  ;;  %v3914_v47 = vadd.f32 %v12817_v1, %v16299_v6  ;;  %v9329_v1 = vld [vmem:[%s9678_s24 + $0x44] sm:$0xf]  ;;  %v8943_v36 = vld [vmem:[%s9678_s24 + $0x50] sm:$0xf0]  ;;  %v9077_v7 = vld [vmem:[%s9678_s24 + $0x148] sm:$0xf] }
 0x70a   : > { %v13073_v12 = vpack.c.bf16 %v4907_v28, %v4903_v62 }
 0x70b   : > { %v4080_v24 = vpop.f32.mrf.mxu1  ;;  %v13075_v19 = vpop.f32.mrf.mxu0  ;;  %6473 = vmatpush.bf16.msra.mxu1 %v16296_v41  ;;  %v4652_v46 = vmul.f32 0.01, %v4416_v14  ;;  %v16301_v41 = vld [vmem:[#allocation38_spill] sm:$0xff] }
 0x70c   : > { %v4081_v13 = vadd.f32 %v4080_v24, %v3912_v23  ;;  %6563 = vmatpush.bf16.msra.mxu2 %v12898_v20  ;;  %v4250_v20 = vadd.f32 %v12815_v56, %v16291_v38  ;;  %v9069_v38 = vld [vmem:[%s9678_s24 + $0x140] sm:$0xf]  ;;  %v9363_v23 = vld [vmem:[%s9678_s24 + $0x14c] sm:$0xf0] }
 0x70d   : > { %v4908_v3 = vmax.f32 %v4416_v14, %v4652_v46  ;;  %5900 = vmatmul.bf16.gmra.mxu2 %v13077_v8  ;;  %5949 = vmatmul.bf16.gmra.mxu3 %v13079_v30  ;;  %v9364_v46 = vld [vmem:[%s9678_s24 + $0x154] sm:$0xf0] }
 0x70e   : > { %5722 = vmatmul.bf16.gmra.mxu0 %v13069_v11  ;;  %5771 = vmatmul.bf16.gmra.mxu1 %v13071_v39 }
 0x70f   : > { %6474 = vmatpush.bf16.msra.mxu1 %v16297_v4  ;;  %v13091_v32 = vpack.c.bf16 %v4908_v3, %v4904_v61  ;;  %v9330_v61 = vld [vmem:[%s9678_s24 + $0x4c] sm:$0xf]  ;;  %v8951_v3 = vld [vmem:[%s9678_s24 + $0x58] sm:$0xf0]  ;;  %v13111_v4 = vpop.permute.xlu2 %5266 }
 0x710   : > { %6564 = vmatpush.bf16.msra.mxu2 %v12866_v25  ;;  %v4418_v34 = vpop.f32.mrf.mxu3  ;;  %v13095_v62 = vpop.f32.mrf.mxu2  ;;  %v4655_v25 = vmul.f32 0.01, %v4081_v13  ;;  %16302 = vst [vmem:[#allocation111_spill] sm:$0xff] %v13111_v4 }
 0x711   : > { %16298 = vst [vmem:[#allocation110_spill] sm:$0xff] %v13091_v32  ;;  %v4419_v28 = vadd.f32 %v4418_v34, %v4250_v20  ;;  %v16303_v20 = vld [vmem:[#allocation67_spill] sm:$0xff]  ;;  %v13127_v32 = vor.u32 %v9364_v46, %v9077_v7 }
 0x712   : > { %v4911_v14 = vmax.f32 %v4081_v13, %v4655_v25  ;;  %v13119_v13 = vor.u32 %v9363_v23, %v9069_v38  ;;  %v13121_v25 = vor.u32 %v9329_v1, %v8943_v36  ;;  %v13136_v1 = vpop.permute.xlu0 %5341  ;;  %v4255_v36 = vadd.f32 %v12850_v31, %v16303_v20 }
 0x713   : > { %v4082_v37 = vpop.f32.mrf.mxu1  ;;  %v13097_v26 = vpop.f32.mrf.mxu0  ;;  %6475 = vmatpush.bf16.msra.mxu1 %v16300_v49  ;;  %16306 = vst [vmem:[#allocation134_spill] sm:$0xff] %v13127_v32 }
 0x714   : > { %v4083_v56 = vadd.f32 %v4082_v37, %v3914_v47  ;;  %6565 = vmatpush.bf16.msra.mxu2 %v12833_v45  ;;  %v4252_v45 = vadd.f32 %v12829_v58, %v16299_v6  ;;  %v3917_v47 = vadd.f32 %v12835_v59, %v16303_v20  ;;  %16304 = vst [vmem:[#allocation12_spill] sm:$0xff] %v13119_v13  ;;  %v16308_v6 = vld [vmem:[#allocation17_spill] sm:$0xff]  ;;  %v9085_v20 = vld [vmem:[%s9678_s24 + $0x160] sm:$0xf] }
 0x715   : > { %16305 = vst [vmem:[#allocation9_spill] sm:$0xff] %v13121_v25  ;;  %v13129_v58 = vor.u32 %v9330_v61, %v8951_v3 }
 0x716   : > { %v4659_v44 = vmul.f32 0.01, %v4083_v56  ;;  %16309 = vst [vmem:[#allocation115_spill] sm:$0xff] %v13136_v1  ;;  %v9334_v1 = vld [vmem:[%s9678_s24 + $0x6c] sm:$0xf] }
 0x717   : > { %6476 = vmatpush.bf16.msra.mxu1 %v16301_v41  ;;  %16307 = vst [vmem:[#allocation114_spill] sm:$0xff] %v13129_v58 }
 0x718   : > { %v4915_v24 = vmax.f32 %v4083_v56, %v4659_v44  ;;  %6566 = vmatpush.bf16.msra.mxu2 %v12797_v42  ;;  %v4420_v34 = vpop.f32.mrf.mxu3  ;;  %v13117_v37 = vpop.f32.mrf.mxu2  ;;  %v4656_v42 = vmul.f32 0.01, %v4419_v28 }
 0x719   : > { %v4421_v56 = vadd.f32 %v4420_v34, %v4252_v45  ;;  %v13148_v34 = vpop.permute.xlu2 %5251 }
 0x71a   : > { %v13123_v49 = vpack.c.bf16 %v4915_v24, %v4911_v14  ;;  %v4912_v38 = vmax.f32 %v4419_v28, %v4656_v42  ;;  %v16311_v14 = vld [vmem:[#allocation87_spill] sm:$0xff]  ;;  %16312 = vst [vmem:[#allocation117_spill] sm:$0xff] %v13148_v34  ;;  %v9367_v42 = vld [vmem:[%s9678_s24 + $0x16c] sm:$0xf0] }
 0x71b   : > { %v4085_v44 = vpop.f32.mrf.mxu1  ;;  %v13125_v41 = vpop.f32.mrf.mxu0  ;;  %6477 = vmatpush.bf16.msra.mxu1 %v16308_v6  ;;  %v4660_v30 = vmul.f32 0.01, %v4421_v56  ;;  %v3919_v28 = vadd.f32 %v12852_v50, %v16311_v14  ;;  %v9093_v50 = vld [vmem:[%s9678_s24 + $0x168] sm:$0xf] }
 0x71c   : > { %v4086_v59 = vadd.f32 %v4085_v44, %v3917_v47  ;;  %v8959_v44 = vld [vmem:[%s9678_s24 + $0x70] sm:$0xf0] }
 0x71d   : > { %v4916_v23 = vmax.f32 %v4421_v56, %v4660_v30  ;;  %5905 = vmatmul.bf16.gmra.mxu2 %v13127_v32  ;;  %5954 = vmatmul.bf16.gmra.mxu3 %v13129_v58  ;;  %v9333_v56 = vld [vmem:[%s9678_s24 + $0x64] sm:$0xf]  ;;  %v8967_v58 = vld [vmem:[%s9678_s24 + $0x78] sm:$0xf0] }
 0x71e   : > { %5727 = vmatmul.bf16.gmra.mxu0 %v13119_v13  ;;  %5776 = vmatmul.bf16.gmra.mxu1 %v13121_v25  ;;  %v4663_v45 = vmul.f32 0.01, %v4086_v59  ;;  %v13164_v25 = vor.u32 %v9367_v42, %v9085_v20  ;;  %v13166_v13 = vor.u32 %v9333_v56, %v8959_v44 }
 0x71f   : > { %v13140_v7 = vpack.c.bf16 %v4916_v23, %v4912_v38  ;;  %v9368_v23 = vld [vmem:[%s9678_s24 + $0x174] sm:$0xf0] }
 0x720   : > { %v4423_v30 = vpop.f32.mrf.mxu3  ;;  %v13144_v24 = vpop.f32.mrf.mxu2  ;;  %v4919_v6 = vmax.f32 %v4086_v59, %v4663_v45  ;;  %16314 = vst [vmem:[#allocation109_spill] sm:$0xff] %v13164_v25  ;;  %v13172_v8 = vor.u32 %v9368_v23, %v9093_v50 }
 0x721   : > { %16310 = vst [vmem:[#allocation116_spill] sm:$0xff] %v13140_v7  ;;  %v4424_v46 = vadd.f32 %v4423_v30, %v4255_v36  ;;  %v4257_v36 = vadd.f32 %v12862_v10, %v16311_v14  ;;  %v16313_v30 = vld [vmem:[#allocation74_spill] sm:$0xff]  ;;  %v13174_v10 = vor.u32 %v9334_v1, %v8967_v58  ;;  %v13180_v20 = vpop.permute.xlu2 %5336  ;;  %v16321_v1 = vld [vmem:[#allocation35_spill] sm:$0xff] }
 0x722   : > { %v3922_v32 = vadd.f32 %v12868_v48, %v16313_v30  ;;  %16315 = vst [vmem:[#allocation89_spill] sm:$0xff] %v13166_v13  ;;  %v13176_v48 = vpop.permute.xlu0 %5256  ;;  %v3924_v44 = vadd.f32 %v12884_v15, %v16321_v1  ;;  %v9337_v15 = vld [vmem:[%s9678_s24 + $0x84] sm:$0xf] }
 0x723   : > { %v4087_v61 = vpop.f32.mrf.mxu1  ;;  %v13146_v3 = vpop.f32.mrf.mxu0  ;;  %v4664_v59 = vmul.f32 0.01, %v4424_v46  ;;  %16316 = vst [vmem:[#allocation118_spill] sm:$0xff] %v13172_v8 }
 0x724   : > { %v4088_v47 = vadd.f32 %v4087_v61, %v3919_v28  ;;  %16317 = vst [vmem:[#allocation81_spill] sm:$0xff] %v13174_v10 }
 0x725   : > { %16318 = vst [vmem:[#allocation68_spill] sm:$0xff] %v13176_v48  ;;  %v4920_v42 = vmax.f32 %v4424_v46, %v4664_v59  ;;  %v9371_v59 = vld [vmem:[%s9678_s24 + $0x18c] sm:$0xf0] }
 0x726   : > { %v4667_v31 = vmul.f32 0.01, %v4088_v47  ;;  %16319 = vst [vmem:[#allocation120_spill] sm:$0xff] %v13180_v20 }
 0x728   : > { %v4923_v38 = vmax.f32 %v4088_v47, %v4667_v31  ;;  %v4425_v28 = vpop.f32.mrf.mxu3  ;;  %v13162_v61 = vpop.f32.mrf.mxu2 }
 0x729   : > { %v4426_v45 = vadd.f32 %v4425_v28, %v4257_v36  ;;  %v9101_v28 = vld [vmem:[%s9678_s24 + $0x180] sm:$0xf] }
 0x72a   : > { %v13168_v7 = vpack.c.bf16 %v4923_v38, %v4919_v6  ;;  %v13214_v11 = vor.u32 %v9371_v59, %v9101_v28 }
 0x72b   : > { %v4090_v47 = vpop.f32.mrf.mxu1  ;;  %v13170_v31 = vpop.f32.mrf.mxu0  ;;  %v4668_v39 = vmul.f32 0.01, %v4426_v45 }
 0x72c   : > { %v4091_v14 = vadd.f32 %v4090_v47, %v3922_v32  ;;  %v4260_v32 = vadd.f32 %v12882_v33, %v16313_v30  ;;  %v13194_v33 = vpop.permute.xlu1 %5261  ;;  %v8975_v47 = vld [vmem:[%s9678_s24 + $0x90] sm:$0xf0]  ;;  %16326 = vst [vmem:[#allocation124_spill] sm:$0xff] %v13214_v11 }
 0x72d   : > { %v4924_v56 = vmax.f32 %v4426_v45, %v4668_v39  ;;  %5910 = vmatmul.bf16.gmra.mxu2 %v13172_v8  ;;  %5959 = vmatmul.bf16.gmra.mxu3 %v13174_v10  ;;  %16322 = vst [vmem:[#allocation70_spill] sm:$0xff] %v13194_v33  ;;  %v13198_v45 = vpop.permute.xlu0 %5241  ;;  %v8983_v10 = vld [vmem:[%s9678_s24 + $0x98] sm:$0xf0]  ;;  %v13206_v8 = vpop.permute.xlu2 %5321  ;;  %v13216_v55 = vor.u32 %v9337_v15, %v8975_v47  ;;  %v16333_v15 = vld [vmem:[#allocation19_spill] sm:$0xff] }
 0x72e   : > { %5732 = vmatmul.bf16.gmra.mxu0 %v13164_v25  ;;  %5781 = vmatmul.bf16.gmra.mxu1 %v13166_v13  ;;  %v4671_v23 = vmul.f32 0.01, %v4091_v14  ;;  %16323 = vst [vmem:[#allocation48_spill] sm:$0xff] %v13198_v45 }
 0x72f   : > { %v13186_v58 = vpack.c.bf16 %v4924_v56, %v4920_v42  ;;  %v9109_v42 = vld [vmem:[%s9678_s24 + $0x188] sm:$0xf]  ;;  %16324 = vst [vmem:[#allocation123_spill] sm:$0xff] %v13206_v8 }
 0x730   : > { %v4428_v50 = vpop.f32.mrf.mxu3  ;;  %v13190_v46 = vpop.f32.mrf.mxu2  ;;  %v4927_v56 = vmax.f32 %v4091_v14, %v4671_v23  ;;  %16327 = vst [vmem:[#allocation77_spill] sm:$0xff] %v13216_v55 }
 0x731   : > { %16320 = vst [vmem:[#allocation121_spill] sm:$0xff] %v13186_v58  ;;  %v4429_v39 = vadd.f32 %v4428_v50, %v4260_v32  ;;  %v9372_v32 = vld [vmem:[%s9678_s24 + $0x194] sm:$0xf0]  ;;  %v9338_v50 = vld [vmem:[%s9678_s24 + $0x8c] sm:$0xf] }
 0x732   : > { %v13222_v8 = vor.u32 %v9372_v32, %v9109_v42 }
 0x733   : > { %v4092_v6 = vpop.f32.mrf.mxu1  ;;  %v13192_v38 = vpop.f32.mrf.mxu0  ;;  %v4672_v23 = vmul.f32 0.01, %v4429_v39 }
 0x734   : > { %v4093_v36 = vadd.f32 %v4092_v6, %v3924_v44  ;;  %v4262_v44 = vadd.f32 %v12894_v29, %v16321_v1  ;;  %v16325_v6 = vld [vmem:[#allocation45_spill] sm:$0xff]  ;;  %16328 = vst [vmem:[#allocation66_spill] sm:$0xff] %v13222_v8  ;;  %v13224_v29 = vor.u32 %v9338_v50, %v8983_v10  ;;  %v13228_v28 = vpop.permute.xlu1 %5346 }
 0x735   : > { %v3927_v13 = vadd.f32 %v12900_v5, %v16325_v6  ;;  %16330 = vst [vmem:[#allocation127_spill] sm:$0xff] %v13228_v28  ;;  %v4928_v59 = vmax.f32 %v4429_v39, %v4672_v23  ;;  %v3929_v39 = vadd.f32 %v12916_v22, %v16333_v15  ;;  %v9125_v22 = vld [vmem:[%s9678_s24 + $0x1a8] sm:$0xf] }
 0x736   : > { %v4675_v30 = vmul.f32 0.01, %v4093_v36  ;;  %16329 = vst [vmem:[#allocation126_spill] sm:$0xff] %v13224_v29 }
 0x738   : > { %v4931_v20 = vmax.f32 %v4093_v36, %v4675_v30  ;;  %v4430_v25 = vpop.f32.mrf.mxu3  ;;  %v13212_v58 = vpop.f32.mrf.mxu2 }
 0x739   : > { %v4431_v36 = vadd.f32 %v4430_v25, %v4262_v44  ;;  %v13232_v25 = vpop.permute.xlu0 %5326 }
 0x73a   : > { %v13218_v14 = vpack.c.bf16 %v4931_v20, %v4927_v56  ;;  %16331 = vst [vmem:[#allocation8_spill] sm:$0xff] %v13232_v25  ;;  %v9376_v25 = vld [vmem:[%s9678_s24 + $0x1b4] sm:$0xf0] }
 0x73b   : > { %v4095_v30 = vpop.f32.mrf.mxu1  ;;  %v13220_v2 = vpop.f32.mrf.mxu0  ;;  %v4676_v5 = vmul.f32 0.01, %v4431_v36 }
 0x73c   : > { %v4096_v1 = vadd.f32 %v4095_v30, %v3927_v13  ;;  %v4265_v13 = vadd.f32 %v12914_v43, %v16325_v6  ;;  %v9117_v6 = vld [vmem:[%s9678_s24 + $0x1a0] sm:$0xf]  ;;  %v9375_v30 = vld [vmem:[%s9678_s24 + $0x1ac] sm:$0xf0] }
 0x73d   : > { %v4932_v20 = vmax.f32 %v4431_v36, %v4676_v5  ;;  %5915 = vmatmul.bf16.gmra.mxu2 %v13222_v8  ;;  %5964 = vmatmul.bf16.gmra.mxu3 %v13224_v29  ;;  %v13244_v36 = vpop.permute.xlu2 %5236  ;;  %v9341_v5 = vld [vmem:[%s9678_s24 + $0xa4] sm:$0xf]  ;;  %v9342_v29 = vld [vmem:[%s9678_s24 + $0xac] sm:$0xf]  ;;  %v8999_v8 = vld [vmem:[%s9678_s24 + $0xb8] sm:$0xf0] }
 0x73e   : > { %5737 = vmatmul.bf16.gmra.mxu0 %v13214_v11  ;;  %5786 = vmatmul.bf16.gmra.mxu1 %v13216_v55  ;;  %v4679_v44 = vmul.f32 0.01, %v4096_v1  ;;  %16334 = vst [vmem:[#allocation129_spill] sm:$0xff] %v13244_v36 }
 0x73f   : > { %v13236_v10 = vpack.c.bf16 %v4932_v20, %v4928_v59  ;;  %v8991_v59 = vld [vmem:[%s9678_s24 + $0xb0] sm:$0xf0] }
 0x740   : > { %v4433_v47 = vpop.f32.mrf.mxu3  ;;  %v13240_v42 = vpop.f32.mrf.mxu2  ;;  %v4935_v20 = vmax.f32 %v4096_v1, %v4679_v44  ;;  %v13262_v11 = vor.u32 %v9341_v5, %v8991_v59 }
 0x741   : > { %16332 = vst [vmem:[#allocation14_spill] sm:$0xff] %v13236_v10  ;;  %v4434_v56 = vadd.f32 %v4433_v47, %v4265_v13  ;;  %v13254_v13 = vpop.permute.xlu1 %5331  ;;  %v4267_v47 = vadd.f32 %v12924_v51, %v16333_v15  ;;  %v13272_v60 = vpop.permute.xlu0 %5311  ;;  %v16341_v15 = vld [vmem:[#allocation57_spill] sm:$0xff] }
 0x742   : > { %16335 = vst [vmem:[#allocation130_spill] sm:$0xff] %v13254_v13  ;;  %v13270_v13 = vor.u32 %v9342_v29, %v8999_v8  ;;  %v4270_v29 = vadd.f32 %v12946_v54, %v16341_v15 }
 0x743   : > { %v4097_v32 = vpop.f32.mrf.mxu1  ;;  %v13242_v50 = vpop.f32.mrf.mxu0  ;;  %16337 = vst [vmem:[#allocation15_spill] sm:$0xff] %v13262_v11  ;;  %v4680_v63 = vmul.f32 0.01, %v4434_v56 }
 0x744   : > { %v4098_v23 = vadd.f32 %v4097_v32, %v3929_v39  ;;  %v13260_v32 = vor.u32 %v9375_v30, %v9117_v6  ;;  %16339 = vst [vmem:[#allocation133_spill] sm:$0xff] %v13270_v13  ;;  %v3932_v6 = vadd.f32 %v12930_v52, %v16341_v15  ;;  %v9379_v15 = vld [vmem:[%s9678_s24 + $0x1cc] sm:$0xf0] }
 0x745   : > { %16340 = vst [vmem:[#allocation24_spill] sm:$0xff] %v13272_v60 }
 0x746   : > { %v4683_v43 = vmul.f32 0.01, %v4098_v23  ;;  %16336 = vst [vmem:[#allocation53_spill] sm:$0xff] %v13260_v32 }
 0x748   : > { %v4939_v28 = vmax.f32 %v4098_v23, %v4683_v43  ;;  %v4435_v55 = vpop.f32.mrf.mxu3  ;;  %v13258_v39 = vpop.f32.mrf.mxu2  ;;  %v13268_v43 = vor.u32 %v9376_v25, %v9125_v22  ;;  %v16344_v25 = vld [vmem:[#allocation26_spill] sm:$0xff] }
 0x749   : > { %v4436_v1 = vadd.f32 %v4435_v55, %v4267_v47  ;;  %v4936_v55 = vmax.f32 %v4434_v56, %v4680_v63  ;;  %v3934_v5 = vadd.f32 %v12948_v53, %v16344_v25  ;;  %v13292_v54 = vpop.permute.xlu1 %5246  ;;  %v9345_v53 = vld [vmem:[%s9678_s24 + $0xc4] sm:$0xf] }
 0x74a   : > { %v13264_v10 = vpack.c.bf16 %v4939_v28, %v4935_v20  ;;  %16338 = vst [vmem:[#allocation132_spill] sm:$0xff] %v13268_v43  ;;  %v13278_v28 = vpop.permute.xlu2 %5221 }
 0x74b   : > { %v4100_v44 = vpop.f32.mrf.mxu1  ;;  %v13266_v23 = vpop.f32.mrf.mxu0  ;;  %v4684_v51 = vmul.f32 0.01, %v4436_v1  ;;  %16342 = vst [vmem:[#allocation29_spill] sm:$0xff] %v13278_v28 }
 0x74c   : > { %v4101_v8 = vadd.f32 %v4100_v44, %v3932_v6  ;;  %16345 = vst [vmem:[#allocation138_spill] sm:$0xff] %v13292_v54  ;;  %v13296_v6 = vpop.permute.xlu0 %5226 }
 0x74d   : > { %v4940_v30 = vmax.f32 %v4436_v1, %v4684_v51  ;;  %5920 = vmatmul.bf16.gmra.mxu2 %v13268_v43  ;;  %5969 = vmatmul.bf16.gmra.mxu3 %v13270_v13  ;;  %v9133_v51 = vld [vmem:[%s9678_s24 + $0x1c0] sm:$0xf]  ;;  %16346 = vst [vmem:[#allocation33_spill] sm:$0xff] %v13296_v6 }
 0x74e   : > { %5742 = vmatmul.bf16.gmra.mxu0 %v13260_v32  ;;  %5791 = vmatmul.bf16.gmra.mxu1 %v13262_v11  ;;  %v4687_v47 = vmul.f32 0.01, %v4101_v8  ;;  %v9015_v11 = vld [vmem:[%s9678_s24 + $0xd8] sm:$0xf0] }
 0x74f   : > { %v13284_v52 = vpack.c.bf16 %v4940_v30, %v4936_v55  ;;  %v9007_v55 = vld [vmem:[%s9678_s24 + $0xd0] sm:$0xf0]  ;;  %v9141_v30 = vld [vmem:[%s9678_s24 + $0x1c8] sm:$0xf] }
 0x750   : > { %v4438_v63 = vpop.f32.mrf.mxu3  ;;  %v13288_v56 = vpop.f32.mrf.mxu2  ;;  %v4943_v13 = vmax.f32 %v4101_v8, %v4687_v47  ;;  %v13312_v4 = vor.u32 %v9345_v53, %v9007_v55  ;;  %v16358_v55 = vld [vmem:[#allocation59_spill] sm:$0xff] }
 0x751   : > { %16343 = vst [vmem:[#allocation137_spill] sm:$0xff] %v13284_v52  ;;  %v4439_v59 = vadd.f32 %v4438_v63, %v4270_v29  ;;  %v9380_v29 = vld [vmem:[%s9678_s24 + $0x1d4] sm:$0xf0]  ;;  %v9346_v63 = vld [vmem:[%s9678_s24 + $0xcc] sm:$0xf]  ;;  %v13310_v52 = vor.u32 %v9379_v15, %v9133_v51  ;;  %v13326_v51 = vpop.permute.xlu1 %5231 }
 0x752   : > { %v13304_v32 = vpop.permute.xlu2 %5306  ;;  %16350 = vst [vmem:[#allocation90_spill] sm:$0xff] %v13312_v4 }
 0x753   : > { %v4102_v22 = vpop.f32.mrf.mxu1  ;;  %v13290_v20 = vpop.f32.mrf.mxu0  ;;  %16347 = vst [vmem:[#allocation83_spill] sm:$0xff] %v13304_v32  ;;  %v4688_v48 = vmul.f32 0.01, %v4439_v59  ;;  %v13320_v32 = vor.u32 %v9346_v63, %v9015_v11 }
 0x754   : > { %v4103_v1 = vadd.f32 %v4102_v22, %v3934_v5  ;;  %v4272_v5 = vadd.f32 %v12956_v16, %v16344_v25  ;;  %16349 = vst [vmem:[#allocation112_spill] sm:$0xff] %v13310_v52  ;;  %v16354_v16 = vld [vmem:[#allocation32_spill] sm:$0xff]  ;;  %v13330_v15 = vpop.permute.xlu0 %5211 }
 0x755   : > { %16353 = vst [vmem:[#allocation49_spill] sm:$0xff] %v13320_v32  ;;  %v3937_v25 = vadd.f32 %v12962_v27, %v16354_v16  ;;  %v4275_v27 = vadd.f32 %v12978_v0, %v16354_v16  ;;  %v9383_v16 = vld [vmem:[%s9678_s24 + $0x1ec] sm:$0xf0] }
 0x756   : > { %v4691_v44 = vmul.f32 0.01, %v4103_v1  ;;  %16355 = vst [vmem:[#allocation106_spill] sm:$0xff] %v13326_v51 }
 0x757   : > { %16356 = vst [vmem:[#allocation52_spill] sm:$0xff] %v13330_v15 }
 0x758   : > { %v4947_v43 = vmax.f32 %v4103_v1, %v4691_v44  ;;  %v4440_v22 = vpop.f32.mrf.mxu3  ;;  %v13308_v60 = vpop.f32.mrf.mxu2  ;;  %v13318_v44 = vor.u32 %v9380_v29, %v9141_v30 }
 0x759   : > { %16348 = vst [vmem:[#allocation139_spill] sm:$0xff] %v13308_v60  ;;  %v4441_v8 = vadd.f32 %v4440_v22, %v4272_v5 }
 0x75a   : > { %v13314_v33 = vpack.c.bf16 %v4947_v43, %v4943_v13  ;;  %16352 = vst [vmem:[#allocation73_spill] sm:$0xff] %v13318_v44  ;;  %v4944_v13 = vmax.f32 %v4439_v59, %v4688_v48 }
 0x75b   : > { %v4105_v47 = vpop.f32.mrf.mxu1  ;;  %v13316_v1 = vpop.f32.mrf.mxu0  ;;  %v4692_v34 = vmul.f32 0.01, %v4441_v8 }
 0x75c   : > { %16351 = vst [vmem:[#allocation34_spill] sm:$0xff] %v13316_v1  ;;  %v4106_v11 = vadd.f32 %v4105_v47, %v3937_v25  ;;  %v9149_v47 = vld [vmem:[%s9678_s24 + $0x1e0] sm:$0xf]  ;;  %v9349_v25 = vld [vmem:[%s9678_s24 + $0xe4] sm:$0xf]  ;;  %v13370_v60 = vpop.permute.xlu0 %5296 }
 0x75d   : > { %v4948_v43 = vmax.f32 %v4441_v8, %v4692_v34  ;;  %5925 = vmatmul.bf16.gmra.mxu2 %v13318_v44  ;;  %5974 = vmatmul.bf16.gmra.mxu3 %v13320_v32  ;;  %v3939_v34 = vadd.f32 %v12980_v17, %v16358_v55  ;;  %v13342_v8 = vpop.permute.xlu2 %5291  ;;  %v9157_v17 = vld [vmem:[%s9678_s24 + $0x1e8] sm:$0xf]  ;;  %v9384_v44 = vld [vmem:[%s9678_s24 + $0x1f4] sm:$0xf0]  ;;  %16369 = vst [vmem:[#allocation94_spill] sm:$0xff] %v13370_v60 }
 0x75e   : > { %5747 = vmatmul.bf16.gmra.mxu0 %v13310_v52  ;;  %5796 = vmatmul.bf16.gmra.mxu1 %v13312_v4  ;;  %v4695_v5 = vmul.f32 0.01, %v4106_v11  ;;  %16361 = vst [vmem:[#allocation56_spill] sm:$0xff] %v13342_v8  ;;  %v9350_v4 = vld [vmem:[%s9678_s24 + $0xec] sm:$0xf] }
 0x75f   : > { %v13334_v53 = vpack.c.bf16 %v4948_v43, %v4944_v13  ;;  %v9023_v13 = vld [vmem:[%s9678_s24 + $0xf0] sm:$0xf0]  ;;  %v9031_v52 = vld [vmem:[%s9678_s24 + $0xf8] sm:$0xf0] }
 0x760   : > { %v4443_v48 = vpop.f32.mrf.mxu3  ;;  %v13338_v59 = vpop.f32.mrf.mxu2  ;;  %v4951_v43 = vmax.f32 %v4106_v11, %v4695_v5  ;;  %v13360_v8 = vor.u32 %v9349_v25, %v9023_v13  ;;  %v16375_v25 = vld [vmem:[#allocation31_spill] sm:$0xff]  ;;  %v16376_v13 = vld [vmem:[#allocation105_spill] sm:$0xff] }
 0x761   : > { %16357 = vst [vmem:[#allocation44_spill] sm:$0xff] %v13334_v53  ;;  %v4444_v30 = vadd.f32 %v4443_v48, %v4275_v27  ;;  %v13352_v27 = vpop.permute.xlu1 %5316  ;;  %v16363_v48 = vld [vmem:[#allocation23_spill] sm:$0xff] }
 0x762   : > { %16359 = vst [vmem:[#allocation55_spill] sm:$0xff] %v13338_v59  ;;  %v4277_v53 = vadd.f32 %v16363_v48, %v16358_v55  ;;  %v16370_v48 = vld [vmem:[#allocation30_spill] sm:$0xff] }
 0x763   : > { %v4107_v29 = vpop.f32.mrf.mxu1  ;;  %v13340_v63 = vpop.f32.mrf.mxu0  ;;  %16362 = vst [vmem:[#allocation103_spill] sm:$0xff] %v13352_v27  ;;  %v4696_v1 = vmul.f32 0.01, %v4444_v30  ;;  %v13368_v27 = vor.u32 %v9350_v4, %v9031_v52  ;;  %v16373_v52 = vld [vmem:[#allocation104_spill] sm:$0xff] }
 0x764   : > { %16360 = vst [vmem:[#allocation69_spill] sm:$0xff] %v13340_v63  ;;  %v4108_v22 = vadd.f32 %v4107_v29, %v3939_v34  ;;  %v13358_v29 = vor.u32 %v9383_v16, %v9149_v47 }
 0x765   : > { %16366 = vst [vmem:[#allocation100_spill] sm:$0xff] %v13360_v8 }
 0x766   : > { %v4699_v0 = vmul.f32 0.01, %v4108_v22  ;;  %16365 = vst [vmem:[#allocation10_spill] sm:$0xff] %v13358_v29 }
 0x767   : > { %16368 = vst [vmem:[#allocation63_spill] sm:$0xff] %v13368_v27 }
 0x768   : > { %v4955_v32 = vmax.f32 %v4108_v22, %v4699_v0  ;;  %v4445_v63 = vpop.f32.mrf.mxu3  ;;  %v13356_v34 = vpop.f32.mrf.mxu2  ;;  %v13366_v0 = vor.u32 %v9384_v44, %v9157_v17  ;;  %v4280_v44 = vadd.f32 %v16373_v52, %v16370_v48  ;;  %v3944_v17 = vadd.f32 %v16376_v13, %v16375_v25  ;;  %v9354_v13 = vld [vmem:[%s9678_s24 + $0x10c] sm:$0xf] }
 0x769   : > { %16364 = vst [vmem:[#allocation37_spill] sm:$0xff] %v13356_v34  ;;  %v4446_v11 = vadd.f32 %v4445_v63, %v4277_v53  ;;  %v16371_v34 = vld [vmem:[#allocation102_spill] sm:$0xff]  ;;  %v4952_v53 = vmax.f32 %v4444_v30, %v4696_v1 }
 0x76a   : > { %v13362_v59 = vpack.c.bf16 %v4955_v32, %v4951_v43  ;;  %16367 = vst [vmem:[#allocation11_spill] sm:$0xff] %v13366_v0  ;;  %v3942_v47 = vadd.f32 %v16371_v34, %v16370_v48  ;;  %v13376_v32 = vpop.permute.xlu2 %5206  ;;  %v13392_v48 = vpop.permute.xlu0 %5281 }
 0x76b   : > { %v4110_v5 = vpop.f32.mrf.mxu1  ;;  %v13364_v22 = vpop.f32.mrf.mxu0  ;;  %v4700_v55 = vmul.f32 0.01, %v4446_v11  ;;  %16372 = vst [vmem:[#allocation13_spill] sm:$0xff] %v13376_v32 }
 0x76c   : > { %v4111_v4 = vadd.f32 %v4110_v5, %v3942_v47  ;;  %v13390_v5 = vpop.permute.xlu1 %5301  ;;  %16379 = vst [vmem:[#allocation113_spill] sm:$0xff] %v13392_v48 }
 0x76d   : > { %v4956_v63 = vmax.f32 %v4446_v11, %v4700_v55  ;;  %5930 = vmatmul.bf16.gmra.mxu2 %v13366_v0  ;;  %5979 = vmatmul.bf16.gmra.mxu3 %v13368_v27  ;;  %16378 = vst [vmem:[#allocation25_spill] sm:$0xff] %v13390_v5 }
 0x76e   : > { %5752 = vmatmul.bf16.gmra.mxu0 %v13358_v29  ;;  %5801 = vmatmul.bf16.gmra.mxu1 %v13360_v8  ;;  %v4703_v55 = vmul.f32 0.01, %v4111_v4  ;;  %v9047_v8 = vld [vmem:[%s9678_s24 + $0x118] sm:$0xf0] }
 0x76f   : > { %v13382_v16 = vpack.c.bf16 %v4956_v63, %v4952_v53  ;;  %v9353_v53 = vld [vmem:[%s9678_s24 + $0x104] sm:$0xf]  ;;  %v9039_v63 = vld [vmem:[%s9678_s24 + $0x110] sm:$0xf0] }
 0x770   : > { %v4448_v43 = vpop.f32.mrf.mxu3  ;;  %v13386_v1 = vpop.f32.mrf.mxu2  ;;  %v4959_v52 = vmax.f32 %v4111_v4, %v4703_v55  ;;  %v13406_v60 = vor.u32 %v9353_v53, %v9039_v63  ;;  %v13410_v55 = vor.u32 %v9354_v13, %v9047_v8  ;;  %v16385_v53 = vld [vmem:[#allocation78_spill] sm:$0xff]  ;;  %v16386_v63 = vld [vmem:[#allocation36_spill] sm:$0xff] }
 0x771   : > { %16374 = vst [vmem:[#allocation46_spill] sm:$0xff] %v13382_v16  ;;  %v4449_v30 = vadd.f32 %v4448_v43, %v4280_v44  ;;  %v4282_v44 = vadd.f32 %v13024_v57, %v16375_v25  ;;  %v16383_v57 = vld [vmem:[#allocation7_spill] sm:$0xff] }
 0x772   : > { %v13398_v29 = vpop.permute.xlu2 %5191  ;;  %16381 = vst [vmem:[#allocation76_spill] sm:$0xff] %v13406_v60  ;;  %v13420_v8 = vpop.permute.xlu0 %5196 }
 0x773   : > { %v4112_v34 = vpop.f32.mrf.mxu1  ;;  %v13388_v11 = vpop.f32.mrf.mxu0  ;;  %16380 = vst [vmem:[#allocation135_spill] sm:$0xff] %v13398_v29  ;;  %v5679_v43 = vadd.f32 %v13030_v40, %v13398_v29  ;;  %v4704_v48 = vmul.f32 0.01, %v4449_v30 }
 0x774   : > { %16377 = vst [vmem:[#allocation20_spill] sm:$0xff] %v13388_v11  ;;  %v4113_v27 = vadd.f32 %v4112_v34, %v3944_v17  ;;  %v13414_v40 = vpop.permute.xlu1 %5216 }
 0x775   : > { %16382 = vst [vmem:[#allocation27_spill] sm:$0xff] %v13410_v55 }
 0x776   : > { %v4707_v47 = vmul.f32 0.01, %v4113_v27  ;;  %16384 = vst [vmem:[#allocation65_spill] sm:$0xff] %v13414_v40 }
 0x777   : > { %16387 = vst [vmem:[#allocation80_spill] sm:$0xff] %v13420_v8 }
 0x778   : > { %v4963_v0 = vmax.f32 %v4113_v27, %v4707_v47  ;;  %v4450_v34 = vpop.f32.mrf.mxu3  ;;  %v13404_v5 = vpop.f32.mrf.mxu2 }
 0x779   : > { %v4451_v16 = vadd.f32 %v4450_v34, %v4282_v44 }
 0x77a   : > { %v5091_v17 = vpack.c.bf16 %v4963_v0, %v4959_v52  ;;  %v4960_v0 = vmax.f32 %v4449_v30, %v4704_v48 }
 0x77b   : > { %v13408_v4 = vpop.f32.mrf.mxu0  ;;  %v5767_v27 = vpop.f32.mrf.mxu1  ;;  %v4708_v11 = vmul.f32 0.01, %v4451_v16 }
 0x77c   : > { %v5768_v47 = vadd.f32 %v5767_v27, %v5679_v43  ;;  %6648 = vmatpush.bf16.msra.mxu3 %v5091_v17  ;;  %v16388_v43 = vld [vmem:[#allocation119_spill] sm:$0xff]  ;;  %v16389_v17 = vld [vmem:[#allocation40_spill] sm:$0xff]  ;;  %v16390_v27 = vld [vmem:[#allocation122_spill] sm:$0xff] }
 0x77d   : > { %v4964_v25 = vmax.f32 %v4451_v16, %v4708_v11  ;;  %5984 = vmatmul.bf16.gmra.mxu3 %v13410_v55  ;;  %6211 = vmatmul.bf16.vlgmr.msrb.gmra.mxu2 %v16385_v53  ;;  %v5681_v16 = vadd.f32 %v13049_v21, %v13420_v8  ;;  %v9358_v21 = vld [vmem:[%s9678_s24 + $0x12c] sm:$0xf]  ;;  %v16395_v8 = vld [vmem:[#allocation125_spill] sm:$0xff] }
 0x77e   : > { %5806 = vmatmul.bf16.gmra.mxu1 %v13406_v60  ;;  %6033 = vmatmul.bf16.vlgmr.msrb.gmra.mxu0 %v16383_v57  ;;  %v5857_v30 = vadd.f32 %v13047_v35, %v5768_v47  ;;  %v9055_v35 = vld [vmem:[%s9678_s24 + $0x130] sm:$0xf0]  ;;  %v16391_v47 = vld [vmem:[#allocation51_spill] sm:$0xff] }
 0x77f   : > { %6737 = vmatpush.bf16.msrb.mxu0 %v16386_v63  ;;  %6915 = vmatpush.bf16.msrb.mxu2 %v13043_v9  ;;  %v13422_v52 = vpack.c.bf16 %v4964_v25, %v4960_v0  ;;  %v9063_v0 = vld [vmem:[%s9678_s24 + $0x138] sm:$0xf0]  ;;  %v13441_v25 = vpop.permute.xlu1 %5201 }
 0x780   : > { %6649 = vmatpush.bf16.msra.mxu3 %v13362_v59  ;;  %v13428_v11 = vpop.f32.mrf.mxu2  ;;  %v5945_v48 = vpop.f32.mrf.mxu3  ;;  %v9357_v59 = vld [vmem:[%s9678_s24 + $0x124] sm:$0xf]  ;;  %16392 = vst [vmem:[#allocation54_spill] sm:$0xff] %v13441_v25 }
 0x781   : > { %v5946_v13 = vadd.f32 %v5945_v48, %v5857_v30  ;;  %v5684_v30 = vadd.f32 %v13075_v19, %v13441_v25  ;;  %v13449_v48 = vor.u32 %v9357_v59, %v9055_v35  ;;  %v16397_v19 = vld [vmem:[#allocation136_spill] sm:$0xff] }
 0x783   : > { %v13430_v44 = vpop.f32.mrf.mxu0  ;;  %v5769_v9 = vpop.f32.mrf.mxu1  ;;  %6738 = vmatpush.bf16.msrb.mxu0 %v16388_v43  ;;  %6916 = vmatpush.bf16.msrb.mxu2 %v16389_v17  ;;  %16393 = vst [vmem:[#allocation38_spill] sm:$0xff] %v13449_v48 }
 0x784   : > { %v5770_v34 = vadd.f32 %v5769_v9, %v5681_v16  ;;  %6650 = vmatpush.bf16.msra.mxu3 %v13314_v33  ;;  %v7093_v9 = vmul.f32 0.01, %v5946_v13 }
 0x786   : > { %v5859_v63 = vadd.f32 %v13067_v18, %v5770_v34  ;;  %v7221_v59 = vmax.f32 %v5946_v13, %v7093_v9  ;;  %v5686_v13 = vadd.f32 %v13097_v26, %v13376_v32  ;;  %v9362_v26 = vld [vmem:[%s9678_s24 + $0x14c] sm:$0xf] }
 0x787   : > { %6739 = vmatpush.bf16.msrb.mxu0 %v16390_v27  ;;  %6917 = vmatpush.bf16.msrb.mxu2 %v16391_v47  ;;  %v13453_v47 = vor.u32 %v9358_v21, %v9063_v0  ;;  %v16399_v21 = vld [vmem:[#allocation128_spill] sm:$0xff] }
 0x788   : > { %6651 = vmatpush.bf16.msra.mxu3 %v13264_v10  ;;  %v13447_v16 = vpop.f32.mrf.mxu2  ;;  %v5947_v33 = vpop.f32.mrf.mxu3  ;;  %v16396_v10 = vld [vmem:[#allocation42_spill] sm:$0xff] }
 0x789   : > { %v5948_v43 = vadd.f32 %v5947_v33, %v5859_v63  ;;  %16394 = vst [vmem:[#allocation67_spill] sm:$0xff] %v13453_v47  ;;  %v16398_v63 = vld [vmem:[#allocation62_spill] sm:$0xff] }
 0x78b   : > { %v13451_v17 = vpop.f32.mrf.mxu0  ;;  %v5772_v27 = vpop.f32.mrf.mxu1  ;;  %6740 = vmatpush.bf16.msrb.mxu0 %v16395_v8  ;;  %6918 = vmatpush.bf16.msrb.mxu2 %v16396_v10  ;;  %v7097_v34 = vmul.f32 0.01, %v5948_v43  ;;  %v16400_v8 = vld [vmem:[#allocation95_spill] sm:$0xff]  ;;  %v16402_v10 = vld [vmem:[#allocation21_spill] sm:$0xff] }
 0x78c   : > { %v5773_v18 = vadd.f32 %v5772_v27, %v5684_v30  ;;  %6652 = vmatpush.bf16.msra.mxu3 %v13218_v14 }
 0x78d   : > { %v7225_v35 = vmax.f32 %v5948_v43, %v7097_v34  ;;  %5989 = vmatmul.bf16.gmra.mxu3 %v13453_v47  ;;  %6216 = vmatmul.bf16.gmra.mxu2 %v16398_v63  ;;  %v16403_v34 = vld [vmem:[#allocation92_spill] sm:$0xff] }
 0x78e   : > { %5811 = vmatmul.bf16.gmra.mxu1 %v13449_v48  ;;  %6038 = vmatmul.bf16.gmra.mxu0 %v16397_v19  ;;  %v5862_v14 = vadd.f32 %v13095_v62, %v5773_v18  ;;  %v9361_v62 = vld [vmem:[%s9678_s24 + $0x144] sm:$0xf]  ;;  %v9071_v18 = vld [vmem:[%s9678_s24 + $0x150] sm:$0xf0] }
 0x78f   : > { %6741 = vmatpush.bf16.msrb.mxu0 %v16399_v21  ;;  %6919 = vmatpush.bf16.msrb.mxu2 %v16400_v8  ;;  %v13466_v0 = vpack.c.bf16 %v7225_v35, %v7221_v59  ;;  %v16404_v59 = vld [vmem:[#allocation28_spill] sm:$0xff]  ;;  %v9079_v21 = vld [vmem:[%s9678_s24 + $0x158] sm:$0xf0] }
 0x790   : > { %6653 = vmatpush.bf16.msra.mxu3 %v13168_v7  ;;  %v13470_v30 = vpop.f32.mrf.mxu2  ;;  %v5950_v33 = vpop.f32.mrf.mxu3  ;;  %v16405_v35 = vld [vmem:[#allocation88_spill] sm:$0xff] }
 0x791   : > { %16401 = vst [vmem:[#allocation17_spill] sm:$0xff] %v13466_v0  ;;  %v5951_v9 = vadd.f32 %v5950_v33, %v5862_v14  ;;  %v5689_v14 = vadd.f32 %v13125_v41, %v13330_v15  ;;  %v16408_v0 = vld [vmem:[#allocation131_spill] sm:$0xff]  ;;  %v16410_v41 = vld [vmem:[#allocation85_spill] sm:$0xff]  ;;  %v9159_v15 = vld [vmem:[%s9678_s24 + $0x1f8] sm:$0xf0] }
 0x793   : > { %v13472_v43 = vpop.f32.mrf.mxu0  ;;  %v5774_v27 = vpop.f32.mrf.mxu1  ;;  %6742 = vmatpush.bf16.msrb.mxu0 %v16402_v10  ;;  %6920 = vmatpush.bf16.msrb.mxu2 %v16403_v34 }
 0x794   : > { %v5775_v7 = vadd.f32 %v5774_v27, %v5686_v13  ;;  %6654 = vmatpush.bf16.msra.mxu3 %v13123_v49  ;;  %v13489_v27 = vor.u32 %v9361_v62, %v9071_v18  ;;  %v7101_v49 = vmul.f32 0.01, %v5951_v9 }
 0x796   : > { %v5864_v8 = vadd.f32 %v13117_v37, %v5775_v7  ;;  %16406 = vst [vmem:[#allocation87_spill] sm:$0xff] %v13489_v27  ;;  %v7229_v62 = vmax.f32 %v5951_v9, %v7101_v49 }
 0x797   : > { %6743 = vmatpush.bf16.msrb.mxu0 %v16404_v59  ;;  %6921 = vmatpush.bf16.msrb.mxu2 %v16405_v35  ;;  %v13493_v35 = vor.u32 %v9362_v26, %v9079_v21  ;;  %v16411_v26 = vld [vmem:[#allocation86_spill] sm:$0xff] }
 0x798   : > { %6655 = vmatpush.bf16.msra.mxu3 %v13073_v12  ;;  %v13487_v33 = vpop.f32.mrf.mxu2  ;;  %v5952_v13 = vpop.f32.mrf.mxu3  ;;  %v16409_v12 = vld [vmem:[#allocation84_spill] sm:$0xff] }
 0x799   : > { %v5953_v10 = vadd.f32 %v5952_v13, %v5864_v8  ;;  %16407 = vst [vmem:[#allocation74_spill] sm:$0xff] %v13493_v35  ;;  %v5691_v8 = vadd.f32 %v13146_v3, %v13414_v40 }
 0x79b   : > { %v13491_v34 = vpop.f32.mrf.mxu0  ;;  %v5777_v59 = vpop.f32.mrf.mxu1  ;;  %6744 = vmatpush.bf16.msrb.mxu0 %v16408_v0  ;;  %6922 = vmatpush.bf16.msrb.mxu2 %v16409_v12  ;;  %v7105_v7 = vmul.f32 0.01, %v5953_v10 }
 0x79c   : > { %v5778_v37 = vadd.f32 %v5777_v59, %v5689_v14 }
 0x79d   : > { %v7233_v18 = vmax.f32 %v5953_v10, %v7105_v7  ;;  %5994 = vmatmul.bf16.gmra.mxu3 %v13493_v35  ;;  %6221 = vmatmul.bf16.gmra.mxu2 %v16411_v26  ;;  %v9365_v10 = vld [vmem:[%s9678_s24 + $0x164] sm:$0xf]  ;;  %v9087_v7 = vld [vmem:[%s9678_s24 + $0x170] sm:$0xf0]  ;;  %v9366_v35 = vld [vmem:[%s9678_s24 + $0x16c] sm:$0xf] }
 0x79e   : > { %5816 = vmatmul.bf16.gmra.mxu1 %v13489_v27  ;;  %6043 = vmatmul.bf16.gmra.mxu0 %v16410_v41  ;;  %v5867_v0 = vadd.f32 %v13144_v24, %v5778_v37  ;;  %v9095_v41 = vld [vmem:[%s9678_s24 + $0x178] sm:$0xf0]  ;;  %v5694_v24 = vadd.f32 %v13170_v31, %v13278_v28 }
 0x79f   : > { %v13502_v21 = vpack.c.bf16 %v7233_v18, %v7229_v62  ;;  %v13519_v62 = vor.u32 %v9365_v10, %v9087_v7 }
 0x7a0   : > { %v13506_v14 = vpop.f32.mrf.mxu2  ;;  %v5955_v13 = vpop.f32.mrf.mxu3 }
 0x7a1   : > { %16412 = vst [vmem:[#allocation35_spill] sm:$0xff] %v13502_v21  ;;  %v5956_v59 = vadd.f32 %v5955_v13, %v5867_v0 }
 0x7a2   : > { %16413 = vst [vmem:[#allocation45_spill] sm:$0xff] %v13519_v62 }
 0x7a3   : > { %v13508_v12 = vpop.f32.mrf.mxu0  ;;  %v5779_v9 = vpop.f32.mrf.mxu1  ;;  %v7109_v18 = vmul.f32 0.01, %v5956_v59 }
 0x7a4   : > { %v5780_v49 = vadd.f32 %v5779_v9, %v5691_v8  ;;  %v13523_v8 = vor.u32 %v9366_v35, %v9095_v41 }
 0x7a5   : > { %v7237_v31 = vmax.f32 %v5956_v59, %v7109_v18 }
 0x7a6   : > { %v5869_v26 = vadd.f32 %v13162_v61, %v5780_v49  ;;  %16414 = vst [vmem:[#allocation19_spill] sm:$0xff] %v13523_v8  ;;  %v16415_v61 = vld [vmem:[#allocation75_spill] sm:$0xff] }
 0x7a8   : > { %v13517_v37 = vpop.f32.mrf.mxu2  ;;  %v5957_v3 = vpop.f32.mrf.mxu3 }
 0x7a9   : > { %v5958_v0 = vadd.f32 %v5957_v3, %v5869_v26  ;;  %v16416_v26 = vld [vmem:[#allocation91_spill] sm:$0xff] }
 0x7ab   : > { %v13521_v13 = vpop.f32.mrf.mxu0  ;;  %v5782_v40 = vpop.f32.mrf.mxu1  ;;  %v7113_v27 = vmul.f32 0.01, %v5958_v0 }
 0x7ac   : > { %v5783_v9 = vadd.f32 %v5782_v40, %v5694_v24  ;;  %v5696_v40 = vadd.f32 %v13192_v38, %v13296_v6 }
 0x7ad   : > { %v7241_v49 = vmax.f32 %v5958_v0, %v7113_v27  ;;  %5999 = vmatmul.bf16.gmra.mxu3 %v13523_v8  ;;  %6226 = vmatmul.bf16.gmra.mxu2 %v16416_v26  ;;  %v9369_v27 = vld [vmem:[%s9678_s24 + $0x184] sm:$0xf]  ;;  %v9103_v0 = vld [vmem:[%s9678_s24 + $0x190] sm:$0xf0]  ;;  %v9370_v8 = vld [vmem:[%s9678_s24 + $0x18c] sm:$0xf] }
 0x7ae   : > { %5821 = vmatmul.bf16.gmra.mxu1 %v13519_v62  ;;  %6048 = vmatmul.bf16.gmra.mxu0 %v16415_v61  ;;  %v5872_v10 = vadd.f32 %v13190_v46, %v5783_v9  ;;  %v9111_v61 = vld [vmem:[%s9678_s24 + $0x198] sm:$0xf0]  ;;  %v5699_v46 = vadd.f32 %v13220_v2, %v13326_v51 }
 0x7af   : > { %v13530_v35 = vpack.c.bf16 %v7241_v49, %v7237_v31  ;;  %v13547_v31 = vor.u32 %v9369_v27, %v9103_v0 }
 0x7b0   : > { %v13534_v41 = vpop.f32.mrf.mxu2  ;;  %v5960_v7 = vpop.f32.mrf.mxu3 }
 0x7b1   : > { %16417 = vst [vmem:[#allocation57_spill] sm:$0xff] %v13530_v35  ;;  %v5961_v24 = vadd.f32 %v5960_v7, %v5872_v10 }
 0x7b2   : > { %16418 = vst [vmem:[#allocation26_spill] sm:$0xff] %v13547_v31 }
 0x7b3   : > { %v13536_v3 = vpop.f32.mrf.mxu0  ;;  %v5784_v59 = vpop.f32.mrf.mxu1  ;;  %v7117_v49 = vmul.f32 0.01, %v5961_v24 }
 0x7b4   : > { %v5785_v18 = vadd.f32 %v5784_v59, %v5696_v40  ;;  %v13551_v40 = vor.u32 %v9370_v8, %v9111_v61 }
 0x7b5   : > { %v7245_v2 = vmax.f32 %v5961_v24, %v7117_v49 }
 0x7b6   : > { %v5874_v26 = vadd.f32 %v13212_v58, %v5785_v18  ;;  %16419 = vst [vmem:[#allocation32_spill] sm:$0xff] %v13551_v40  ;;  %v16420_v58 = vld [vmem:[#allocation93_spill] sm:$0xff] }
 0x7b8   : > { %v13545_v9 = vpop.f32.mrf.mxu2  ;;  %v5962_v38 = vpop.f32.mrf.mxu3 }
 0x7b9   : > { %v5963_v10 = vadd.f32 %v5962_v38, %v5874_v26  ;;  %v16421_v26 = vld [vmem:[#allocation82_spill] sm:$0xff] }
 0x7bb   : > { %v13549_v7 = vpop.f32.mrf.mxu0  ;;  %v5787_v6 = vpop.f32.mrf.mxu1  ;;  %v7121_v62 = vmul.f32 0.01, %v5963_v10 }
 0x7bc   : > { %v5788_v59 = vadd.f32 %v5787_v6, %v5699_v46  ;;  %v5701_v6 = vadd.f32 %v13242_v50, %v13244_v36 }
 0x7bd   : > { %v7249_v18 = vmax.f32 %v5963_v10, %v7121_v62  ;;  %6004 = vmatmul.bf16.gmra.mxu3 %v13551_v40  ;;  %6231 = vmatmul.bf16.gmra.mxu2 %v16421_v26  ;;  %v9373_v62 = vld [vmem:[%s9678_s24 + $0x1a4] sm:$0xf]  ;;  %v9119_v10 = vld [vmem:[%s9678_s24 + $0x1b0] sm:$0xf0]  ;;  %v9374_v40 = vld [vmem:[%s9678_s24 + $0x1ac] sm:$0xf] }
 0x7be   : > { %5826 = vmatmul.bf16.gmra.mxu1 %v13547_v31  ;;  %6053 = vmatmul.bf16.gmra.mxu0 %v16420_v58  ;;  %v5877_v27 = vadd.f32 %v13240_v42, %v5788_v59  ;;  %v9127_v58 = vld [vmem:[%s9678_s24 + $0x1b8] sm:$0xf0]  ;;  %v5704_v42 = vadd.f32 %v13266_v23, %v13198_v45 }
 0x7bf   : > { %v13558_v8 = vpack.c.bf16 %v7249_v18, %v7245_v2  ;;  %v13575_v2 = vor.u32 %v9373_v62, %v9119_v10  ;;  %v9143_v45 = vld [vmem:[%s9678_s24 + $0x1d8] sm:$0xf0] }
 0x7c0   : > { %v13562_v61 = vpop.f32.mrf.mxu2  ;;  %v5965_v0 = vpop.f32.mrf.mxu3 }
 0x7c1   : > { %16422 = vst [vmem:[#allocation59_spill] sm:$0xff] %v13558_v8  ;;  %v5966_v46 = vadd.f32 %v5965_v0, %v5877_v27 }
 0x7c2   : > { %16423 = vst [vmem:[#allocation23_spill] sm:$0xff] %v13575_v2 }
 0x7c3   : > { %v13564_v38 = vpop.f32.mrf.mxu0  ;;  %v5789_v24 = vpop.f32.mrf.mxu1  ;;  %v7125_v18 = vmul.f32 0.01, %v5966_v46 }
 0x7c4   : > { %v5790_v49 = vadd.f32 %v5789_v24, %v5701_v6  ;;  %v13579_v6 = vor.u32 %v9374_v40, %v9127_v58 }
 0x7c5   : > { %v7253_v23 = vmax.f32 %v5966_v46, %v7125_v18 }
 0x7c6   : > { %v5879_v26 = vadd.f32 %v13258_v39, %v5790_v49  ;;  %16424 = vst [vmem:[#allocation30_spill] sm:$0xff] %v13579_v6  ;;  %v16425_v39 = vld [vmem:[#allocation96_spill] sm:$0xff] }
 0x7c8   : > { %v13573_v59 = vpop.f32.mrf.mxu2  ;;  %v5967_v50 = vpop.f32.mrf.mxu3 }
 0x7c9   : > { %v5968_v27 = vadd.f32 %v5967_v50, %v5879_v26  ;;  %v16426_v26 = vld [vmem:[#allocation39_spill] sm:$0xff] }
 0x7cb   : > { %v13577_v0 = vpop.f32.mrf.mxu0  ;;  %v5792_v36 = vpop.f32.mrf.mxu1  ;;  %v7129_v31 = vmul.f32 0.01, %v5968_v27 }
 0x7cc   : > { %v5793_v24 = vadd.f32 %v5792_v36, %v5704_v42  ;;  %v5706_v36 = vadd.f32 %v13290_v20, %v13292_v54 }
 0x7cd   : > { %v7257_v49 = vmax.f32 %v5968_v27, %v7129_v31  ;;  %6009 = vmatmul.bf16.gmra.mxu3 %v13579_v6  ;;  %6236 = vmatmul.bf16.gmra.mxu2 %v16426_v26  ;;  %v9377_v31 = vld [vmem:[%s9678_s24 + $0x1c4] sm:$0xf]  ;;  %v9135_v27 = vld [vmem:[%s9678_s24 + $0x1d0] sm:$0xf0]  ;;  %v9378_v6 = vld [vmem:[%s9678_s24 + $0x1cc] sm:$0xf] }
 0x7ce   : > { %5831 = vmatmul.bf16.gmra.mxu1 %v13575_v2  ;;  %6058 = vmatmul.bf16.gmra.mxu0 %v16425_v39  ;;  %v5882_v62 = vadd.f32 %v13288_v56, %v5793_v24  ;;  %v16427_v26 = vld [vmem:[#allocation139_spill] sm:$0xff]  ;;  %v16428_v56 = vld [vmem:[#allocation117_spill] sm:$0xff]  ;;  %v16429_v24 = vld [vmem:[#allocation34_spill] sm:$0xff]  ;;  %v13603_v54 = vor.u32 %v9377_v31, %v9135_v27 }
 0x7cf   : > { %v13586_v40 = vpack.c.bf16 %v7257_v49, %v7253_v23  ;;  %v5709_v23 = vadd.f32 %v16429_v24, %v16428_v56  ;;  %v16434_v27 = vld [vmem:[#allocation55_spill] sm:$0xff] }
 0x7d0   : > { %v13590_v58 = vpop.f32.mrf.mxu2  ;;  %v5970_v10 = vpop.f32.mrf.mxu3  ;;  %16430 = vst [vmem:[#allocation102_spill] sm:$0xff] %v13603_v54 }
 0x7d1   : > { %v5971_v42 = vadd.f32 %v5970_v10, %v5882_v62 }
 0x7d3   : > { %v13592_v50 = vpop.f32.mrf.mxu0  ;;  %v5794_v46 = vpop.f32.mrf.mxu1  ;;  %v7133_v2 = vmul.f32 0.01, %v5971_v42 }
 0x7d4   : > { %v5795_v18 = vadd.f32 %v5794_v46, %v5706_v36  ;;  %v13607_v36 = vor.u32 %v9378_v6, %v9143_v45  ;;  %v16436_v6 = vld [vmem:[#allocation69_spill] sm:$0xff] }
 0x7d6   : > { %v5884_v39 = vadd.f32 %v16427_v26, %v5795_v18  ;;  %16431 = vst [vmem:[#allocation104_spill] sm:$0xff] %v13607_v36  ;;  %v16432_v26 = vld [vmem:[#allocation98_spill] sm:$0xff]  ;;  %v7261_v18 = vmax.f32 %v5971_v42, %v7133_v2 }
 0x7d8   : > { %v13601_v49 = vpop.f32.mrf.mxu2  ;;  %v5972_v20 = vpop.f32.mrf.mxu3 }
 0x7d9   : > { %v5973_v62 = vadd.f32 %v5972_v20, %v5884_v39  ;;  %v16433_v39 = vld [vmem:[#allocation99_spill] sm:$0xff] }
 0x7db   : > { %v13605_v10 = vpop.f32.mrf.mxu0  ;;  %v5797_v51 = vpop.f32.mrf.mxu1  ;;  %v7137_v28 = vmul.f32 0.01, %v5973_v62 }
 0x7dc   : > { %v5798_v46 = vadd.f32 %v5797_v51, %v5709_v23  ;;  %v16435_v51 = vld [vmem:[#allocation68_spill] sm:$0xff] }
 0x7dd   : > { %v7265_v31 = vmax.f32 %v5973_v62, %v7137_v28  ;;  %6014 = vmatmul.bf16.gmra.mxu3 %v13607_v36  ;;  %6241 = vmatmul.bf16.gmra.mxu2 %v16433_v39  ;;  %v5711_v23 = vadd.f32 %v16436_v6, %v16435_v51  ;;  %v9381_v28 = vld [vmem:[%s9678_s24 + $0x1e4] sm:$0xf]  ;;  %v9151_v62 = vld [vmem:[%s9678_s24 + $0x1f0] sm:$0xf0]  ;;  %v9382_v36 = vld [vmem:[%s9678_s24 + $0x1ec] sm:$0xf] }
 0x7de   : > { %5836 = vmatmul.bf16.gmra.mxu1 %v13603_v54  ;;  %6063 = vmatmul.bf16.gmra.mxu0 %v16432_v26  ;;  %v5887_v24 = vadd.f32 %v16434_v27, %v5798_v46  ;;  %v16437_v39 = vld [vmem:[#allocation37_spill] sm:$0xff]  ;;  %v16438_v46 = vld [vmem:[#allocation70_spill] sm:$0xff]  ;;  %v13631_v6 = vor.u32 %v9381_v28, %v9151_v62  ;;  %v16443_v28 = vld [vmem:[#allocation43_spill] sm:$0xff] }
 0x7df   : > { %v13614_v45 = vpack.c.bf16 %v7265_v31, %v7261_v18  ;;  %v5714_v18 = vadd.f32 %v13364_v22, %v16438_v46 }
 0x7e0   : > { %v13618_v20 = vpop.f32.mrf.mxu2  ;;  %v5975_v56 = vpop.f32.mrf.mxu3  ;;  %16439 = vst [vmem:[#allocation31_spill] sm:$0xff] %v13631_v6 }
 0x7e1   : > { %v5976_v54 = vadd.f32 %v5975_v56, %v5887_v24 }
 0x7e3   : > { %v13620_v26 = vpop.f32.mrf.mxu0  ;;  %v5799_v2 = vpop.f32.mrf.mxu1  ;;  %v7141_v51 = vmul.f32 0.01, %v5976_v54 }
 0x7e4   : > { %v5800_v42 = vadd.f32 %v5799_v2, %v5711_v23  ;;  %v13635_v23 = vor.u32 %v9382_v36, %v9159_v15  ;;  %v16444_v15 = vld [vmem:[#allocation111_spill] sm:$0xff]  ;;  %v16445_v36 = vld [vmem:[#allocation20_spill] sm:$0xff] }
 0x7e5   : > { %v7269_v22 = vmax.f32 %v5976_v54, %v7141_v51 }
 0x7e6   : > { %v5889_v21 = vadd.f32 %v16437_v39, %v5800_v42  ;;  %16440 = vst [vmem:[#allocation105_spill] sm:$0xff] %v13635_v23  ;;  %v16441_v39 = vld [vmem:[#allocation101_spill] sm:$0xff]  ;;  %v13639_v42 = vpop.permute.xlu1 %5286 }
 0x7e7   : > { %16442 = vst [vmem:[#allocation36_spill] sm:$0xff] %v13639_v42 }
 0x7e8   : > { %v13629_v31 = vpop.f32.mrf.mxu2  ;;  %v5977_v27 = vpop.f32.mrf.mxu3 }
 0x7e9   : > { %v5978_v56 = vadd.f32 %v5977_v27, %v5889_v21 }
 0x7eb   : > { %v13633_v24 = vpop.f32.mrf.mxu0  ;;  %v5802_v35 = vpop.f32.mrf.mxu1  ;;  %v7145_v32 = vmul.f32 0.01, %v5978_v56 }
 0x7ec   : > { %v5803_v2 = vadd.f32 %v5802_v35, %v5714_v18  ;;  %v5716_v35 = vadd.f32 %v16445_v36, %v16444_v15 }
 0x7ed   : > { %v7273_v46 = vmax.f32 %v5978_v56, %v7145_v32  ;;  %6019 = vmatmul.bf16.gmra.mxu3 %v13635_v23  ;;  %6246 = vmatmul.bf16.gmra.mxu2 %v16443_v28  ;;  %v16447_v28 = vld [vmem:[#allocation16_spill] sm:$0xff] }
 0x7ee   : > { %5841 = vmatmul.bf16.gmra.mxu1 %v13631_v6  ;;  %6068 = vmatmul.bf16.gmra.mxu0 %v16441_v39  ;;  %v5892_v21 = vadd.f32 %v13386_v1, %v5803_v2  ;;  %v13652_v32 = vpop.permute.xlu1 %5271 }
 0x7ef   : > { %v13644_v62 = vpack.c.bf16 %v7273_v46, %v7269_v22  ;;  %16446 = vst [vmem:[#allocation119_spill] sm:$0xff] %v13652_v32  ;;  %v5719_v1 = vadd.f32 %v13408_v4, %v13652_v32  ;;  %v16451_v4 = vld [vmem:[#allocation79_spill] sm:$0xff] }
 0x7f0   : > { %v13648_v18 = vpop.f32.mrf.mxu2  ;;  %v5980_v27 = vpop.f32.mrf.mxu3 }
 0x7f1   : > { %v5981_v6 = vadd.f32 %v5980_v27, %v5892_v21 }
 0x7f3   : > { %v13650_v39 = vpop.f32.mrf.mxu0  ;;  %v5804_v8 = vpop.f32.mrf.mxu1  ;;  %v7149_v2 = vmul.f32 0.01, %v5981_v6 }
 0x7f4   : > { %v5805_v54 = vadd.f32 %v5804_v8, %v5716_v35  ;;  %v16448_v8 = vld [vmem:[#allocation60_spill] sm:$0xff] }
 0x7f5   : > { %v7277_v35 = vmax.f32 %v5981_v6, %v7149_v2 }
 0x7f6   : > { %v5894_v51 = vadd.f32 %v13404_v5, %v5805_v54  ;;  %v16449_v5 = vld [vmem:[#allocation107_spill] sm:$0xff]  ;;  %v16450_v54 = vld [vmem:[#allocation108_spill] sm:$0xff] }
 0x7f8   : > { %v13657_v46 = vpop.f32.mrf.mxu2  ;;  %v5982_v56 = vpop.f32.mrf.mxu3 }
 0x7f9   : > { %v5983_v22 = vadd.f32 %v5982_v56, %v5894_v51  ;;  %v13667_v51 = vpop.permute.xlu2 %5276 }
 0x7fa   : > { %16452 = vst [vmem:[#allocation40_spill] sm:$0xff] %v13667_v51 }
 0x7fb   : > { %v5807_v36 = vpop.f32.mrf.mxu1  ;;  %v13659_v15 = vpop.f32.mrf.mxu0  ;;  %v7153_v27 = vmul.f32 0.01, %v5983_v22 }
 0x7fc   : > { %v5808_v21 = vadd.f32 %v5807_v36, %v5719_v1  ;;  %v5721_v36 = vadd.f32 %v13430_v44, %v13667_v51 }
 0x7fd   : > { %v7281_v23 = vmax.f32 %v5983_v22, %v7153_v27  ;;  %6251 = vmatmul.bf16.gmra.mxu2 %v16449_v5  ;;  %6300 = vmatmul.bf16.vlgmr.msrb.gmra.mxu3 %v16450_v54  ;;  %v16453_v54 = vld [vmem:[#allocation18_spill] sm:$0xff]  ;;  %v16455_v5 = vld [vmem:[#allocation72_spill] sm:$0xff] }
 0x7fe   : > { %6073 = vmatmul.bf16.gmra.mxu0 %v16447_v28  ;;  %6122 = vmatmul.bf16.vlgmr.msrb.gmra.mxu1 %v16448_v8  ;;  %v5897_v1 = vadd.f32 %v13428_v11, %v5808_v21  ;;  %v16457_v21 = vld [vmem:[#allocation113_spill] sm:$0xff] }
 0x7ff   : > { %6826 = vmatpush.bf16.msrb.mxu1 %v16451_v4  ;;  %7004 = vmatpush.bf16.msrb.mxu3 %v13422_v52  ;;  %v13669_v56 = vpack.c.bf16 %v7281_v23, %v7277_v35  ;;  %v16454_v4 = vld [vmem:[#allocation46_spill] sm:$0xff]  ;;  %v16456_v23 = vld [vmem:[#allocation44_spill] sm:$0xff]  ;;  %v5724_v44 = vadd.f32 %v13451_v17, %v16457_v21  ;;  %v16463_v21 = vld [vmem:[#allocation61_spill] sm:$0xff] }
 0x800   : > { %v5985_v8 = vpop.f32.mrf.mxu3  ;;  %v13674_v6 = vpop.f32.mrf.mxu2 }
 0x801   : > { %v5986_v2 = vadd.f32 %v5985_v8, %v5897_v1 }
 0x803   : > { %v5809_v22 = vpop.f32.mrf.mxu1  ;;  %v13676_v27 = vpop.f32.mrf.mxu0  ;;  %6827 = vmatpush.bf16.msrb.mxu1 %v16453_v54  ;;  %7005 = vmatpush.bf16.msrb.mxu3 %v16454_v4  ;;  %v7157_v8 = vmul.f32 0.01, %v5986_v2  ;;  %v16458_v54 = vld [vmem:[#allocation71_spill] sm:$0xff] }
 0x804   : > { %v5810_v52 = vadd.f32 %v5809_v22, %v5721_v36  ;;  %v16459_v36 = vld [vmem:[#allocation137_spill] sm:$0xff]  ;;  %v16460_v4 = vld [vmem:[#allocation47_spill] sm:$0xff] }
 0x806   : > { %v5899_v11 = vadd.f32 %v13447_v16, %v5810_v52  ;;  %v16461_v16 = vld [vmem:[#allocation58_spill] sm:$0xff]  ;;  %v7285_v52 = vmax.f32 %v5986_v2, %v7157_v8 }
 0x807   : > { %6828 = vmatpush.bf16.msrb.mxu1 %v16455_v5  ;;  %7006 = vmatpush.bf16.msrb.mxu3 %v16456_v23  ;;  %v16462_v23 = vld [vmem:[#allocation22_spill] sm:$0xff] }
 0x808   : > { %v5987_v35 = vpop.f32.mrf.mxu3  ;;  %v13685_v51 = vpop.f32.mrf.mxu2 }
 0x809   : > { %v5988_v1 = vadd.f32 %v5987_v35, %v5899_v11  ;;  %v16464_v11 = vld [vmem:[#allocation97_spill] sm:$0xff]  ;;  %v16465_v35 = vld [vmem:[#allocation14_spill] sm:$0xff] }
 0x80b   : > { %v5812_v28 = vpop.f32.mrf.mxu1  ;;  %v13687_v32 = vpop.f32.mrf.mxu0  ;;  %6829 = vmatpush.bf16.msrb.mxu1 %v16458_v54  ;;  %7007 = vmatpush.bf16.msrb.mxu3 %v16459_v36  ;;  %v7161_v22 = vmul.f32 0.01, %v5988_v1 }
 0x80c   : > { %v5813_v5 = vadd.f32 %v5812_v28, %v5724_v44  ;;  %v5726_v28 = vadd.f32 %v13472_v43, %v13639_v42 }
 0x80d   : > { %v7289_v17 = vmax.f32 %v5988_v1, %v7161_v22  ;;  %6256 = vmatmul.bf16.gmra.mxu2 %v16462_v23  ;;  %6305 = vmatmul.bf16.gmra.mxu3 %v16463_v21  ;;  %v16467_v22 = vld [vmem:[#allocation64_spill] sm:$0xff]  ;;  %v16468_v21 = vld [vmem:[#allocation121_spill] sm:$0xff] }
 0x80e   : > { %6078 = vmatmul.bf16.gmra.mxu0 %v16460_v4  ;;  %6127 = vmatmul.bf16.gmra.mxu1 %v16461_v16  ;;  %v5902_v54 = vadd.f32 %v13470_v30, %v5813_v5  ;;  %v16470_v30 = vld [vmem:[#allocation116_spill] sm:$0xff]  ;;  %v16479_v16 = vld [vmem:[#allocation94_spill] sm:$0xff] }
 0x80f   : > { %6830 = vmatpush.bf16.msrb.mxu1 %v16464_v11  ;;  %7008 = vmatpush.bf16.msrb.mxu3 %v16465_v35  ;;  %v13698_v63 = vpack.c.bf16 %v7289_v17, %v7285_v52  ;;  %v16469_v35 = vld [vmem:[#allocation50_spill] sm:$0xff]  ;;  %v16471_v52 = vld [vmem:[#allocation56_spill] sm:$0xff] }
 0x810   : > { %v5990_v44 = vpop.f32.mrf.mxu3  ;;  %v13702_v36 = vpop.f32.mrf.mxu2  ;;  %v5729_v43 = vadd.f32 %v13491_v34, %v16471_v52  ;;  %v16477_v52 = vld [vmem:[#allocation114_spill] sm:$0xff] }
 0x811   : > { %16466 = vst [vmem:[#allocation122_spill] sm:$0xff] %v13698_v63  ;;  %v5991_v2 = vadd.f32 %v5990_v44, %v5902_v54 }
 0x813   : > { %v5814_v8 = vpop.f32.mrf.mxu1  ;;  %v13704_v1 = vpop.f32.mrf.mxu0  ;;  %6831 = vmatpush.bf16.msrb.mxu1 %v16467_v22  ;;  %7009 = vmatpush.bf16.msrb.mxu3 %v16468_v21  ;;  %v7165_v54 = vmul.f32 0.01, %v5991_v2  ;;  %v16472_v22 = vld [vmem:[#allocation41_spill] sm:$0xff]  ;;  %v16473_v21 = vld [vmem:[#allocation110_spill] sm:$0xff] }
 0x814   : > { %v5815_v11 = vadd.f32 %v5814_v8, %v5726_v28 }
 0x816   : > { %v5904_v5 = vadd.f32 %v13487_v33, %v5815_v11  ;;  %v16475_v33 = vld [vmem:[#allocation9_spill] sm:$0xff]  ;;  %v7293_v11 = vmax.f32 %v5991_v2, %v7165_v54 }
 0x817   : > { %6832 = vmatpush.bf16.msrb.mxu1 %v16469_v35  ;;  %7010 = vmatpush.bf16.msrb.mxu3 %v16470_v30  ;;  %v16474_v35 = vld [vmem:[#allocation12_spill] sm:$0xff]  ;;  %v16476_v30 = vld [vmem:[#allocation134_spill] sm:$0xff] }
 0x818   : > { %v5992_v17 = vpop.f32.mrf.mxu3  ;;  %v13713_v63 = vpop.f32.mrf.mxu2 }
 0x819   : > { %v5993_v44 = vadd.f32 %v5992_v17, %v5904_v5 }
 0x81b   : > { %v5817_v42 = vpop.f32.mrf.mxu1  ;;  %v13715_v23 = vpop.f32.mrf.mxu0  ;;  %6833 = vmatpush.bf16.msrb.mxu1 %v16472_v22  ;;  %7011 = vmatpush.bf16.msrb.mxu3 %v16473_v21  ;;  %v7169_v8 = vmul.f32 0.01, %v5993_v44  ;;  %v5731_v22 = vadd.f32 %v13508_v12, %v16479_v16 }
 0x81c   : > { %v5818_v28 = vadd.f32 %v5817_v42, %v5729_v43 }
 0x81d   : > { %v7297_v34 = vmax.f32 %v5993_v44, %v7169_v8  ;;  %6261 = vmatmul.bf16.gmra.mxu2 %v16476_v30  ;;  %6310 = vmatmul.bf16.gmra.mxu3 %v16477_v52  ;;  %v16480_v44 = vld [vmem:[#allocation25_spill] sm:$0xff] }
 0x81e   : > { %6083 = vmatmul.bf16.gmra.mxu0 %v16474_v35  ;;  %6132 = vmatmul.bf16.gmra.mxu1 %v16475_v33  ;;  %v5907_v5 = vadd.f32 %v13506_v14, %v5818_v28  ;;  %v5734_v8 = vadd.f32 %v13521_v13, %v16480_v44 }
 0x81f   : > { %v13724_v17 = vpack.c.bf16 %v7297_v34, %v7293_v11 }
 0x820   : > { %v5995_v21 = vpop.f32.mrf.mxu3  ;;  %v13728_v42 = vpop.f32.mrf.mxu2 }
 0x821   : > { %16478 = vst [vmem:[#allocation51_spill] sm:$0xff] %v13724_v17  ;;  %v5996_v43 = vadd.f32 %v5995_v21, %v5907_v5  ;;  %v16481_v5 = vld [vmem:[#allocation109_spill] sm:$0xff] }
 0x822   : > { %v16482_v21 = vld [vmem:[#allocation89_spill] sm:$0xff] }
 0x823   : > { %v5819_v35 = vpop.f32.mrf.mxu1  ;;  %v13730_v4 = vpop.f32.mrf.mxu0  ;;  %v7173_v28 = vmul.f32 0.01, %v5996_v43 }
 0x824   : > { %v5820_v2 = vadd.f32 %v5819_v35, %v5731_v22 }
 0x825   : > { %v7301_v35 = vmax.f32 %v5996_v43, %v7173_v28  ;;  %v16487_v28 = vld [vmem:[#allocation24_spill] sm:$0xff] }
 0x826   : > { %v5909_v54 = vadd.f32 %v13517_v37, %v5820_v2  ;;  %v16483_v37 = vld [vmem:[#allocation118_spill] sm:$0xff]  ;;  %v16484_v2 = vld [vmem:[#allocation81_spill] sm:$0xff] }
 0x828   : > { %v5997_v52 = vpop.f32.mrf.mxu3  ;;  %v13735_v14 = vpop.f32.mrf.mxu2 }
 0x829   : > { %v5998_v11 = vadd.f32 %v5997_v52, %v5909_v54  ;;  %v16486_v52 = vld [vmem:[#allocation83_spill] sm:$0xff] }
 0x82a   : > { %v5736_v54 = vadd.f32 %v13536_v3, %v16486_v52 }
 0x82b   : > { %v5822_v34 = vpop.f32.mrf.mxu1  ;;  %v13737_v12 = vpop.f32.mrf.mxu0  ;;  %v7177_v30 = vmul.f32 0.01, %v5998_v11 }
 0x82c   : > { %v5823_v16 = vadd.f32 %v5822_v34, %v5734_v8 }
 0x82d   : > { %v7305_v22 = vmax.f32 %v5998_v11, %v7177_v30  ;;  %6266 = vmatmul.bf16.gmra.mxu2 %v16483_v37  ;;  %6315 = vmatmul.bf16.gmra.mxu3 %v16484_v2  ;;  %v5739_v11 = vadd.f32 %v13549_v7, %v16487_v28 }
 0x82e   : > { %6088 = vmatmul.bf16.gmra.mxu0 %v16481_v5  ;;  %6137 = vmatmul.bf16.gmra.mxu1 %v16482_v21  ;;  %v5912_v13 = vadd.f32 %v13534_v41, %v5823_v16 }
 0x82f   : > { %v13744_v44 = vpack.c.bf16 %v7305_v22, %v7301_v35 }
 0x830   : > { %v6000_v33 = vpop.f32.mrf.mxu3  ;;  %v13748_v8 = vpop.f32.mrf.mxu2 }
 0x831   : > { %16485 = vst [vmem:[#allocation125_spill] sm:$0xff] %v13744_v44  ;;  %v6001_v34 = vadd.f32 %v6000_v33, %v5912_v13  ;;  %v16488_v33 = vld [vmem:[#allocation124_spill] sm:$0xff]  ;;  %v16489_v13 = vld [vmem:[#allocation77_spill] sm:$0xff] }
 0x833   : > { %v5824_v5 = vpop.f32.mrf.mxu1  ;;  %v13750_v17 = vpop.f32.mrf.mxu0  ;;  %v7181_v16 = vmul.f32 0.01, %v6001_v34 }
 0x834   : > { %v5825_v43 = vadd.f32 %v5824_v5, %v5736_v54 }
 0x835   : > { %v7309_v5 = vmax.f32 %v6001_v34, %v7181_v16  ;;  %v16494_v16 = vld [vmem:[#allocation123_spill] sm:$0xff] }
 0x836   : > { %v5914_v30 = vadd.f32 %v13545_v9, %v5825_v43  ;;  %v16490_v9 = vld [vmem:[#allocation66_spill] sm:$0xff] }
 0x837   : > { %v16491_v43 = vld [vmem:[#allocation126_spill] sm:$0xff] }
 0x838   : > { %v6002_v2 = vpop.f32.mrf.mxu3  ;;  %v13755_v41 = vpop.f32.mrf.mxu2 }
 0x839   : > { %v6003_v35 = vadd.f32 %v6002_v2, %v5914_v30  ;;  %v16493_v2 = vld [vmem:[#allocation103_spill] sm:$0xff] }
 0x83a   : > { %v5741_v30 = vadd.f32 %v13564_v38, %v16493_v2 }
 0x83b   : > { %v5827_v22 = vpop.f32.mrf.mxu1  ;;  %v13757_v3 = vpop.f32.mrf.mxu0  ;;  %v7185_v37 = vmul.f32 0.01, %v6003_v35 }
 0x83c   : > { %v5828_v52 = vadd.f32 %v5827_v22, %v5739_v11 }
 0x83d   : > { %v7313_v54 = vmax.f32 %v6003_v35, %v7185_v37  ;;  %6271 = vmatmul.bf16.gmra.mxu2 %v16490_v9  ;;  %6320 = vmatmul.bf16.gmra.mxu3 %v16491_v43  ;;  %v5744_v35 = vadd.f32 %v13577_v0, %v16494_v16 }
 0x83e   : > { %6093 = vmatmul.bf16.gmra.mxu0 %v16488_v33  ;;  %6142 = vmatmul.bf16.gmra.mxu1 %v16489_v13  ;;  %v5917_v7 = vadd.f32 %v13562_v61, %v5828_v52 }
 0x83f   : > { %v13764_v28 = vpack.c.bf16 %v7313_v54, %v7309_v5 }
 0x840   : > { %v6005_v21 = vpop.f32.mrf.mxu3  ;;  %v13768_v11 = vpop.f32.mrf.mxu2 }
 0x841   : > { %16492 = vst [vmem:[#allocation42_spill] sm:$0xff] %v13764_v28  ;;  %v6006_v22 = vadd.f32 %v6005_v21, %v5917_v7  ;;  %v16495_v21 = vld [vmem:[#allocation53_spill] sm:$0xff]  ;;  %v16496_v7 = vld [vmem:[#allocation15_spill] sm:$0xff] }
 0x843   : > { %v5829_v33 = vpop.f32.mrf.mxu1  ;;  %v13770_v44 = vpop.f32.mrf.mxu0  ;;  %v7189_v52 = vmul.f32 0.01, %v6006_v22 }
 0x844   : > { %v5830_v34 = vadd.f32 %v5829_v33, %v5741_v30 }
 0x845   : > { %v7317_v33 = vmax.f32 %v6006_v22, %v7189_v52  ;;  %v16501_v52 = vld [vmem:[#allocation130_spill] sm:$0xff] }
 0x846   : > { %v5919_v37 = vadd.f32 %v13573_v59, %v5830_v34  ;;  %v16497_v59 = vld [vmem:[#allocation132_spill] sm:$0xff]  ;;  %v16498_v34 = vld [vmem:[#allocation133_spill] sm:$0xff] }
 0x848   : > { %v6007_v43 = vpop.f32.mrf.mxu3  ;;  %v13775_v61 = vpop.f32.mrf.mxu2 }
 0x849   : > { %v6008_v5 = vadd.f32 %v6007_v43, %v5919_v37  ;;  %v16500_v43 = vld [vmem:[#allocation8_spill] sm:$0xff] }
 0x84a   : > { %v5746_v37 = vadd.f32 %v13592_v50, %v16500_v43 }
 0x84b   : > { %v5832_v54 = vpop.f32.mrf.mxu1  ;;  %v13777_v38 = vpop.f32.mrf.mxu0  ;;  %v7193_v9 = vmul.f32 0.01, %v6008_v5 }
 0x84c   : > { %v5833_v2 = vadd.f32 %v5832_v54, %v5744_v35 }
 0x84d   : > { %v7321_v30 = vmax.f32 %v6008_v5, %v7193_v9  ;;  %6276 = vmatmul.bf16.gmra.mxu2 %v16497_v59  ;;  %6325 = vmatmul.bf16.gmra.mxu3 %v16498_v34  ;;  %v5749_v5 = vadd.f32 %v13605_v10, %v16501_v52 }
 0x84e   : > { %6098 = vmatmul.bf16.gmra.mxu0 %v16495_v21  ;;  %6147 = vmatmul.bf16.gmra.mxu1 %v16496_v7  ;;  %v5922_v0 = vadd.f32 %v13590_v58, %v5833_v2 }
 0x84f   : > { %v13784_v16 = vpack.c.bf16 %v7321_v30, %v7317_v33 }
 0x850   : > { %v6010_v13 = vpop.f32.mrf.mxu3  ;;  %v13788_v35 = vpop.f32.mrf.mxu2 }
 0x851   : > { %16499 = vst [vmem:[#allocation128_spill] sm:$0xff] %v13784_v16  ;;  %v6011_v54 = vadd.f32 %v6010_v13, %v5922_v0  ;;  %v16502_v13 = vld [vmem:[#allocation112_spill] sm:$0xff]  ;;  %v16503_v0 = vld [vmem:[#allocation90_spill] sm:$0xff] }
 0x853   : > { %v5834_v21 = vpop.f32.mrf.mxu1  ;;  %v13790_v28 = vpop.f32.mrf.mxu0  ;;  %v7197_v2 = vmul.f32 0.01, %v6011_v54 }
 0x854   : > { %v5835_v22 = vadd.f32 %v5834_v21, %v5746_v37 }
 0x855   : > { %v7325_v21 = vmax.f32 %v6011_v54, %v7197_v2  ;;  %v16508_v2 = vld [vmem:[#allocation115_spill] sm:$0xff] }
 0x856   : > { %v5924_v9 = vadd.f32 %v13601_v49, %v5835_v22  ;;  %v16504_v49 = vld [vmem:[#allocation73_spill] sm:$0xff] }
 0x857   : > { %v16505_v22 = vld [vmem:[#allocation49_spill] sm:$0xff] }
 0x858   : > { %v6012_v34 = vpop.f32.mrf.mxu3  ;;  %v13795_v58 = vpop.f32.mrf.mxu2 }
 0x859   : > { %v6013_v33 = vadd.f32 %v6012_v34, %v5924_v9  ;;  %v16507_v34 = vld [vmem:[#allocation120_spill] sm:$0xff] }
 0x85a   : > { %v5751_v9 = vadd.f32 %v13620_v26, %v16507_v34 }
 0x85b   : > { %v5837_v30 = vpop.f32.mrf.mxu1  ;;  %v13797_v50 = vpop.f32.mrf.mxu0  ;;  %v7201_v59 = vmul.f32 0.01, %v6013_v33 }
 0x85c   : > { %v5838_v43 = vadd.f32 %v5837_v30, %v5749_v5 }
 0x85d   : > { %v7329_v37 = vmax.f32 %v6013_v33, %v7201_v59  ;;  %6281 = vmatmul.bf16.gmra.mxu2 %v16504_v49  ;;  %6330 = vmatmul.bf16.gmra.mxu3 %v16505_v22  ;;  %v5754_v33 = vadd.f32 %v13633_v24, %v16508_v2 }
 0x85e   : > { %6103 = vmatmul.bf16.gmra.mxu0 %v16502_v13  ;;  %6152 = vmatmul.bf16.gmra.mxu1 %v16503_v0  ;;  %v5927_v10 = vadd.f32 %v13618_v20, %v5838_v43 }
 0x85f   : > { %v13804_v52 = vpack.c.bf16 %v7329_v37, %v7325_v21 }
 0x860   : > { %v6015_v7 = vpop.f32.mrf.mxu3  ;;  %v13808_v5 = vpop.f32.mrf.mxu2 }
 0x861   : > { %16506 = vst [vmem:[#allocation95_spill] sm:$0xff] %v13804_v52  ;;  %v6016_v30 = vadd.f32 %v6015_v7, %v5927_v10  ;;  %v16509_v7 = vld [vmem:[#allocation10_spill] sm:$0xff]  ;;  %v16510_v10 = vld [vmem:[#allocation100_spill] sm:$0xff] }
 0x863   : > { %v5839_v13 = vpop.f32.mrf.mxu1  ;;  %v13810_v16 = vpop.f32.mrf.mxu0  ;;  %v7205_v43 = vmul.f32 0.01, %v6016_v30 }
 0x864   : > { %v5840_v54 = vadd.f32 %v5839_v13, %v5751_v9 }
 0x865   : > { %v7333_v13 = vmax.f32 %v6016_v30, %v7205_v43  ;;  %v6035_v43 = vadd.f32 %v13659_v15, %v13398_v29 }
 0x866   : > { %v5929_v59 = vadd.f32 %v13629_v31, %v5840_v54  ;;  %v16511_v31 = vld [vmem:[#allocation11_spill] sm:$0xff] }
 0x867   : > { %v16512_v54 = vld [vmem:[#allocation63_spill] sm:$0xff] }
 0x868   : > { %v6017_v22 = vpop.f32.mrf.mxu3  ;;  %v13815_v20 = vpop.f32.mrf.mxu2 }
 0x869   : > { %v6018_v21 = vadd.f32 %v6017_v22, %v5929_v59  ;;  %v16513_v22 = vld [vmem:[#allocation127_spill] sm:$0xff] }
 0x86a   : > { %v5756_v59 = vadd.f32 %v13650_v39, %v16513_v22 }
 0x86b   : > { %v5842_v37 = vpop.f32.mrf.mxu1  ;;  %v13817_v26 = vpop.f32.mrf.mxu0  ;;  %v7209_v49 = vmul.f32 0.01, %v6018_v21 }
 0x86c   : > { %v5843_v34 = vadd.f32 %v5842_v37, %v5754_v33 }
 0x86d   : > { %v7337_v9 = vmax.f32 %v6018_v21, %v7209_v49  ;;  %6286 = vmatmul.bf16.gmra.mxu2 %v16511_v31  ;;  %6335 = vmatmul.bf16.gmra.mxu3 %v16512_v54 }
 0x86e   : > { %6108 = vmatmul.bf16.gmra.mxu0 %v16509_v7  ;;  %6157 = vmatmul.bf16.gmra.mxu1 %v16510_v10  ;;  %v5932_v24 = vadd.f32 %v13648_v18, %v5843_v34 }
 0x86f   : > { %v13824_v2 = vpack.c.bf16 %v7337_v9, %v7333_v13 }
 0x870   : > { %v6020_v0 = vpop.f32.mrf.mxu3  ;;  %v13828_v33 = vpop.f32.mrf.mxu2 }
 0x871   : > { %v6021_v37 = vadd.f32 %v6020_v0, %v5932_v24  ;;  %v16514_v24 = vld [vmem:[#allocation80_spill] sm:$0xff] }
 0x873   : > { %v5844_v7 = vpop.f32.mrf.mxu1  ;;  %v13830_v52 = vpop.f32.mrf.mxu0  ;;  %v7213_v34 = vmul.f32 0.01, %v6021_v37 }
 0x874   : > { %v5845_v30 = vadd.f32 %v5844_v7, %v5756_v59  ;;  %v6037_v59 = vadd.f32 %v13676_v27, %v16514_v24  ;;  %v16544_v24 = vld [vmem:[#allocation138_spill] sm:$0xff] }
 0x875   : > { %v7341_v0 = vmax.f32 %v6021_v37, %v7213_v34 }
 0x876   : > { %v5934_v49 = vadd.f32 %v13657_v46, %v5845_v30 }
 0x878   : > { %v6022_v21 = vpop.f32.mrf.mxu3  ;;  %v13835_v18 = vpop.f32.mrf.mxu2 }
 0x879   : > { %v6023_v13 = vadd.f32 %v6022_v21, %v5934_v49 }
 0x87b   : > { %v13837_v9 = vpop.f32.mrf.mxu0  ;;  %v6123_v39 = vpop.f32.mrf.mxu1  ;;  %v7217_v54 = vmul.f32 0.01, %v6023_v13 }
 0x87c   : > { %v6124_v22 = vadd.f32 %v6123_v39, %v6035_v43 }
 0x87d   : > { %v7345_v7 = vmax.f32 %v6023_v13, %v7217_v54  ;;  %6340 = vmatmul.bf16.gmra.mxu3 %v13410_v55  ;;  %6567 = vmatmul.bf16.vlgmr.msra.gmra.mxu2 %v16385_v53 }
 0x87e   : > { %6162 = vmatmul.bf16.gmra.mxu1 %v13406_v60  ;;  %6389 = vmatmul.bf16.vlgmr.msra.gmra.mxu0 %v16383_v57  ;;  %v6213_v46 = vadd.f32 %v13674_v6, %v6124_v22  ;;  %v6040_v6 = vadd.f32 %v13687_v32, %v13441_v25  ;;  %v16515_v32 = vld [vmem:[#allocation62_spill] sm:$0xff] }
 0x87f   : > { %7605 = vmatpush.bf16.msra.mxu0 %v13669_v56  ;;  %v13844_v15 = vpack.c.bf16 %v7345_v7, %v7341_v0 }
 0x880   : > { %v13849_v30 = vpop.f32.mrf.mxu2  ;;  %v6301_v49 = vpop.f32.mrf.mxu3 }
 0x881   : > { %v6302_v43 = vadd.f32 %v6301_v49, %v6213_v46  ;;  %v16516_v46 = vld [vmem:[#allocation59_spill] sm:$0xff] }
 0x883   : > { %v13851_v21 = vpop.f32.mrf.mxu0  ;;  %v6125_v54 = vpop.f32.mrf.mxu1  ;;  %7606 = vmatpush.bf16.msra.mxu0 %v13644_v62  ;;  %v7094_v34 = vmul.f32 0.01, %v6302_v43 }
 0x884   : > { %v6126_v37 = vadd.f32 %v6125_v54, %v6037_v59  ;;  %v16517_v54 = vld [vmem:[#allocation13_spill] sm:$0xff] }
 0x886   : > { %v6215_v56 = vadd.f32 %v13685_v51, %v6126_v37 }
 0x887   : > { %7607 = vmatpush.bf16.msra.mxu0 %v13614_v45  ;;  %v7222_v45 = vmax.f32 %v6302_v43, %v7094_v34  ;;  %v16518_v34 = vld [vmem:[#allocation57_spill] sm:$0xff] }
 0x888   : > { %v13858_v22 = vpop.f32.mrf.mxu2  ;;  %v6303_v27 = vpop.f32.mrf.mxu3 }
 0x889   : > { %v6304_v13 = vadd.f32 %v6303_v27, %v6215_v56 }
 0x88b   : > { %v13860_v39 = vpop.f32.mrf.mxu0  ;;  %v6128_v0 = vpop.f32.mrf.mxu1  ;;  %7608 = vmatpush.bf16.msra.mxu0 %v13586_v40  ;;  %v7098_v62 = vmul.f32 0.01, %v6304_v13  ;;  %v6042_v40 = vadd.f32 %v13704_v1, %v16517_v54 }
 0x88c   : > { %v6129_v7 = vadd.f32 %v6128_v0, %v6040_v6  ;;  %v16519_v0 = vld [vmem:[#allocation35_spill] sm:$0xff] }
 0x88d   : > { %v7226_v51 = vmax.f32 %v6304_v13, %v7098_v62  ;;  %6345 = vmatmul.bf16.gmra.mxu3 %v13453_v47  ;;  %6572 = vmatmul.bf16.gmra.mxu2 %v16515_v32 }
 0x88e   : > { %6167 = vmatmul.bf16.gmra.mxu1 %v13449_v48  ;;  %6394 = vmatmul.bf16.gmra.mxu0 %v16397_v19  ;;  %v6218_v59 = vadd.f32 %v13702_v36, %v6129_v7  ;;  %v16520_v36 = vld [vmem:[#allocation52_spill] sm:$0xff] }
 0x88f   : > { %7609 = vmatpush.bf16.msra.mxu0 %v16516_v46  ;;  %v13869_v49 = vpack.c.bf16 %v7226_v51, %v7222_v45  ;;  %v6045_v7 = vadd.f32 %v13715_v23, %v16520_v36  ;;  %v16525_v23 = vld [vmem:[#allocation86_spill] sm:$0xff] }
 0x890   : > { %v13873_v37 = vpop.f32.mrf.mxu2  ;;  %v6306_v56 = vpop.f32.mrf.mxu3 }
 0x891   : > { %v6307_v6 = vadd.f32 %v6306_v56, %v6218_v59  ;;  %v16521_v56 = vld [vmem:[#allocation17_spill] sm:$0xff] }
 0x893   : > { %v13875_v27 = vpop.f32.mrf.mxu0  ;;  %v6130_v43 = vpop.f32.mrf.mxu1  ;;  %7610 = vmatpush.bf16.msra.mxu0 %v16518_v34  ;;  %v7102_v51 = vmul.f32 0.01, %v6307_v6 }
 0x894   : > { %v6131_v13 = vadd.f32 %v6130_v43, %v6042_v40  ;;  %v16522_v40 = vld [vmem:[#allocation87_spill] sm:$0xff]  ;;  %v16523_v43 = vld [vmem:[#allocation85_spill] sm:$0xff] }
 0x896   : > { %v6220_v62 = vadd.f32 %v13713_v63, %v6131_v13  ;;  %v7230_v63 = vmax.f32 %v6307_v6, %v7102_v51 }
 0x897   : > { %7611 = vmatpush.bf16.msra.mxu0 %v16519_v0  ;;  %v16524_v0 = vld [vmem:[#allocation74_spill] sm:$0xff] }
 0x898   : > { %v13882_v45 = vpop.f32.mrf.mxu2  ;;  %v6308_v1 = vpop.f32.mrf.mxu3 }
 0x899   : > { %v6309_v46 = vadd.f32 %v6308_v1, %v6220_v62  ;;  %v16526_v1 = vld [vmem:[#allocation65_spill] sm:$0xff] }
 0x89a   : > { %v6047_v47 = vadd.f32 %v13730_v4, %v16526_v1 }
 0x89b   : > { %v13884_v54 = vpop.f32.mrf.mxu0  ;;  %v6133_v59 = vpop.f32.mrf.mxu1  ;;  %7612 = vmatpush.bf16.msra.mxu0 %v16521_v56  ;;  %v7106_v34 = vmul.f32 0.01, %v6309_v46 }
 0x89c   : > { %v6134_v32 = vadd.f32 %v6133_v59, %v6045_v7 }
 0x89d   : > { %v7234_v13 = vmax.f32 %v6309_v46, %v7106_v34  ;;  %6350 = vmatmul.bf16.gmra.mxu3 %v16524_v0  ;;  %6577 = vmatmul.bf16.gmra.mxu2 %v16525_v23  ;;  %v16527_v46 = vld [vmem:[#allocation29_spill] sm:$0xff] }
 0x89e   : > { %6172 = vmatmul.bf16.gmra.mxu1 %v16522_v40  ;;  %6399 = vmatmul.bf16.gmra.mxu0 %v16523_v43  ;;  %v6223_v36 = vadd.f32 %v13728_v42, %v6134_v32  ;;  %v6050_v34 = vadd.f32 %v13737_v12, %v16527_v46 }
 0x89f   : > { %v13892_v62 = vpack.c.bf16 %v7234_v13, %v7230_v63 }
 0x8a0   : > { %v13896_v56 = vpop.f32.mrf.mxu2  ;;  %v6311_v7 = vpop.f32.mrf.mxu3 }
 0x8a1   : > { %v6312_v59 = vadd.f32 %v6311_v7, %v6223_v36  ;;  %v16528_v36 = vld [vmem:[#allocation45_spill] sm:$0xff]  ;;  %v16529_v7 = vld [vmem:[#allocation75_spill] sm:$0xff] }
 0x8a3   : > { %v13898_v40 = vpop.f32.mrf.mxu0  ;;  %v6135_v43 = vpop.f32.mrf.mxu1  ;;  %v7110_v32 = vmul.f32 0.01, %v6312_v59 }
 0x8a4   : > { %v6136_v6 = vadd.f32 %v6135_v43, %v6047_v47 }
 0x8a5   : > { %v7238_v47 = vmax.f32 %v6312_v59, %v7110_v32  ;;  %v16533_v32 = vld [vmem:[#allocation106_spill] sm:$0xff] }
 0x8a6   : > { %v6225_v51 = vadd.f32 %v13735_v14, %v6136_v6  ;;  %v16530_v14 = vld [vmem:[#allocation19_spill] sm:$0xff] }
 0x8a7   : > { %v16531_v6 = vld [vmem:[#allocation91_spill] sm:$0xff] }
 0x8a8   : > { %v13903_v23 = vpop.f32.mrf.mxu2  ;;  %v6313_v42 = vpop.f32.mrf.mxu3 }
 0x8a9   : > { %v6314_v63 = vadd.f32 %v6313_v42, %v6225_v51  ;;  %v16532_v51 = vld [vmem:[#allocation33_spill] sm:$0xff] }
 0x8aa   : > { %v6052_v42 = vadd.f32 %v13750_v17, %v16532_v51 }
 0x8ab   : > { %v13905_v13 = vpop.f32.mrf.mxu0  ;;  %v6138_v4 = vpop.f32.mrf.mxu1  ;;  %v7114_v0 = vmul.f32 0.01, %v6314_v63 }
 0x8ac   : > { %v6139_v1 = vadd.f32 %v6138_v4, %v6050_v34 }
 0x8ad   : > { %v7242_v43 = vmax.f32 %v6314_v63, %v7114_v0  ;;  %6355 = vmatmul.bf16.gmra.mxu3 %v16530_v14  ;;  %6582 = vmatmul.bf16.gmra.mxu2 %v16531_v6  ;;  %v6055_v63 = vadd.f32 %v13757_v3, %v16533_v32 }
 0x8ae   : > { %6177 = vmatmul.bf16.gmra.mxu1 %v16528_v36  ;;  %6404 = vmatmul.bf16.gmra.mxu0 %v16529_v7  ;;  %v6228_v12 = vadd.f32 %v13748_v8, %v6139_v1 }
 0x8af   : > { %v13912_v46 = vpack.c.bf16 %v7242_v43, %v7238_v47 }
 0x8b0   : > { %v13916_v19 = vpop.f32.mrf.mxu2  ;;  %v6316_v34 = vpop.f32.mrf.mxu3 }
 0x8b1   : > { %v6317_v4 = vadd.f32 %v6316_v34, %v6228_v12  ;;  %v16534_v12 = vld [vmem:[#allocation26_spill] sm:$0xff]  ;;  %v16535_v34 = vld [vmem:[#allocation93_spill] sm:$0xff] }
 0x8b3   : > { %v13918_v36 = vpop.f32.mrf.mxu0  ;;  %v6140_v7 = vpop.f32.mrf.mxu1  ;;  %v7118_v1 = vmul.f32 0.01, %v6317_v4 }
 0x8b4   : > { %v6141_v59 = vadd.f32 %v6140_v7, %v6052_v42 }
 0x8b5   : > { %v7246_v7 = vmax.f32 %v6317_v4, %v7118_v1 }
 0x8b6   : > { %v6230_v0 = vadd.f32 %v13755_v41, %v6141_v59  ;;  %v16536_v41 = vld [vmem:[#allocation32_spill] sm:$0xff]  ;;  %v16537_v59 = vld [vmem:[#allocation82_spill] sm:$0xff] }
 0x8b8   : > { %v13923_v6 = vpop.f32.mrf.mxu2  ;;  %v6318_v8 = vpop.f32.mrf.mxu3 }
 0x8b9   : > { %v6319_v47 = vadd.f32 %v6318_v8, %v6230_v0  ;;  %v16538_v0 = vld [vmem:[#allocation129_spill] sm:$0xff] }
 0x8ba   : > { %v6057_v8 = vadd.f32 %v13770_v44, %v16538_v0  ;;  %v16539_v44 = vld [vmem:[#allocation23_spill] sm:$0xff]  ;;  %v16540_v0 = vld [vmem:[#allocation96_spill] sm:$0xff] }
 0x8bb   : > { %v13925_v43 = vpop.f32.mrf.mxu0  ;;  %v6143_v17 = vpop.f32.mrf.mxu1  ;;  %v7122_v14 = vmul.f32 0.01, %v6319_v47 }
 0x8bc   : > { %v6144_v51 = vadd.f32 %v6143_v17, %v6055_v63 }
 0x8bd   : > { %v7250_v42 = vmax.f32 %v6319_v47, %v7122_v14  ;;  %6360 = vmatmul.bf16.gmra.mxu3 %v16536_v41  ;;  %6587 = vmatmul.bf16.gmra.mxu2 %v16537_v59 }
 0x8be   : > { %6182 = vmatmul.bf16.gmra.mxu1 %v16534_v12  ;;  %6409 = vmatmul.bf16.gmra.mxu0 %v16535_v34  ;;  %v6233_v3 = vadd.f32 %v13768_v11, %v6144_v51 }
 0x8bf   : > { %v13932_v32 = vpack.c.bf16 %v7250_v42, %v7246_v7 }
 0x8c0   : > { %v13936_v48 = vpop.f32.mrf.mxu2  ;;  %v6321_v63 = vpop.f32.mrf.mxu3 }
 0x8c1   : > { %v6322_v17 = vadd.f32 %v6321_v63, %v6233_v3  ;;  %v16541_v3 = vld [vmem:[#allocation48_spill] sm:$0xff] }
 0x8c2   : > { %v6060_v63 = vadd.f32 %v13777_v38, %v16541_v3  ;;  %v16545_v3 = vld [vmem:[#allocation102_spill] sm:$0xff] }
 0x8c3   : > { %v13938_v12 = vpop.f32.mrf.mxu0  ;;  %v6145_v34 = vpop.f32.mrf.mxu1  ;;  %v7126_v59 = vmul.f32 0.01, %v6322_v17 }
 0x8c4   : > { %v6146_v4 = vadd.f32 %v6145_v34, %v6057_v8  ;;  %v16542_v8 = vld [vmem:[#allocation30_spill] sm:$0xff] }
 0x8c5   : > { %v7254_v41 = vmax.f32 %v6322_v17, %v7126_v59 }
 0x8c6   : > { %v6235_v14 = vadd.f32 %v13775_v61, %v6146_v4  ;;  %v16543_v61 = vld [vmem:[#allocation39_spill] sm:$0xff] }
 0x8c8   : > { %v13941_v1 = vpop.f32.mrf.mxu2  ;;  %v6323_v47 = vpop.f32.mrf.mxu3 }
 0x8c9   : > { %v6324_v11 = vadd.f32 %v6323_v47, %v6235_v14 }
 0x8cb   : > { %v13943_v51 = vpop.f32.mrf.mxu0  ;;  %v6148_v7 = vpop.f32.mrf.mxu1  ;;  %v7130_v42 = vmul.f32 0.01, %v6324_v11 }
 0x8cc   : > { %v6149_v4 = vadd.f32 %v6148_v7, %v6060_v63 }
 0x8cd   : > { %v7258_v34 = vmax.f32 %v6324_v11, %v7130_v42  ;;  %6365 = vmatmul.bf16.gmra.mxu3 %v16542_v8  ;;  %6592 = vmatmul.bf16.gmra.mxu2 %v16543_v61 }
 0x8ce   : > { %6187 = vmatmul.bf16.gmra.mxu1 %v16539_v44  ;;  %6414 = vmatmul.bf16.gmra.mxu0 %v16540_v0  ;;  %v6062_v44 = vadd.f32 %v13790_v28, %v16544_v24  ;;  %v6238_v38 = vadd.f32 %v13788_v35, %v6149_v4  ;;  %v16546_v28 = vld [vmem:[#allocation98_spill] sm:$0xff]  ;;  %v16547_v24 = vld [vmem:[#allocation117_spill] sm:$0xff]  ;;  %v16548_v4 = vld [vmem:[#allocation104_spill] sm:$0xff] }
 0x8cf   : > { %v13951_v25 = vpack.c.bf16 %v7258_v34, %v7254_v41  ;;  %v6065_v35 = vadd.f32 %v13797_v50, %v16547_v24  ;;  %v16551_v24 = vld [vmem:[#allocation31_spill] sm:$0xff] }
 0x8d0   : > { %v13953_v14 = vpop.f32.mrf.mxu2  ;;  %v6326_v47 = vpop.f32.mrf.mxu3 }
 0x8d1   : > { %v6327_v17 = vadd.f32 %v6326_v47, %v6238_v38 }
 0x8d3   : > { %v13957_v53 = vpop.f32.mrf.mxu0  ;;  %v6150_v0 = vpop.f32.mrf.mxu1  ;;  %v7134_v41 = vmul.f32 0.01, %v6327_v17 }
 0x8d4   : > { %v6151_v59 = vadd.f32 %v6150_v0, %v6062_v44 }
 0x8d5   : > { %v7262_v0 = vmax.f32 %v6327_v17, %v7134_v41 }
 0x8d6   : > { %v6240_v11 = vadd.f32 %v13795_v58, %v6151_v59  ;;  %v16549_v58 = vld [vmem:[#allocation99_spill] sm:$0xff] }
 0x8d8   : > { %v13961_v42 = vpop.f32.mrf.mxu2  ;;  %v6328_v7 = vpop.f32.mrf.mxu3 }
 0x8d9   : > { %v6329_v63 = vadd.f32 %v6328_v7, %v6240_v11  ;;  %v16550_v7 = vld [vmem:[#allocation68_spill] sm:$0xff] }
 0x8db   : > { %v13963_v34 = vpop.f32.mrf.mxu0  ;;  %v6153_v61 = vpop.f32.mrf.mxu1  ;;  %v7138_v8 = vmul.f32 0.01, %v6329_v63 }
 0x8dc   : > { %v6154_v47 = vadd.f32 %v6153_v61, %v6065_v35 }
 0x8dd   : > { %v7266_v44 = vmax.f32 %v6329_v63, %v7138_v8  ;;  %6370 = vmatmul.bf16.gmra.mxu3 %v16548_v4  ;;  %6597 = vmatmul.bf16.gmra.mxu2 %v16549_v58 }
 0x8de   : > { %6192 = vmatmul.bf16.gmra.mxu1 %v16545_v3  ;;  %6419 = vmatmul.bf16.gmra.mxu0 %v16546_v28  ;;  %v6067_v3 = vadd.f32 %v13810_v16, %v16550_v7  ;;  %v6243_v50 = vadd.f32 %v13808_v5, %v6154_v47  ;;  %v16552_v16 = vld [vmem:[#allocation101_spill] sm:$0xff]  ;;  %v16553_v7 = vld [vmem:[#allocation70_spill] sm:$0xff] }
 0x8df   : > { %v13971_v38 = vpack.c.bf16 %v7266_v44, %v7262_v0  ;;  %v6070_v5 = vadd.f32 %v13817_v26, %v16553_v7  ;;  %v16554_v47 = vld [vmem:[#allocation105_spill] sm:$0xff]  ;;  %v16558_v7 = vld [vmem:[#allocation16_spill] sm:$0xff] }
 0x8e0   : > { %v13973_v59 = vpop.f32.mrf.mxu2  ;;  %v6331_v11 = vpop.f32.mrf.mxu3 }
 0x8e1   : > { %v6332_v8 = vadd.f32 %v6331_v11, %v6243_v50 }
 0x8e3   : > { %v13977_v55 = vpop.f32.mrf.mxu0  ;;  %v6155_v28 = vpop.f32.mrf.mxu1  ;;  %v7142_v35 = vmul.f32 0.01, %v6332_v8 }
 0x8e4   : > { %v6156_v17 = vadd.f32 %v6155_v28, %v6067_v3 }
 0x8e5   : > { %v7270_v3 = vmax.f32 %v6332_v8, %v7142_v35  ;;  %v16557_v35 = vld [vmem:[#allocation119_spill] sm:$0xff] }
 0x8e6   : > { %v6245_v41 = vadd.f32 %v13815_v20, %v6156_v17  ;;  %v16555_v20 = vld [vmem:[#allocation43_spill] sm:$0xff] }
 0x8e8   : > { %v13981_v63 = vpop.f32.mrf.mxu2  ;;  %v6333_v61 = vpop.f32.mrf.mxu3 }
 0x8e9   : > { %v6334_v0 = vadd.f32 %v6333_v61, %v6245_v41  ;;  %v16556_v61 = vld [vmem:[#allocation111_spill] sm:$0xff] }
 0x8ea   : > { %v6072_v57 = vadd.f32 %v13830_v52, %v16556_v61 }
 0x8eb   : > { %v13983_v44 = vpop.f32.mrf.mxu0  ;;  %v6158_v58 = vpop.f32.mrf.mxu1  ;;  %v7146_v4 = vmul.f32 0.01, %v6334_v0 }
 0x8ec   : > { %v6159_v11 = vadd.f32 %v6158_v58, %v6070_v5 }
 0x8ed   : > { %v7274_v28 = vmax.f32 %v6334_v0, %v7146_v4  ;;  %6375 = vmatmul.bf16.gmra.mxu3 %v16554_v47  ;;  %6602 = vmatmul.bf16.gmra.mxu2 %v16555_v20  ;;  %v6075_v0 = vadd.f32 %v13837_v9, %v16557_v35 }
 0x8ee   : > { %6197 = vmatmul.bf16.gmra.mxu1 %v16551_v24  ;;  %6424 = vmatmul.bf16.gmra.mxu0 %v16552_v16  ;;  %v6248_v60 = vadd.f32 %v13828_v33, %v6159_v11  ;;  %v16559_v33 = vld [vmem:[#allocation60_spill] sm:$0xff] }
 0x8ef   : > { %v7374_v50 = vpack.c.bf16 %v7274_v28, %v7270_v3 }
 0x8f0   : > { %v13991_v17 = vpop.f32.mrf.mxu2  ;;  %v6336_v41 = vpop.f32.mrf.mxu3 }
 0x8f1   : > { %v6337_v8 = vadd.f32 %v6336_v41, %v6248_v60  ;;  %v16562_v41 = vld [vmem:[#allocation40_spill] sm:$0xff] }
 0x8f3   : > { %v13995_v24 = vpop.f32.mrf.mxu0  ;;  %v6160_v16 = vpop.f32.mrf.mxu1  ;;  %v7150_v3 = vmul.f32 0.01, %v6337_v8 }
 0x8f4   : > { %v6161_v26 = vadd.f32 %v6160_v16, %v6072_v57  ;;  %v16561_v16 = vld [vmem:[#allocation108_spill] sm:$0xff] }
 0x8f5   : > { %v7278_v60 = vmax.f32 %v6337_v8, %v7150_v3  ;;  %v16563_v3 = vld [vmem:[#allocation95_spill] sm:$0xff] }
 0x8f6   : > { %v6250_v4 = vadd.f32 %v13835_v18, %v6161_v26  ;;  %v16560_v18 = vld [vmem:[#allocation107_spill] sm:$0xff]  ;;  %v6077_v26 = vadd.f32 %v13851_v21, %v16562_v41 }
 0x8f8   : > { %v14001_v58 = vpop.f32.mrf.mxu2  ;;  %v6338_v5 = vpop.f32.mrf.mxu3 }
 0x8f9   : > { %v6339_v28 = vadd.f32 %v6338_v5, %v6250_v4 }
 0x8fb   : > { %v6163_v20 = vpop.f32.mrf.mxu1  ;;  %v14003_v47 = vpop.f32.mrf.mxu0  ;;  %v7154_v61 = vmul.f32 0.01, %v6339_v28 }
 0x8fc   : > { %v6164_v52 = vadd.f32 %v6163_v20, %v6075_v0 }
 0x8fd   : > { %v7282_v57 = vmax.f32 %v6339_v28, %v7154_v61  ;;  %6607 = vmatmul.bf16.gmra.mxu2 %v16560_v18  ;;  %6656 = vmatmul.bf16.vlgmr.msra.gmra.mxu3 %v16561_v16 }
 0x8fe   : > { %6429 = vmatmul.bf16.gmra.mxu0 %v16558_v7  ;;  %6478 = vmatmul.bf16.vlgmr.msra.gmra.mxu1 %v16559_v33  ;;  %v6253_v11 = vadd.f32 %v13849_v30, %v6164_v52  ;;  %v16564_v30 = vld [vmem:[#allocation113_spill] sm:$0xff] }
 0x8ff   : > { %7654 = vmatpush.bf16.msra.mxu1 %v13844_v15  ;;  %v7378_v9 = vpack.c.bf16 %v7282_v57, %v7278_v60  ;;  %v6080_v28 = vadd.f32 %v13860_v39, %v16564_v30  ;;  %v16598_v30 = vld [vmem:[#allocation8_spill] sm:$0xff] }
 0x900   : > { %v6341_v20 = vpop.f32.mrf.mxu3  ;;  %v14013_v4 = vpop.f32.mrf.mxu2 }
 0x901   : > { %v6342_v0 = vadd.f32 %v6341_v20, %v6253_v11  ;;  %7703 = vmatpush.bf16.msra.mxu2 %v7378_v9  ;;  %v16566_v20 = vld [vmem:[#allocation47_spill] sm:$0xff] }
 0x903   : > { %v6165_v5 = vpop.f32.mrf.mxu1  ;;  %v14015_v8 = vpop.f32.mrf.mxu0  ;;  %7655 = vmatpush.bf16.msra.mxu1 %v13824_v2  ;;  %v7158_v60 = vmul.f32 0.01, %v6342_v0  ;;  %v16565_v2 = vld [vmem:[#allocation128_spill] sm:$0xff] }
 0x904   : > { %v6166_v61 = vadd.f32 %v6165_v5, %v6077_v26 }
 0x905   : > { %7704 = vmatpush.bf16.msra.mxu2 %v7374_v50  ;;  %v7286_v5 = vmax.f32 %v6342_v0, %v7158_v60 }
 0x906   : > { %v6255_v15 = vadd.f32 %v13858_v22, %v6166_v61  ;;  %v16567_v22 = vld [vmem:[#allocation58_spill] sm:$0xff] }
 0x907   : > { %7656 = vmatpush.bf16.msra.mxu1 %v16563_v3  ;;  %v16568_v61 = vld [vmem:[#allocation22_spill] sm:$0xff]  ;;  %v16569_v3 = vld [vmem:[#allocation61_spill] sm:$0xff] }
 0x908   : > { %v6343_v21 = vpop.f32.mrf.mxu3  ;;  %v14022_v52 = vpop.f32.mrf.mxu2 }
 0x909   : > { %v6344_v57 = vadd.f32 %v6343_v21, %v6255_v15  ;;  %7705 = vmatpush.bf16.msra.mxu2 %v13971_v38  ;;  %v16570_v15 = vld [vmem:[#allocation42_spill] sm:$0xff] }
 0x90b   : > { %v6168_v9 = vpop.f32.mrf.mxu1  ;;  %v14025_v11 = vpop.f32.mrf.mxu0  ;;  %7657 = vmatpush.bf16.msra.mxu1 %v16565_v2  ;;  %v7162_v26 = vmul.f32 0.01, %v6344_v57 }
 0x90c   : > { %v6169_v50 = vadd.f32 %v6168_v9, %v6080_v28  ;;  %v16571_v28 = vld [vmem:[#allocation36_spill] sm:$0xff] }
 0x90d   : > { %v7290_v39 = vmax.f32 %v6344_v57, %v7162_v26  ;;  %6612 = vmatmul.bf16.gmra.mxu2 %v16568_v61  ;;  %6661 = vmatmul.bf16.gmra.mxu3 %v16569_v3  ;;  %v6082_v9 = vadd.f32 %v13875_v27, %v16571_v28  ;;  %v16572_v26 = vld [vmem:[#allocation125_spill] sm:$0xff] }
 0x90e   : > { %6434 = vmatmul.bf16.gmra.mxu0 %v16566_v20  ;;  %6483 = vmatmul.bf16.gmra.mxu1 %v16567_v22  ;;  %v6258_v38 = vadd.f32 %v13873_v37, %v6169_v50  ;;  %v16574_v50 = vld [vmem:[#allocation56_spill] sm:$0xff] }
 0x90f   : > { %7658 = vmatpush.bf16.msra.mxu1 %v16570_v15  ;;  %7706 = vmatpush.bf16.msra.mxu2 %v13951_v25  ;;  %v14035_v21 = vpack.c.bf16 %v7290_v39, %v7286_v5  ;;  %v16573_v25 = vld [vmem:[#allocation51_spill] sm:$0xff]  ;;  %v6085_v27 = vadd.f32 %v13884_v54, %v16574_v50 }
 0x910   : > { %v6346_v2 = vpop.f32.mrf.mxu3  ;;  %v14039_v20 = vpop.f32.mrf.mxu2 }
 0x911   : > { %v6347_v0 = vadd.f32 %v6346_v2, %v6258_v38 }
 0x913   : > { %v6170_v60 = vpop.f32.mrf.mxu1  ;;  %v14041_v57 = vpop.f32.mrf.mxu0  ;;  %7659 = vmatpush.bf16.msra.mxu1 %v16572_v26  ;;  %7707 = vmatpush.bf16.msra.mxu2 %v13932_v32  ;;  %v7166_v38 = vmul.f32 0.01, %v6347_v0  ;;  %v16575_v26 = vld [vmem:[#allocation122_spill] sm:$0xff] }
 0x914   : > { %v6171_v15 = vadd.f32 %v6170_v60, %v6082_v9 }
 0x915   : > { %v7294_v60 = vmax.f32 %v6347_v0, %v7166_v38 }
 0x916   : > { %v6260_v37 = vadd.f32 %v13882_v45, %v6171_v15  ;;  %v16577_v45 = vld [vmem:[#allocation9_spill] sm:$0xff]  ;;  %v16578_v15 = vld [vmem:[#allocation134_spill] sm:$0xff] }
 0x917   : > { %7660 = vmatpush.bf16.msra.mxu1 %v16573_v25  ;;  %7708 = vmatpush.bf16.msra.mxu2 %v13912_v46  ;;  %v16576_v46 = vld [vmem:[#allocation12_spill] sm:$0xff]  ;;  %v16579_v25 = vld [vmem:[#allocation114_spill] sm:$0xff] }
 0x918   : > { %v6348_v5 = vpop.f32.mrf.mxu3  ;;  %v14050_v39 = vpop.f32.mrf.mxu2 }
 0x919   : > { %v6349_v2 = vadd.f32 %v6348_v5, %v6260_v37 }
 0x91b   : > { %v6173_v28 = vpop.f32.mrf.mxu1  ;;  %v14052_v3 = vpop.f32.mrf.mxu0  ;;  %7661 = vmatpush.bf16.msra.mxu1 %v16575_v26  ;;  %7709 = vmatpush.bf16.msra.mxu2 %v13892_v62  ;;  %v7170_v9 = vmul.f32 0.01, %v6349_v2  ;;  %v16580_v26 = vld [vmem:[#allocation94_spill] sm:$0xff] }
 0x91c   : > { %v6174_v32 = vadd.f32 %v6173_v28, %v6085_v27  ;;  %v6087_v62 = vadd.f32 %v13898_v40, %v16580_v26 }
 0x91d   : > { %v7298_v54 = vmax.f32 %v6349_v2, %v7170_v9  ;;  %6617 = vmatmul.bf16.gmra.mxu2 %v16578_v15  ;;  %6666 = vmatmul.bf16.gmra.mxu3 %v16579_v25  ;;  %v16581_v9 = vld [vmem:[#allocation25_spill] sm:$0xff] }
 0x91e   : > { %6439 = vmatmul.bf16.gmra.mxu0 %v16576_v46  ;;  %6488 = vmatmul.bf16.gmra.mxu1 %v16577_v45  ;;  %v6263_v37 = vadd.f32 %v13896_v56, %v6174_v32 }
 0x91f   : > { %7710 = vmatpush.bf16.msra.mxu2 %v13869_v49  ;;  %v14062_v5 = vpack.c.bf16 %v7298_v54, %v7294_v60  ;;  %v6090_v49 = vadd.f32 %v13905_v13, %v16581_v9 }
 0x920   : > { %v6351_v28 = vpop.f32.mrf.mxu3  ;;  %v14066_v27 = vpop.f32.mrf.mxu2 }
 0x921   : > { %v6352_v46 = vadd.f32 %v6351_v28, %v6263_v37  ;;  %v16582_v37 = vld [vmem:[#allocation109_spill] sm:$0xff] }
 0x922   : > { %v16583_v28 = vld [vmem:[#allocation89_spill] sm:$0xff] }
 0x923   : > { %v6175_v45 = vpop.f32.mrf.mxu1  ;;  %v14068_v0 = vpop.f32.mrf.mxu0  ;;  %v7174_v32 = vmul.f32 0.01, %v6352_v46 }
 0x924   : > { %v6176_v38 = vadd.f32 %v6175_v45, %v6087_v62 }
 0x925   : > { %v7302_v45 = vmax.f32 %v6352_v46, %v7174_v32  ;;  %v16587_v32 = vld [vmem:[#allocation24_spill] sm:$0xff] }
 0x926   : > { %v6265_v2 = vadd.f32 %v13903_v23, %v6176_v38  ;;  %v16584_v23 = vld [vmem:[#allocation118_spill] sm:$0xff]  ;;  %v16585_v38 = vld [vmem:[#allocation81_spill] sm:$0xff] }
 0x928   : > { %v6353_v25 = vpop.f32.mrf.mxu3  ;;  %v14073_v56 = vpop.f32.mrf.mxu2 }
 0x929   : > { %v6354_v60 = vadd.f32 %v6353_v25, %v6265_v2  ;;  %v16586_v25 = vld [vmem:[#allocation83_spill] sm:$0xff] }
 0x92a   : > { %v6092_v2 = vadd.f32 %v13918_v36, %v16586_v25 }
 0x92b   : > { %v6178_v54 = vpop.f32.mrf.mxu1  ;;  %v14075_v40 = vpop.f32.mrf.mxu0  ;;  %v7178_v15 = vmul.f32 0.01, %v6354_v60 }
 0x92c   : > { %v6179_v26 = vadd.f32 %v6178_v54, %v6090_v49 }
 0x92d   : > { %v7306_v62 = vmax.f32 %v6354_v60, %v7178_v15  ;;  %6622 = vmatmul.bf16.gmra.mxu2 %v16584_v23  ;;  %6671 = vmatmul.bf16.gmra.mxu3 %v16585_v38  ;;  %v6095_v60 = vadd.f32 %v13925_v43, %v16587_v32 }
 0x92e   : > { %6444 = vmatmul.bf16.gmra.mxu0 %v16582_v37  ;;  %6493 = vmatmul.bf16.gmra.mxu1 %v16583_v28  ;;  %v6268_v13 = vadd.f32 %v13916_v19, %v6179_v26 }
 0x92f   : > { %v14082_v9 = vpack.c.bf16 %v7306_v62, %v7302_v45 }
 0x930   : > { %v6356_v50 = vpop.f32.mrf.mxu3  ;;  %v14086_v49 = vpop.f32.mrf.mxu2 }
 0x931   : > { %v6357_v54 = vadd.f32 %v6356_v50, %v6268_v13  ;;  %v16588_v50 = vld [vmem:[#allocation124_spill] sm:$0xff]  ;;  %v16589_v13 = vld [vmem:[#allocation77_spill] sm:$0xff] }
 0x933   : > { %v6180_v37 = vpop.f32.mrf.mxu1  ;;  %v14088_v61 = vpop.f32.mrf.mxu0  ;;  %v7182_v26 = vmul.f32 0.01, %v6357_v54 }
 0x934   : > { %v6181_v46 = vadd.f32 %v6180_v37, %v6092_v2 }
 0x935   : > { %v7310_v37 = vmax.f32 %v6357_v54, %v7182_v26 }
 0x936   : > { %v6270_v15 = vadd.f32 %v13923_v6, %v6181_v46  ;;  %v16590_v6 = vld [vmem:[#allocation66_spill] sm:$0xff] }
 0x937   : > { %v16591_v46 = vld [vmem:[#allocation126_spill] sm:$0xff] }
 0x938   : > { %v6358_v38 = vpop.f32.mrf.mxu3  ;;  %v14093_v19 = vpop.f32.mrf.mxu2 }
 0x939   : > { %v6359_v45 = vadd.f32 %v6358_v38, %v6270_v15  ;;  %v16592_v38 = vld [vmem:[#allocation103_spill] sm:$0xff] }
 0x93a   : > { %v6097_v15 = vadd.f32 %v13938_v12, %v16592_v38  ;;  %v16593_v12 = vld [vmem:[#allocation53_spill] sm:$0xff]  ;;  %v16594_v38 = vld [vmem:[#allocation15_spill] sm:$0xff] }
 0x93b   : > { %v6183_v62 = vpop.f32.mrf.mxu1  ;;  %v14095_v36 = vpop.f32.mrf.mxu0  ;;  %v7186_v23 = vmul.f32 0.01, %v6359_v45 }
 0x93c   : > { %v6184_v25 = vadd.f32 %v6183_v62, %v6095_v60 }
 0x93d   : > { %v7314_v2 = vmax.f32 %v6359_v45, %v7186_v23  ;;  %6627 = vmatmul.bf16.gmra.mxu2 %v16590_v6  ;;  %6676 = vmatmul.bf16.gmra.mxu3 %v16591_v46 }
 0x93e   : > { %6449 = vmatmul.bf16.gmra.mxu0 %v16588_v50  ;;  %6498 = vmatmul.bf16.gmra.mxu1 %v16589_v13  ;;  %v6273_v43 = vadd.f32 %v13936_v48, %v6184_v25 }
 0x93f   : > { %v14102_v32 = vpack.c.bf16 %v7314_v2, %v7310_v37 }
 0x940   : > { %v6361_v28 = vpop.f32.mrf.mxu3  ;;  %v14106_v60 = vpop.f32.mrf.mxu2 }
 0x941   : > { %v6362_v62 = vadd.f32 %v6361_v28, %v6273_v43  ;;  %v16595_v28 = vld [vmem:[#allocation123_spill] sm:$0xff] }
 0x942   : > { %v6100_v43 = vadd.f32 %v13943_v51, %v16595_v28  ;;  %v16599_v28 = vld [vmem:[#allocation112_spill] sm:$0xff] }
 0x943   : > { %v6185_v50 = vpop.f32.mrf.mxu1  ;;  %v14108_v22 = vpop.f32.mrf.mxu0  ;;  %v7190_v46 = vmul.f32 0.01, %v6362_v62 }
 0x944   : > { %v6186_v54 = vadd.f32 %v6185_v50, %v6097_v15  ;;  %v16596_v15 = vld [vmem:[#allocation132_spill] sm:$0xff] }
 0x945   : > { %v7318_v6 = vmax.f32 %v6362_v62, %v7190_v46 }
 0x946   : > { %v6275_v23 = vadd.f32 %v13941_v1, %v6186_v54  ;;  %v16597_v1 = vld [vmem:[#allocation133_spill] sm:$0xff] }
 0x948   : > { %v6363_v26 = vpop.f32.mrf.mxu3  ;;  %v14111_v45 = vpop.f32.mrf.mxu2 }
 0x949   : > { %v6364_v48 = vadd.f32 %v6363_v26, %v6275_v23 }
 0x94b   : > { %v6188_v25 = vpop.f32.mrf.mxu1  ;;  %v14113_v37 = vpop.f32.mrf.mxu0  ;;  %v7194_v2 = vmul.f32 0.01, %v6364_v48 }
 0x94c   : > { %v6189_v54 = vadd.f32 %v6188_v25, %v6100_v43 }
 0x94d   : > { %v7322_v50 = vmax.f32 %v6364_v48, %v7194_v2  ;;  %6632 = vmatmul.bf16.gmra.mxu2 %v16596_v15  ;;  %6681 = vmatmul.bf16.gmra.mxu3 %v16597_v1 }
 0x94e   : > { %6454 = vmatmul.bf16.gmra.mxu0 %v16593_v12  ;;  %6503 = vmatmul.bf16.gmra.mxu1 %v16594_v38  ;;  %v6102_v12 = vadd.f32 %v13957_v53, %v16598_v30  ;;  %v6278_v51 = vadd.f32 %v13953_v14, %v6189_v54  ;;  %v16600_v53 = vld [vmem:[#allocation90_spill] sm:$0xff]  ;;  %v16602_v54 = vld [vmem:[#allocation73_spill] sm:$0xff] }
 0x94f   : > { %v14121_v13 = vpack.c.bf16 %v7322_v50, %v7318_v6  ;;  %v16601_v30 = vld [vmem:[#allocation130_spill] sm:$0xff] }
 0x950   : > { %v6366_v23 = vpop.f32.mrf.mxu3  ;;  %v14123_v26 = vpop.f32.mrf.mxu2  ;;  %v6105_v14 = vadd.f32 %v13963_v34, %v16601_v30  ;;  %v16605_v30 = vld [vmem:[#allocation10_spill] sm:$0xff] }
 0x951   : > { %v6367_v62 = vadd.f32 %v6366_v23, %v6278_v51 }
 0x953   : > { %v6190_v41 = vpop.f32.mrf.mxu1  ;;  %v14127_v38 = vpop.f32.mrf.mxu0  ;;  %v7198_v6 = vmul.f32 0.01, %v6367_v62 }
 0x954   : > { %v6191_v46 = vadd.f32 %v6190_v41, %v6102_v12 }
 0x955   : > { %v7326_v41 = vmax.f32 %v6367_v62, %v7198_v6 }
 0x956   : > { %v6280_v48 = vadd.f32 %v13961_v42, %v6191_v46  ;;  %v16603_v42 = vld [vmem:[#allocation49_spill] sm:$0xff] }
 0x958   : > { %v6368_v2 = vpop.f32.mrf.mxu3  ;;  %v14131_v1 = vpop.f32.mrf.mxu2 }
 0x959   : > { %v6369_v25 = vadd.f32 %v6368_v2, %v6280_v48  ;;  %v16604_v2 = vld [vmem:[#allocation120_spill] sm:$0xff] }
 0x95b   : > { %v6193_v43 = vpop.f32.mrf.mxu1  ;;  %v14133_v50 = vpop.f32.mrf.mxu0  ;;  %v7202_v15 = vmul.f32 0.01, %v6369_v25 }
 0x95c   : > { %v6194_v23 = vadd.f32 %v6193_v43, %v6105_v14 }
 0x95d   : > { %v7330_v12 = vmax.f32 %v6369_v25, %v7202_v15  ;;  %6637 = vmatmul.bf16.gmra.mxu2 %v16602_v54  ;;  %6686 = vmatmul.bf16.gmra.mxu3 %v16603_v42 }
 0x95e   : > { %6459 = vmatmul.bf16.gmra.mxu0 %v16599_v28  ;;  %6508 = vmatmul.bf16.gmra.mxu1 %v16600_v53  ;;  %v6107_v28 = vadd.f32 %v13977_v55, %v16604_v2  ;;  %v6283_v34 = vadd.f32 %v13973_v59, %v6194_v23  ;;  %v16606_v55 = vld [vmem:[#allocation115_spill] sm:$0xff] }
 0x95f   : > { %v14141_v51 = vpack.c.bf16 %v7330_v12, %v7326_v41  ;;  %v6110_v59 = vadd.f32 %v13983_v44, %v16606_v55 }
 0x960   : > { %v6371_v46 = vpop.f32.mrf.mxu3  ;;  %v14143_v48 = vpop.f32.mrf.mxu2 }
 0x961   : > { %v6372_v15 = vadd.f32 %v6371_v46, %v6283_v34 }
 0x963   : > { %v6195_v16 = vpop.f32.mrf.mxu1  ;;  %v14147_v53 = vpop.f32.mrf.mxu0  ;;  %v7206_v43 = vmul.f32 0.01, %v6372_v15 }
 0x964   : > { %v6196_v62 = vadd.f32 %v6195_v16, %v6107_v28 }
 0x965   : > { %v7334_v16 = vmax.f32 %v6372_v15, %v7206_v43  ;;  %v6391_v43 = vadd.f32 %v14003_v47, %v13398_v29 }
 0x966   : > { %v6285_v6 = vadd.f32 %v13981_v63, %v6196_v62  ;;  %v16607_v63 = vld [vmem:[#allocation63_spill] sm:$0xff] }
 0x968   : > { %v6373_v25 = vpop.f32.mrf.mxu3  ;;  %v14151_v42 = vpop.f32.mrf.mxu2 }
 0x969   : > { %v6374_v14 = vadd.f32 %v6373_v25, %v6285_v6  ;;  %v16608_v6 = vld [vmem:[#allocation127_spill] sm:$0xff] }
 0x96a   : > { %v6112_v25 = vadd.f32 %v13995_v24, %v16608_v6 }
 0x96b   : > { %v6198_v41 = vpop.f32.mrf.mxu1  ;;  %v14153_v12 = vpop.f32.mrf.mxu0  ;;  %v7210_v54 = vmul.f32 0.01, %v6374_v14 }
 0x96c   : > { %v6199_v23 = vadd.f32 %v6198_v41, %v6110_v59 }
 0x96d   : > { %v7338_v28 = vmax.f32 %v6374_v14, %v7210_v54  ;;  %6642 = vmatmul.bf16.gmra.mxu2 %v16511_v31  ;;  %6691 = vmatmul.bf16.gmra.mxu3 %v16607_v63  ;;  %v16609_v31 = vld [vmem:[#allocation76_spill] sm:$0xff] }
 0x96e   : > { %6464 = vmatmul.bf16.gmra.mxu0 %v16605_v30  ;;  %6513 = vmatmul.bf16.gmra.mxu1 %v16510_v10  ;;  %v6288_v10 = vadd.f32 %v13991_v17, %v6199_v23  ;;  %v16610_v17 = vld [vmem:[#allocation7_spill] sm:$0xff]  ;;  %v16612_v23 = vld [vmem:[#allocation78_spill] sm:$0xff] }
 0x96f   : > { %v7406_v46 = vpack.c.bf16 %v7338_v28, %v7334_v16 }
 0x970   : > { %v6376_v34 = vpop.f32.mrf.mxu3  ;;  %v14161_v62 = vpop.f32.mrf.mxu2 }
 0x971   : > { %v6377_v15 = vadd.f32 %v6376_v34, %v6288_v10 }
 0x973   : > { %v6200_v30 = vpop.f32.mrf.mxu1  ;;  %v14165_v2 = vpop.f32.mrf.mxu0  ;;  %v7214_v59 = vmul.f32 0.01, %v6377_v15 }
 0x974   : > { %v6201_v44 = vadd.f32 %v6200_v30, %v6112_v25  ;;  %v16613_v25 = vld [vmem:[#allocation80_spill] sm:$0xff] }
 0x975   : > { %v7342_v10 = vmax.f32 %v6377_v15, %v7214_v59  ;;  %v16614_v59 = vld [vmem:[#allocation54_spill] sm:$0xff] }
 0x976   : > { %v6290_v54 = vadd.f32 %v14001_v58, %v6201_v44  ;;  %v16611_v58 = vld [vmem:[#allocation27_spill] sm:$0xff]  ;;  %v6393_v44 = vadd.f32 %v14015_v8, %v16613_v25 }
 0x978   : > { %v6378_v14 = vpop.f32.mrf.mxu3  ;;  %v14171_v41 = vpop.f32.mrf.mxu2 }
 0x979   : > { %v6379_v16 = vadd.f32 %v6378_v14, %v6290_v54 }
 0x97b   : > { %v14173_v28 = vpop.f32.mrf.mxu0  ;;  %v6479_v24 = vpop.f32.mrf.mxu1  ;;  %v7218_v63 = vmul.f32 0.01, %v6379_v16 }
 0x97c   : > { %v6480_v6 = vadd.f32 %v6479_v24, %v6391_v43 }
 0x97d   : > { %v7346_v30 = vmax.f32 %v6379_v16, %v7218_v63  ;;  %6696 = vmatmul.bf16.gmra.mxu3 %v16611_v58  ;;  %6923 = vmatmul.bf16.vlgmr.msrb.gmra.mxu2 %v16612_v23  ;;  %v6396_v16 = vadd.f32 %v14025_v11, %v16614_v59  ;;  %v16618_v11 = vld [vmem:[#allocation62_spill] sm:$0xff] }
 0x97e   : > { %6518 = vmatmul.bf16.gmra.mxu1 %v16609_v31  ;;  %6745 = vmatmul.bf16.vlgmr.msrb.gmra.mxu0 %v16610_v17  ;;  %v6569_v34 = vadd.f32 %v14013_v4, %v6480_v6  ;;  %v16643_v59 = vld [vmem:[#allocation138_spill] sm:$0xff] }
 0x97f   : > { %v7410_v47 = vpack.c.bf16 %v7346_v30, %v7342_v10 }
 0x980   : > { %v14182_v54 = vpop.f32.mrf.mxu2  ;;  %v6657_v43 = vpop.f32.mrf.mxu3 }
 0x981   : > { %v6658_v14 = vadd.f32 %v6657_v43, %v6569_v34  ;;  %7752 = vmatpush.bf16.msra.mxu3 %v7410_v47  ;;  %v16615_v43 = vld [vmem:[#allocation38_spill] sm:$0xff] }
 0x983   : > { %v14184_v24 = vpop.f32.mrf.mxu0  ;;  %v6481_v17 = vpop.f32.mrf.mxu1  ;;  %v7095_v6 = vmul.f32 0.01, %v6658_v14 }
 0x984   : > { %v6482_v15 = vadd.f32 %v6481_v17, %v6393_v44  ;;  %v16617_v17 = vld [vmem:[#allocation67_spill] sm:$0xff] }
 0x985   : > { %7753 = vmatpush.bf16.msra.mxu3 %v7406_v46  ;;  %v16616_v46 = vld [vmem:[#allocation136_spill] sm:$0xff] }
 0x986   : > { %v6571_v63 = vadd.f32 %v14022_v52, %v6482_v15  ;;  %v7223_v52 = vmax.f32 %v6658_v14, %v7095_v6 }
 0x988   : > { %v14189_v10 = vpop.f32.mrf.mxu2  ;;  %v6659_v4 = vpop.f32.mrf.mxu3 }
 0x989   : > { %v6660_v8 = vadd.f32 %v6659_v4, %v6571_v63  ;;  %7754 = vmatpush.bf16.msra.mxu3 %v14141_v51  ;;  %v16619_v63 = vld [vmem:[#allocation13_spill] sm:$0xff] }
 0x98b   : > { %v14192_v30 = vpop.f32.mrf.mxu0  ;;  %v6484_v23 = vpop.f32.mrf.mxu1  ;;  %v7099_v34 = vmul.f32 0.01, %v6660_v8 }
 0x98c   : > { %v6485_v47 = vadd.f32 %v6484_v23, %v6396_v16  ;;  %v6398_v16 = vadd.f32 %v14041_v57, %v16619_v63 }
 0x98d   : > { %v7227_v44 = vmax.f32 %v6660_v8, %v7099_v34  ;;  %6701 = vmatmul.bf16.gmra.mxu3 %v16617_v17  ;;  %6928 = vmatmul.bf16.gmra.mxu2 %v16618_v11 }
 0x98e   : > { %6523 = vmatmul.bf16.gmra.mxu1 %v16615_v43  ;;  %6750 = vmatmul.bf16.gmra.mxu0 %v16616_v46  ;;  %v6574_v15 = vadd.f32 %v14039_v20, %v6485_v47  ;;  %v16620_v20 = vld [vmem:[#allocation52_spill] sm:$0xff] }
 0x98f   : > { %7755 = vmatpush.bf16.msra.mxu3 %v14121_v13  ;;  %v14200_v51 = vpack.c.bf16 %v7227_v44, %v7223_v52  ;;  %v6401_v8 = vadd.f32 %v14052_v3, %v16620_v20  ;;  %v16624_v3 = vld [vmem:[#allocation86_spill] sm:$0xff] }
 0x990   : > { %v14204_v4 = vpop.f32.mrf.mxu2  ;;  %v6662_v23 = vpop.f32.mrf.mxu3 }
 0x991   : > { %v6663_v43 = vadd.f32 %v6662_v23, %v6574_v15 }
 0x993   : > { %v14206_v46 = vpop.f32.mrf.mxu0  ;;  %v6486_v14 = vpop.f32.mrf.mxu1  ;;  %7756 = vmatpush.bf16.msra.mxu3 %v14102_v32  ;;  %v7103_v34 = vmul.f32 0.01, %v6663_v43 }
 0x994   : > { %v6487_v6 = vadd.f32 %v6486_v14, %v6398_v16  ;;  %v16621_v16 = vld [vmem:[#allocation87_spill] sm:$0xff]  ;;  %v16623_v14 = vld [vmem:[#allocation74_spill] sm:$0xff] }
 0x996   : > { %v6576_v13 = vadd.f32 %v14050_v39, %v6487_v6  ;;  %v7231_v39 = vmax.f32 %v6663_v43, %v7103_v34 }
 0x997   : > { %7757 = vmatpush.bf16.msra.mxu3 %v14082_v9  ;;  %v16622_v9 = vld [vmem:[#allocation85_spill] sm:$0xff] }
 0x998   : > { %v14213_v47 = vpop.f32.mrf.mxu2  ;;  %v6664_v57 = vpop.f32.mrf.mxu3 }
 0x999   : > { %v6665_v52 = vadd.f32 %v6664_v57, %v6576_v13  ;;  %v16625_v57 = vld [vmem:[#allocation65_spill] sm:$0xff] }
 0x99b   : > { %v14215_v44 = vpop.f32.mrf.mxu0  ;;  %v6489_v11 = vpop.f32.mrf.mxu1  ;;  %7758 = vmatpush.bf16.msra.mxu3 %v14062_v5  ;;  %v7107_v32 = vmul.f32 0.01, %v6665_v52  ;;  %v6403_v5 = vadd.f32 %v14068_v0, %v16625_v57 }
 0x99c   : > { %v6490_v15 = vadd.f32 %v6489_v11, %v6401_v8 }
 0x99d   : > { %v7235_v23 = vmax.f32 %v6665_v52, %v7107_v32  ;;  %6706 = vmatmul.bf16.gmra.mxu3 %v16623_v14  ;;  %6933 = vmatmul.bf16.gmra.mxu2 %v16624_v3  ;;  %v16626_v32 = vld [vmem:[#allocation29_spill] sm:$0xff] }
 0x99e   : > { %6528 = vmatmul.bf16.gmra.mxu1 %v16621_v16  ;;  %6755 = vmatmul.bf16.gmra.mxu0 %v16622_v9  ;;  %v6579_v6 = vadd.f32 %v14066_v27, %v6490_v15 }
 0x99f   : > { %7759 = vmatpush.bf16.msra.mxu3 %v14035_v21  ;;  %v14224_v13 = vpack.c.bf16 %v7235_v23, %v7231_v39  ;;  %v6406_v21 = vadd.f32 %v14075_v40, %v16626_v32 }
 0x9a0   : > { %v14228_v8 = vpop.f32.mrf.mxu2  ;;  %v6667_v11 = vpop.f32.mrf.mxu3 }
 0x9a1   : > { %v6668_v16 = vadd.f32 %v6667_v11, %v6579_v6  ;;  %v16627_v6 = vld [vmem:[#allocation45_spill] sm:$0xff]  ;;  %v16628_v11 = vld [vmem:[#allocation75_spill] sm:$0xff] }
 0x9a3   : > { %v14230_v9 = vpop.f32.mrf.mxu0  ;;  %v6491_v43 = vpop.f32.mrf.mxu1  ;;  %v7111_v15 = vmul.f32 0.01, %v6668_v16 }
 0x9a4   : > { %v6492_v34 = vadd.f32 %v6491_v43, %v6403_v5 }
 0x9a5   : > { %v7239_v5 = vmax.f32 %v6668_v16, %v7111_v15  ;;  %v16632_v15 = vld [vmem:[#allocation106_spill] sm:$0xff] }
 0x9a6   : > { %v6581_v52 = vadd.f32 %v14073_v56, %v6492_v34  ;;  %v16629_v56 = vld [vmem:[#allocation19_spill] sm:$0xff] }
 0x9a7   : > { %v16630_v34 = vld [vmem:[#allocation91_spill] sm:$0xff] }
 0x9a8   : > { %v14235_v3 = vpop.f32.mrf.mxu2  ;;  %v6669_v27 = vpop.f32.mrf.mxu3 }
 0x9a9   : > { %v6670_v39 = vadd.f32 %v6669_v27, %v6581_v52  ;;  %v16631_v52 = vld [vmem:[#allocation33_spill] sm:$0xff] }
 0x9aa   : > { %v6408_v27 = vadd.f32 %v14088_v61, %v16631_v52 }
 0x9ab   : > { %v14237_v23 = vpop.f32.mrf.mxu0  ;;  %v6494_v0 = vpop.f32.mrf.mxu1  ;;  %v7115_v14 = vmul.f32 0.01, %v6670_v39 }
 0x9ac   : > { %v6495_v57 = vadd.f32 %v6494_v0, %v6406_v21 }
 0x9ad   : > { %v7243_v43 = vmax.f32 %v6670_v39, %v7115_v14  ;;  %6711 = vmatmul.bf16.gmra.mxu3 %v16629_v56  ;;  %6938 = vmatmul.bf16.gmra.mxu2 %v16630_v34  ;;  %v6411_v39 = vadd.f32 %v14095_v36, %v16632_v15 }
 0x9ae   : > { %6533 = vmatmul.bf16.gmra.mxu1 %v16627_v6  ;;  %6760 = vmatmul.bf16.gmra.mxu0 %v16628_v11  ;;  %v6584_v40 = vadd.f32 %v14086_v49, %v6495_v57 }
 0x9af   : > { %v14244_v32 = vpack.c.bf16 %v7243_v43, %v7239_v5 }
 0x9b0   : > { %v14248_v20 = vpop.f32.mrf.mxu2  ;;  %v6672_v21 = vpop.f32.mrf.mxu3 }
 0x9b1   : > { %v6673_v0 = vadd.f32 %v6672_v21, %v6584_v40  ;;  %v16633_v40 = vld [vmem:[#allocation26_spill] sm:$0xff]  ;;  %v16634_v21 = vld [vmem:[#allocation93_spill] sm:$0xff] }
 0x9b3   : > { %v14250_v6 = vpop.f32.mrf.mxu0  ;;  %v6496_v11 = vpop.f32.mrf.mxu1  ;;  %v7119_v57 = vmul.f32 0.01, %v6673_v0 }
 0x9b4   : > { %v6497_v16 = vadd.f32 %v6496_v11, %v6408_v27 }
 0x9b5   : > { %v7247_v27 = vmax.f32 %v6673_v0, %v7119_v57 }
 0x9b6   : > { %v6586_v14 = vadd.f32 %v14093_v19, %v6497_v16  ;;  %v16635_v19 = vld [vmem:[#allocation32_spill] sm:$0xff]  ;;  %v16636_v16 = vld [vmem:[#allocation82_spill] sm:$0xff] }
 0x9b8   : > { %v14255_v34 = vpop.f32.mrf.mxu2  ;;  %v6674_v49 = vpop.f32.mrf.mxu3 }
 0x9b9   : > { %v6675_v5 = vadd.f32 %v6674_v49, %v6586_v14  ;;  %v16637_v14 = vld [vmem:[#allocation129_spill] sm:$0xff] }
 0x9ba   : > { %v6413_v49 = vadd.f32 %v14108_v22, %v16637_v14  ;;  %v16638_v22 = vld [vmem:[#allocation23_spill] sm:$0xff]  ;;  %v16639_v14 = vld [vmem:[#allocation96_spill] sm:$0xff] }
 0x9bb   : > { %v14257_v43 = vpop.f32.mrf.mxu0  ;;  %v6499_v61 = vpop.f32.mrf.mxu1  ;;  %v7123_v56 = vmul.f32 0.01, %v6675_v5 }
 0x9bc   : > { %v6500_v52 = vadd.f32 %v6499_v61, %v6411_v39 }
 0x9bd   : > { %v7251_v11 = vmax.f32 %v6675_v5, %v7123_v56  ;;  %6716 = vmatmul.bf16.gmra.mxu3 %v16635_v19  ;;  %6943 = vmatmul.bf16.gmra.mxu2 %v16636_v16 }
 0x9be   : > { %6538 = vmatmul.bf16.gmra.mxu1 %v16633_v40  ;;  %6765 = vmatmul.bf16.gmra.mxu0 %v16634_v21  ;;  %v6589_v36 = vadd.f32 %v14106_v60, %v6500_v52 }
 0x9bf   : > { %v14264_v15 = vpack.c.bf16 %v7251_v11, %v7247_v27 }
 0x9c0   : > { %v14268_v63 = vpop.f32.mrf.mxu2  ;;  %v6677_v39 = vpop.f32.mrf.mxu3 }
 0x9c1   : > { %v6678_v61 = vadd.f32 %v6677_v39, %v6589_v36  ;;  %v16640_v36 = vld [vmem:[#allocation48_spill] sm:$0xff] }
 0x9c2   : > { %v6416_v39 = vadd.f32 %v14113_v37, %v16640_v36  ;;  %v16644_v36 = vld [vmem:[#allocation102_spill] sm:$0xff] }
 0x9c3   : > { %v14270_v40 = vpop.f32.mrf.mxu0  ;;  %v6501_v21 = vpop.f32.mrf.mxu1  ;;  %v7127_v16 = vmul.f32 0.01, %v6678_v61 }
 0x9c4   : > { %v6502_v0 = vadd.f32 %v6501_v21, %v6413_v49  ;;  %v16641_v21 = vld [vmem:[#allocation30_spill] sm:$0xff] }
 0x9c5   : > { %v7255_v19 = vmax.f32 %v6678_v61, %v7127_v16 }
 0x9c6   : > { %v6591_v56 = vadd.f32 %v14111_v45, %v6502_v0  ;;  %v16642_v45 = vld [vmem:[#allocation39_spill] sm:$0xff] }
 0x9c8   : > { %v14273_v57 = vpop.f32.mrf.mxu2  ;;  %v6679_v5 = vpop.f32.mrf.mxu3 }
 0x9c9   : > { %v6680_v60 = vadd.f32 %v6679_v5, %v6591_v56 }
 0x9cb   : > { %v14275_v52 = vpop.f32.mrf.mxu0  ;;  %v6504_v27 = vpop.f32.mrf.mxu1  ;;  %v7131_v11 = vmul.f32 0.01, %v6680_v60 }
 0x9cc   : > { %v6505_v0 = vadd.f32 %v6504_v27, %v6416_v39 }
 0x9cd   : > { %v7259_v49 = vmax.f32 %v6680_v60, %v7131_v11  ;;  %6721 = vmatmul.bf16.gmra.mxu3 %v16641_v21  ;;  %6948 = vmatmul.bf16.gmra.mxu2 %v16642_v45 }
 0x9ce   : > { %6543 = vmatmul.bf16.gmra.mxu1 %v16638_v22  ;;  %6770 = vmatmul.bf16.gmra.mxu0 %v16639_v14  ;;  %v6418_v22 = vadd.f32 %v14127_v38, %v16643_v59  ;;  %v6594_v37 = vadd.f32 %v14123_v26, %v6505_v0  ;;  %v16645_v38 = vld [vmem:[#allocation98_spill] sm:$0xff]  ;;  %v16646_v59 = vld [vmem:[#allocation117_spill] sm:$0xff] }
 0x9cf   : > { %v14283_v17 = vpack.c.bf16 %v7259_v49, %v7255_v19  ;;  %v6421_v26 = vadd.f32 %v14133_v50, %v16646_v59  ;;  %v16650_v59 = vld [vmem:[#allocation31_spill] sm:$0xff] }
 0x9d0   : > { %v14285_v56 = vpop.f32.mrf.mxu2  ;;  %v6682_v5 = vpop.f32.mrf.mxu3 }
 0x9d1   : > { %v6683_v16 = vadd.f32 %v6682_v5, %v6594_v37  ;;  %v16647_v5 = vld [vmem:[#allocation104_spill] sm:$0xff] }
 0x9d3   : > { %v14289_v25 = vpop.f32.mrf.mxu0  ;;  %v6506_v14 = vpop.f32.mrf.mxu1  ;;  %v7135_v19 = vmul.f32 0.01, %v6683_v16 }
 0x9d4   : > { %v6507_v61 = vadd.f32 %v6506_v14, %v6418_v22 }
 0x9d5   : > { %v7263_v22 = vmax.f32 %v6683_v16, %v7135_v19 }
 0x9d6   : > { %v6596_v60 = vadd.f32 %v14131_v1, %v6507_v61  ;;  %v16648_v1 = vld [vmem:[#allocation99_spill] sm:$0xff] }
 0x9d8   : > { %v14293_v11 = vpop.f32.mrf.mxu2  ;;  %v6684_v27 = vpop.f32.mrf.mxu3 }
 0x9d9   : > { %v6685_v39 = vadd.f32 %v6684_v27, %v6596_v60  ;;  %v16649_v27 = vld [vmem:[#allocation68_spill] sm:$0xff] }
 0x9db   : > { %v14295_v49 = vpop.f32.mrf.mxu0  ;;  %v6509_v45 = vpop.f32.mrf.mxu1  ;;  %v7139_v21 = vmul.f32 0.01, %v6685_v39 }
 0x9dc   : > { %v6510_v14 = vadd.f32 %v6509_v45, %v6421_v26 }
 0x9dd   : > { %v7267_v0 = vmax.f32 %v6685_v39, %v7139_v21  ;;  %6726 = vmatmul.bf16.gmra.mxu3 %v16647_v5  ;;  %6953 = vmatmul.bf16.gmra.mxu2 %v16648_v1 }
 0x9de   : > { %6548 = vmatmul.bf16.gmra.mxu1 %v16644_v36  ;;  %6775 = vmatmul.bf16.gmra.mxu0 %v16645_v38  ;;  %v6423_v36 = vadd.f32 %v14147_v53, %v16649_v27  ;;  %v6599_v50 = vadd.f32 %v14143_v48, %v6510_v14  ;;  %v16651_v53 = vld [vmem:[#allocation101_spill] sm:$0xff]  ;;  %v16652_v27 = vld [vmem:[#allocation70_spill] sm:$0xff] }
 0x9df   : > { %v14303_v37 = vpack.c.bf16 %v7267_v0, %v7263_v22  ;;  %v6426_v48 = vadd.f32 %v14153_v12, %v16652_v27 }
 0x9e0   : > { %v14305_v61 = vpop.f32.mrf.mxu2  ;;  %v6687_v60 = vpop.f32.mrf.mxu3 }
 0x9e1   : > { %v6688_v21 = vadd.f32 %v6687_v60, %v6599_v50  ;;  %v16653_v60 = vld [vmem:[#allocation105_spill] sm:$0xff] }
 0x9e3   : > { %v14309_v58 = vpop.f32.mrf.mxu0  ;;  %v6511_v38 = vpop.f32.mrf.mxu1  ;;  %v7143_v26 = vmul.f32 0.01, %v6688_v21 }
 0x9e4   : > { %v6512_v16 = vadd.f32 %v6511_v38, %v6423_v36 }
 0x9e5   : > { %v7271_v36 = vmax.f32 %v6688_v21, %v7143_v26  ;;  %v6431_v26 = vadd.f32 %v14173_v28, %v16557_v35 }
 0x9e6   : > { %v6601_v19 = vadd.f32 %v14151_v42, %v6512_v16  ;;  %v16654_v42 = vld [vmem:[#allocation43_spill] sm:$0xff] }
 0x9e8   : > { %v14313_v39 = vpop.f32.mrf.mxu2  ;;  %v6689_v45 = vpop.f32.mrf.mxu3 }
 0x9e9   : > { %v6690_v22 = vadd.f32 %v6689_v45, %v6601_v19  ;;  %v16655_v19 = vld [vmem:[#allocation111_spill] sm:$0xff] }
 0x9ea   : > { %v6428_v45 = vadd.f32 %v14165_v2, %v16655_v19 }
 0x9eb   : > { %v14315_v0 = vpop.f32.mrf.mxu0  ;;  %v6514_v1 = vpop.f32.mrf.mxu1  ;;  %v7147_v5 = vmul.f32 0.01, %v6690_v22 }
 0x9ec   : > { %v6515_v38 = vadd.f32 %v6514_v1, %v6426_v48 }
 0x9ed   : > { %v7275_v14 = vmax.f32 %v6690_v22, %v7147_v5  ;;  %6731 = vmatmul.bf16.gmra.mxu3 %v16653_v60  ;;  %6958 = vmatmul.bf16.gmra.mxu2 %v16654_v42 }
 0x9ee   : > { %6553 = vmatmul.bf16.gmra.mxu1 %v16650_v59  ;;  %6780 = vmatmul.bf16.gmra.mxu0 %v16651_v53  ;;  %v6604_v53 = vadd.f32 %v14161_v62, %v6515_v38 }
 0x9ef   : > { %v7375_v50 = vpack.c.bf16 %v7275_v14, %v7271_v36 }
 0x9f0   : > { %v6692_v16 = vpop.f32.mrf.mxu3  ;;  %v14327_v29 = vpop.f32.mrf.mxu2 }
 0x9f1   : > { %v6693_v21 = vadd.f32 %v6692_v16, %v6604_v53  ;;  %v16657_v16 = vld [vmem:[#allocation40_spill] sm:$0xff] }
 0x9f3   : > { %v14325_v31 = vpop.f32.mrf.mxu0  ;;  %v6516_v59 = vpop.f32.mrf.mxu1  ;;  %v7151_v1 = vmul.f32 0.01, %v6693_v21 }
 0x9f4   : > { %v6517_v12 = vadd.f32 %v6516_v59, %v6428_v45  ;;  %v6433_v45 = vadd.f32 %v14184_v24, %v16657_v16 }
 0x9f5   : > { %v7279_v62 = vmax.f32 %v6693_v21, %v7151_v1  ;;  %v16658_v21 = vld [vmem:[#allocation113_spill] sm:$0xff] }
 0x9f6   : > { %v6606_v5 = vadd.f32 %v14171_v41, %v6517_v12  ;;  %v16656_v41 = vld [vmem:[#allocation108_spill] sm:$0xff] }
 0x9f8   : > { %v6694_v22 = vpop.f32.mrf.mxu3  ;;  %v14335_v19 = vpop.f32.mrf.mxu2 }
 0x9f9   : > { %v6695_v48 = vadd.f32 %v6694_v22, %v6606_v5  ;;  %v6436_v22 = vadd.f32 %v14192_v30, %v16658_v21 }
 0x9fb   : > { %v6519_v36 = vpop.f32.mrf.mxu1  ;;  %v14333_v14 = vpop.f32.mrf.mxu0  ;;  %v7155_v42 = vmul.f32 0.01, %v6695_v48 }
 0x9fc   : > { %v6520_v2 = vadd.f32 %v6519_v36, %v6431_v26 }
 0x9fd   : > { %v7283_v59 = vmax.f32 %v6695_v48, %v7155_v42  ;;  %6963 = vmatmul.bf16.gmra.mxu2 %v16560_v18  ;;  %7012 = vmatmul.bf16.vlgmr.msrb.gmra.mxu3 %v16656_v41 }
 0x9fe   : > { %6785 = vmatmul.bf16.gmra.mxu0 %v16558_v7  ;;  %6834 = vmatmul.bf16.vlgmr.msrb.gmra.mxu1 %v16559_v33  ;;  %v6609_v38 = vadd.f32 %v14182_v54, %v6520_v2 }
 0x9ff   : > { %v7379_v28 = vpack.c.bf16 %v7283_v59, %v7279_v62  ;;  %v16659_v62 = vld [vmem:[#allocation47_spill] sm:$0xff] }
 0xa00   : > { %v6697_v53 = vpop.f32.mrf.mxu3  ;;  %v14346_v33 = vpop.f32.mrf.mxu2 }
 0xa01   : > { %v6698_v12 = vadd.f32 %v6697_v53, %v6609_v38  ;;  %7801 = vmatpush.bf16.msrb.mxu0 %v7379_v28  ;;  %v16662_v28 = vld [vmem:[#allocation61_spill] sm:$0xff]  ;;  %v16663_v38 = vld [vmem:[#allocation36_spill] sm:$0xff] }
 0xa03   : > { %v6521_v5 = vpop.f32.mrf.mxu1  ;;  %v14344_v26 = vpop.f32.mrf.mxu0  ;;  %v7159_v54 = vmul.f32 0.01, %v6698_v12 }
 0xa04   : > { %v6522_v7 = vadd.f32 %v6521_v5, %v6433_v45  ;;  %v6438_v45 = vadd.f32 %v14206_v46, %v16663_v38 }
 0xa05   : > { %7802 = vmatpush.bf16.msrb.mxu0 %v7375_v50  ;;  %v16660_v50 = vld [vmem:[#allocation58_spill] sm:$0xff]  ;;  %v7287_v59 = vmax.f32 %v6698_v12, %v7159_v54 }
 0xa06   : > { %v6611_v18 = vadd.f32 %v14189_v10, %v6522_v7  ;;  %v16661_v10 = vld [vmem:[#allocation22_spill] sm:$0xff] }
 0xa08   : > { %v6699_v1 = vpop.f32.mrf.mxu3  ;;  %v14364_v53 = vpop.f32.mrf.mxu2 }
 0xa09   : > { %v6700_v48 = vadd.f32 %v6699_v1, %v6611_v18  ;;  %7803 = vmatpush.bf16.msrb.mxu0 %v14303_v37 }
 0xa0b   : > { %v6524_v24 = vpop.f32.mrf.mxu1  ;;  %v14352_v36 = vpop.f32.mrf.mxu0  ;;  %v7163_v42 = vmul.f32 0.01, %v6700_v48 }
 0xa0c   : > { %v6525_v2 = vadd.f32 %v6524_v24, %v6436_v22 }
 0xa0d   : > { %v7291_v41 = vmax.f32 %v6700_v48, %v7163_v42  ;;  %6968 = vmatmul.bf16.gmra.mxu2 %v16661_v10  ;;  %7017 = vmatmul.bf16.gmra.mxu3 %v16662_v28 }
 0xa0e   : > { %6790 = vmatmul.bf16.gmra.mxu0 %v16659_v62  ;;  %6839 = vmatmul.bf16.gmra.mxu1 %v16660_v50  ;;  %v6614_v30 = vadd.f32 %v14204_v4, %v6525_v2  ;;  %v16664_v4 = vld [vmem:[#allocation56_spill] sm:$0xff] }
 0xa0f   : > { %7804 = vmatpush.bf16.msrb.mxu0 %v14283_v17  ;;  %v14360_v37 = vpack.c.bf16 %v7291_v41, %v7287_v59  ;;  %v6441_v1 = vadd.f32 %v14215_v44, %v16664_v4  ;;  %v16665_v50 = vld [vmem:[#allocation12_spill] sm:$0xff]  ;;  %v16667_v41 = vld [vmem:[#allocation134_spill] sm:$0xff] }
 0xa10   : > { %v6702_v5 = vpop.f32.mrf.mxu3  ;;  %v14375_v42 = vpop.f32.mrf.mxu2  ;;  %v16668_v44 = vld [vmem:[#allocation114_spill] sm:$0xff] }
 0xa11   : > { %v6703_v7 = vadd.f32 %v6702_v5, %v6614_v30  ;;  %v16669_v30 = vld [vmem:[#allocation94_spill] sm:$0xff] }
 0xa13   : > { %v6526_v18 = vpop.f32.mrf.mxu1  ;;  %v14366_v12 = vpop.f32.mrf.mxu0  ;;  %7805 = vmatpush.bf16.msrb.mxu0 %v14264_v15  ;;  %v7167_v48 = vmul.f32 0.01, %v6703_v7 }
 0xa14   : > { %v6527_v22 = vadd.f32 %v6526_v18, %v6438_v45 }
 0xa16   : > { %v6616_v17 = vadd.f32 %v14213_v47, %v6527_v22  ;;  %v7295_v47 = vmax.f32 %v6703_v7, %v7167_v48 }
 0xa17   : > { %7806 = vmatpush.bf16.msrb.mxu0 %v14244_v32  ;;  %v16666_v32 = vld [vmem:[#allocation9_spill] sm:$0xff] }
 0xa18   : > { %v6704_v54 = vpop.f32.mrf.mxu3 }
 0xa19   : > { %v6705_v46 = vadd.f32 %v6704_v54, %v6616_v17  ;;  %v14390_v17 = vpop.f32.mrf.mxu2  ;;  %v16670_v54 = vld [vmem:[#allocation25_spill] sm:$0xff] }
 0xa1b   : > { %v6529_v24 = vpop.f32.mrf.mxu1  ;;  %v14373_v2 = vpop.f32.mrf.mxu0  ;;  %7807 = vmatpush.bf16.msrb.mxu0 %v14224_v13  ;;  %v7171_v15 = vmul.f32 0.01, %v6705_v46  ;;  %v6443_v13 = vadd.f32 %v14230_v9, %v16669_v30 }
 0xa1c   : > { %v6530_v62 = vadd.f32 %v6529_v24, %v6441_v1 }
 0xa1d   : > { %v7299_v59 = vmax.f32 %v6705_v46, %v7171_v15  ;;  %6973 = vmatmul.bf16.gmra.mxu2 %v16667_v41  ;;  %7022 = vmatmul.bf16.gmra.mxu3 %v16668_v44  ;;  %v16673_v41 = vld [vmem:[#allocation118_spill] sm:$0xff] }
 0xa1e   : > { %6795 = vmatmul.bf16.gmra.mxu0 %v16665_v50  ;;  %6844 = vmatmul.bf16.gmra.mxu1 %v16666_v32  ;;  %v6619_v10 = vadd.f32 %v14228_v8, %v6530_v62  ;;  %v16671_v50 = vld [vmem:[#allocation109_spill] sm:$0xff] }
 0xa1f   : > { %7808 = vmatpush.bf16.msrb.mxu0 %v14200_v51  ;;  %v14384_v28 = vpack.c.bf16 %v7299_v59, %v7295_v47  ;;  %v6446_v51 = vadd.f32 %v14237_v23, %v16670_v54  ;;  %v16672_v32 = vld [vmem:[#allocation89_spill] sm:$0xff] }
 0xa20   : > { %v6707_v45 = vpop.f32.mrf.mxu3 }
 0xa21   : > { %v6708_v5 = vadd.f32 %v6707_v45, %v6619_v10  ;;  %v14401_v44 = vpop.f32.mrf.mxu2 }
 0xa23   : > { %v6531_v18 = vpop.f32.mrf.mxu1  ;;  %v14388_v22 = vpop.f32.mrf.mxu0  ;;  %v7175_v8 = vmul.f32 0.01, %v6708_v5 }
 0xa24   : > { %v6532_v7 = vadd.f32 %v6531_v18, %v6443_v13  ;;  %v16675_v13 = vld [vmem:[#allocation83_spill] sm:$0xff] }
 0xa25   : > { %v7303_v47 = vmax.f32 %v6708_v5, %v7175_v8  ;;  %v6448_v45 = vadd.f32 %v14250_v6, %v16675_v13  ;;  %v16676_v8 = vld [vmem:[#allocation24_spill] sm:$0xff] }
 0xa26   : > { %v6621_v1 = vadd.f32 %v14235_v3, %v6532_v7  ;;  %v16674_v3 = vld [vmem:[#allocation81_spill] sm:$0xff] }
 0xa28   : > { %v6709_v48 = vpop.f32.mrf.mxu3 }
 0xa29   : > { %v6710_v46 = vadd.f32 %v6709_v48, %v6621_v1 }
 0xa2b   : > { %v6534_v24 = vpop.f32.mrf.mxu1  ;;  %v14395_v62 = vpop.f32.mrf.mxu0  ;;  %v7179_v15 = vmul.f32 0.01, %v6710_v46 }
 0xa2c   : > { %v6535_v9 = vadd.f32 %v6534_v24, %v6446_v51  ;;  %v14413_v24 = vpop.f32.mrf.mxu2 }
 0xa2d   : > { %v7307_v59 = vmax.f32 %v6710_v46, %v7179_v15  ;;  %6978 = vmatmul.bf16.gmra.mxu2 %v16673_v41  ;;  %7027 = vmatmul.bf16.gmra.mxu3 %v16674_v3  ;;  %v6451_v46 = vadd.f32 %v14257_v43, %v16676_v8  ;;  %v16678_v41 = vld [vmem:[#allocation77_spill] sm:$0xff] }
 0xa2e   : > { %6800 = vmatmul.bf16.gmra.mxu0 %v16671_v50  ;;  %6849 = vmatmul.bf16.gmra.mxu1 %v16672_v32  ;;  %v6624_v23 = vadd.f32 %v14248_v20, %v6535_v9 }
 0xa2f   : > { %v14404_v10 = vpack.c.bf16 %v7307_v59, %v7303_v47  ;;  %v16677_v59 = vld [vmem:[#allocation124_spill] sm:$0xff] }
 0xa30   : > { %v6712_v18 = vpop.f32.mrf.mxu3 }
 0xa31   : > { %v6713_v7 = vadd.f32 %v6712_v18, %v6624_v23 }
 0xa33   : > { %v6536_v1 = vpop.f32.mrf.mxu1  ;;  %v14408_v51 = vpop.f32.mrf.mxu0  ;;  %v7183_v20 = vmul.f32 0.01, %v6713_v7 }
 0xa34   : > { %v6537_v5 = vadd.f32 %v6536_v1, %v6448_v45  ;;  %v16680_v45 = vld [vmem:[#allocation126_spill] sm:$0xff]  ;;  %v16681_v1 = vld [vmem:[#allocation103_spill] sm:$0xff] }
 0xa35   : > { %v7311_v3 = vmax.f32 %v6713_v7, %v7183_v20 }
 0xa36   : > { %v6626_v48 = vadd.f32 %v14255_v34, %v6537_v5  ;;  %v16679_v34 = vld [vmem:[#allocation66_spill] sm:$0xff]  ;;  %v6453_v5 = vadd.f32 %v14270_v40, %v16681_v1  ;;  %v16683_v40 = vld [vmem:[#allocation15_spill] sm:$0xff]  ;;  %v16687_v1 = vld [vmem:[#allocation8_spill] sm:$0xff] }
 0xa38   : > { %v6714_v15 = vpop.f32.mrf.mxu3 }
 0xa39   : > { %v6715_v9 = vadd.f32 %v6714_v15, %v6626_v48 }
 0xa3b   : > { %v6539_v50 = vpop.f32.mrf.mxu1  ;;  %v14415_v32 = vpop.f32.mrf.mxu0  ;;  %v7187_v47 = vmul.f32 0.01, %v6715_v9 }
 0xa3c   : > { %v6540_v6 = vadd.f32 %v6539_v50, %v6451_v46 }
 0xa3d   : > { %v7315_v23 = vmax.f32 %v6715_v9, %v7187_v47  ;;  %6983 = vmatmul.bf16.gmra.mxu2 %v16679_v34  ;;  %7032 = vmatmul.bf16.gmra.mxu3 %v16680_v45 }
 0xa3e   : > { %6805 = vmatmul.bf16.gmra.mxu0 %v16677_v59  ;;  %6854 = vmatmul.bf16.gmra.mxu1 %v16678_v41  ;;  %v6629_v43 = vadd.f32 %v14268_v63, %v6540_v6  ;;  %v14428_v41 = vpop.f32.mrf.mxu2 }
 0xa3f   : > { %v14422_v18 = vpack.c.bf16 %v7315_v23, %v7311_v3  ;;  %v16682_v3 = vld [vmem:[#allocation53_spill] sm:$0xff]  ;;  %v16684_v23 = vld [vmem:[#allocation123_spill] sm:$0xff] }
 0xa40   : > { %v6717_v48 = vpop.f32.mrf.mxu3  ;;  %v6456_v45 = vadd.f32 %v14275_v52, %v16684_v23 }
 0xa41   : > { %v6718_v46 = vadd.f32 %v6717_v48, %v6629_v43 }
 0xa43   : > { %v6541_v15 = vpop.f32.mrf.mxu1  ;;  %v14426_v50 = vpop.f32.mrf.mxu0  ;;  %v7191_v9 = vmul.f32 0.01, %v6718_v46 }
 0xa44   : > { %v6542_v59 = vadd.f32 %v6541_v15, %v6453_v5  ;;  %v16685_v15 = vld [vmem:[#allocation132_spill] sm:$0xff] }
 0xa45   : > { %v7319_v5 = vmax.f32 %v6718_v46, %v7191_v9 }
 0xa46   : > { %v6631_v7 = vadd.f32 %v14273_v57, %v6542_v59  ;;  %v14437_v43 = vpop.f32.mrf.mxu2  ;;  %v16686_v57 = vld [vmem:[#allocation133_spill] sm:$0xff] }
 0xa48   : > { %v6719_v20 = vpop.f32.mrf.mxu3 }
 0xa49   : > { %v6720_v47 = vadd.f32 %v6719_v20, %v6631_v7 }
 0xa4b   : > { %v6544_v34 = vpop.f32.mrf.mxu1  ;;  %v14431_v63 = vpop.f32.mrf.mxu0  ;;  %v7195_v6 = vmul.f32 0.01, %v6720_v47 }
 0xa4c   : > { %v6545_v59 = vadd.f32 %v6544_v34, %v6456_v45 }
 0xa4d   : > { %v7323_v48 = vmax.f32 %v6720_v47, %v7195_v6  ;;  %6988 = vmatmul.bf16.gmra.mxu2 %v16685_v15  ;;  %7037 = vmatmul.bf16.gmra.mxu3 %v16686_v57  ;;  %v16689_v15 = vld [vmem:[#allocation90_spill] sm:$0xff] }
 0xa4e   : > { %6810 = vmatmul.bf16.gmra.mxu0 %v16682_v3  ;;  %6859 = vmatmul.bf16.gmra.mxu1 %v16683_v40  ;;  %v6458_v3 = vadd.f32 %v14289_v25, %v16687_v1  ;;  %v6634_v40 = vadd.f32 %v14285_v56, %v6545_v59  ;;  %v14448_v46 = vpop.f32.mrf.mxu2  ;;  %v16690_v25 = vld [vmem:[#allocation130_spill] sm:$0xff]  ;;  %v16691_v59 = vld [vmem:[#allocation73_spill] sm:$0xff] }
 0xa4f   : > { %v14441_v7 = vpack.c.bf16 %v7323_v48, %v7319_v5  ;;  %v16688_v48 = vld [vmem:[#allocation112_spill] sm:$0xff]  ;;  %v6461_v56 = vadd.f32 %v14295_v49, %v16690_v25 }
 0xa50   : > { %v6722_v20 = vpop.f32.mrf.mxu3 }
 0xa51   : > { %v6723_v23 = vadd.f32 %v6722_v20, %v6634_v40  ;;  %v16692_v20 = vld [vmem:[#allocation49_spill] sm:$0xff] }
 0xa53   : > { %v6546_v8 = vpop.f32.mrf.mxu1  ;;  %v14446_v52 = vpop.f32.mrf.mxu0  ;;  %v7199_v6 = vmul.f32 0.01, %v6723_v23 }
 0xa54   : > { %v6547_v13 = vadd.f32 %v6546_v8, %v6458_v3 }
 0xa55   : > { %v7327_v8 = vmax.f32 %v6723_v23, %v7199_v6 }
 0xa56   : > { %v6636_v9 = vadd.f32 %v14293_v11, %v6547_v13 }
 0xa58   : > { %v6724_v47 = vpop.f32.mrf.mxu3 }
 0xa59   : > { %v6725_v34 = vadd.f32 %v6724_v47, %v6636_v9  ;;  %v16693_v9 = vld [vmem:[#allocation120_spill] sm:$0xff] }
 0xa5a   : > { %v6463_v47 = vadd.f32 %v14309_v58, %v16693_v9  ;;  %v16694_v58 = vld [vmem:[#allocation10_spill] sm:$0xff]  ;;  %v16695_v9 = vld [vmem:[#allocation100_spill] sm:$0xff] }
 0xa5b   : > { %v6549_v45 = vpop.f32.mrf.mxu1  ;;  %v7203_v5 = vmul.f32 0.01, %v6725_v34  ;;  %v14457_v3 = vpop.f32.mrf.mxu0 }
 0xa5c   : > { %v6550_v11 = vadd.f32 %v6549_v45, %v6461_v56 }
 0xa5d   : > { %v7331_v57 = vmax.f32 %v6725_v34, %v7203_v5  ;;  %6993 = vmatmul.bf16.gmra.mxu2 %v16691_v59  ;;  %7042 = vmatmul.bf16.gmra.mxu3 %v16692_v20 }
 0xa5e   : > { %6815 = vmatmul.bf16.gmra.mxu0 %v16688_v48  ;;  %6864 = vmatmul.bf16.gmra.mxu1 %v16689_v15  ;;  %v14463_v48 = vpop.f32.mrf.mxu2  ;;  %v6639_v49 = vadd.f32 %v14305_v61, %v6550_v11  ;;  %v6466_v61 = vadd.f32 %v14315_v0, %v16606_v55 }
 0xa5f   : > { %v14459_v13 = vpack.c.bf16 %v7331_v57, %v7327_v8 }
 0xa60   : > { %v6727_v40 = vpop.f32.mrf.mxu3 }
 0xa61   : > { %v6728_v6 = vadd.f32 %v6727_v40, %v6639_v49 }
 0xa63   : > { %v6551_v15 = vpop.f32.mrf.mxu1  ;;  %v14467_v5 = vpop.f32.mrf.mxu0  ;;  %v7207_v20 = vmul.f32 0.01, %v6728_v6 }
 0xa64   : > { %v6552_v23 = vadd.f32 %v6551_v15, %v6463_v47  ;;  %v16697_v47 = vld [vmem:[#allocation63_spill] sm:$0xff] }
 0xa65   : > { %v7335_v11 = vmax.f32 %v6728_v6, %v7207_v20 }
 0xa66   : > { %v6641_v34 = vadd.f32 %v14313_v39, %v6552_v23  ;;  %v14469_v8 = vpop.f32.mrf.mxu2  ;;  %v16696_v39 = vld [vmem:[#allocation11_spill] sm:$0xff] }
 0xa68   : > { %v6729_v59 = vpop.f32.mrf.mxu3 }
 0xa69   : > { %v6730_v45 = vadd.f32 %v6729_v59, %v6641_v34  ;;  %v16698_v34 = vld [vmem:[#allocation127_spill] sm:$0xff] }
 0xa6a   : > { %v6468_v59 = vadd.f32 %v14325_v31, %v16698_v34 }
 0xa6b   : > { %v6554_v56 = vpop.f32.mrf.mxu1  ;;  %v7211_v57 = vmul.f32 0.01, %v6730_v45  ;;  %v14485_v0 = vpop.f32.mrf.mxu0 }
 0xa6c   : > { %v6555_v15 = vadd.f32 %v6554_v56, %v6466_v61  ;;  %v9165_v56 = vld [vmem:[%s14483_s22] sm:$0xf] }
 0xa6d   : > { %v7339_v40 = vmax.f32 %v6730_v45, %v7211_v57  ;;  %6998 = vmatmul.bf16.gmra.mxu2 %v16696_v39  ;;  %7047 = vmatmul.bf16.gmra.mxu3 %v16697_v47  ;;  %v9386_v57 = vld [vmem:[%s14483_s22 + $0x4] sm:$0xf0] }
 0xa6e   : > { %6820 = vmatmul.bf16.gmra.mxu0 %v16694_v58  ;;  %6869 = vmatmul.bf16.gmra.mxu1 %v16695_v9  ;;  %v6644_v9 = vadd.f32 %v14327_v29, %v6555_v15  ;;  %v14488_v20 = vpop.f32.mrf.mxu2  ;;  %v16700_v58 = vld [vmem:[#allocation135_spill] sm:$0xff] }
 0xa6f   : > { %v7407_v49 = vpack.c.bf16 %v7339_v40, %v7335_v11  ;;  %v6747_v61 = vadd.f32 %v14333_v14, %v16700_v58  ;;  %v14495_v40 = vor.u32 %v9386_v57, %v9165_v56 }
 0xa70   : > { %v6732_v23 = vpop.f32.mrf.mxu3 }
 0xa71   : > { %v6733_v45 = vadd.f32 %v6732_v23, %v6644_v9  ;;  %v16702_v23 = vld [vmem:[#allocation27_spill] sm:$0xff]  ;;  %v16703_v9 = vld [vmem:[#allocation80_spill] sm:$0xff] }
 0xa73   : > { %v6556_v25 = vpop.f32.mrf.mxu1  ;;  %v7215_v39 = vmul.f32 0.01, %v6733_v45  ;;  %v14497_v29 = vpop.f32.mrf.mxu0 }
 0xa74   : > { %v6557_v6 = vadd.f32 %v6556_v25, %v6468_v59  ;;  %v16701_v25 = vld [vmem:[#allocation76_spill] sm:$0xff] }
 0xa76   : > { %v6646_v31 = vadd.f32 %v14335_v19, %v6557_v6  ;;  %v7343_v19 = vmax.f32 %v6733_v45, %v7215_v39  ;;  %v14503_v14 = vpop.f32.mrf.mxu2  ;;  %v6749_v6 = vadd.f32 %v14344_v26, %v16703_v9  ;;  %v9173_v45 = vld [vmem:[%s14483_s22 + $0x10] sm:$0xf]  ;;  %v16704_v39 = vld [vmem:[#allocation54_spill] sm:$0xff] }
 0xa78   : > { %v6734_v11 = vpop.f32.mrf.mxu3 }
 0xa79   : > { %v6735_v47 = vadd.f32 %v6734_v11, %v6646_v31 }
 0xa7b   : > { %v6835_v34 = vpop.f32.mrf.mxu1  ;;  %v7219_v1 = vmul.f32 0.01, %v6735_v47 }
 0xa7c   : > { %v6836_v55 = vadd.f32 %v6835_v34, %v6747_v61  ;;  %v14510_v61 = vpop.f32.mrf.mxu0 }
 0xa7d   : > { %v7347_v15 = vmax.f32 %v6735_v47, %v7219_v1  ;;  %7052 = vmatmul.bf16.gmra.mxu3 %v16702_v23  ;;  %7711 = vmatmul.bf16.vlgmr.msra.gmra.mxu2 %v14495_v40  ;;  %v9388_v1 = vld [vmem:[%s14483_s22 + $0x14] sm:$0xf0]  ;;  %v6752_v47 = vadd.f32 %v14352_v36, %v16704_v39  ;;  %v9181_v39 = vld [vmem:[%s14483_s22 + $0x20] sm:$0xf] }
 0xa7e   : > { %6874 = vmatmul.bf16.gmra.mxu1 %v16701_v25  ;;  %7613 = vmatmul.bf16.vlgmr.msra.gmra.mxu0 %v14495_v40  ;;  %v6925_v34 = vadd.f32 %v14346_v33, %v6836_v55  ;;  %v14515_v55 = vor.u32 %v9388_v1, %v9173_v45  ;;  %v14517_v33 = vpop.f32.mrf.mxu2 }
 0xa7f   : > { %v7411_v59 = vpack.c.bf16 %v7347_v15, %v7343_v19 }
 0xa80   : > { %v7013_v56 = vpop.f32.mrf.mxu3 }
 0xa81   : > { %v7014_v57 = vadd.f32 %v7013_v56, %v6925_v34  ;;  %7850 = vmatpush.bf16.msrb.mxu1 %v7411_v59  ;;  %v16705_v59 = vld [vmem:[#allocation38_spill] sm:$0xff]  ;;  %v16706_v34 = vld [vmem:[#allocation67_spill] sm:$0xff] }
 0xa83   : > { %v6837_v31 = vpop.f32.mrf.mxu1  ;;  %v7096_v26 = vmul.f32 0.01, %v7014_v57 }
 0xa84   : > { %v6838_v58 = vadd.f32 %v6837_v31, %v6749_v6  ;;  %v16707_v6 = vld [vmem:[#allocation13_spill] sm:$0xff]  ;;  %v14530_v31 = vpop.f32.mrf.mxu0 }
 0xa85   : > { %7851 = vmatpush.bf16.msrb.mxu1 %v7407_v49  ;;  %v6754_v56 = vadd.f32 %v14366_v12, %v16707_v6 }
 0xa86   : > { %v6927_v11 = vadd.f32 %v14364_v53, %v6838_v58  ;;  %v7224_v53 = vmax.f32 %v7014_v57, %v7096_v26 }
 0xa88   : > { %v7015_v25 = vpop.f32.mrf.mxu3 }
 0xa89   : > { %v7016_v19 = vadd.f32 %v7015_v25, %v6927_v11  ;;  %7852 = vmatpush.bf16.msrb.mxu1 %v14459_v13  ;;  %v14533_v11 = vpop.f32.mrf.mxu2 }
 0xa8b   : > { %v6840_v15 = vpop.f32.mrf.mxu1  ;;  %v7100_v23 = vmul.f32 0.01, %v7016_v19 }
 0xa8c   : > { %v6841_v49 = vadd.f32 %v6840_v15, %v6752_v47  ;;  %v9390_v47 = vld [vmem:[%s14483_s22 + $0x24] sm:$0xf0] }
 0xa8d   : > { %v7228_v36 = vmax.f32 %v7016_v19, %v7100_v23  ;;  %7057 = vmatmul.bf16.gmra.mxu3 %v16706_v34  ;;  %7716 = vmatmul.bf16.gmra.mxu2 %v14515_v55  ;;  %v14541_v26 = vor.u32 %v9390_v47, %v9181_v39  ;;  %v14543_v23 = vpop.f32.mrf.mxu0  ;;  %v9392_v47 = vld [vmem:[%s14483_s22 + $0x34] sm:$0xf0] }
 0xa8e   : > { %6879 = vmatmul.bf16.gmra.mxu1 %v16705_v59  ;;  %7618 = vmatmul.bf16.gmra.mxu0 %v14515_v55  ;;  %v6930_v9 = vadd.f32 %v14375_v42, %v6841_v49 }
 0xa8f   : > { %7853 = vmatpush.bf16.msrb.mxu1 %v14441_v7  ;;  %v14526_v13 = vpack.c.bf16 %v7228_v36, %v7224_v53  ;;  %v16708_v7 = vld [vmem:[#allocation52_spill] sm:$0xff]  ;;  %v16709_v53 = vld [vmem:[#allocation87_spill] sm:$0xff]  ;;  %v16710_v36 = vld [vmem:[#allocation74_spill] sm:$0xff] }
 0xa90   : > { %v7018_v58 = vpop.f32.mrf.mxu3  ;;  %v6757_v25 = vadd.f32 %v14373_v2, %v16708_v7 }
 0xa91   : > { %v7019_v45 = vadd.f32 %v7018_v58, %v6930_v9  ;;  %v16711_v9 = vld [vmem:[#allocation65_spill] sm:$0xff] }
 0xa92   : > { %v6759_v6 = vadd.f32 %v14388_v22, %v16711_v9 }
 0xa93   : > { %v6842_v57 = vpop.f32.mrf.mxu1  ;;  %7854 = vmatpush.bf16.msrb.mxu1 %v14422_v18  ;;  %v7104_v19 = vmul.f32 0.01, %v7019_v45 }
 0xa94   : > { %v6843_v1 = vadd.f32 %v6842_v57, %v6754_v56 }
 0xa95   : > { %v7232_v2 = vmax.f32 %v7019_v45, %v7104_v19  ;;  %v14558_v39 = vpop.f32.mrf.mxu0  ;;  %v9189_v45 = vld [vmem:[%s14483_s22 + $0x30] sm:$0xf] }
 0xa96   : > { %v6932_v42 = vadd.f32 %v14390_v17, %v6843_v1  ;;  %v14548_v17 = vpop.f32.mrf.mxu2 }
 0xa97   : > { %7855 = vmatpush.bf16.msrb.mxu1 %v14404_v10 }
 0xa98   : > { %v7020_v12 = vpop.f32.mrf.mxu3 }
 0xa99   : > { %v7021_v15 = vadd.f32 %v7020_v12, %v6932_v42  ;;  %v14567_v12 = vor.u32 %v9392_v47, %v9189_v45  ;;  %v9197_v45 = vld [vmem:[%s14483_s22 + $0x40] sm:$0xf]  ;;  %v9394_v47 = vld [vmem:[%s14483_s22 + $0x44] sm:$0xf0] }
 0xa9b   : > { %v6845_v49 = vpop.f32.mrf.mxu1  ;;  %7856 = vmatpush.bf16.msrb.mxu1 %v14384_v28  ;;  %v7108_v59 = vmul.f32 0.01, %v7021_v15 }
 0xa9c   : > { %v6846_v18 = vadd.f32 %v6845_v49, %v6757_v25 }
 0xa9d   : > { %v7236_v10 = vmax.f32 %v7021_v15, %v7108_v59  ;;  %7062 = vmatmul.bf16.gmra.mxu3 %v16710_v36  ;;  %7721 = vmatmul.bf16.gmra.mxu2 %v14541_v26  ;;  %v16713_v59 = vld [vmem:[#allocation45_spill] sm:$0xff] }
 0xa9e   : > { %6884 = vmatmul.bf16.gmra.mxu1 %v16709_v53  ;;  %7623 = vmatmul.bf16.gmra.mxu0 %v14541_v26  ;;  %v6935_v28 = vadd.f32 %v14401_v44, %v6846_v18  ;;  %v14562_v42 = vpop.f32.mrf.mxu2 }
 0xa9f   : > { %7857 = vmatpush.bf16.msrb.mxu1 %v14360_v37  ;;  %v14554_v34 = vpack.c.bf16 %v7236_v10, %v7232_v2  ;;  %v16712_v37 = vld [vmem:[#allocation29_spill] sm:$0xff] }
 0xaa0   : > { %v7023_v56 = vpop.f32.mrf.mxu3  ;;  %v6762_v44 = vadd.f32 %v14395_v62, %v16712_v37  ;;  %v14573_v62 = vpop.f32.mrf.mxu0  ;;  %v16716_v37 = vld [vmem:[#allocation106_spill] sm:$0xff] }
 0xaa1   : > { %v7024_v58 = vadd.f32 %v7023_v56, %v6935_v28  ;;  %v16715_v28 = vld [vmem:[#allocation33_spill] sm:$0xff] }
 0xaa2   : > { %v6764_v9 = vadd.f32 %v14408_v51, %v16715_v28 }
 0xaa3   : > { %v6847_v57 = vpop.f32.mrf.mxu1  ;;  %v7112_v19 = vmul.f32 0.01, %v7024_v58 }
 0xaa4   : > { %v6848_v1 = vadd.f32 %v6847_v57, %v6759_v6 }
 0xaa5   : > { %v7240_v53 = vmax.f32 %v7024_v58, %v7112_v19  ;;  %v14589_v19 = vor.u32 %v9394_v47, %v9197_v45 }
 0xaa6   : > { %v6937_v7 = vadd.f32 %v14413_v24, %v6848_v1  ;;  %v16714_v24 = vld [vmem:[#allocation19_spill] sm:$0xff]  ;;  %v14580_v56 = vpop.f32.mrf.mxu2 }
 0xaa8   : > { %v7025_v25 = vpop.f32.mrf.mxu3 }
 0xaa9   : > { %v7026_v22 = vadd.f32 %v7025_v25, %v6937_v7  ;;  %v14587_v25 = vpop.f32.mrf.mxu0 }
 0xaab   : > { %v6850_v15 = vpop.f32.mrf.mxu1  ;;  %v7116_v18 = vmul.f32 0.01, %v7026_v22 }
 0xaac   : > { %v6851_v49 = vadd.f32 %v6850_v15, %v6762_v44  ;;  %v6767_v44 = vadd.f32 %v14415_v32, %v16716_v37  ;;  %v9396_v37 = vld [vmem:[%s14483_s22 + $0x54] sm:$0xf0] }
 0xaad   : > { %v7244_v2 = vmax.f32 %v7026_v22, %v7116_v18  ;;  %7067 = vmatmul.bf16.gmra.mxu3 %v16714_v24  ;;  %7726 = vmatmul.bf16.gmra.mxu2 %v14567_v12 }
 0xaae   : > { %6889 = vmatmul.bf16.gmra.mxu1 %v16713_v59  ;;  %7628 = vmatmul.bf16.gmra.mxu0 %v14567_v12  ;;  %v6940_v10 = vadd.f32 %v14428_v41, %v6851_v49  ;;  %v14591_v18 = vpop.f32.mrf.mxu2 }
 0xaaf   : > { %v14576_v36 = vpack.c.bf16 %v7244_v2, %v7240_v53  ;;  %v16717_v53 = vld [vmem:[#allocation26_spill] sm:$0xff]  ;;  %v16718_v2 = vld [vmem:[#allocation32_spill] sm:$0xff] }
 0xab0   : > { %v7028_v6 = vpop.f32.mrf.mxu3 }
 0xab1   : > { %v7029_v57 = vadd.f32 %v7028_v6, %v6940_v10  ;;  %v14602_v45 = vpop.f32.mrf.mxu0 }
 0xab3   : > { %v6852_v1 = vpop.f32.mrf.mxu1  ;;  %v7120_v22 = vmul.f32 0.01, %v7029_v57 }
 0xab4   : > { %v6853_v58 = vadd.f32 %v6852_v1, %v6764_v9  ;;  %v16719_v9 = vld [vmem:[#allocation129_spill] sm:$0xff] }
 0xab5   : > { %v6769_v6 = vadd.f32 %v14426_v50, %v16719_v9  ;;  %v16720_v50 = vld [vmem:[#allocation23_spill] sm:$0xff] }
 0xab6   : > { %v6942_v7 = vadd.f32 %v14437_v43, %v6853_v58  ;;  %v7248_v43 = vmax.f32 %v7029_v57, %v7120_v22  ;;  %v9205_v57 = vld [vmem:[%s14483_s22 + $0x50] sm:$0xf] }
 0xab7   : > { %v14609_v22 = vor.u32 %v9396_v37, %v9205_v57 }
 0xab8   : > { %v7030_v41 = vpop.f32.mrf.mxu3 }
 0xab9   : > { %v7031_v51 = vadd.f32 %v7030_v41, %v6942_v7  ;;  %v14604_v7 = vpop.f32.mrf.mxu2 }
 0xabb   : > { %v6855_v15 = vpop.f32.mrf.mxu1  ;;  %v7124_v59 = vmul.f32 0.01, %v7031_v51 }
 0xabc   : > { %v6856_v49 = vadd.f32 %v6855_v15, %v6767_v44 }
 0xabd   : > { %v7252_v32 = vmax.f32 %v7031_v51, %v7124_v59  ;;  %7072 = vmatmul.bf16.gmra.mxu3 %v16718_v2  ;;  %7731 = vmatmul.bf16.gmra.mxu2 %v14589_v19  ;;  %v14611_v59 = vpop.f32.mrf.mxu0  ;;  %v16722_v2 = vld [vmem:[#allocation30_spill] sm:$0xff] }
 0xabe   : > { %6894 = vmatmul.bf16.gmra.mxu1 %v16717_v53  ;;  %7633 = vmatmul.bf16.gmra.mxu0 %v14589_v19  ;;  %v6945_v24 = vadd.f32 %v14448_v46, %v6856_v49  ;;  %v16721_v53 = vld [vmem:[#allocation48_spill] sm:$0xff] }
 0xabf   : > { %v14598_v10 = vpack.c.bf16 %v7252_v32, %v7248_v43  ;;  %v6772_v43 = vadd.f32 %v14431_v63, %v16721_v53 }
 0xac0   : > { %v7033_v28 = vpop.f32.mrf.mxu3 }
 0xac1   : > { %v7034_v1 = vadd.f32 %v7033_v28, %v6945_v24  ;;  %v14619_v24 = vpop.f32.mrf.mxu2 }
 0xac3   : > { %v6857_v58 = vpop.f32.mrf.mxu1  ;;  %v7128_v46 = vmul.f32 0.01, %v7034_v1 }
 0xac4   : > { %v6858_v47 = vadd.f32 %v6857_v58, %v6769_v6  ;;  %v16723_v58 = vld [vmem:[#allocation138_spill] sm:$0xff] }
 0xac5   : > { %v7256_v32 = vmax.f32 %v7034_v1, %v7128_v46  ;;  %v9213_v1 = vld [vmem:[%s14483_s22 + $0x60] sm:$0xf]  ;;  %v14628_v46 = vpop.f32.mrf.mxu0 }
 0xac6   : > { %v6947_v44 = vadd.f32 %v14463_v48, %v6858_v47  ;;  %v6774_v47 = vadd.f32 %v14446_v52, %v16723_v58 }
 0xac8   : > { %v7035_v41 = vpop.f32.mrf.mxu3 }
 0xac9   : > { %v7036_v51 = vadd.f32 %v7035_v41, %v6947_v44  ;;  %v9398_v41 = vld [vmem:[%s14483_s22 + $0x64] sm:$0xf0] }
 0xacb   : > { %v6860_v15 = vpop.f32.mrf.mxu1  ;;  %v7132_v49 = vmul.f32 0.01, %v7036_v51 }
 0xacc   : > { %v6861_v28 = vadd.f32 %v6860_v15, %v6772_v43  ;;  %v14633_v15 = vpop.f32.mrf.mxu2 }
 0xacd   : > { %v7260_v48 = vmax.f32 %v7036_v51, %v7132_v49  ;;  %7077 = vmatmul.bf16.gmra.mxu3 %v16722_v2  ;;  %7736 = vmatmul.bf16.gmra.mxu2 %v14609_v22 }
 0xace   : > { %6899 = vmatmul.bf16.gmra.mxu1 %v16720_v50  ;;  %7638 = vmatmul.bf16.gmra.mxu0 %v14609_v22  ;;  %v6950_v37 = vadd.f32 %v14469_v8, %v6861_v28  ;;  %v14631_v50 = vor.u32 %v9398_v41, %v9213_v1  ;;  %v16725_v8 = vld [vmem:[#allocation117_spill] sm:$0xff] }
 0xacf   : > { %v14621_v9 = vpack.c.bf16 %v7260_v48, %v7256_v32  ;;  %v16724_v48 = vld [vmem:[#allocation102_spill] sm:$0xff]  ;;  %v6777_v2 = vadd.f32 %v14457_v3, %v16725_v8 }
 0xad0   : > { %v7038_v6 = vpop.f32.mrf.mxu3 }
 0xad1   : > { %v7039_v63 = vadd.f32 %v7038_v6, %v6950_v37  ;;  %v16726_v6 = vld [vmem:[#allocation104_spill] sm:$0xff] }
 0xad3   : > { %v6862_v57 = vpop.f32.mrf.mxu1  ;;  %v7136_v53 = vmul.f32 0.01, %v7039_v63 }
 0xad4   : > { %v6863_v44 = vadd.f32 %v6862_v57, %v6774_v47  ;;  %v14643_v57 = vpop.f32.mrf.mxu0 }
 0xad5   : > { %v7264_v28 = vmax.f32 %v7039_v63, %v7136_v53  ;;  %v9221_v53 = vld [vmem:[%s14483_s22 + $0x70] sm:$0xf] }
 0xad6   : > { %v6952_v51 = vadd.f32 %v14488_v20, %v6863_v44  ;;  %v16727_v44 = vld [vmem:[#allocation68_spill] sm:$0xff] }
 0xad7   : > { %v6779_v1 = vadd.f32 %v14467_v5, %v16727_v44 }
 0xad8   : > { %v7040_v49 = vpop.f32.mrf.mxu3 }
 0xad9   : > { %v7041_v43 = vadd.f32 %v7040_v49, %v6952_v51  ;;  %v14647_v51 = vpop.f32.mrf.mxu2 }
 0xadb   : > { %v6865_v32 = vpop.f32.mrf.mxu1  ;;  %v7140_v52 = vmul.f32 0.01, %v7041_v43 }
 0xadc   : > { %v6866_v58 = vadd.f32 %v6865_v32, %v6777_v2 }
 0xadd   : > { %v7268_v20 = vmax.f32 %v7041_v43, %v7140_v52  ;;  %7082 = vmatmul.bf16.gmra.mxu3 %v16726_v6  ;;  %7741 = vmatmul.bf16.gmra.mxu2 %v14631_v50  ;;  %v9400_v43 = vld [vmem:[%s14483_s22 + $0x74] sm:$0xf0]  ;;  %v16728_v6 = vld [vmem:[#allocation31_spill] sm:$0xff] }
 0xade   : > { %6904 = vmatmul.bf16.gmra.mxu1 %v16724_v48  ;;  %7643 = vmatmul.bf16.gmra.mxu0 %v14631_v50  ;;  %v6955_v3 = vadd.f32 %v14503_v14, %v6866_v58  ;;  %v14653_v48 = vor.u32 %v9400_v43, %v9221_v53  ;;  %v6782_v14 = vadd.f32 %v14485_v0, %v16652_v27 }
 0xadf   : > { %v14641_v47 = vpack.c.bf16 %v7268_v20, %v7264_v28  ;;  %v14655_v20 = vpop.f32.mrf.mxu0 }
 0xae0   : > { %v7043_v37 = vpop.f32.mrf.mxu3 }
 0xae1   : > { %v7044_v49 = vadd.f32 %v7043_v37, %v6955_v3  ;;  %v14661_v58 = vpop.f32.mrf.mxu2  ;;  %v16729_v3 = vld [vmem:[#allocation111_spill] sm:$0xff] }
 0xae3   : > { %v6867_v41 = vpop.f32.mrf.mxu1  ;;  %v7144_v8 = vmul.f32 0.01, %v7044_v49 }
 0xae4   : > { %v6868_v63 = vadd.f32 %v6867_v41, %v6779_v1 }
 0xae6   : > { %v6957_v52 = vadd.f32 %v14517_v33, %v6868_v63  ;;  %v7272_v33 = vmax.f32 %v7044_v49, %v7144_v8  ;;  %v6784_v63 = vadd.f32 %v14497_v29, %v16729_v3  ;;  %v9167_v49 = vld [vmem:[%s14483_s22 + $0x8] sm:$0xf0] }
 0xae7   : > { %v14668_v27 = vpop.f32.mrf.mxu0 }
 0xae8   : > { %v7045_v32 = vpop.f32.mrf.mxu3 }
 0xae9   : > { %v7046_v2 = vadd.f32 %v7045_v32, %v6957_v52  ;;  %v9385_v32 = vld [vmem:[%s14483_s22 + $0x4] sm:$0xf] }
 0xaeb   : > { %v6870_v28 = vpop.f32.mrf.mxu1  ;;  %v7148_v5 = vmul.f32 0.01, %v7046_v2 }
 0xaec   : > { %v6871_v44 = vadd.f32 %v6870_v28, %v6782_v14  ;;  %v14675_v28 = vor.u32 %v9385_v32, %v9167_v49  ;;  %v14677_v14 = vpop.f32.mrf.mxu2  ;;  %v9175_v32 = vld [vmem:[%s14483_s22 + $0x18] sm:$0xf0] }
 0xaed   : > { %v7276_v37 = vmax.f32 %v7046_v2, %v7148_v5  ;;  %7087 = vmatmul.bf16.gmra.mxu3 %v16653_v60  ;;  %7746 = vmatmul.bf16.gmra.mxu2 %v14653_v48  ;;  %v6787_v60 = vadd.f32 %v14510_v61, %v16557_v35 }
 0xaee   : > { %6909 = vmatmul.bf16.gmra.mxu1 %v16728_v6  ;;  %7648 = vmatmul.bf16.gmra.mxu0 %v14653_v48  ;;  %v6960_v43 = vadd.f32 %v14533_v11, %v6871_v44 }
 0xaef   : > { %v7376_v1 = vpack.c.bf16 %v7276_v37, %v7272_v33  ;;  %v14682_v35 = vpop.f32.mrf.mxu0 }
 0xaf0   : > { %v7048_v41 = vpop.f32.mrf.mxu3 }
 0xaf1   : > { %v7049_v0 = vadd.f32 %v7048_v41, %v6960_v43  ;;  %v6789_v41 = vadd.f32 %v14530_v31, %v16657_v16 }
 0xaf3   : > { %v6872_v53 = vpop.f32.mrf.mxu1  ;;  %v7152_v5 = vmul.f32 0.01, %v7049_v0 }
 0xaf4   : > { %v6873_v52 = vadd.f32 %v6872_v53, %v6784_v63 }
 0xaf6   : > { %v6962_v8 = vadd.f32 %v14548_v17, %v6873_v52  ;;  %v7280_v17 = vmax.f32 %v7049_v0, %v7152_v5  ;;  %v14687_v52 = vpop.f32.mrf.mxu2  ;;  %v9387_v0 = vld [vmem:[%s14483_s22 + $0x14] sm:$0xf] }
 0xaf8   : > { %v7050_v2 = vpop.f32.mrf.mxu3 }
 0xaf9   : > { %v7051_v6 = vadd.f32 %v7050_v2, %v6962_v8  ;;  %v6792_v8 = vadd.f32 %v14543_v23, %v16658_v21  ;;  %v14696_v2 = vor.u32 %v9387_v0, %v9175_v32 }
 0xafb   : > { %v6875_v29 = vpop.f32.mrf.mxu1  ;;  %v7156_v33 = vmul.f32 0.01, %v7051_v6 }
 0xafc   : > { %v6876_v11 = vadd.f32 %v6875_v29, %v6787_v60  ;;  %v14694_v60 = vpop.f32.mrf.mxu0 }
 0xafd   : > { %v7284_v37 = vmax.f32 %v7051_v6, %v7156_v33  ;;  %7760 = vmatmul.bf16.vlgmr.msra.gmra.mxu3 %v14675_v28 }
 0xafe   : > { %7662 = vmatmul.bf16.vlgmr.msra.gmra.mxu1 %v14675_v28  ;;  %7809 = vmatmul.bf16.vlgmr.msrb.gmra.mxu0 %v14495_v40  ;;  %v6965_v44 = vadd.f32 %v14562_v42, %v6876_v11  ;;  %v14703_v23 = vpop.f32.mrf.mxu2  ;;  %v6794_v11 = vadd.f32 %v14558_v39, %v16663_v38 }
 0xaff   : > { %v7380_v61 = vpack.c.bf16 %v7284_v37, %v7280_v17 }
 0xb00   : > { %v7053_v3 = vpop.f32.mrf.mxu3 }
 0xb01   : > { %v7054_v63 = vadd.f32 %v7053_v3, %v6965_v44  ;;  %7899 = vmatpush.bf16.msrb.mxu2 %v7380_v61 }
 0xb03   : > { %v6877_v53 = vpop.f32.mrf.mxu1  ;;  %v7160_v16 = vmul.f32 0.01, %v7054_v63 }
 0xb04   : > { %v6878_v43 = vadd.f32 %v6877_v53, %v6789_v41  ;;  %v14711_v61 = vpop.f32.mrf.mxu0  ;;  %v9183_v41 = vld [vmem:[%s14483_s22 + $0x28] sm:$0xf0] }
 0xb05   : > { %7900 = vmatpush.bf16.msrb.mxu2 %v7376_v1 }
 0xb06   : > { %v6967_v49 = vadd.f32 %v14580_v56, %v6878_v43  ;;  %v7288_v56 = vmax.f32 %v7054_v63, %v7160_v16  ;;  %v14719_v63 = vpop.f32.mrf.mxu2 }
 0xb08   : > { %v7055_v42 = vpop.f32.mrf.mxu3 }
 0xb09   : > { %v7056_v31 = vadd.f32 %v7055_v42, %v6967_v49  ;;  %7901 = vmatpush.bf16.msrb.mxu2 %v14641_v47  ;;  %v6799_v49 = vadd.f32 %v14587_v25, %v16669_v30 }
 0xb0b   : > { %v6880_v5 = vpop.f32.mrf.mxu1  ;;  %v7164_v29 = vmul.f32 0.01, %v7056_v31 }
 0xb0c   : > { %v6881_v6 = vadd.f32 %v6880_v5, %v6792_v8 }
 0xb0d   : > { %v7292_v21 = vmax.f32 %v7056_v31, %v7164_v29  ;;  %7765 = vmatmul.bf16.gmra.mxu3 %v14696_v2  ;;  %7902 = vmatpush.bf16.msrb.mxu2 %v14621_v9  ;;  %v9389_v9 = vld [vmem:[%s14483_s22 + $0x24] sm:$0xf]  ;;  %v9191_v29 = vld [vmem:[%s14483_s22 + $0x38] sm:$0xf0] }
 0xb0e   : > { %7667 = vmatmul.bf16.gmra.mxu1 %v14696_v2  ;;  %7814 = vmatmul.bf16.gmra.mxu0 %v14515_v55  ;;  %v6970_v1 = vadd.f32 %v14591_v18, %v6881_v6  ;;  %v6797_v18 = vadd.f32 %v14573_v62, %v16664_v4  ;;  %v14721_v39 = vor.u32 %v9389_v9, %v9183_v41  ;;  %v14736_v31 = vpop.f32.mrf.mxu2  ;;  %v9391_v6 = vld [vmem:[%s14483_s22 + $0x34] sm:$0xf] }
 0xb0f   : > { %v14706_v47 = vpack.c.bf16 %v7292_v21, %v7288_v56 }
 0xb10   : > { %v7058_v33 = vpop.f32.mrf.mxu3 }
 0xb11   : > { %v7059_v17 = vadd.f32 %v7058_v33, %v6970_v1  ;;  %7903 = vmatpush.bf16.msrb.mxu2 %v14598_v10  ;;  %v14745_v1 = vor.u32 %v9391_v6, %v9191_v29 }
 0xb13   : > { %v6882_v37 = vpop.f32.mrf.mxu1  ;;  %v7168_v53 = vmul.f32 0.01, %v7059_v17 }
 0xb14   : > { %v6883_v44 = vadd.f32 %v6882_v37, %v6794_v11 }
 0xb15   : > { %7904 = vmatpush.bf16.msrb.mxu2 %v14576_v36  ;;  %v14724_v36 = vpop.f32.mrf.mxu0  ;;  %v7296_v4 = vmax.f32 %v7059_v17, %v7168_v53 }
 0xb16   : > { %v6972_v3 = vadd.f32 %v14604_v7, %v6883_v44  ;;  %v14747_v17 = vpop.f32.mrf.mxu2  ;;  %v16730_v44 = vld [vmem:[#allocation83_spill] sm:$0xff] }
 0xb17   : > { %v6804_v9 = vadd.f32 %v14611_v59, %v16730_v44 }
 0xb18   : > { %v7060_v38 = vpop.f32.mrf.mxu3 }
 0xb19   : > { %v7061_v10 = vadd.f32 %v7060_v38, %v6972_v3  ;;  %7905 = vmatpush.bf16.msrb.mxu2 %v14554_v34 }
 0xb1b   : > { %v6885_v43 = vpop.f32.mrf.mxu1  ;;  %v7172_v32 = vmul.f32 0.01, %v7061_v10 }
 0xb1c   : > { %v6886_v0 = vadd.f32 %v6885_v43, %v6797_v18  ;;  %v9199_v43 = vld [vmem:[%s14483_s22 + $0x48] sm:$0xf0] }
 0xb1d   : > { %v7300_v62 = vmax.f32 %v7061_v10, %v7172_v32  ;;  %7770 = vmatmul.bf16.gmra.mxu3 %v14721_v39  ;;  %7906 = vmatpush.bf16.msrb.mxu2 %v14526_v13  ;;  %v14740_v56 = vpop.f32.mrf.mxu0  ;;  %v9393_v10 = vld [vmem:[%s14483_s22 + $0x44] sm:$0xf] }
 0xb1e   : > { %7672 = vmatmul.bf16.gmra.mxu1 %v14721_v39  ;;  %7819 = vmatmul.bf16.gmra.mxu0 %v14541_v26  ;;  %v6975_v7 = vadd.f32 %v14619_v24, %v6886_v0  ;;  %v6802_v24 = vadd.f32 %v14602_v45, %v16670_v54  ;;  %v14762_v0 = vpop.f32.mrf.mxu2 }
 0xb1f   : > { %v14731_v34 = vpack.c.bf16 %v7300_v62, %v7296_v4 }
 0xb20   : > { %v7063_v8 = vpop.f32.mrf.mxu3  ;;  %7907 = vmatmul.bf16.vlgmr.msrb.gmra.mxu2 %v14495_v40 }
 0xb21   : > { %v7064_v42 = vadd.f32 %v7063_v8, %v6975_v7  ;;  %v14767_v7 = vor.u32 %v9393_v10, %v9199_v43 }
 0xb23   : > { %v6887_v16 = vpop.f32.mrf.mxu1  ;;  %v7176_v30 = vmul.f32 0.01, %v7064_v42 }
 0xb24   : > { %v6888_v5 = vadd.f32 %v6887_v16, %v6799_v49 }
 0xb25   : > { %v14757_v41 = vpop.f32.mrf.mxu0 }
 0xb26   : > { %v6977_v13 = vadd.f32 %v14633_v15, %v6888_v5  ;;  %v7304_v15 = vmax.f32 %v7064_v42, %v7176_v30  ;;  %v14777_v29 = vpop.f32.mrf.mxu2 }
 0xb28   : > { %v7065_v21 = vpop.f32.mrf.mxu3 }
 0xb29   : > { %v7066_v25 = vadd.f32 %v7065_v21, %v6977_v13 }
 0xb2b   : > { %v6890_v40 = vpop.f32.mrf.mxu1  ;;  %v7180_v33 = vmul.f32 0.01, %v7066_v25 }
 0xb2c   : > { %v6891_v11 = vadd.f32 %v6890_v40, %v6802_v24  ;;  %v16732_v24 = vld [vmem:[#allocation103_spill] sm:$0xff] }
 0xb2d   : > { %v7308_v37 = vmax.f32 %v7066_v25, %v7180_v33  ;;  %7775 = vmatmul.bf16.gmra.mxu3 %v14745_v1  ;;  %v14769_v42 = vpop.f32.mrf.mxu0  ;;  %v6809_v21 = vadd.f32 %v14643_v57, %v16732_v24  ;;  %v9395_v33 = vld [vmem:[%s14483_s22 + $0x54] sm:$0xf]  ;;  %v14793_v57 = vpop.permute.xlu0 %7517 }
 0xb2e   : > { %7677 = vmatmul.bf16.gmra.mxu1 %v14745_v1  ;;  %7824 = vmatmul.bf16.gmra.mxu0 %v14567_v12  ;;  %v6980_v54 = vadd.f32 %v14647_v51, %v6891_v11  ;;  %v16731_v51 = vld [vmem:[#allocation24_spill] sm:$0xff]  ;;  %16733 = vst [vmem:[#allocation21_spill] sm:$0xff] %v14793_v57 }
 0xb2f   : > { %v14753_v45 = vpack.c.bf16 %v7308_v37, %v7304_v15  ;;  %v6807_v4 = vadd.f32 %v14628_v46, %v16731_v51  ;;  %v9207_v15 = vld [vmem:[%s14483_s22 + $0x58] sm:$0xf0] }
 0xb30   : > { %v7068_v3 = vpop.f32.mrf.mxu3  ;;  %7912 = vmatmul.bf16.gmra.mxu2 %v14515_v55 }
 0xb31   : > { %v7069_v18 = vadd.f32 %v7068_v3, %v6980_v54  ;;  %v14787_v54 = vor.u32 %v9395_v33, %v9207_v15 }
 0xb33   : > { %v6892_v38 = vpop.f32.mrf.mxu1  ;;  %v7184_v59 = vmul.f32 0.01, %v7069_v18 }
 0xb34   : > { %v6893_v53 = vadd.f32 %v6892_v38, %v6804_v9  ;;  %v16734_v38 = vld [vmem:[#allocation123_spill] sm:$0xff] }
 0xb35   : > { %v14782_v11 = vpop.f32.mrf.mxu0 }
 0xb36   : > { %v6982_v32 = vadd.f32 %v14661_v58, %v6893_v53  ;;  %v7312_v58 = vmax.f32 %v7069_v18, %v7184_v59  ;;  %v14789_v18 = vpop.f32.mrf.mxu2  ;;  %v6812_v53 = vadd.f32 %v14655_v20, %v16734_v38  ;;  %v16735_v59 = vld [vmem:[#allocation8_spill] sm:$0xff] }
 0xb38   : > { %v7070_v62 = vpop.f32.mrf.mxu3 }
 0xb39   : > { %v7071_v49 = vadd.f32 %v7070_v62, %v6982_v32  ;;  %v14800_v32 = vpop.permute.xlu2 %7507 }
 0xb3b   : > { %v6895_v8 = vpop.f32.mrf.mxu1  ;;  %v7188_v16 = vmul.f32 0.01, %v7071_v49 }
 0xb3c   : > { %v6896_v55 = vadd.f32 %v6895_v8, %v6807_v4 }
 0xb3d   : > { %v7316_v5 = vmax.f32 %v7071_v49, %v7188_v16  ;;  %7780 = vmatmul.bf16.gmra.mxu3 %v14767_v7  ;;  %v14798_v43 = vpop.f32.mrf.mxu0  ;;  %v6814_v49 = vadd.f32 %v14668_v27, %v16735_v59 }
 0xb3e   : > { %7682 = vmatmul.bf16.gmra.mxu1 %v14767_v7  ;;  %7829 = vmatmul.bf16.gmra.mxu0 %v14589_v19  ;;  %v6985_v46 = vadd.f32 %v14677_v14, %v6896_v55  ;;  %v14808_v16 = vpop.f32.mrf.mxu2 }
 0xb3f   : > { %v14775_v6 = vpack.c.bf16 %v7316_v5, %v7312_v58  ;;  %16736 = vst [vmem:[#allocation92_spill] sm:$0xff] %v14808_v16  ;;  %v9397_v5 = vld [vmem:[%s14483_s22 + $0x64] sm:$0xf] }
 0xb40   : > { %v7073_v13 = vpop.f32.mrf.mxu3  ;;  %7917 = vmatmul.bf16.gmra.mxu2 %v14541_v26 }
 0xb41   : > { %v7074_v30 = vadd.f32 %v7073_v13, %v6985_v46  ;;  %v9215_v46 = vld [vmem:[%s14483_s22 + $0x68] sm:$0xf0]  ;;  %v14812_v13 = vpop.permute.xlu0 %7512 }
 0xb42   : > { %16737 = vst [vmem:[#allocation28_spill] sm:$0xff] %v14812_v13  ;;  %v14819_v27 = vor.u32 %v9397_v5, %v9215_v46 }
 0xb43   : > { %v6897_v25 = vpop.f32.mrf.mxu1  ;;  %v7192_v44 = vmul.f32 0.01, %v7074_v30 }
 0xb44   : > { %v6898_v40 = vadd.f32 %v6897_v25, %v6809_v21  ;;  %v16738_v21 = vld [vmem:[#allocation130_spill] sm:$0xff] }
 0xb46   : > { %v6987_v37 = vadd.f32 %v14687_v52, %v6898_v40  ;;  %v7320_v52 = vmax.f32 %v7074_v30, %v7192_v44  ;;  %v6817_v30 = vadd.f32 %v14682_v35, %v16738_v21  ;;  %v14821_v40 = vpop.permute.xlu2 %7502 }
 0xb48   : > { %v7075_v14 = vpop.f32.mrf.mxu3 }
 0xb49   : > { %v7076_v9 = vadd.f32 %v7075_v14, %v6987_v37  ;;  %v14832_v38 = vpop.permute.xlu0 %7487 }
 0xb4a   : > { %16739 = vst [vmem:[#allocation88_spill] sm:$0xff] %v14832_v38 }
 0xb4b   : > { %v6900_v3 = vpop.f32.mrf.mxu1  ;;  %v7196_v26 = vmul.f32 0.01, %v7076_v9 }
 0xb4c   : > { %v6901_v51 = vadd.f32 %v6900_v3, %v6812_v53  ;;  %v16740_v53 = vld [vmem:[#allocation120_spill] sm:$0xff] }
 0xb4d   : > { %v7324_v10 = vmax.f32 %v7076_v9, %v7196_v26  ;;  %7785 = vmatmul.bf16.gmra.mxu3 %v14787_v54  ;;  %v14827_v9 = vpop.f32.mrf.mxu2 }
 0xb4e   : > { %7687 = vmatmul.bf16.gmra.mxu1 %v14787_v54  ;;  %7834 = vmatmul.bf16.gmra.mxu0 %v14609_v22  ;;  %v6990_v8 = vadd.f32 %v14703_v23, %v6901_v51 }
 0xb4f   : > { %v14802_v4 = vpack.c.bf16 %v7324_v10, %v7320_v52  ;;  %v6819_v52 = vadd.f32 %v14694_v60, %v16740_v53 }
 0xb50   : > { %v7078_v62 = vpop.f32.mrf.mxu3  ;;  %7922 = vmatmul.bf16.gmra.mxu2 %v14567_v12  ;;  %v14817_v12 = vpop.f32.mrf.mxu0 }
 0xb51   : > { %v7079_v58 = vadd.f32 %v7078_v62, %v6990_v8  ;;  %v14842_v8 = vpop.permute.xlu1 %7522  ;;  %v14849_v21 = vpop.permute.xlu0 %7482 }
 0xb53   : > { %v6902_v20 = vpop.f32.mrf.mxu1  ;;  %v7200_v23 = vmul.f32 0.01, %v7079_v58 }
 0xb54   : > { %v6903_v55 = vadd.f32 %v6902_v20, %v6814_v49  ;;  %v9399_v49 = vld [vmem:[%s14483_s22 + $0x74] sm:$0xf]  ;;  %v9223_v20 = vld [vmem:[%s14483_s22 + $0x78] sm:$0xf0] }
 0xb55   : > { %v7328_v35 = vmax.f32 %v7079_v58, %v7200_v23  ;;  %v14845_v58 = vpop.f32.mrf.mxu2  ;;  %v14847_v5 = vor.u32 %v9399_v49, %v9223_v20 }
 0xb56   : > { %v6992_v24 = vadd.f32 %v14719_v63, %v6903_v55 }
 0xb57   : > { %16742 = vst [vmem:[#allocation84_spill] sm:$0xff] %v14847_v5 }
 0xb58   : > { %v7080_v25 = vpop.f32.mrf.mxu3  ;;  %v14836_v51 = vpop.f32.mrf.mxu0 }
 0xb59   : > { %v7081_v33 = vadd.f32 %v7080_v25, %v6992_v24 }
 0xb5b   : > { %v6905_v15 = vpop.f32.mrf.mxu1  ;;  %v7204_v14 = vmul.f32 0.01, %v7081_v33 }
 0xb5c   : > { %v6906_v37 = vadd.f32 %v6905_v15, %v6817_v30 }
 0xb5d   : > { %v7332_v44 = vmax.f32 %v7081_v33, %v7204_v14  ;;  %7790 = vmatmul.bf16.gmra.mxu3 %v14819_v27 }
 0xb5e   : > { %7692 = vmatmul.bf16.gmra.mxu1 %v14819_v27  ;;  %7839 = vmatmul.bf16.gmra.mxu0 %v14631_v50  ;;  %v6995_v63 = vadd.f32 %v14736_v31, %v6906_v37  ;;  %v14838_v31 = vpop.permute.xlu2 %7477 }
 0xb5f   : > { %v14829_v3 = vpack.c.bf16 %v7332_v44, %v7328_v35  ;;  %16741 = vst [vmem:[#allocation131_spill] sm:$0xff] %v14838_v31  ;;  %v14861_v44 = vpop.permute.xlu1 %7497 }
 0xb60   : > { %v7083_v26 = vpop.f32.mrf.mxu3  ;;  %7927 = vmatmul.bf16.gmra.mxu2 %v14589_v19  ;;  %v14851_v25 = vpop.f32.mrf.mxu0 }
 0xb61   : > { %v7084_v59 = vadd.f32 %v7083_v26, %v6995_v63  ;;  %v16744_v26 = vld [vmem:[#allocation127_spill] sm:$0xff] }
 0xb62   : > { %v6824_v53 = vadd.f32 %v14724_v36, %v16744_v26 }
 0xb63   : > { %v6907_v10 = vpop.f32.mrf.mxu1  ;;  %v7208_v46 = vmul.f32 0.01, %v7084_v59 }
 0xb64   : > { %v6908_v62 = vadd.f32 %v6907_v10, %v6819_v52  ;;  %v14865_v10 = vpop.f32.mrf.mxu2 }
 0xb65   : > { %v7336_v15 = vmax.f32 %v7084_v59, %v7208_v46  ;;  %v14868_v59 = vpop.permute.xlu0 %7457 }
 0xb66   : > { %v6997_v55 = vadd.f32 %v14747_v17, %v6908_v62  ;;  %v14855_v23 = vpop.permute.xlu2 %7472  ;;  %v16743_v17 = vld [vmem:[#allocation115_spill] sm:$0xff] }
 0xb67   : > { %v6822_v33 = vadd.f32 %v14711_v61, %v16743_v17 }
 0xb68   : > { %v7085_v19 = vpop.f32.mrf.mxu3 }
 0xb69   : > { %v7086_v60 = vadd.f32 %v7085_v19, %v6997_v55 }
 0xb6b   : > { %v6910_v24 = vpop.f32.mrf.mxu1  ;;  %v7212_v30 = vmul.f32 0.01, %v7086_v60 }
 0xb6c   : > { %v6911_v14 = vadd.f32 %v6910_v24, %v6822_v33 }
 0xb6d   : > { %v7340_v37 = vmax.f32 %v7086_v60, %v7212_v30  ;;  %7795 = vmatmul.bf16.gmra.mxu3 %v14847_v5  ;;  %v14875_v30 = vpop.permute.xlu1 %7492 }
 0xb6e   : > { %7697 = vmatmul.bf16.gmra.mxu1 %v14847_v5  ;;  %7844 = vmatmul.bf16.gmra.mxu0 %v14653_v48  ;;  %v7000_v62 = vadd.f32 %v14762_v0, %v6911_v14  ;;  %v14870_v20 = vpop.permute.xlu2 %7447  ;;  %v14877_v0 = vpop.f32.mrf.mxu2 }
 0xb6f   : > { %v7408_v63 = vpack.c.bf16 %v7340_v37, %v7336_v15  ;;  %v14880_v37 = vpop.permute.xlu0 %7452 }
 0xb70   : > { %v7088_v35 = vpop.f32.mrf.mxu3  ;;  %7932 = vmatmul.bf16.gmra.mxu2 %v14609_v22  ;;  %v7615_v22 = vadd.f32 %v14740_v56, %v14870_v20  ;;  %v7617_v14 = vadd.f32 %v14757_v41, %v14880_v37  ;;  %v7620_v41 = vadd.f32 %v14769_v42, %v14868_v59 }
 0xb71   : > { %v7089_v49 = vadd.f32 %v7088_v35, %v7000_v62 }
 0xb73   : > { %v6912_v52 = vpop.f32.mrf.mxu1  ;;  %v7216_v46 = vmul.f32 0.01, %v7089_v49 }
 0xb74   : > { %v6913_v61 = vadd.f32 %v6912_v52, %v6824_v53 }
 0xb75   : > { %v7344_v33 = vmax.f32 %v7089_v49, %v7216_v46  ;;  %v14889_v49 = vpop.permute.xlu1 %7467 }
 0xb76   : > { %v7002_v55 = vadd.f32 %v14777_v29, %v6913_v61  ;;  %v7713_v29 = vadd.f32 %v14789_v18, %v14870_v20  ;;  %16746 = vst [vmem:[#allocation34_spill] sm:$0xff] %v14889_v49 }
 0xb78   : > { %v7090_v19 = vpop.f32.mrf.mxu3 }
 0xb79   : > { %v7091_v60 = vadd.f32 %v7090_v19, %v7002_v55  ;;  %v7727_v55 = vpop.f32.mrf.mxu2  ;;  %v14891_v19 = vpop.f32.mrf.mxu0 }
 0xb7b   : > { %v7663_v36 = vpop.f32.mrf.mxu1  ;;  %v7220_v17 = vmul.f32 0.01, %v7091_v60 }
 0xb7c   : > { %v7664_v24 = vadd.f32 %v7663_v36, %v7615_v22 }
 0xb7d   : > { %v7348_v15 = vmax.f32 %v7091_v60, %v7220_v17 }
 0xb7e   : > { %7858 = vmatmul.bf16.vlgmr.msrb.gmra.mxu1 %v14675_v28  ;;  %v7997_v52 = vmul.f32 0.01, %v7664_v24 }
 0xb7f   : > { %v7412_v56 = vpack.c.bf16 %v7348_v15, %v7344_v33 }
 0xb80   : > { %v7761_v35 = vpop.f32.mrf.mxu3  ;;  %7937 = vmatmul.bf16.gmra.mxu2 %v14631_v50  ;;  %v8061_v22 = vmax.f32 %v7664_v24, %v7997_v52  ;;  %v7718_v24 = vadd.f32 %v14827_v9, %v14868_v59 }
 0xb81   : > { %v14887_v26 = vadd.f32 %v7761_v35, %v7713_v29  ;;  %7948 = vmatpush.bf16.msrb.mxu3 %v7412_v56  ;;  %v14908_v17 = vpop.f32.mrf.mxu2 }
 0xb83   : > { %16745 = vst [vmem:[#allocation139_spill] sm:$0xff] %v14887_v26  ;;  %v7665_v53 = vpop.f32.mrf.mxu1 }
 0xb84   : > { %v7666_v62 = vadd.f32 %v7665_v53, %v7617_v14 }
 0xb85   : > { %7949 = vmatpush.bf16.msrb.mxu3 %v7408_v63  ;;  %v14902_v63 = vpop.permute.xlu1 %7462 }
 0xb86   : > { %v8001_v61 = vmul.f32 0.01, %v7666_v62  ;;  %v7622_v42 = vadd.f32 %v14782_v11, %v14902_v63  ;;  %v7625_v11 = vadd.f32 %v14798_v43, %v14889_v49  ;;  %v7627_v43 = vadd.f32 %v14817_v12, %v14855_v23 }
 0xb88   : > { %v8065_v18 = vmax.f32 %v7666_v62, %v8001_v61  ;;  %v14895_v46 = vpop.f32.mrf.mxu3 }
 0xb89   : > { %16747 = vst [vmem:[#allocation55_spill] sm:$0xff] %v14895_v46  ;;  %7950 = vmatpush.bf16.msrb.mxu3 %v14829_v3  ;;  %v14911_v3 = vpop.f32.mrf.mxu0 }
 0xb8a   : > { %v14897_v50 = vpack.c.bf16 %v8065_v18, %v8061_v22 }
 0xb8b   : > { %v7668_v60 = vpop.f32.mrf.mxu1 }
 0xb8c   : > { %16748 = vst [vmem:[#allocation69_spill] sm:$0xff] %v14897_v50  ;;  %v7669_v36 = vadd.f32 %v7668_v60, %v7620_v41 }
 0xb8d   : > { %7951 = vmatpush.bf16.msrb.mxu3 %v14802_v4 }
 0xb8e   : > { %7863 = vmatmul.bf16.gmra.mxu1 %v14696_v2  ;;  %v8005_v29 = vmul.f32 0.01, %v7669_v36 }
 0xb90   : > { %v7766_v33 = vpop.f32.mrf.mxu3  ;;  %7942 = vmatmul.bf16.gmra.mxu2 %v14653_v48  ;;  %v8069_v9 = vmax.f32 %v7669_v36, %v8005_v29  ;;  %v7728_v29 = vadd.f32 %v7727_v55, %v14838_v31 }
 0xb91   : > { %v14913_v15 = vadd.f32 %v7766_v33, %v7718_v24  ;;  %7952 = vmatpush.bf16.msrb.mxu3 %v14775_v6  ;;  %v14924_v6 = vpop.f32.mrf.mxu0 }
 0xb93   : > { %16749 = vst [vmem:[#allocation37_spill] sm:$0xff] %v14913_v15  ;;  %v7670_v4 = vpop.f32.mrf.mxu1 }
 0xb94   : > { %v7671_v56 = vadd.f32 %v7670_v4, %v7622_v42 }
 0xb95   : > { %7953 = vmatpush.bf16.msrb.mxu3 %v14753_v45  ;;  %v7723_v45 = vadd.f32 %v14865_v10, %v14889_v49 }
 0xb96   : > { %v8009_v14 = vmul.f32 0.01, %v7671_v56 }
 0xb98   : > { %v8073_v35 = vmax.f32 %v7671_v56, %v8009_v14  ;;  %v14919_v53 = vpop.f32.mrf.mxu3  ;;  %v7632_v14 = vadd.f32 %v14851_v25, %v14849_v21 }
 0xb99   : > { %16750 = vst [vmem:[#allocation20_spill] sm:$0xff] %v14919_v53  ;;  %7954 = vmatpush.bf16.msrb.mxu3 %v14731_v34  ;;  %v14935_v36 = vpop.f32.mrf.mxu0 }
 0xb9a   : > { %v14921_v48 = vpack.c.bf16 %v8073_v35, %v8069_v9 }
 0xb9b   : > { %v7673_v52 = vpop.f32.mrf.mxu1 }
 0xb9c   : > { %16751 = vst [vmem:[#allocation79_spill] sm:$0xff] %v14921_v48  ;;  %v7674_v62 = vadd.f32 %v7673_v52, %v7625_v11 }
 0xb9d   : > { %7955 = vmatpush.bf16.msrb.mxu3 %v14706_v47  ;;  %v7630_v47 = vadd.f32 %v14836_v51, %v14838_v31 }
 0xb9e   : > { %7868 = vmatmul.bf16.gmra.mxu1 %v14721_v39  ;;  %v8013_v18 = vmul.f32 0.01, %v7674_v62 }
 0xba0   : > { %v7771_v61 = vpop.f32.mrf.mxu3  ;;  %7956 = vmatmul.bf16.vlgmr.msrb.gmra.mxu3 %v14675_v28  ;;  %v8077_v24 = vmax.f32 %v7674_v62, %v8013_v18  ;;  %v7732_v28 = vpop.f32.mrf.mxu2 }
 0xba1   : > { %v14933_v22 = vadd.f32 %v7771_v61, %v7723_v45  ;;  %v7644_v56 = vpop.f32.mrf.mxu0  ;;  %v7635_v61 = vadd.f32 %v14891_v19, %v14832_v38 }
 0xba2   : > { %v7645_v26 = vadd.f32 %v7644_v56, %v14800_v32 }
 0xba3   : > { %16752 = vst [vmem:[#allocation18_spill] sm:$0xff] %v14933_v22  ;;  %v7675_v34 = vpop.f32.mrf.mxu1 }
 0xba4   : > { %v7676_v41 = vadd.f32 %v7675_v34, %v7627_v43 }
 0xba6   : > { %v8017_v60 = vmul.f32 0.01, %v7676_v41 }
 0xba8   : > { %v8081_v42 = vmax.f32 %v7676_v41, %v8017_v60  ;;  %v14939_v10 = vpop.f32.mrf.mxu3  ;;  %v14952_v34 = vpop.f32.mrf.mxu2  ;;  %v7733_v60 = vadd.f32 %v7732_v28, %v14832_v38 }
 0xba9   : > { %v7646_v25 = vpop.f32.mrf.mxu0 }
 0xbaa   : > { %v14941_v33 = vpack.c.bf16 %v8081_v42, %v8077_v24  ;;  %v7647_v49 = vadd.f32 %v7646_v25, %v14812_v13  ;;  %v7640_v25 = vadd.f32 %v14924_v6, %v14861_v44 }
 0xbab   : > { %v7678_v12 = vpop.f32.mrf.mxu1 }
 0xbac   : > { %16753 = vst [vmem:[#allocation46_spill] sm:$0xff] %v14941_v33  ;;  %v7679_v4 = vadd.f32 %v7678_v12, %v7630_v47  ;;  %v7642_v33 = vadd.f32 %v14935_v36, %v14821_v40 }
 0xbae   : > { %7873 = vmatmul.bf16.gmra.mxu1 %v14745_v1  ;;  %v8021_v11 = vmul.f32 0.01, %v7679_v4 }
 0xbb0   : > { %v7776_v9 = vpop.f32.mrf.mxu3  ;;  %7961 = vmatmul.bf16.gmra.mxu3 %v14696_v2  ;;  %v8085_v45 = vmax.f32 %v7679_v4, %v8021_v11  ;;  %v14965_v47 = vpop.f32.mrf.mxu2 }
 0xbb1   : > { %v14948_v35 = vadd.f32 %v7776_v9, %v7728_v29  ;;  %v7649_v12 = vpop.f32.mrf.mxu0 }
 0xbb3   : > { %16754 = vst [vmem:[#allocation72_spill] sm:$0xff] %v14948_v35  ;;  %v7680_v51 = vpop.f32.mrf.mxu1 }
 0xbb4   : > { %v7681_v52 = vadd.f32 %v7680_v51, %v7632_v14 }
 0xbb6   : > { %v8025_v62 = vmul.f32 0.01, %v7681_v52 }
 0xbb8   : > { %v8089_v43 = vmax.f32 %v7681_v52, %v8025_v62  ;;  %v14954_v55 = vpop.f32.mrf.mxu3  ;;  %v7739_v14 = vpop.f32.mrf.mxu2 }
 0xbb9   : > { %v7651_v9 = vpop.f32.mrf.mxu0 }
 0xbba   : > { %v14956_v18 = vpack.c.bf16 %v8089_v43, %v8085_v45  ;;  %v7652_v48 = vadd.f32 %v7651_v9, %v14842_v8 }
 0xbbb   : > { %v7683_v41 = vpop.f32.mrf.mxu1 }
 0xbbc   : > { %16755 = vst [vmem:[#allocation44_spill] sm:$0xff] %v14956_v18  ;;  %v14958_v2 = vadd.f32 %v7683_v41, %v7635_v61 }
 0xbbe   : > { %7878 = vmatmul.bf16.gmra.mxu1 %v14767_v7 }
 0xbc0   : > { %v7781_v24 = vpop.f32.mrf.mxu3  ;;  %7966 = vmatmul.bf16.gmra.mxu3 %v14721_v39  ;;  %v7742_v11 = vpop.f32.mrf.mxu2 }
 0xbc1   : > { %v14963_v42 = vadd.f32 %v7781_v24, %v7733_v60  ;;  %v7810_v39 = vpop.f32.mrf.mxu0 }
 0xbc3   : > { %v7685_v19 = vpop.f32.mrf.mxu1 }
 0xbc8   : > { %v14967_v4 = vpop.f32.mrf.mxu3  ;;  %v7744_v45 = vpop.f32.mrf.mxu2 }
 0xbc9   : > { %v14975_v61 = vpop.f32.mrf.mxu0 }
 0xbcb   : > { %v7688_v29 = vpop.f32.mrf.mxu1 }
 0xbce   : > { %7883 = vmatmul.bf16.gmra.mxu1 %v14787_v54 }
 0xbd0   : > { %v14970_v51 = vpop.f32.mrf.mxu3  ;;  %7971 = vmatmul.bf16.gmra.mxu3 %v14745_v1  ;;  %v7747_v38 = vpop.f32.mrf.mxu2  ;;  %v7650_v1 = vadd.f32 %v7649_v12, %v14793_v57 }
 0xbd1   : > { %v14977_v31 = vpop.f32.mrf.mxu0 }
 0xbd3   : > { %v7690_v28 = vpop.f32.mrf.mxu1 }
 0xbd4   : > { %v7691_v56 = vadd.f32 %v7690_v28, %v7642_v33  ;;  %v7811_v33 = vadd.f32 %v7810_v39, %v14870_v20 }
 0xbd6   : > { %v8041_v53 = vmul.f32 0.01, %v7691_v56 }
 0xbd8   : > { %v7788_v52 = vpop.f32.mrf.mxu3 }
 0xbdb   : > { %v7693_v62 = vpop.f32.mrf.mxu1 }
 0xbdc   : > { %v7694_v22 = vadd.f32 %v7693_v62, %v7645_v26  ;;  %v7689_v26 = vadd.f32 %v7688_v29, %v7640_v25 }
 0xbde   : > { %7888 = vmatmul.bf16.gmra.mxu1 %v14819_v27  ;;  %v8045_v62 = vmul.f32 0.01, %v7694_v22 }
 0xbe0   : > { %v7791_v43 = vpop.f32.mrf.mxu3  ;;  %7976 = vmatmul.bf16.gmra.mxu3 %v14767_v7 }
 0xbe3   : > { %v7695_v41 = vpop.f32.mrf.mxu1 }
 0xbe4   : > { %v7696_v7 = vadd.f32 %v7695_v41, %v7647_v49  ;;  %v7637_v49 = vadd.f32 %v14911_v3, %v14875_v30  ;;  %v14993_v41 = vpop.f32.mrf.mxu0 }
 0xbe8   : > { %v7793_v60 = vpop.f32.mrf.mxu3 }
 0xbeb   : > { %v7698_v24 = vpop.f32.mrf.mxu1 }
 0xbec   : > { %v7699_v50 = vadd.f32 %v7698_v24, %v7650_v1  ;;  %v7749_v24 = vpop.f32.mrf.mxu2  ;;  %v8049_v1 = vmul.f32 0.01, %v7696_v7 }
 0xbed   : > { %v7750_v6 = vadd.f32 %v7749_v24, %v14842_v8  ;;  %v8105_v24 = vmax.f32 %v7691_v56, %v8041_v53  ;;  %v7813_v53 = vadd.f32 %v14975_v61, %v14880_v37 }
 0xbee   : > { %7893 = vmatmul.bf16.gmra.mxu1 %v14847_v5  ;;  %v8053_v16 = vmul.f32 0.01, %v7699_v50  ;;  %v7748_v5 = vadd.f32 %v7747_v38, %v14793_v57  ;;  %v7743_v38 = vadd.f32 %v7742_v11, %v14800_v32  ;;  %v7686_v57 = vadd.f32 %v7685_v19, %v7637_v49 }
 0xbef   : > { %v8113_v18 = vmax.f32 %v7696_v7, %v8049_v1  ;;  %v7738_v11 = vadd.f32 %v14965_v47, %v14861_v44  ;;  %v7735_v7 = vadd.f32 %v14952_v34, %v14875_v30 }
 0xbf0   : > { %v7796_v15 = vpop.f32.mrf.mxu3  ;;  %7981 = vmatmul.bf16.gmra.mxu3 %v14787_v54  ;;  %v7745_v54 = vadd.f32 %v7744_v45, %v14812_v13  ;;  %v7740_v45 = vadd.f32 %v7739_v14, %v14821_v40  ;;  %v7792_v13 = vadd.f32 %v7791_v43, %v7743_v38  ;;  %v8033_v25 = vmul.f32 0.01, %v7686_v57 }
 0xbf1   : > { %v7797_v36 = vadd.f32 %v7796_v15, %v7748_v5  ;;  %v7787_v43 = vadd.f32 %v14970_v51, %v7738_v11  ;;  %v7784_v47 = vadd.f32 %v14967_v4, %v7735_v7  ;;  %v7730_v51 = vadd.f32 %v14908_v17, %v14849_v21 }
 0xbf2   : > { %v7794_v28 = vadd.f32 %v7793_v60, %v7745_v54  ;;  %v7789_v39 = vadd.f32 %v7788_v52, %v7740_v45  ;;  %v15005_v54 = vpop.f32.mrf.mxu0  ;;  %v8097_v34 = vmax.f32 %v7686_v57, %v8033_v25  ;;  %v7725_v17 = vadd.f32 %v14877_v0, %v14855_v23 }
 0xbf3   : > { %v7700_v46 = vpop.f32.mrf.mxu1  ;;  %v8054_v5 = vmul.f32 0.01, %v7797_v36  ;;  %v7779_v61 = vadd.f32 %v14954_v55, %v7730_v51  ;;  %v8034_v57 = vmul.f32 0.01, %v7784_v47  ;;  %v8030_v45 = vmul.f32 0.01, %v14963_v42 }
 0xbf4   : > { %v7701_v12 = vadd.f32 %v7700_v46, %v7652_v48  ;;  %v8117_v46 = vmax.f32 %v7699_v50, %v8053_v16  ;;  %v8037_v16 = vmul.f32 0.01, %v7689_v26  ;;  %v8109_v50 = vmax.f32 %v7694_v22, %v8045_v62  ;;  %v15013_v56 = vpop.f32.mrf.mxu2  ;;  %v16763_v51 = vld [vmem:[#allocation84_spill] sm:$0xff] }
 0xbf5   : > { %v8050_v60 = vmul.f32 0.01, %v7794_v28  ;;  %v8118_v1 = vmax.f32 %v7797_v36, %v8054_v5  ;;  %v8029_v22 = vmul.f32 0.01, %v14958_v2  ;;  %v8042_v52 = vmul.f32 0.01, %v7789_v39 }
 0xbf6   : > { %v8057_v9 = vmul.f32 0.01, %v7701_v12  ;;  %v8149_v14 = vpack.c.bf16 %v8113_v18, %v8109_v50  ;;  %v8101_v49 = vmax.f32 %v7689_v26, %v8037_v16  ;;  %v8038_v36 = vmul.f32 0.01, %v7787_v43 }
 0xbf7   : > { %v8114_v62 = vmax.f32 %v7794_v28, %v8050_v60  ;;  %v8093_v4 = vmax.f32 %v14958_v2, %v8029_v22  ;;  %v7774_v2 = vadd.f32 %v14939_v10, %v7725_v17  ;;  %v8098_v16 = vmax.f32 %v7784_v47, %v8034_v57  ;;  %v16756_v60 = vld [vmem:[#allocation72_spill] sm:$0xff]  ;;  %v16760_v22 = vld [vmem:[#allocation18_spill] sm:$0xff] }
 0xbf8   : > { %v8121_v48 = vmax.f32 %v7701_v12, %v8057_v9  ;;  %v7798_v35 = vpop.f32.mrf.mxu3  ;;  %v8145_v18 = vpack.c.bf16 %v8105_v24, %v8101_v49  ;;  %v7816_v50 = vadd.f32 %v14977_v31, %v14868_v59  ;;  %v7720_v0 = vadd.f32 %v14845_v58, %v14902_v63  ;;  %v16757_v10 = vld [vmem:[#allocation44_spill] sm:$0xff]  ;;  %v16761_v47 = vld [vmem:[#allocation46_spill] sm:$0xff] }
 0xbf9   : > { %v7799_v15 = vadd.f32 %v7798_v35, %v7750_v6  ;;  %v8046_v35 = vmul.f32 0.01, %v7792_v13  ;;  %v16758_v24 = vld [vmem:[#allocation20_spill] sm:$0xff]  ;;  %v8014_v49 = vmul.f32 0.01, %v16760_v22 }
 0xbfa   : > { %v8153_v3 = vpack.c.bf16 %v8121_v48, %v8117_v46  ;;  %v16759_v58 = vld [vmem:[#allocation92_spill] sm:$0xff] }
 0xbfb   : > { %v7859_v29 = vpop.f32.mrf.mxu1  ;;  %v8058_v19 = vmul.f32 0.01, %v7799_v15  ;;  %v8110_v26 = vmax.f32 %v7792_v13, %v8046_v35  ;;  %v8102_v13 = vmax.f32 %v7787_v43, %v8038_v36  ;;  %v8018_v43 = vmul.f32 0.01, %v7774_v2  ;;  %v16764_v36 = vld [vmem:[#allocation37_spill] sm:$0xff] }
 0xbfc   : > { %v7860_v12 = vadd.f32 %v7859_v29, %v7811_v33  ;;  %8164 = vmatpush.bf16.msra.mxu0 %v8153_v3  ;;  %v8106_v33 = vmax.f32 %v7789_v39, %v8042_v52  ;;  %v8141_v3 = vpack.c.bf16 %v8097_v34, %v8093_v4  ;;  %v8026_v29 = vmul.f32 0.01, %v7779_v61  ;;  %v7822_v39 = vpop.f32.mrf.mxu0  ;;  %v15031_v31 = vpop.f32.mrf.mxu2  ;;  %v16762_v52 = vld [vmem:[#allocation55_spill] sm:$0xff] }
 0xbfd   : > { %v8122_v9 = vmax.f32 %v7799_v15, %v8058_v19  ;;  %v8022_v19 = vmul.f32 0.01, %v16756_v60 }
 0xbfe   : > { %v7999_v38 = vmul.f32 0.01, %v7860_v12  ;;  %v8146_v55 = vpack.c.bf16 %v8106_v33, %v8102_v13  ;;  %v8090_v35 = vmax.f32 %v7779_v61, %v8026_v29  ;;  %v16765_v61 = vld [vmem:[#allocation79_spill] sm:$0xff]  ;;  %v15052_v29 = vld [vmem:[%s721_s21] sm:$0x3] }
 0xbff   : > { %v8154_v46 = vpack.c.bf16 %v8122_v9, %v8118_v1  ;;  %v7715_v9 = vadd.f32 %v16759_v58, %v14880_v37 }
 0xc00   : > { %8165 = vmatpush.bf16.msra.mxu0 %v8149_v14  ;;  %7986 = vmatmul.bf16.gmra.mxu3 %v14819_v27  ;;  %v8150_v27 = vpack.c.bf16 %v8114_v62, %v8110_v26  ;;  %v8063_v5 = vmax.f32 %v7860_v12, %v7999_v38  ;;  %v8094_v12 = vmax.f32 %v14963_v42, %v8030_v45  ;;  %v8006_v26 = vmul.f32 0.01, %v16764_v36 }
 0xc01   : > { %8177 = vmatpush.bf16.msra.mxu1 %v8154_v46  ;;  %v7769_v14 = vadd.f32 %v16758_v24, %v7720_v0  ;;  %v8086_v42 = vmax.f32 %v16756_v60, %v8022_v19  ;;  %v7764_v62 = vadd.f32 %v16762_v52, %v7715_v9  ;;  %v16770_v52 = vld [vmem:[#allocation131_spill] sm:$0xff] }
 0xc02   : > { %v8142_v1 = vpack.c.bf16 %v8098_v16, %v8094_v12  ;;  %v8070_v45 = vmax.f32 %v16764_v36, %v8006_v26 }
 0xc03   : > { %v7861_v48 = vpop.f32.mrf.mxu1  ;;  %v8010_v46 = vmul.f32 0.01, %v7769_v14  ;;  %v8138_v34 = vpack.c.bf16 %v8090_v35, %v8086_v42  ;;  %v8002_v57 = vmul.f32 0.01, %v7764_v62 }
 0xc04   : > { %v7862_v6 = vadd.f32 %v7861_v48, %v7813_v53  ;;  %8166 = vmatpush.bf16.msra.mxu0 %v8145_v18  ;;  %v8082_v53 = vmax.f32 %v7774_v2, %v8018_v43  ;;  %v7818_v18 = vadd.f32 %v14993_v41, %v14902_v63  ;;  %v8078_v48 = vmax.f32 %v16760_v22, %v8014_v49  ;;  %v7913_v13 = vpop.f32.mrf.mxu2  ;;  %v16768_v2 = vld [vmem:[#allocation69_spill] sm:$0xff] }
 0xc05   : > { %8178 = vmatpush.bf16.msra.mxu1 %v8150_v27  ;;  %v8074_v33 = vmax.f32 %v7769_v14, %v8010_v46  ;;  %v7825_v27 = vpop.f32.mrf.mxu0  ;;  %v8066_v16 = vmax.f32 %v7764_v62, %v8002_v57  ;;  %v7823_v14 = vadd.f32 %v7822_v39, %v14855_v23 }
 0xc06   : > { %v8003_v28 = vmul.f32 0.01, %v7862_v6  ;;  %v7826_v62 = vadd.f32 %v7825_v27, %v16770_v52 }
 0xc08   : > { %v8067_v15 = vmax.f32 %v7862_v6, %v8003_v28  ;;  %8167 = vmatpush.bf16.msra.mxu0 %v8141_v3  ;;  %v8134_v28 = vpack.c.bf16 %v8082_v53, %v8078_v48  ;;  %v16767_v3 = vld [vmem:[#allocation139_spill] sm:$0xff] }
 0xc09   : > { %8179 = vmatpush.bf16.msra.mxu1 %v8146_v55  ;;  %v7998_v17 = vmul.f32 0.01, %v16767_v3  ;;  %v8130_v55 = vpack.c.bf16 %v8074_v33, %v8070_v45  ;;  %v16771_v45 = vld [vmem:[#allocation88_spill] sm:$0xff] }
 0xc0a   : > { %v15023_v11 = vpack.c.bf16 %v8067_v15, %v8063_v5 }
 0xc0b   : > { %v7864_v7 = vpop.f32.mrf.mxu1  ;;  %v8062_v19 = vmax.f32 %v16767_v3, %v7998_v17 }
 0xc0c   : > { %v7865_v25 = vadd.f32 %v7864_v7, %v7816_v50  ;;  %8168 = vmatpush.bf16.msra.mxu0 %v16757_v10  ;;  %v16769_v50 = vld [vmem:[#allocation34_spill] sm:$0xff]  ;;  %v7915_v24 = vpop.f32.mrf.mxu2 }
 0xc0d   : > { %8180 = vmatpush.bf16.msra.mxu1 %v8142_v1  ;;  %v7821_v0 = vadd.f32 %v15005_v54, %v16769_v50  ;;  %v7827_v10 = vpop.f32.mrf.mxu0  ;;  %v7909_v54 = vadd.f32 %v15013_v56, %v14870_v20 }
 0xc0e   : > { %v8007_v38 = vmul.f32 0.01, %v7865_v25  ;;  %v7828_v26 = vadd.f32 %v7827_v10, %v14849_v21 }
 0xc10   : > { %8169 = vmatpush.bf16.msra.mxu0 %v16761_v47  ;;  %7991 = vmatmul.bf16.gmra.mxu3 %v16763_v51  ;;  %v8071_v5 = vmax.f32 %v7865_v25, %v8007_v38  ;;  %v8126_v25 = vpack.c.bf16 %v8066_v16, %v8062_v19  ;;  %v7916_v16 = vadd.f32 %v7915_v24, %v14902_v63 }
 0xc11   : > { %8181 = vmatpush.bf16.msra.mxu1 %v8138_v34  ;;  %v7911_v34 = vadd.f32 %v15031_v31, %v14880_v37 }
 0xc13   : > { %v7866_v4 = vpop.f32.mrf.mxu1 }
 0xc14   : > { %v7867_v6 = vadd.f32 %v7866_v4, %v7818_v18  ;;  %8170 = vmatpush.bf16.msra.mxu0 %v16765_v61  ;;  %v7918_v53 = vpop.f32.mrf.mxu2  ;;  %v7914_v61 = vadd.f32 %v7913_v13, %v14868_v59 }
 0xc15   : > { %8182 = vmatpush.bf16.msra.mxu1 %v8134_v28  ;;  %v7830_v47 = vpop.f32.mrf.mxu0 }
 0xc16   : > { %v8011_v41 = vmul.f32 0.01, %v7867_v6 }
 0xc18   : > { %v8075_v15 = vmax.f32 %v7867_v6, %v8011_v41  ;;  %8171 = vmatpush.bf16.msra.mxu0 %v16768_v2 }
 0xc19   : > { %8183 = vmatpush.bf16.msra.mxu1 %v8130_v55 }
 0xc1a   : > { %v15056_v60 = vpack.c.bf16 %v8075_v15, %v8071_v5  ;;  %v7831_v5 = vadd.f32 %v7830_v47, %v16771_v45 }
 0xc1b   : > { %v7869_v12 = vpop.f32.mrf.mxu1  ;;  %8172 = vmatmul.bf16.vlgmr.msra.gmra.mxu0 %v15052_v29 }
 0xc1c   : > { %v7870_v7 = vadd.f32 %v7869_v12, %v7821_v0  ;;  %v7920_v28 = vpop.f32.mrf.mxu2 }
 0xc1d   : > { %8184 = vmatpush.bf16.msra.mxu1 %v8126_v25  ;;  %v15070_v38 = vpop.f32.mrf.mxu0 }
 0xc1e   : > { %v8015_v35 = vmul.f32 0.01, %v7870_v7 }
 0xc20   : > { %8185 = vmatmul.bf16.vlgmr.msra.gmra.mxu1 %v15052_v29  ;;  %v8079_v49 = vmax.f32 %v7870_v7, %v8015_v35 }
 0xc23   : > { %v7871_v43 = vpop.f32.mrf.mxu1  ;;  %v7957_v58 = vpop.f32.mrf.mxu3 }
 0xc24   : > { %v7872_v1 = vadd.f32 %v7871_v43, %v7823_v14  ;;  %v7958_v22 = vadd.f32 %v7957_v58, %v7909_v54  ;;  %v7923_v12 = vpop.f32.mrf.mxu2  ;;  %v7919_v43 = vadd.f32 %v7918_v53, %v16769_v50 }
 0xc25   : > { %v15081_v59 = vpop.f32.mrf.mxu0  ;;  %v7924_v50 = vadd.f32 %v7923_v12, %v16770_v52 }
 0xc26   : > { %v8019_v9 = vmul.f32 0.01, %v7872_v1  ;;  %v8000_v20 = vmul.f32 0.01, %v7958_v22 }
 0xc28   : > { %v8083_v42 = vmax.f32 %v7872_v1, %v8019_v9  ;;  %v8064_v48 = vmax.f32 %v7958_v22, %v8000_v20  ;;  %v7921_v9 = vadd.f32 %v7920_v28, %v14855_v23 }
 0xc2a   : > { %v15065_v46 = vpack.c.bf16 %v8083_v42, %v8079_v49 }
 0xc2b   : > { %v7874_v39 = vpop.f32.mrf.mxu1  ;;  %v7959_v51 = vpop.f32.mrf.mxu3 }
 0xc2c   : > { %v7875_v18 = vadd.f32 %v7874_v39, %v7826_v62  ;;  %v7960_v56 = vadd.f32 %v7959_v51, %v7911_v34  ;;  %v7925_v24 = vpop.f32.mrf.mxu2 }
 0xc2d   : > { %v7837_v63 = vpop.f32.mrf.mxu0 }
 0xc2e   : > { %v8004_v36 = vmul.f32 0.01, %v7960_v56  ;;  %v8023_v57 = vmul.f32 0.01, %v7875_v18 }
 0xc30   : > { %v8068_v4 = vmax.f32 %v7960_v56, %v8004_v36  ;;  %v8087_v3 = vmax.f32 %v7875_v18, %v8023_v57 }
 0xc32   : > { %v15073_v27 = vpack.c.bf16 %v8068_v4, %v8064_v48  ;;  %v7926_v48 = vadd.f32 %v7925_v24, %v14849_v21 }
 0xc33   : > { %v7876_v6 = vpop.f32.mrf.mxu1  ;;  %v7962_v37 = vpop.f32.mrf.mxu3 }
 0xc34   : > { %v7877_v33 = vadd.f32 %v7876_v6, %v7828_v26  ;;  %v7963_v41 = vadd.f32 %v7962_v37, %v7914_v61  ;;  %v7928_v18 = vpop.f32.mrf.mxu2 }
 0xc35   : > { %v7840_v62 = vpop.f32.mrf.mxu0 }
 0xc36   : > { %v8027_v31 = vmul.f32 0.01, %v7877_v33  ;;  %v8008_v0 = vmul.f32 0.01, %v7963_v41 }
 0xc38   : > { %v8091_v17 = vmax.f32 %v7877_v33, %v8027_v31  ;;  %v8072_v25 = vmax.f32 %v7963_v41, %v8008_v0  ;;  %v7929_v31 = vadd.f32 %v7928_v18, %v16771_v45  ;;  %v7841_v45 = vadd.f32 %v7840_v62, %v14800_v32 }
 0xc39   : > { %v7833_v62 = vadd.f32 %v15070_v38, %v14875_v30 }
 0xc3a   : > { %v15076_v15 = vpack.c.bf16 %v8091_v17, %v8087_v3 }
 0xc3b   : > { %v7879_v2 = vpop.f32.mrf.mxu1  ;;  %v7964_v13 = vpop.f32.mrf.mxu3 }
 0xc3c   : > { %v15079_v55 = vadd.f32 %v7879_v2, %v7831_v5  ;;  %v7965_v19 = vadd.f32 %v7964_v13, %v7916_v16  ;;  %v15093_v23 = vpop.f32.mrf.mxu2  ;;  %v16772_v16 = vld [vmem:[#allocation21_spill] sm:$0xff] }
 0xc3d   : > { %v7842_v36 = vpop.f32.mrf.mxu0 }
 0xc3e   : > { %v8012_v7 = vmul.f32 0.01, %v7965_v19 }
 0xc40   : > { %v8076_v10 = vmax.f32 %v7965_v19, %v8012_v7  ;;  %v16773_v19 = vld [vmem:[#allocation28_spill] sm:$0xff] }
 0xc41   : > { %v7843_v12 = vadd.f32 %v7842_v36, %v16773_v19 }
 0xc42   : > { %v15086_v54 = vpack.c.bf16 %v8076_v10, %v8072_v25 }
 0xc43   : > { %v15083_v14 = vpop.f32.mrf.mxu1  ;;  %v7967_v35 = vpop.f32.mrf.mxu3 }
 0xc44   : > { %v7968_v1 = vadd.f32 %v7967_v35, %v7919_v43  ;;  %v15100_v5 = vpop.f32.mrf.mxu2 }
 0xc45   : > { %v7845_v41 = vpop.f32.mrf.mxu0 }
 0xc46   : > { %v8016_v49 = vmul.f32 0.01, %v7968_v1  ;;  %v7846_v13 = vadd.f32 %v7845_v41, %v16772_v16 }
 0xc48   : > { %v8080_v39 = vmax.f32 %v7968_v1, %v8016_v49  ;;  %v7838_v1 = vadd.f32 %v7837_v63, %v14821_v40  ;;  %v7882_v63 = vadd.f32 %v15083_v14, %v7833_v62  ;;  %v8219_v62 = vld.sshfl [vmem:[#allocation1] sm:$0xff pattern:$0x75316420] }
 0xc4b   : > { %v7884_v58 = vpop.f32.mrf.mxu1  ;;  %v7969_v22 = vpop.f32.mrf.mxu3 }
 0xc4c   : > { %v7970_v42 = vadd.f32 %v7969_v22, %v7921_v9  ;;  %v7935_v25 = vpop.f32.mrf.mxu2 }
 0xc4d   : > { %v7847_v0 = vpop.f32.mrf.mxu0 }
 0xc4e   : > { %v8020_v47 = vmul.f32 0.01, %v7970_v42  ;;  %v7848_v10 = vadd.f32 %v7847_v0, %v14842_v8 }
 0xc50   : > { %v8084_v34 = vmax.f32 %v7970_v42, %v8020_v47  ;;  %v7836_v42 = vadd.f32 %v15081_v59, %v14861_v44 }
 0xc52   : > { %v15090_v53 = vpack.c.bf16 %v8084_v34, %v8080_v39  ;;  %v7885_v18 = vadd.f32 %v7884_v58, %v7836_v42  ;;  %v8220_v42 = vld.sshfl [vmem:[#allocation1 + $0x8] sm:$0xff pattern:$0x75316420] }
 0xc53   : > { %v7886_v51 = vpop.f32.mrf.mxu1  ;;  %v7972_v20 = vpop.f32.mrf.mxu3 }
 0xc54   : > { %v7973_v56 = vadd.f32 %v7972_v20, %v7924_v50  ;;  %v7887_v47 = vadd.f32 %v7886_v51, %v7838_v1  ;;  %v8035_v51 = vmul.f32 0.01, %v7882_v63 }
 0xc56   : > { %v8024_v6 = vmul.f32 0.01, %v7973_v56  ;;  %v8043_v36 = vmul.f32 0.01, %v7887_v47  ;;  %v8099_v58 = vmax.f32 %v7882_v63, %v8035_v51 }
 0xc58   : > { %v8088_v33 = vmax.f32 %v7973_v56, %v8024_v6  ;;  %v8039_v6 = vmul.f32 0.01, %v7885_v18 }
 0xc5a   : > { %v8103_v38 = vmax.f32 %v7885_v18, %v8039_v6 }
 0xc5b   : > { %v7889_v26 = vpop.f32.mrf.mxu1  ;;  %v7974_v4 = vpop.f32.mrf.mxu3 }
 0xc5c   : > { %v7975_v61 = vadd.f32 %v7974_v4, %v7926_v48  ;;  %v7890_v24 = vadd.f32 %v7889_v26, %v7841_v45  ;;  %v7938_v4 = vpop.f32.mrf.mxu2 }
 0xc5e   : > { %v8028_v57 = vmul.f32 0.01, %v7975_v61  ;;  %v8047_v50 = vmul.f32 0.01, %v7890_v24 }
 0xc60   : > { %v8092_v28 = vmax.f32 %v7975_v61, %v8028_v57  ;;  %v8111_v61 = vmax.f32 %v7890_v24, %v8047_v50  ;;  %v8107_v57 = vmax.f32 %v7887_v47, %v8043_v36 }
 0xc62   : > { %v15096_v52 = vpack.c.bf16 %v8092_v28, %v8088_v33  ;;  %v8031_v28 = vmul.f32 0.01, %v15079_v55 }
 0xc63   : > { %v7891_v37 = vpop.f32.mrf.mxu1  ;;  %v7977_v3 = vpop.f32.mrf.mxu3 }
 0xc64   : > { %v15098_v17 = vadd.f32 %v7977_v3, %v7929_v31  ;;  %v7892_v43 = vadd.f32 %v7891_v37, %v7843_v12  ;;  %v8147_v37 = vpack.c.bf16 %v8107_v57, %v8103_v38  ;;  %v8095_v31 = vmax.f32 %v15079_v55, %v8031_v28  ;;  %v7940_v14 = vpop.f32.mrf.mxu2 }
 0xc65   : > { %v7941_v45 = vadd.f32 %v7940_v14, %v16773_v19  ;;  %v8222_v14 = vld.sshfl [vmem:[#allocation1 + $0x18] sm:$0xff pattern:$0x75316420] }
 0xc66   : > { %v8051_v39 = vmul.f32 0.01, %v7892_v43  ;;  %v8143_v3 = vpack.c.bf16 %v8099_v58, %v8095_v31 }
 0xc68   : > { %v8115_v26 = vmax.f32 %v7892_v43, %v8051_v39 }
 0xc6a   : > { %v8151_v33 = vpack.c.bf16 %v8115_v26, %v8111_v61 }
 0xc6b   : > { %v7894_v21 = vpop.f32.mrf.mxu1  ;;  %v15102_v2 = vpop.f32.mrf.mxu3 }
 0xc6c   : > { %v7895_v7 = vadd.f32 %v7894_v21, %v7846_v13  ;;  %v7943_v13 = vpop.f32.mrf.mxu2 }
 0xc6d   : > { %v7944_v12 = vadd.f32 %v7943_v13, %v16772_v16 }
 0xc6e   : > { %v8055_v9 = vmul.f32 0.01, %v7895_v7 }
 0xc70   : > { %v8119_v20 = vmax.f32 %v7895_v7, %v8055_v9  ;;  %v8162_v9 = vpop.permute.xlu1 %8161 }
 0xc73   : > { %v7896_v35 = vpop.f32.mrf.mxu1  ;;  %v15109_v49 = vpop.f32.mrf.mxu3 }
 0xc74   : > { %v7897_v22 = vadd.f32 %v7896_v35, %v7848_v10  ;;  %v7945_v55 = vpop.f32.mrf.mxu2 }
 0xc75   : > { %v7946_v43 = vadd.f32 %v7945_v55, %v14842_v8 }
 0xc76   : > { %v8059_v34 = vmul.f32 0.01, %v7897_v22 }
 0xc78   : > { %v8123_v56 = vmax.f32 %v7897_v22, %v8059_v34 }
 0xc7a   : > { %v8155_v48 = vpack.c.bf16 %v8123_v56, %v8119_v20 }
 0xc7b   : > { %v7984_v59 = vpop.f32.mrf.mxu3 }
 0xc7c   : > { %8190 = vmatpush.bf16.msra.mxu2 %v8155_v48 }
 0xc80   : > { %8191 = vmatpush.bf16.msra.mxu2 %v8151_v33 }
 0xc83   : > { %v7987_v41 = vpop.f32.mrf.mxu3 }
 0xc84   : > { %8192 = vmatpush.bf16.msra.mxu2 %v8147_v37 }
 0xc88   : > { %8193 = vmatpush.bf16.msra.mxu2 %v8143_v3  ;;  %v8221_v3 = vld.sshfl [vmem:[#allocation1 + $0x10] sm:$0xff pattern:$0x75316420] }
 0xc8b   : > { %v7989_v21 = vpop.f32.mrf.mxu3 }
 0xc8c   : > { %8194 = vmatpush.bf16.msra.mxu2 %v15076_v15  ;;  %v7939_v15 = vadd.f32 %v7938_v4, %v14800_v32  ;;  %v7990_v35 = vadd.f32 %v7989_v21, %v7941_v45 }
 0xc8e   : > { %v7988_v1 = vadd.f32 %v7987_v41, %v7939_v15  ;;  %v8052_v47 = vmul.f32 0.01, %v7990_v35 }
 0xc90   : > { %8195 = vmatpush.bf16.msra.mxu2 %v15065_v46  ;;  %v7936_v46 = vadd.f32 %v7935_v25, %v14821_v40  ;;  %v7931_v40 = vadd.f32 %v15093_v23, %v14875_v30  ;;  %v8048_v18 = vmul.f32 0.01, %v7988_v1  ;;  %v8116_v63 = vmax.f32 %v7990_v35, %v8052_v47 }
 0xc92   : > { %v7985_v22 = vadd.f32 %v7984_v59, %v7936_v46  ;;  %v8032_v59 = vmul.f32 0.01, %v15098_v17 }
 0xc93   : > { %v7992_v0 = vpop.f32.mrf.mxu3 }
 0xc94   : > { %8196 = vmatpush.bf16.msra.mxu2 %v15056_v60  ;;  %v7993_v10 = vadd.f32 %v7992_v0, %v7944_v12  ;;  %v8096_v28 = vmax.f32 %v15098_v17, %v8032_v59 }
 0xc96   : > { %v8056_v24 = vmul.f32 0.01, %v7993_v10 }
 0xc98   : > { %v8173_v7 = vpop.f32.mrf.mxu0  ;;  %8197 = vmatpush.bf16.msra.mxu2 %v15023_v11  ;;  %v7934_v11 = vadd.f32 %v15100_v5, %v14861_v44  ;;  %v8120_v50 = vmax.f32 %v7993_v10, %v8056_v24  ;;  %v7980_v44 = vadd.f32 %v15102_v2, %v7931_v40  ;;  %v8044_v5 = vmul.f32 0.01, %v7985_v22 }
 0xc99   : > { %v8174_v39 = vadd.f32 %v8173_v7, %v8162_v9 }
 0xc9a   : > { %v7983_v25 = vadd.f32 %v15109_v49, %v7934_v11  ;;  %v8112_v49 = vmax.f32 %v7988_v1, %v8048_v18  ;;  %v8036_v4 = vmul.f32 0.01, %v7980_v44  ;;  %v8108_v6 = vmax.f32 %v7985_v22, %v8044_v5 }
 0xc9b   : > { %8198 = vmatmul.bf16.vlgmr.msra.gmra.mxu2 %v15052_v29  ;;  %v7994_v60 = vpop.f32.mrf.mxu3  ;;  %v8227_v36 = vadd.f32 %v8219_v62, %v8174_v39 }
 0xc9c   : > { %v7995_v16 = vadd.f32 %v7994_v60, %v7946_v43  ;;  %v8040_v23 = vmul.f32 0.01, %v7983_v25  ;;  %v8152_v61 = vpack.c.bf16 %v8116_v63, %v8112_v49  ;;  %v8100_v57 = vmax.f32 %v7980_v44, %v8036_v4 }
 0xc9d   : > { %v8186_v19 = vpop.f32.mrf.mxu1 }
 0xc9e   : > { %v8060_v34 = vmul.f32 0.01, %v7995_v16  ;;  %v8187_v32 = vadd.f32 %v8186_v19, %v8162_v9  ;;  %v8104_v51 = vmax.f32 %v7983_v25, %v8040_v23  ;;  %v8144_v38 = vpack.c.bf16 %v8100_v57, %v8096_v28 }
 0xca0   : > { %v8175_v8 = vpop.f32.mrf.mxu0  ;;  %v8124_v20 = vmax.f32 %v7995_v16, %v8060_v34  ;;  %v8228_v56 = vadd.f32 %v8220_v42, %v8187_v32  ;;  %v8148_v33 = vpack.c.bf16 %v8108_v6, %v8104_v51 }
 0xca2   : > { %v8156_v26 = vpack.c.bf16 %v8124_v20, %v8120_v50  ;;  %v8235_v30 = vrot.slane %v8228_v56, 4 }
 0xca4   : > { %v8238_v48 = vsel %vm8237_vm2, %v8227_v36, %v8235_v30  ;;  %8203 = vmatpush.bf16.msra.mxu3 %v8156_v26 }
 0xca5   : > { %8242 = vst [vmem:[%s15139_s18] sm:$0x77] %v8238_v48  ;;  %v8188_v2 = vpop.f32.mrf.mxu1 }
 0xca8   : > { %8204 = vmatpush.bf16.msra.mxu3 %v8152_v61 }
 0xcac   : > { %8205 = vmatpush.bf16.msra.mxu3 %v8148_v33 }
 0xcb0   : > { %8206 = vmatpush.bf16.msra.mxu3 %v8144_v38 }
 0xcb4   : > { %8207 = vmatpush.bf16.msra.mxu3 %v15096_v52 }
 0xcb8   : > { %8208 = vmatpush.bf16.msra.mxu3 %v15090_v53 }
 0xcbc   : > { %8209 = vmatpush.bf16.msra.mxu3 %v15086_v54 }
 0xcc0   : > { %8210 = vmatpush.bf16.msra.mxu3 %v15073_v27 }
 0xcc3   : > { %8211 = vmatmul.bf16.vlgmr.msra.gmra.mxu3 %v15052_v29 }
 0xd1e   : > { %v8199_v58 = vpop.f32.mrf.mxu2 }
 0xd1f   : > { %v8200_v41 = vadd.f32 %v8199_v58, %v8162_v9 }
 0xd21   : > { %v8229_v13 = vadd.f32 %v8221_v3, %v8200_v41 }
 0xd26   : > { %v8201_v37 = vpop.f32.mrf.mxu2 }
 0xd46   : > { %v8212_v31 = vpop.f32.mrf.mxu3 }
 0xd47   : > { %v8213_v17 = vadd.f32 %v8212_v31, %v8162_v9 }
 0xd49   : > { %v8230_v21 = vadd.f32 %v8222_v14, %v8213_v17 }
 0xd4b   : > { %v8236_v0 = vrot.slane %v8230_v21, 4 }
 0xd4d   : > { %v8239_v52 = vsel %vm8237_vm2, %v8229_v13, %v8236_v0 }
 0xd4e   : > { %8243 = vst [vmem:[%s15139_s18 + $0x8] sm:$0x77] %v8239_v52  ;;  %v8214_v53 = vpop.f32.mrf.mxu3 }
 0xd4f PF: > { %s26_s30 = sadd.s32 1, %s9542_s30   ;;  %s16775_s28 = sld [smem:[#allocation5_spill]] }
 0xd50   : > { %p23_p0 = scmp.ge.s32.totalorder %s26_s30, 4   ;;  %s16776_s29 = sld [smem:[#allocation6_spill]] }
 0xd51   : > { %s16777_s25 = smov %s9526_s26  ;;  %s16778_s26 = smov %s9530_s27 }
 0xd52   : > { %s16779_s27 = smov %s9666_s20  ;;  %25 = sbr.rel (!%p23_p0) target bundleno = 8 (0x8), region = 150 }
 0xd57   :  { %8274 = vsyncpa [#allocation3], 1 }
 0xd58   :  { %8276 = vsyncpa [#allocation3 + $0x1], 1 }

</bundles_post_ra>
